<compile_context>
chip_gen: v5e
topology: v5e:2x2
jax: 0.10.0
libtpu: 0.0.40
codegen_flags: <defaults>
</compile_context>

<pallas_src>
import functools

import jax
import jax.numpy as jnp
from jax.experimental import pallas as pl
from jax.experimental.pallas import tpu as pltpu


def seq2seq_kernel(src_ref, ctx_ref, tgt_ref,
                   wih_ref, whh_ref, blstm_ref, wctx_ref,
                   emb_ref, wx_ref, wh_ref, bx_ref, bh_ref, wout_ref, bout_ref,
                   out_ref, loss_ref):
    f32, bf16 = jnp.float32, jnp.bfloat16
    Bs, S, D = src_ref.shape
    H = whh_ref.shape[0]
    O = emb_ref.shape[0]
    T = tgt_ref.shape[1]

    # ---- hoisted weight loads (already bf16), folded projections, bias broadcasts ----
    w_ih = wih_ref[...]                                    # (D, 4H)  bf16
    w_hh = whh_ref[...]                                    # (H, 4H)  bf16
    w_ctx = wctx_ref[...]                                  # (C, H)   bf16
    w_h = wh_ref[...]                                      # (H, 3H)  bf16
    w_out = wout_ref[...]                                  # (H, O)   bf16
    # fold decoder embedding + input projection once: (O,E)@(E,3H) -> (O,3H)
    emb_wx = jnp.dot(emb_ref[...], wx_ref[...],
                     preferred_element_type=f32).astype(bf16)
    b_out = jnp.broadcast_to(bout_ref[...], (Bs, O))       # (Bs, O)  f32

    # --------------------------- encoder: LSTM over S steps ---------------------------
    # Input projection hoisted out of the recurrence: one big matmul, M = Bs*S rows.
    src2 = src_ref[...].reshape(Bs * S, D).astype(bf16)
    xg = jnp.dot(src2, w_ih, preferred_element_type=f32)
    xg = (xg + jnp.broadcast_to(blstm_ref[...], (Bs * S, 4 * H))).reshape(Bs, S, 4 * H)

    h = jnp.zeros((Bs, H), f32)
    c = jnp.zeros((Bs, H), f32)
    for t in range(S):                                     # static unroll (S is small)
        gates = xg[:, t, :] + jnp.dot(h.astype(bf16), w_hh,
                                      preferred_element_type=f32)   # (Bs, 4H)
        sg = jax.nn.sigmoid(gates)                         # one full-width EUP push
        th = jnp.tanh(gates)                               # one full-width EUP push
        i_g = sg[:, 0 * H:1 * H]
        f_g = sg[:, 1 * H:2 * H]
        g_g = th[:, 2 * H:3 * H]
        o_g = sg[:, 3 * H:4 * H]
        c = f_g * c + i_g * g_g
        h = o_g * jnp.tanh(c)

    ctx = ctx_ref[...].astype(bf16)                                      # (Bs, C)
    h_enc = jnp.tanh(h + jnp.dot(ctx, w_ctx, preferred_element_type=f32))  # (Bs, H) f32

    # ------------------- decoder: GRU cell, greedy feedback over T --------------------
    # The reference loop never updates decoder_hidden, so its gate projection is constant
    # -> computed ONCE (hoisted), with the r/z input biases folded into the constant part.
    gh = (jnp.dot(h_enc.astype(bf16), w_h, preferred_element_type=f32)
          + jnp.broadcast_to(bh_ref[...], (Bs, 3 * H)))                  # (Bs, 3H)
    bx = jnp.broadcast_to(bx_ref[...], (Bs, 3 * H))
    off_rz = gh[:, 0:2 * H] + bx[:, 0:2 * H]               # constant r/z offset
    gh_n = gh[:, 2 * H:3 * H]                              # inside r * (.)
    bx_n = bx[:, 2 * H:3 * H]                              # outside r * (.)

    lane_o = jax.lax.broadcasted_iota(jnp.int32, (Bs, O), 1)
    tgt = tgt_ref[...]                                     # (Bs, T) int32
    tok = tgt[:, 0:1]                                      # decoder_input = target[:, 0]

    loss_acc = jnp.zeros((Bs, 1), f32)
    logits_slab = []                                       # per-step logits, stored once

    for t in range(T):                                     # static unroll (T is small)
        onehot = (lane_o == tok).astype(bf16)              # (Bs, O)
        gx = jnp.dot(onehot, emb_wx, preferred_element_type=f32)         # (Bs, 3H)
        rz = jax.nn.sigmoid(gx[:, 0:2 * H] + off_rz)       # one EUP push for r and z
        r = rz[:, 0:H]
        z = rz[:, H:2 * H]
        n = jnp.tanh(gx[:, 2 * H:3 * H] + bx_n + r * gh_n)
        h_dec = (1.0 - z) * n + z * h_enc                                 # (Bs, H)
        # NOTE: bf16 operands (f32 accumulation); switch w_out/h_dec to f32 here if strict
        # argmax parity with an f32 reference is required.
        logits = (jnp.dot(h_dec.astype(bf16), w_out, preferred_element_type=f32)
                  + b_out)                                                # (Bs, O) f32
        logits_slab.append(logits)

        # greedy next input (first-index argmax) + fused cross-entropy (reuses the max)
        m = jnp.max(logits, axis=1, keepdims=True)                        # (Bs, 1)
        tok = jnp.min(jnp.where(logits == m, lane_o, O), axis=1, keepdims=True)
        lse = m + jnp.log(jnp.sum(jnp.exp(logits - m), axis=1, keepdims=True))
        picked = jnp.sum(jnp.where(lane_o == tgt[:, t:t + 1], logits, 0.0),
                         axis=1, keepdims=True)
        loss_acc = loss_acc + (lse - picked)

    # one lane-dense (Bs, T*O) store -> unmasked vst + single HBM writeback
    out_ref[...] = jnp.concatenate(logits_slab, axis=1)
    # partial loss = sum over this shard's rows and all timesteps; wrapper divides by B
    loss_ref[...] = jnp.sum(loss_acc).reshape(1, 1)


# ----------------------------------- Wrapper ------------------------------------------
def lstm_seq2seq_forward(source_bsd, context, target_bt, params):
    """source: (B,S,D) f32, context: (B,C) f32, target: (B,T) int.
    Returns (outputs (B,T,O) f32, loss scalar) — matching the PyTorch forward."""
    B, S, D = source_bsd.shape
    C = context.shape[1]
    T = target_bt.shape[1]
    O = params["Wout"].shape[1]

    # Batch-shard only on 2-TensorCore parts (v4/v5p/v7x) and only when each shard still
    # fills >= 8 f32 sublanes; on v5e/v6e (1 TC) a 2-step grid is just a serial loop.
    kind = jax.devices()[0].device_kind.lower()
    two_tc = any(tag in kind for tag in ("v4", "v5p", "v7"))
    n_shards = 2 if (two_tc and B % 2 == 0 and (B // 2) >= 8) else 1
    Bs = B // n_shards

    bf16 = jnp.bfloat16
    # pre-cast matmul weights ONCE (halves weight DMA bytes, no per-call in-kernel casts)
    w_ih = params["W_ih"].astype(bf16)
    w_hh = params["W_hh"].astype(bf16)
    w_ctx = params["W_ctx"].astype(bf16)
    emb = params["emb"].astype(bf16)
    w_x = params["Wx"].astype(bf16)
    w_h = params["Wh"].astype(bf16)
    w_out = params["Wout"].astype(bf16)
    b_lstm, b_x, b_h, b_out = (params["b_lstm"], params["bx"],
                               params["bh"], params["bout"])

    tgt = target_bt.astype(jnp.int32)
    weights = [w_ih, w_hh, b_lstm, w_ctx, emb, w_x, w_h, b_x, b_h, w_out, b_out]

    def full_spec(a):
        nd = a.ndim
        return pl.BlockSpec(a.shape, lambda i, _nd=nd: (0,) * _nd)

    out_flat, loss_parts = pl.pallas_call(
        seq2seq_kernel,
        out_shape=(jax.ShapeDtypeStruct((B, T * O), jnp.float32),   # lane-dense logits
                   jax.ShapeDtypeStruct((n_shards, 1), jnp.float32)),
        grid=(n_shards,),
        in_specs=[pl.BlockSpec((Bs, S, D), lambda i: (i, 0, 0)),
                  pl.BlockSpec((Bs, C), lambda i: (i, 0)),
                  pl.BlockSpec((Bs, T), lambda i: (i, 0))]
                 + [full_spec(w) for w in weights],
        out_specs=(pl.BlockSpec((Bs, T * O), lambda i: (i, 0)),
                   pl.BlockSpec((1, 1), lambda i: (i, 0))),
        compiler_params=pltpu.CompilerParams(dimension_semantics=("parallel",)),
    )(source_bsd, context, tgt, *weights)

    outputs = out_flat.reshape(B, T, O)              # free, row-major
    loss = jnp.sum(loss_parts) / jnp.float32(B)      # sum_t of per-step batch means
    return outputs, loss


def init_params(key, D_in, C, H, E, O):
    ks = jax.random.split(key, 9)
    s = 0.1
    return {
        "W_ih": s * jax.random.normal(ks[0], (D_in, 4 * H), jnp.float32),
        "W_hh": s * jax.random.normal(ks[1], (H, 4 * H), jnp.float32),
        "b_lstm": s * jax.random.normal(ks[2], (1, 4 * H), jnp.float32),
        "W_ctx": s * jax.random.normal(ks[3], (C, H), jnp.float32),
        "emb": s * jax.random.normal(ks[4], (O, E), jnp.float32),
        "Wx": s * jax.random.normal(ks[5], (E, 3 * H), jnp.float32),
        "Wh": s * jax.random.normal(ks[6], (H, 3 * H), jnp.float32),
        "bx": jnp.zeros((1, 3 * H), jnp.float32),
        "bh": jnp.zeros((1, 3 * H), jnp.float32),
        "Wout": s * jax.random.normal(ks[7], (H, O), jnp.float32),
        "bout": s * jax.random.normal(ks[8], (1, O), jnp.float32),
    }


if __name__ == "__main__":
    B, S, D_in, C, H, E, O, T = 8, 8, 16, 16, 32, 16, 16, 8

    key = jax.random.PRNGKey(0)
    k_src, k_ctx, k_tgt, k_par = jax.random.split(key, 4)

    source = jax.random.normal(k_src, (B, S, D_in), jnp.float32)
    context = jax.random.normal(k_ctx, (B, C), jnp.float32)
    target = jax.random.randint(k_tgt, (B, T), 0, O, jnp.int32)
    params = init_params(k_par, D_in, C, H, E, O)

    fwd = jax.jit(functools.partial(lstm_seq2seq_forward, params=params))
    outputs, loss = fwd(source, context, target)
    jax.block_until_ready((outputs, loss))

    assert outputs.shape == (B, T, O)
    assert outputs.dtype == jnp.float32
    assert bool(jnp.isfinite(loss))
    print("KERNEL_OK")
</pallas_src>

<mosaic_0001>
module attributes {stable_mosaic.version = 11 : i64} {
  func.func @seq2seq_kernel(%arg0: i32, %arg1: memref<8x8x16xf32, #tpu.memory_space<vmem>>, %arg2: memref<8x16xf32, #tpu.memory_space<vmem>>, %arg3: memref<8x8xi32, #tpu.memory_space<vmem>>, %arg4: memref<16x128xbf16, #tpu.memory_space<vmem>>, %arg5: memref<32x128xbf16, #tpu.memory_space<vmem>>, %arg6: memref<1x128xf32, #tpu.memory_space<vmem>>, %arg7: memref<16x32xbf16, #tpu.memory_space<vmem>>, %arg8: memref<16x16xbf16, #tpu.memory_space<vmem>>, %arg9: memref<16x96xbf16, #tpu.memory_space<vmem>>, %arg10: memref<32x96xbf16, #tpu.memory_space<vmem>>, %arg11: memref<1x96xf32, #tpu.memory_space<vmem>>, %arg12: memref<1x96xf32, #tpu.memory_space<vmem>>, %arg13: memref<32x16xbf16, #tpu.memory_space<vmem>>, %arg14: memref<1x16xf32, #tpu.memory_space<vmem>>, %arg15: memref<8x128xf32, #tpu.memory_space<vmem>>, %arg16: memref<1x1xf32, #tpu.memory_space<vmem>>) attributes {dimension_semantics = [#tpu.dimension_semantics<parallel>], iteration_bounds = array<i64: 1>, scalar_prefetch = 0 : i64, scratch_operands = 0 : i64, tpu.core_type = #tpu.core_type<tc>, window_params = [{transform_indices = @transform_0, window_bounds = array<i64: 8, 8, 16>}, {transform_indices = @transform_1, window_bounds = array<i64: 8, 16>}, {transform_indices = @transform_2, window_bounds = array<i64: 8, 8>}, {pipeline_mode = #tpu.pipeline_mode<synchronous>, transform_indices = @transform_3, window_bounds = array<i64: 16, 128>}, {pipeline_mode = #tpu.pipeline_mode<synchronous>, transform_indices = @transform_4, window_bounds = array<i64: 32, 128>}, {pipeline_mode = #tpu.pipeline_mode<synchronous>, transform_indices = @transform_5, window_bounds = array<i64: 1, 128>}, {pipeline_mode = #tpu.pipeline_mode<synchronous>, transform_indices = @transform_6, window_bounds = array<i64: 16, 32>}, {pipeline_mode = #tpu.pipeline_mode<synchronous>, transform_indices = @transform_7, window_bounds = array<i64: 16, 16>}, {pipeline_mode = #tpu.pipeline_mode<synchronous>, transform_indices = @transform_8, window_bounds = array<i64: 16, 96>}, {pipeline_mode = #tpu.pipeline_mode<synchronous>, transform_indices = @transform_9, window_bounds = array<i64: 32, 96>}, {pipeline_mode = #tpu.pipeline_mode<synchronous>, transform_indices = @transform_10, window_bounds = array<i64: 1, 96>}, {pipeline_mode = #tpu.pipeline_mode<synchronous>, transform_indices = @transform_11, window_bounds = array<i64: 1, 96>}, {pipeline_mode = #tpu.pipeline_mode<synchronous>, transform_indices = @transform_12, window_bounds = array<i64: 32, 16>}, {pipeline_mode = #tpu.pipeline_mode<synchronous>, transform_indices = @transform_13, window_bounds = array<i64: 1, 16>}, {transform_indices = @transform_14, window_bounds = array<i64: 8, 128>}, {transform_indices = @transform_15, window_bounds = array<i64: 1, 1>}]} {
    %c0 = arith.constant 0 : index
    %c0_0 = arith.constant 0 : index
    %0 = vector.load %arg4[%c0, %c0_0] : memref<16x128xbf16, #tpu.memory_space<vmem>>, vector<16x128xbf16>
    %c0_1 = arith.constant 0 : index
    %c0_2 = arith.constant 0 : index
    %1 = vector.load %arg5[%c0_1, %c0_2] : memref<32x128xbf16, #tpu.memory_space<vmem>>, vector<32x128xbf16>
    %c0_3 = arith.constant 0 : index
    %c0_4 = arith.constant 0 : index
    %2 = vector.load %arg7[%c0_3, %c0_4] : memref<16x32xbf16, #tpu.memory_space<vmem>>, vector<16x32xbf16>
    %c0_5 = arith.constant 0 : index
    %c0_6 = arith.constant 0 : index
    %3 = vector.load %arg10[%c0_5, %c0_6] : memref<32x96xbf16, #tpu.memory_space<vmem>>, vector<32x96xbf16>
    %c0_7 = arith.constant 0 : index
    %c0_8 = arith.constant 0 : index
    %4 = vector.load %arg13[%c0_7, %c0_8] : memref<32x16xbf16, #tpu.memory_space<vmem>>, vector<32x16xbf16>
    %c0_9 = arith.constant 0 : index
    %c0_10 = arith.constant 0 : index
    %5 = vector.load %arg8[%c0_9, %c0_10] : memref<16x16xbf16, #tpu.memory_space<vmem>>, vector<16x16xbf16>
    %c0_11 = arith.constant 0 : index
    %c0_12 = arith.constant 0 : index
    %6 = vector.load %arg9[%c0_11, %c0_12] : memref<16x96xbf16, #tpu.memory_space<vmem>>, vector<16x96xbf16>
    %cst = arith.constant dense<0.000000e+00> : vector<16x96xf32>
    %7 = tpu.matmul %5, %6, %cst {dimension_numbers = #tpu.dot_dimension_numbers<[1], [0], [0], [1], [0, 0, 1, 1], [], []>} : vector<16x16xbf16>, vector<16x96xbf16>, vector<16x96xf32> -> vector<16x96xf32>
    %8 = arith.truncf %7 : vector<16x96xf32> to vector<16x96xbf16>
    %c0_13 = arith.constant 0 : index
    %c0_14 = arith.constant 0 : index
    %9 = vector.load %arg14[%c0_13, %c0_14] : memref<1x16xf32, #tpu.memory_space<vmem>>, vector<1x16xf32>
    %10 = vector.shape_cast %9 : vector<1x16xf32> to vector<1x16xf32>
    %11 = vector.broadcast %10 : vector<1x16xf32> to vector<8x16xf32>
    %c0_15 = arith.constant 0 : index
    %c0_16 = arith.constant 0 : index
    %c0_17 = arith.constant 0 : index
    %12 = vector.load %arg1[%c0_15, %c0_16, %c0_17] : memref<8x8x16xf32, #tpu.memory_space<vmem>>, vector<8x8x16xf32>
    %13 = vector.shape_cast %12 : vector<8x8x16xf32> to vector<64x16xf32>
    %14 = arith.truncf %13 : vector<64x16xf32> to vector<64x16xbf16>
    %cst_18 = arith.constant dense<0.000000e+00> : vector<64x128xf32>
    %15 = tpu.matmul %14, %0, %cst_18 {dimension_numbers = #tpu.dot_dimension_numbers<[1], [0], [0], [1], [0, 0, 1, 1], [], []>} : vector<64x16xbf16>, vector<16x128xbf16>, vector<64x128xf32> -> vector<64x128xf32>
    %c0_19 = arith.constant 0 : index
    %c0_20 = arith.constant 0 : index
    %16 = vector.load %arg6[%c0_19, %c0_20] : memref<1x128xf32, #tpu.memory_space<vmem>>, vector<1x128xf32>
    %17 = vector.shape_cast %16 : vector<1x128xf32> to vector<1x128xf32>
    %18 = vector.broadcast %17 : vector<1x128xf32> to vector<64x128xf32>
    %19 = arith.addf %15, %18 : vector<64x128xf32>
    %20 = vector.shape_cast %19 : vector<64x128xf32> to vector<8x8x128xf32>
    %cst_21 = arith.constant 0.000000e+00 : f32
    %21 = vector.broadcast %cst_21 : f32 to vector<8x32xf32>
    %cst_22 = arith.constant 0.000000e+00 : f32
    %22 = vector.broadcast %cst_22 : f32 to vector<8x32xf32>
    %23 = vector.extract_strided_slice %20 {offsets = [0, 0, 0], sizes = [8, 1, 128], strides = [1, 1, 1]} : vector<8x8x128xf32> to vector<8x1x128xf32>
    %24 = vector.shape_cast %23 : vector<8x1x128xf32> to vector<8x128xf32>
    %25 = arith.truncf %21 : vector<8x32xf32> to vector<8x32xbf16>
    %cst_23 = arith.constant dense<0.000000e+00> : vector<8x128xf32>
    %26 = tpu.matmul %25, %1, %cst_23 {dimension_numbers = #tpu.dot_dimension_numbers<[1], [0], [0], [1], [0, 0, 1, 1], [], []>} : vector<8x32xbf16>, vector<32x128xbf16>, vector<8x128xf32> -> vector<8x128xf32>
    %27 = arith.addf %24, %26 : vector<8x128xf32>
    %28 = arith.negf %27 : vector<8x128xf32>
    %29 = math.exp %28 : vector<8x128xf32>
    %cst_24 = arith.constant 1.000000e+00 : f32
    %30 = vector.broadcast %cst_24 : f32 to vector<8x128xf32>
    %31 = arith.addf %30, %29 : vector<8x128xf32>
    %32 = arith.divf %30, %31 : vector<8x128xf32>
    %33 = math.tanh %27 : vector<8x128xf32>
    %34 = vector.extract_strided_slice %32 {offsets = [0, 0], sizes = [8, 32], strides = [1, 1]} : vector<8x128xf32> to vector<8x32xf32>
    %35 = vector.extract_strided_slice %32 {offsets = [0, 32], sizes = [8, 32], strides = [1, 1]} : vector<8x128xf32> to vector<8x32xf32>
    %36 = vector.extract_strided_slice %33 {offsets = [0, 64], sizes = [8, 32], strides = [1, 1]} : vector<8x128xf32> to vector<8x32xf32>
    %37 = vector.extract_strided_slice %32 {offsets = [0, 96], sizes = [8, 32], strides = [1, 1]} : vector<8x128xf32> to vector<8x32xf32>
    %38 = arith.mulf %35, %22 : vector<8x32xf32>
    %39 = arith.mulf %34, %36 : vector<8x32xf32>
    %40 = arith.addf %38, %39 : vector<8x32xf32>
    %41 = math.tanh %40 : vector<8x32xf32>
    %42 = arith.mulf %37, %41 : vector<8x32xf32>
    %43 = vector.extract_strided_slice %20 {offsets = [0, 1, 0], sizes = [8, 1, 128], strides = [1, 1, 1]} : vector<8x8x128xf32> to vector<8x1x128xf32>
    %44 = vector.shape_cast %43 : vector<8x1x128xf32> to vector<8x128xf32>
    %45 = arith.truncf %42 : vector<8x32xf32> to vector<8x32xbf16>
    %cst_25 = arith.constant dense<0.000000e+00> : vector<8x128xf32>
    %46 = tpu.matmul %45, %1, %cst_25 {dimension_numbers = #tpu.dot_dimension_numbers<[1], [0], [0], [1], [0, 0, 1, 1], [], []>} : vector<8x32xbf16>, vector<32x128xbf16>, vector<8x128xf32> -> vector<8x128xf32>
    %47 = arith.addf %44, %46 : vector<8x128xf32>
    %48 = arith.negf %47 : vector<8x128xf32>
    %49 = math.exp %48 : vector<8x128xf32>
    %cst_26 = arith.constant 1.000000e+00 : f32
    %50 = vector.broadcast %cst_26 : f32 to vector<8x128xf32>
    %51 = arith.addf %50, %49 : vector<8x128xf32>
    %52 = arith.divf %50, %51 : vector<8x128xf32>
    %53 = math.tanh %47 : vector<8x128xf32>
    %54 = vector.extract_strided_slice %52 {offsets = [0, 0], sizes = [8, 32], strides = [1, 1]} : vector<8x128xf32> to vector<8x32xf32>
    %55 = vector.extract_strided_slice %52 {offsets = [0, 32], sizes = [8, 32], strides = [1, 1]} : vector<8x128xf32> to vector<8x32xf32>
    %56 = vector.extract_strided_slice %53 {offsets = [0, 64], sizes = [8, 32], strides = [1, 1]} : vector<8x128xf32> to vector<8x32xf32>
    %57 = vector.extract_strided_slice %52 {offsets = [0, 96], sizes = [8, 32], strides = [1, 1]} : vector<8x128xf32> to vector<8x32xf32>
    %58 = arith.mulf %55, %40 : vector<8x32xf32>
    %59 = arith.mulf %54, %56 : vector<8x32xf32>
    %60 = arith.addf %58, %59 : vector<8x32xf32>
    %61 = math.tanh %60 : vector<8x32xf32>
    %62 = arith.mulf %57, %61 : vector<8x32xf32>
    %63 = vector.extract_strided_slice %20 {offsets = [0, 2, 0], sizes = [8, 1, 128], strides = [1, 1, 1]} : vector<8x8x128xf32> to vector<8x1x128xf32>
    %64 = vector.shape_cast %63 : vector<8x1x128xf32> to vector<8x128xf32>
    %65 = arith.truncf %62 : vector<8x32xf32> to vector<8x32xbf16>
    %cst_27 = arith.constant dense<0.000000e+00> : vector<8x128xf32>
    %66 = tpu.matmul %65, %1, %cst_27 {dimension_numbers = #tpu.dot_dimension_numbers<[1], [0], [0], [1], [0, 0, 1, 1], [], []>} : vector<8x32xbf16>, vector<32x128xbf16>, vector<8x128xf32> -> vector<8x128xf32>
    %67 = arith.addf %64, %66 : vector<8x128xf32>
    %68 = arith.negf %67 : vector<8x128xf32>
    %69 = math.exp %68 : vector<8x128xf32>
    %cst_28 = arith.constant 1.000000e+00 : f32
    %70 = vector.broadcast %cst_28 : f32 to vector<8x128xf32>
    %71 = arith.addf %70, %69 : vector<8x128xf32>
    %72 = arith.divf %70, %71 : vector<8x128xf32>
    %73 = math.tanh %67 : vector<8x128xf32>
    %74 = vector.extract_strided_slice %72 {offsets = [0, 0], sizes = [8, 32], strides = [1, 1]} : vector<8x128xf32> to vector<8x32xf32>
    %75 = vector.extract_strided_slice %72 {offsets = [0, 32], sizes = [8, 32], strides = [1, 1]} : vector<8x128xf32> to vector<8x32xf32>
    %76 = vector.extract_strided_slice %73 {offsets = [0, 64], sizes = [8, 32], strides = [1, 1]} : vector<8x128xf32> to vector<8x32xf32>
    %77 = vector.extract_strided_slice %72 {offsets = [0, 96], sizes = [8, 32], strides = [1, 1]} : vector<8x128xf32> to vector<8x32xf32>
    %78 = arith.mulf %75, %60 : vector<8x32xf32>
    %79 = arith.mulf %74, %76 : vector<8x32xf32>
    %80 = arith.addf %78, %79 : vector<8x32xf32>
    %81 = math.tanh %80 : vector<8x32xf32>
    %82 = arith.mulf %77, %81 : vector<8x32xf32>
    %83 = vector.extract_strided_slice %20 {offsets = [0, 3, 0], sizes = [8, 1, 128], strides = [1, 1, 1]} : vector<8x8x128xf32> to vector<8x1x128xf32>
    %84 = vector.shape_cast %83 : vector<8x1x128xf32> to vector<8x128xf32>
    %85 = arith.truncf %82 : vector<8x32xf32> to vector<8x32xbf16>
    %cst_29 = arith.constant dense<0.000000e+00> : vector<8x128xf32>
    %86 = tpu.matmul %85, %1, %cst_29 {dimension_numbers = #tpu.dot_dimension_numbers<[1], [0], [0], [1], [0, 0, 1, 1], [], []>} : vector<8x32xbf16>, vector<32x128xbf16>, vector<8x128xf32> -> vector<8x128xf32>
    %87 = arith.addf %84, %86 : vector<8x128xf32>
    %88 = arith.negf %87 : vector<8x128xf32>
    %89 = math.exp %88 : vector<8x128xf32>
    %cst_30 = arith.constant 1.000000e+00 : f32
    %90 = vector.broadcast %cst_30 : f32 to vector<8x128xf32>
    %91 = arith.addf %90, %89 : vector<8x128xf32>
    %92 = arith.divf %90, %91 : vector<8x128xf32>
    %93 = math.tanh %87 : vector<8x128xf32>
    %94 = vector.extract_strided_slice %92 {offsets = [0, 0], sizes = [8, 32], strides = [1, 1]} : vector<8x128xf32> to vector<8x32xf32>
    %95 = vector.extract_strided_slice %92 {offsets = [0, 32], sizes = [8, 32], strides = [1, 1]} : vector<8x128xf32> to vector<8x32xf32>
    %96 = vector.extract_strided_slice %93 {offsets = [0, 64], sizes = [8, 32], strides = [1, 1]} : vector<8x128xf32> to vector<8x32xf32>
    %97 = vector.extract_strided_slice %92 {offsets = [0, 96], sizes = [8, 32], strides = [1, 1]} : vector<8x128xf32> to vector<8x32xf32>
    %98 = arith.mulf %95, %80 : vector<8x32xf32>
    %99 = arith.mulf %94, %96 : vector<8x32xf32>
    %100 = arith.addf %98, %99 : vector<8x32xf32>
    %101 = math.tanh %100 : vector<8x32xf32>
    %102 = arith.mulf %97, %101 : vector<8x32xf32>
    %103 = vector.extract_strided_slice %20 {offsets = [0, 4, 0], sizes = [8, 1, 128], strides = [1, 1, 1]} : vector<8x8x128xf32> to vector<8x1x128xf32>
    %104 = vector.shape_cast %103 : vector<8x1x128xf32> to vector<8x128xf32>
    %105 = arith.truncf %102 : vector<8x32xf32> to vector<8x32xbf16>
    %cst_31 = arith.constant dense<0.000000e+00> : vector<8x128xf32>
    %106 = tpu.matmul %105, %1, %cst_31 {dimension_numbers = #tpu.dot_dimension_numbers<[1], [0], [0], [1], [0, 0, 1, 1], [], []>} : vector<8x32xbf16>, vector<32x128xbf16>, vector<8x128xf32> -> vector<8x128xf32>
    %107 = arith.addf %104, %106 : vector<8x128xf32>
    %108 = arith.negf %107 : vector<8x128xf32>
    %109 = math.exp %108 : vector<8x128xf32>
    %cst_32 = arith.constant 1.000000e+00 : f32
    %110 = vector.broadcast %cst_32 : f32 to vector<8x128xf32>
    %111 = arith.addf %110, %109 : vector<8x128xf32>
    %112 = arith.divf %110, %111 : vector<8x128xf32>
    %113 = math.tanh %107 : vector<8x128xf32>
    %114 = vector.extract_strided_slice %112 {offsets = [0, 0], sizes = [8, 32], strides = [1, 1]} : vector<8x128xf32> to vector<8x32xf32>
    %115 = vector.extract_strided_slice %112 {offsets = [0, 32], sizes = [8, 32], strides = [1, 1]} : vector<8x128xf32> to vector<8x32xf32>
    %116 = vector.extract_strided_slice %113 {offsets = [0, 64], sizes = [8, 32], strides = [1, 1]} : vector<8x128xf32> to vector<8x32xf32>
    %117 = vector.extract_strided_slice %112 {offsets = [0, 96], sizes = [8, 32], strides = [1, 1]} : vector<8x128xf32> to vector<8x32xf32>
    %118 = arith.mulf %115, %100 : vector<8x32xf32>
    %119 = arith.mulf %114, %116 : vector<8x32xf32>
    %120 = arith.addf %118, %119 : vector<8x32xf32>
    %121 = math.tanh %120 : vector<8x32xf32>
    %122 = arith.mulf %117, %121 : vector<8x32xf32>
    %123 = vector.extract_strided_slice %20 {offsets = [0, 5, 0], sizes = [8, 1, 128], strides = [1, 1, 1]} : vector<8x8x128xf32> to vector<8x1x128xf32>
    %124 = vector.shape_cast %123 : vector<8x1x128xf32> to vector<8x128xf32>
    %125 = arith.truncf %122 : vector<8x32xf32> to vector<8x32xbf16>
    %cst_33 = arith.constant dense<0.000000e+00> : vector<8x128xf32>
    %126 = tpu.matmul %125, %1, %cst_33 {dimension_numbers = #tpu.dot_dimension_numbers<[1], [0], [0], [1], [0, 0, 1, 1], [], []>} : vector<8x32xbf16>, vector<32x128xbf16>, vector<8x128xf32> -> vector<8x128xf32>
    %127 = arith.addf %124, %126 : vector<8x128xf32>
    %128 = arith.negf %127 : vector<8x128xf32>
    %129 = math.exp %128 : vector<8x128xf32>
    %cst_34 = arith.constant 1.000000e+00 : f32
    %130 = vector.broadcast %cst_34 : f32 to vector<8x128xf32>
    %131 = arith.addf %130, %129 : vector<8x128xf32>
    %132 = arith.divf %130, %131 : vector<8x128xf32>
    %133 = math.tanh %127 : vector<8x128xf32>
    %134 = vector.extract_strided_slice %132 {offsets = [0, 0], sizes = [8, 32], strides = [1, 1]} : vector<8x128xf32> to vector<8x32xf32>
    %135 = vector.extract_strided_slice %132 {offsets = [0, 32], sizes = [8, 32], strides = [1, 1]} : vector<8x128xf32> to vector<8x32xf32>
    %136 = vector.extract_strided_slice %133 {offsets = [0, 64], sizes = [8, 32], strides = [1, 1]} : vector<8x128xf32> to vector<8x32xf32>
    %137 = vector.extract_strided_slice %132 {offsets = [0, 96], sizes = [8, 32], strides = [1, 1]} : vector<8x128xf32> to vector<8x32xf32>
    %138 = arith.mulf %135, %120 : vector<8x32xf32>
    %139 = arith.mulf %134, %136 : vector<8x32xf32>
    %140 = arith.addf %138, %139 : vector<8x32xf32>
    %141 = math.tanh %140 : vector<8x32xf32>
    %142 = arith.mulf %137, %141 : vector<8x32xf32>
    %143 = vector.extract_strided_slice %20 {offsets = [0, 6, 0], sizes = [8, 1, 128], strides = [1, 1, 1]} : vector<8x8x128xf32> to vector<8x1x128xf32>
    %144 = vector.shape_cast %143 : vector<8x1x128xf32> to vector<8x128xf32>
    %145 = arith.truncf %142 : vector<8x32xf32> to vector<8x32xbf16>
    %cst_35 = arith.constant dense<0.000000e+00> : vector<8x128xf32>
    %146 = tpu.matmul %145, %1, %cst_35 {dimension_numbers = #tpu.dot_dimension_numbers<[1], [0], [0], [1], [0, 0, 1, 1], [], []>} : vector<8x32xbf16>, vector<32x128xbf16>, vector<8x128xf32> -> vector<8x128xf32>
    %147 = arith.addf %144, %146 : vector<8x128xf32>
    %148 = arith.negf %147 : vector<8x128xf32>
    %149 = math.exp %148 : vector<8x128xf32>
    %cst_36 = arith.constant 1.000000e+00 : f32
    %150 = vector.broadcast %cst_36 : f32 to vector<8x128xf32>
    %151 = arith.addf %150, %149 : vector<8x128xf32>
    %152 = arith.divf %150, %151 : vector<8x128xf32>
    %153 = math.tanh %147 : vector<8x128xf32>
    %154 = vector.extract_strided_slice %152 {offsets = [0, 0], sizes = [8, 32], strides = [1, 1]} : vector<8x128xf32> to vector<8x32xf32>
    %155 = vector.extract_strided_slice %152 {offsets = [0, 32], sizes = [8, 32], strides = [1, 1]} : vector<8x128xf32> to vector<8x32xf32>
    %156 = vector.extract_strided_slice %153 {offsets = [0, 64], sizes = [8, 32], strides = [1, 1]} : vector<8x128xf32> to vector<8x32xf32>
    %157 = vector.extract_strided_slice %152 {offsets = [0, 96], sizes = [8, 32], strides = [1, 1]} : vector<8x128xf32> to vector<8x32xf32>
    %158 = arith.mulf %155, %140 : vector<8x32xf32>
    %159 = arith.mulf %154, %156 : vector<8x32xf32>
    %160 = arith.addf %158, %159 : vector<8x32xf32>
    %161 = math.tanh %160 : vector<8x32xf32>
    %162 = arith.mulf %157, %161 : vector<8x32xf32>
    %163 = vector.extract_strided_slice %20 {offsets = [0, 7, 0], sizes = [8, 1, 128], strides = [1, 1, 1]} : vector<8x8x128xf32> to vector<8x1x128xf32>
    %164 = vector.shape_cast %163 : vector<8x1x128xf32> to vector<8x128xf32>
    %165 = arith.truncf %162 : vector<8x32xf32> to vector<8x32xbf16>
    %cst_37 = arith.constant dense<0.000000e+00> : vector<8x128xf32>
    %166 = tpu.matmul %165, %1, %cst_37 {dimension_numbers = #tpu.dot_dimension_numbers<[1], [0], [0], [1], [0, 0, 1, 1], [], []>} : vector<8x32xbf16>, vector<32x128xbf16>, vector<8x128xf32> -> vector<8x128xf32>
    %167 = arith.addf %164, %166 : vector<8x128xf32>
    %168 = arith.negf %167 : vector<8x128xf32>
    %169 = math.exp %168 : vector<8x128xf32>
    %cst_38 = arith.constant 1.000000e+00 : f32
    %170 = vector.broadcast %cst_38 : f32 to vector<8x128xf32>
    %171 = arith.addf %170, %169 : vector<8x128xf32>
    %172 = arith.divf %170, %171 : vector<8x128xf32>
    %173 = math.tanh %167 : vector<8x128xf32>
    %174 = vector.extract_strided_slice %172 {offsets = [0, 0], sizes = [8, 32], strides = [1, 1]} : vector<8x128xf32> to vector<8x32xf32>
    %175 = vector.extract_strided_slice %172 {offsets = [0, 32], sizes = [8, 32], strides = [1, 1]} : vector<8x128xf32> to vector<8x32xf32>
    %176 = vector.extract_strided_slice %173 {offsets = [0, 64], sizes = [8, 32], strides = [1, 1]} : vector<8x128xf32> to vector<8x32xf32>
    %177 = vector.extract_strided_slice %172 {offsets = [0, 96], sizes = [8, 32], strides = [1, 1]} : vector<8x128xf32> to vector<8x32xf32>
    %178 = arith.mulf %175, %160 : vector<8x32xf32>
    %179 = arith.mulf %174, %176 : vector<8x32xf32>
    %180 = arith.addf %178, %179 : vector<8x32xf32>
    %181 = math.tanh %180 : vector<8x32xf32>
    %182 = arith.mulf %177, %181 : vector<8x32xf32>
    %c0_39 = arith.constant 0 : index
    %c0_40 = arith.constant 0 : index
    %183 = vector.load %arg2[%c0_39, %c0_40] : memref<8x16xf32, #tpu.memory_space<vmem>>, vector<8x16xf32>
    %184 = arith.truncf %183 : vector<8x16xf32> to vector<8x16xbf16>
    %cst_41 = arith.constant dense<0.000000e+00> : vector<8x32xf32>
    %185 = tpu.matmul %184, %2, %cst_41 {dimension_numbers = #tpu.dot_dimension_numbers<[1], [0], [0], [1], [0, 0, 1, 1], [], []>} : vector<8x16xbf16>, vector<16x32xbf16>, vector<8x32xf32> -> vector<8x32xf32>
    %186 = arith.addf %182, %185 : vector<8x32xf32>
    %187 = math.tanh %186 : vector<8x32xf32>
    %188 = arith.truncf %187 : vector<8x32xf32> to vector<8x32xbf16>
    %cst_42 = arith.constant dense<0.000000e+00> : vector<8x96xf32>
    %189 = tpu.matmul %188, %3, %cst_42 {dimension_numbers = #tpu.dot_dimension_numbers<[1], [0], [0], [1], [0, 0, 1, 1], [], []>} : vector<8x32xbf16>, vector<32x96xbf16>, vector<8x96xf32> -> vector<8x96xf32>
    %c0_43 = arith.constant 0 : index
    %c0_44 = arith.constant 0 : index
    %190 = vector.load %arg12[%c0_43, %c0_44] : memref<1x96xf32, #tpu.memory_space<vmem>>, vector<1x96xf32>
    %191 = vector.shape_cast %190 : vector<1x96xf32> to vector<1x96xf32>
    %192 = vector.broadcast %191 : vector<1x96xf32> to vector<8x96xf32>
    %193 = arith.addf %189, %192 : vector<8x96xf32>
    %c0_45 = arith.constant 0 : index
    %c0_46 = arith.constant 0 : index
    %194 = vector.load %arg11[%c0_45, %c0_46] : memref<1x96xf32, #tpu.memory_space<vmem>>, vector<1x96xf32>
    %195 = vector.shape_cast %194 : vector<1x96xf32> to vector<1x96xf32>
    %196 = vector.broadcast %195 : vector<1x96xf32> to vector<8x96xf32>
    %197 = vector.extract_strided_slice %193 {offsets = [0, 0], sizes = [8, 64], strides = [1, 1]} : vector<8x96xf32> to vector<8x64xf32>
    %198 = vector.extract_strided_slice %196 {offsets = [0, 0], sizes = [8, 64], strides = [1, 1]} : vector<8x96xf32> to vector<8x64xf32>
    %199 = arith.addf %197, %198 : vector<8x64xf32>
    %200 = vector.extract_strided_slice %193 {offsets = [0, 64], sizes = [8, 32], strides = [1, 1]} : vector<8x96xf32> to vector<8x32xf32>
    %201 = vector.extract_strided_slice %196 {offsets = [0, 64], sizes = [8, 32], strides = [1, 1]} : vector<8x96xf32> to vector<8x32xf32>
    %202 = tpu.iota {dimensions = array<i32: 1>} : vector<8x16xi32>
    %c0_47 = arith.constant 0 : index
    %c0_48 = arith.constant 0 : index
    %203 = vector.load %arg3[%c0_47, %c0_48] : memref<8x8xi32, #tpu.memory_space<vmem>>, vector<8x8xi32>
    %204 = vector.extract_strided_slice %203 {offsets = [0, 0], sizes = [8, 1], strides = [1, 1]} : vector<8x8xi32> to vector<8x1xi32>
    %cst_49 = arith.constant 0.000000e+00 : f32
    %205 = vector.broadcast %cst_49 : f32 to vector<8x1xf32>
    %206 = vector.broadcast %204 : vector<8x1xi32> to vector<8x16xi32>
    %207 = arith.cmpi eq, %202, %206 : vector<8x16xi32>
    %208 = arith.extui %207 : vector<8x16xi1> to vector<8x16xi32>
    %209 = arith.sitofp %208 : vector<8x16xi32> to vector<8x16xf32>
    %210 = arith.truncf %209 : vector<8x16xf32> to vector<8x16xbf16>
    %cst_50 = arith.constant dense<0.000000e+00> : vector<8x96xf32>
    %211 = tpu.matmul %210, %8, %cst_50 {dimension_numbers = #tpu.dot_dimension_numbers<[1], [0], [0], [1], [0, 0, 1, 1], [], []>} : vector<8x16xbf16>, vector<16x96xbf16>, vector<8x96xf32> -> vector<8x96xf32>
    %212 = vector.extract_strided_slice %211 {offsets = [0, 0], sizes = [8, 64], strides = [1, 1]} : vector<8x96xf32> to vector<8x64xf32>
    %213 = arith.addf %212, %199 : vector<8x64xf32>
    %214 = arith.negf %213 : vector<8x64xf32>
    %215 = math.exp %214 : vector<8x64xf32>
    %cst_51 = arith.constant 1.000000e+00 : f32
    %216 = vector.broadcast %cst_51 : f32 to vector<8x64xf32>
    %217 = arith.addf %216, %215 : vector<8x64xf32>
    %218 = arith.divf %216, %217 : vector<8x64xf32>
    %219 = vector.extract_strided_slice %218 {offsets = [0, 0], sizes = [8, 32], strides = [1, 1]} : vector<8x64xf32> to vector<8x32xf32>
    %220 = vector.extract_strided_slice %218 {offsets = [0, 32], sizes = [8, 32], strides = [1, 1]} : vector<8x64xf32> to vector<8x32xf32>
    %221 = vector.extract_strided_slice %211 {offsets = [0, 64], sizes = [8, 32], strides = [1, 1]} : vector<8x96xf32> to vector<8x32xf32>
    %222 = arith.addf %221, %201 : vector<8x32xf32>
    %223 = arith.mulf %219, %200 : vector<8x32xf32>
    %224 = arith.addf %222, %223 : vector<8x32xf32>
    %225 = math.tanh %224 : vector<8x32xf32>
    %cst_52 = arith.constant 1.000000e+00 : f32
    %226 = vector.broadcast %cst_52 : f32 to vector<8x32xf32>
    %227 = arith.subf %226, %220 : vector<8x32xf32>
    %228 = arith.mulf %227, %225 : vector<8x32xf32>
    %229 = arith.mulf %220, %187 : vector<8x32xf32>
    %230 = arith.addf %228, %229 : vector<8x32xf32>
    %231 = arith.truncf %230 : vector<8x32xf32> to vector<8x32xbf16>
    %cst_53 = arith.constant dense<0.000000e+00> : vector<8x16xf32>
    %232 = tpu.matmul %231, %4, %cst_53 {dimension_numbers = #tpu.dot_dimension_numbers<[1], [0], [0], [1], [0, 0, 1, 1], [], []>} : vector<8x32xbf16>, vector<32x16xbf16>, vector<8x16xf32> -> vector<8x16xf32>
    %233 = arith.addf %232, %11 : vector<8x16xf32>
    %cst_54 = arith.constant dense<0xFF800000> : vector<8xf32>
    %234 = vector.multi_reduction <maximumf>, %233, %cst_54 [1] : vector<8x16xf32> to vector<8xf32>
    %235 = vector.shape_cast %234 : vector<8xf32> to vector<8x1xf32>
    %236 = vector.broadcast %235 : vector<8x1xf32> to vector<8x16xf32>
    %237 = arith.cmpf oeq, %233, %236 : vector<8x16xf32>
    %c16_i32 = arith.constant 16 : i32
    %238 = vector.broadcast %c16_i32 : i32 to vector<8x16xi32>
    %239 = arith.select %237, %202, %238 : vector<8x16xi1>, vector<8x16xi32>
    %cst_55 = arith.constant dense<2147483647> : vector<8xi32>
    %240 = vector.multi_reduction <minsi>, %239, %cst_55 [1] : vector<8x16xi32> to vector<8xi32>
    %241 = vector.shape_cast %240 : vector<8xi32> to vector<8x1xi32>
    %242 = vector.broadcast %235 : vector<8x1xf32> to vector<8x16xf32>
    %243 = arith.subf %233, %242 : vector<8x16xf32>
    %244 = math.exp %243 : vector<8x16xf32>
    %cst_56 = arith.constant dense<0.000000e+00> : vector<8xf32>
    %245 = vector.multi_reduction <add>, %244, %cst_56 [1] : vector<8x16xf32> to vector<8xf32>
    %246 = vector.shape_cast %245 : vector<8xf32> to vector<8x1xf32>
    %247 = math.log %246 : vector<8x1xf32>
    %248 = arith.addf %235, %247 : vector<8x1xf32>
    %249 = vector.extract_strided_slice %203 {offsets = [0, 0], sizes = [8, 1], strides = [1, 1]} : vector<8x8xi32> to vector<8x1xi32>
    %250 = vector.broadcast %249 : vector<8x1xi32> to vector<8x16xi32>
    %251 = arith.cmpi eq, %202, %250 : vector<8x16xi32>
    %cst_57 = arith.constant 0.000000e+00 : f32
    %252 = vector.broadcast %cst_57 : f32 to vector<8x16xf32>
    %253 = arith.select %251, %233, %252 : vector<8x16xi1>, vector<8x16xf32>
    %cst_58 = arith.constant dense<0.000000e+00> : vector<8xf32>
    %254 = vector.multi_reduction <add>, %253, %cst_58 [1] : vector<8x16xf32> to vector<8xf32>
    %255 = vector.shape_cast %254 : vector<8xf32> to vector<8x1xf32>
    %256 = arith.subf %248, %255 : vector<8x1xf32>
    %257 = arith.addf %205, %256 : vector<8x1xf32>
    %258 = vector.broadcast %241 : vector<8x1xi32> to vector<8x16xi32>
    %259 = arith.cmpi eq, %202, %258 : vector<8x16xi32>
    %260 = arith.extui %259 : vector<8x16xi1> to vector<8x16xi32>
    %261 = arith.sitofp %260 : vector<8x16xi32> to vector<8x16xf32>
    %262 = arith.truncf %261 : vector<8x16xf32> to vector<8x16xbf16>
    %cst_59 = arith.constant dense<0.000000e+00> : vector<8x96xf32>
    %263 = tpu.matmul %262, %8, %cst_59 {dimension_numbers = #tpu.dot_dimension_numbers<[1], [0], [0], [1], [0, 0, 1, 1], [], []>} : vector<8x16xbf16>, vector<16x96xbf16>, vector<8x96xf32> -> vector<8x96xf32>
    %264 = vector.extract_strided_slice %263 {offsets = [0, 0], sizes = [8, 64], strides = [1, 1]} : vector<8x96xf32> to vector<8x64xf32>
    %265 = arith.addf %264, %199 : vector<8x64xf32>
    %266 = arith.negf %265 : vector<8x64xf32>
    %267 = math.exp %266 : vector<8x64xf32>
    %cst_60 = arith.constant 1.000000e+00 : f32
    %268 = vector.broadcast %cst_60 : f32 to vector<8x64xf32>
    %269 = arith.addf %268, %267 : vector<8x64xf32>
    %270 = arith.divf %268, %269 : vector<8x64xf32>
    %271 = vector.extract_strided_slice %270 {offsets = [0, 0], sizes = [8, 32], strides = [1, 1]} : vector<8x64xf32> to vector<8x32xf32>
    %272 = vector.extract_strided_slice %270 {offsets = [0, 32], sizes = [8, 32], strides = [1, 1]} : vector<8x64xf32> to vector<8x32xf32>
    %273 = vector.extract_strided_slice %263 {offsets = [0, 64], sizes = [8, 32], strides = [1, 1]} : vector<8x96xf32> to vector<8x32xf32>
    %274 = arith.addf %273, %201 : vector<8x32xf32>
    %275 = arith.mulf %271, %200 : vector<8x32xf32>
    %276 = arith.addf %274, %275 : vector<8x32xf32>
    %277 = math.tanh %276 : vector<8x32xf32>
    %cst_61 = arith.constant 1.000000e+00 : f32
    %278 = vector.broadcast %cst_61 : f32 to vector<8x32xf32>
    %279 = arith.subf %278, %272 : vector<8x32xf32>
    %280 = arith.mulf %279, %277 : vector<8x32xf32>
    %281 = arith.mulf %272, %187 : vector<8x32xf32>
    %282 = arith.addf %280, %281 : vector<8x32xf32>
    %283 = arith.truncf %282 : vector<8x32xf32> to vector<8x32xbf16>
    %cst_62 = arith.constant dense<0.000000e+00> : vector<8x16xf32>
    %284 = tpu.matmul %283, %4, %cst_62 {dimension_numbers = #tpu.dot_dimension_numbers<[1], [0], [0], [1], [0, 0, 1, 1], [], []>} : vector<8x32xbf16>, vector<32x16xbf16>, vector<8x16xf32> -> vector<8x16xf32>
    %285 = arith.addf %284, %11 : vector<8x16xf32>
    %cst_63 = arith.constant dense<0xFF800000> : vector<8xf32>
    %286 = vector.multi_reduction <maximumf>, %285, %cst_63 [1] : vector<8x16xf32> to vector<8xf32>
    %287 = vector.shape_cast %286 : vector<8xf32> to vector<8x1xf32>
    %288 = vector.broadcast %287 : vector<8x1xf32> to vector<8x16xf32>
    %289 = arith.cmpf oeq, %285, %288 : vector<8x16xf32>
    %c16_i32_64 = arith.constant 16 : i32
    %290 = vector.broadcast %c16_i32_64 : i32 to vector<8x16xi32>
    %291 = arith.select %289, %202, %290 : vector<8x16xi1>, vector<8x16xi32>
    %cst_65 = arith.constant dense<2147483647> : vector<8xi32>
    %292 = vector.multi_reduction <minsi>, %291, %cst_65 [1] : vector<8x16xi32> to vector<8xi32>
    %293 = vector.shape_cast %292 : vector<8xi32> to vector<8x1xi32>
    %294 = vector.broadcast %287 : vector<8x1xf32> to vector<8x16xf32>
    %295 = arith.subf %285, %294 : vector<8x16xf32>
    %296 = math.exp %295 : vector<8x16xf32>
    %cst_66 = arith.constant dense<0.000000e+00> : vector<8xf32>
    %297 = vector.multi_reduction <add>, %296, %cst_66 [1] : vector<8x16xf32> to vector<8xf32>
    %298 = vector.shape_cast %297 : vector<8xf32> to vector<8x1xf32>
    %299 = math.log %298 : vector<8x1xf32>
    %300 = arith.addf %287, %299 : vector<8x1xf32>
    %301 = vector.extract_strided_slice %203 {offsets = [0, 1], sizes = [8, 1], strides = [1, 1]} : vector<8x8xi32> to vector<8x1xi32>
    %302 = vector.broadcast %301 : vector<8x1xi32> to vector<8x16xi32>
    %303 = arith.cmpi eq, %202, %302 : vector<8x16xi32>
    %cst_67 = arith.constant 0.000000e+00 : f32
    %304 = vector.broadcast %cst_67 : f32 to vector<8x16xf32>
    %305 = arith.select %303, %285, %304 : vector<8x16xi1>, vector<8x16xf32>
    %cst_68 = arith.constant dense<0.000000e+00> : vector<8xf32>
    %306 = vector.multi_reduction <add>, %305, %cst_68 [1] : vector<8x16xf32> to vector<8xf32>
    %307 = vector.shape_cast %306 : vector<8xf32> to vector<8x1xf32>
    %308 = arith.subf %300, %307 : vector<8x1xf32>
    %309 = arith.addf %257, %308 : vector<8x1xf32>
    %310 = vector.broadcast %293 : vector<8x1xi32> to vector<8x16xi32>
    %311 = arith.cmpi eq, %202, %310 : vector<8x16xi32>
    %312 = arith.extui %311 : vector<8x16xi1> to vector<8x16xi32>
    %313 = arith.sitofp %312 : vector<8x16xi32> to vector<8x16xf32>
    %314 = arith.truncf %313 : vector<8x16xf32> to vector<8x16xbf16>
    %cst_69 = arith.constant dense<0.000000e+00> : vector<8x96xf32>
    %315 = tpu.matmul %314, %8, %cst_69 {dimension_numbers = #tpu.dot_dimension_numbers<[1], [0], [0], [1], [0, 0, 1, 1], [], []>} : vector<8x16xbf16>, vector<16x96xbf16>, vector<8x96xf32> -> vector<8x96xf32>
    %316 = vector.extract_strided_slice %315 {offsets = [0, 0], sizes = [8, 64], strides = [1, 1]} : vector<8x96xf32> to vector<8x64xf32>
    %317 = arith.addf %316, %199 : vector<8x64xf32>
    %318 = arith.negf %317 : vector<8x64xf32>
    %319 = math.exp %318 : vector<8x64xf32>
    %cst_70 = arith.constant 1.000000e+00 : f32
    %320 = vector.broadcast %cst_70 : f32 to vector<8x64xf32>
    %321 = arith.addf %320, %319 : vector<8x64xf32>
    %322 = arith.divf %320, %321 : vector<8x64xf32>
    %323 = vector.extract_strided_slice %322 {offsets = [0, 0], sizes = [8, 32], strides = [1, 1]} : vector<8x64xf32> to vector<8x32xf32>
    %324 = vector.extract_strided_slice %322 {offsets = [0, 32], sizes = [8, 32], strides = [1, 1]} : vector<8x64xf32> to vector<8x32xf32>
    %325 = vector.extract_strided_slice %315 {offsets = [0, 64], sizes = [8, 32], strides = [1, 1]} : vector<8x96xf32> to vector<8x32xf32>
    %326 = arith.addf %325, %201 : vector<8x32xf32>
    %327 = arith.mulf %323, %200 : vector<8x32xf32>
    %328 = arith.addf %326, %327 : vector<8x32xf32>
    %329 = math.tanh %328 : vector<8x32xf32>
    %cst_71 = arith.constant 1.000000e+00 : f32
    %330 = vector.broadcast %cst_71 : f32 to vector<8x32xf32>
    %331 = arith.subf %330, %324 : vector<8x32xf32>
    %332 = arith.mulf %331, %329 : vector<8x32xf32>
    %333 = arith.mulf %324, %187 : vector<8x32xf32>
    %334 = arith.addf %332, %333 : vector<8x32xf32>
    %335 = arith.truncf %334 : vector<8x32xf32> to vector<8x32xbf16>
    %cst_72 = arith.constant dense<0.000000e+00> : vector<8x16xf32>
    %336 = tpu.matmul %335, %4, %cst_72 {dimension_numbers = #tpu.dot_dimension_numbers<[1], [0], [0], [1], [0, 0, 1, 1], [], []>} : vector<8x32xbf16>, vector<32x16xbf16>, vector<8x16xf32> -> vector<8x16xf32>
    %337 = arith.addf %336, %11 : vector<8x16xf32>
    %cst_73 = arith.constant dense<0xFF800000> : vector<8xf32>
    %338 = vector.multi_reduction <maximumf>, %337, %cst_73 [1] : vector<8x16xf32> to vector<8xf32>
    %339 = vector.shape_cast %338 : vector<8xf32> to vector<8x1xf32>
    %340 = vector.broadcast %339 : vector<8x1xf32> to vector<8x16xf32>
    %341 = arith.cmpf oeq, %337, %340 : vector<8x16xf32>
    %c16_i32_74 = arith.constant 16 : i32
    %342 = vector.broadcast %c16_i32_74 : i32 to vector<8x16xi32>
    %343 = arith.select %341, %202, %342 : vector<8x16xi1>, vector<8x16xi32>
    %cst_75 = arith.constant dense<2147483647> : vector<8xi32>
    %344 = vector.multi_reduction <minsi>, %343, %cst_75 [1] : vector<8x16xi32> to vector<8xi32>
    %345 = vector.shape_cast %344 : vector<8xi32> to vector<8x1xi32>
    %346 = vector.broadcast %339 : vector<8x1xf32> to vector<8x16xf32>
    %347 = arith.subf %337, %346 : vector<8x16xf32>
    %348 = math.exp %347 : vector<8x16xf32>
    %cst_76 = arith.constant dense<0.000000e+00> : vector<8xf32>
    %349 = vector.multi_reduction <add>, %348, %cst_76 [1] : vector<8x16xf32> to vector<8xf32>
    %350 = vector.shape_cast %349 : vector<8xf32> to vector<8x1xf32>
    %351 = math.log %350 : vector<8x1xf32>
    %352 = arith.addf %339, %351 : vector<8x1xf32>
    %353 = vector.extract_strided_slice %203 {offsets = [0, 2], sizes = [8, 1], strides = [1, 1]} : vector<8x8xi32> to vector<8x1xi32>
    %354 = vector.broadcast %353 : vector<8x1xi32> to vector<8x16xi32>
    %355 = arith.cmpi eq, %202, %354 : vector<8x16xi32>
    %cst_77 = arith.constant 0.000000e+00 : f32
    %356 = vector.broadcast %cst_77 : f32 to vector<8x16xf32>
    %357 = arith.select %355, %337, %356 : vector<8x16xi1>, vector<8x16xf32>
    %cst_78 = arith.constant dense<0.000000e+00> : vector<8xf32>
    %358 = vector.multi_reduction <add>, %357, %cst_78 [1] : vector<8x16xf32> to vector<8xf32>
    %359 = vector.shape_cast %358 : vector<8xf32> to vector<8x1xf32>
    %360 = arith.subf %352, %359 : vector<8x1xf32>
    %361 = arith.addf %309, %360 : vector<8x1xf32>
    %362 = vector.broadcast %345 : vector<8x1xi32> to vector<8x16xi32>
    %363 = arith.cmpi eq, %202, %362 : vector<8x16xi32>
    %364 = arith.extui %363 : vector<8x16xi1> to vector<8x16xi32>
    %365 = arith.sitofp %364 : vector<8x16xi32> to vector<8x16xf32>
    %366 = arith.truncf %365 : vector<8x16xf32> to vector<8x16xbf16>
    %cst_79 = arith.constant dense<0.000000e+00> : vector<8x96xf32>
    %367 = tpu.matmul %366, %8, %cst_79 {dimension_numbers = #tpu.dot_dimension_numbers<[1], [0], [0], [1], [0, 0, 1, 1], [], []>} : vector<8x16xbf16>, vector<16x96xbf16>, vector<8x96xf32> -> vector<8x96xf32>
    %368 = vector.extract_strided_slice %367 {offsets = [0, 0], sizes = [8, 64], strides = [1, 1]} : vector<8x96xf32> to vector<8x64xf32>
    %369 = arith.addf %368, %199 : vector<8x64xf32>
    %370 = arith.negf %369 : vector<8x64xf32>
    %371 = math.exp %370 : vector<8x64xf32>
    %cst_80 = arith.constant 1.000000e+00 : f32
    %372 = vector.broadcast %cst_80 : f32 to vector<8x64xf32>
    %373 = arith.addf %372, %371 : vector<8x64xf32>
    %374 = arith.divf %372, %373 : vector<8x64xf32>
    %375 = vector.extract_strided_slice %374 {offsets = [0, 0], sizes = [8, 32], strides = [1, 1]} : vector<8x64xf32> to vector<8x32xf32>
    %376 = vector.extract_strided_slice %374 {offsets = [0, 32], sizes = [8, 32], strides = [1, 1]} : vector<8x64xf32> to vector<8x32xf32>
    %377 = vector.extract_strided_slice %367 {offsets = [0, 64], sizes = [8, 32], strides = [1, 1]} : vector<8x96xf32> to vector<8x32xf32>
    %378 = arith.addf %377, %201 : vector<8x32xf32>
    %379 = arith.mulf %375, %200 : vector<8x32xf32>
    %380 = arith.addf %378, %379 : vector<8x32xf32>
    %381 = math.tanh %380 : vector<8x32xf32>
    %cst_81 = arith.constant 1.000000e+00 : f32
    %382 = vector.broadcast %cst_81 : f32 to vector<8x32xf32>
    %383 = arith.subf %382, %376 : vector<8x32xf32>
    %384 = arith.mulf %383, %381 : vector<8x32xf32>
    %385 = arith.mulf %376, %187 : vector<8x32xf32>
    %386 = arith.addf %384, %385 : vector<8x32xf32>
    %387 = arith.truncf %386 : vector<8x32xf32> to vector<8x32xbf16>
    %cst_82 = arith.constant dense<0.000000e+00> : vector<8x16xf32>
    %388 = tpu.matmul %387, %4, %cst_82 {dimension_numbers = #tpu.dot_dimension_numbers<[1], [0], [0], [1], [0, 0, 1, 1], [], []>} : vector<8x32xbf16>, vector<32x16xbf16>, vector<8x16xf32> -> vector<8x16xf32>
    %389 = arith.addf %388, %11 : vector<8x16xf32>
    %cst_83 = arith.constant dense<0xFF800000> : vector<8xf32>
    %390 = vector.multi_reduction <maximumf>, %389, %cst_83 [1] : vector<8x16xf32> to vector<8xf32>
    %391 = vector.shape_cast %390 : vector<8xf32> to vector<8x1xf32>
    %392 = vector.broadcast %391 : vector<8x1xf32> to vector<8x16xf32>
    %393 = arith.cmpf oeq, %389, %392 : vector<8x16xf32>
    %c16_i32_84 = arith.constant 16 : i32
    %394 = vector.broadcast %c16_i32_84 : i32 to vector<8x16xi32>
    %395 = arith.select %393, %202, %394 : vector<8x16xi1>, vector<8x16xi32>
    %cst_85 = arith.constant dense<2147483647> : vector<8xi32>
    %396 = vector.multi_reduction <minsi>, %395, %cst_85 [1] : vector<8x16xi32> to vector<8xi32>
    %397 = vector.shape_cast %396 : vector<8xi32> to vector<8x1xi32>
    %398 = vector.broadcast %391 : vector<8x1xf32> to vector<8x16xf32>
    %399 = arith.subf %389, %398 : vector<8x16xf32>
    %400 = math.exp %399 : vector<8x16xf32>
    %cst_86 = arith.constant dense<0.000000e+00> : vector<8xf32>
    %401 = vector.multi_reduction <add>, %400, %cst_86 [1] : vector<8x16xf32> to vector<8xf32>
    %402 = vector.shape_cast %401 : vector<8xf32> to vector<8x1xf32>
    %403 = math.log %402 : vector<8x1xf32>
    %404 = arith.addf %391, %403 : vector<8x1xf32>
    %405 = vector.extract_strided_slice %203 {offsets = [0, 3], sizes = [8, 1], strides = [1, 1]} : vector<8x8xi32> to vector<8x1xi32>
    %406 = vector.broadcast %405 : vector<8x1xi32> to vector<8x16xi32>
    %407 = arith.cmpi eq, %202, %406 : vector<8x16xi32>
    %cst_87 = arith.constant 0.000000e+00 : f32
    %408 = vector.broadcast %cst_87 : f32 to vector<8x16xf32>
    %409 = arith.select %407, %389, %408 : vector<8x16xi1>, vector<8x16xf32>
    %cst_88 = arith.constant dense<0.000000e+00> : vector<8xf32>
    %410 = vector.multi_reduction <add>, %409, %cst_88 [1] : vector<8x16xf32> to vector<8xf32>
    %411 = vector.shape_cast %410 : vector<8xf32> to vector<8x1xf32>
    %412 = arith.subf %404, %411 : vector<8x1xf32>
    %413 = arith.addf %361, %412 : vector<8x1xf32>
    %414 = vector.broadcast %397 : vector<8x1xi32> to vector<8x16xi32>
    %415 = arith.cmpi eq, %202, %414 : vector<8x16xi32>
    %416 = arith.extui %415 : vector<8x16xi1> to vector<8x16xi32>
    %417 = arith.sitofp %416 : vector<8x16xi32> to vector<8x16xf32>
    %418 = arith.truncf %417 : vector<8x16xf32> to vector<8x16xbf16>
    %cst_89 = arith.constant dense<0.000000e+00> : vector<8x96xf32>
    %419 = tpu.matmul %418, %8, %cst_89 {dimension_numbers = #tpu.dot_dimension_numbers<[1], [0], [0], [1], [0, 0, 1, 1], [], []>} : vector<8x16xbf16>, vector<16x96xbf16>, vector<8x96xf32> -> vector<8x96xf32>
    %420 = vector.extract_strided_slice %419 {offsets = [0, 0], sizes = [8, 64], strides = [1, 1]} : vector<8x96xf32> to vector<8x64xf32>
    %421 = arith.addf %420, %199 : vector<8x64xf32>
    %422 = arith.negf %421 : vector<8x64xf32>
    %423 = math.exp %422 : vector<8x64xf32>
    %cst_90 = arith.constant 1.000000e+00 : f32
    %424 = vector.broadcast %cst_90 : f32 to vector<8x64xf32>
    %425 = arith.addf %424, %423 : vector<8x64xf32>
    %426 = arith.divf %424, %425 : vector<8x64xf32>
    %427 = vector.extract_strided_slice %426 {offsets = [0, 0], sizes = [8, 32], strides = [1, 1]} : vector<8x64xf32> to vector<8x32xf32>
    %428 = vector.extract_strided_slice %426 {offsets = [0, 32], sizes = [8, 32], strides = [1, 1]} : vector<8x64xf32> to vector<8x32xf32>
    %429 = vector.extract_strided_slice %419 {offsets = [0, 64], sizes = [8, 32], strides = [1, 1]} : vector<8x96xf32> to vector<8x32xf32>
    %430 = arith.addf %429, %201 : vector<8x32xf32>
    %431 = arith.mulf %427, %200 : vector<8x32xf32>
    %432 = arith.addf %430, %431 : vector<8x32xf32>
    %433 = math.tanh %432 : vector<8x32xf32>
    %cst_91 = arith.constant 1.000000e+00 : f32
    %434 = vector.broadcast %cst_91 : f32 to vector<8x32xf32>
    %435 = arith.subf %434, %428 : vector<8x32xf32>
    %436 = arith.mulf %435, %433 : vector<8x32xf32>
    %437 = arith.mulf %428, %187 : vector<8x32xf32>
    %438 = arith.addf %436, %437 : vector<8x32xf32>
    %439 = arith.truncf %438 : vector<8x32xf32> to vector<8x32xbf16>
    %cst_92 = arith.constant dense<0.000000e+00> : vector<8x16xf32>
    %440 = tpu.matmul %439, %4, %cst_92 {dimension_numbers = #tpu.dot_dimension_numbers<[1], [0], [0], [1], [0, 0, 1, 1], [], []>} : vector<8x32xbf16>, vector<32x16xbf16>, vector<8x16xf32> -> vector<8x16xf32>
    %441 = arith.addf %440, %11 : vector<8x16xf32>
    %cst_93 = arith.constant dense<0xFF800000> : vector<8xf32>
    %442 = vector.multi_reduction <maximumf>, %441, %cst_93 [1] : vector<8x16xf32> to vector<8xf32>
    %443 = vector.shape_cast %442 : vector<8xf32> to vector<8x1xf32>
    %444 = vector.broadcast %443 : vector<8x1xf32> to vector<8x16xf32>
    %445 = arith.cmpf oeq, %441, %444 : vector<8x16xf32>
    %c16_i32_94 = arith.constant 16 : i32
    %446 = vector.broadcast %c16_i32_94 : i32 to vector<8x16xi32>
    %447 = arith.select %445, %202, %446 : vector<8x16xi1>, vector<8x16xi32>
    %cst_95 = arith.constant dense<2147483647> : vector<8xi32>
    %448 = vector.multi_reduction <minsi>, %447, %cst_95 [1] : vector<8x16xi32> to vector<8xi32>
    %449 = vector.shape_cast %448 : vector<8xi32> to vector<8x1xi32>
    %450 = vector.broadcast %443 : vector<8x1xf32> to vector<8x16xf32>
    %451 = arith.subf %441, %450 : vector<8x16xf32>
    %452 = math.exp %451 : vector<8x16xf32>
    %cst_96 = arith.constant dense<0.000000e+00> : vector<8xf32>
    %453 = vector.multi_reduction <add>, %452, %cst_96 [1] : vector<8x16xf32> to vector<8xf32>
    %454 = vector.shape_cast %453 : vector<8xf32> to vector<8x1xf32>
    %455 = math.log %454 : vector<8x1xf32>
    %456 = arith.addf %443, %455 : vector<8x1xf32>
    %457 = vector.extract_strided_slice %203 {offsets = [0, 4], sizes = [8, 1], strides = [1, 1]} : vector<8x8xi32> to vector<8x1xi32>
    %458 = vector.broadcast %457 : vector<8x1xi32> to vector<8x16xi32>
    %459 = arith.cmpi eq, %202, %458 : vector<8x16xi32>
    %cst_97 = arith.constant 0.000000e+00 : f32
    %460 = vector.broadcast %cst_97 : f32 to vector<8x16xf32>
    %461 = arith.select %459, %441, %460 : vector<8x16xi1>, vector<8x16xf32>
    %cst_98 = arith.constant dense<0.000000e+00> : vector<8xf32>
    %462 = vector.multi_reduction <add>, %461, %cst_98 [1] : vector<8x16xf32> to vector<8xf32>
    %463 = vector.shape_cast %462 : vector<8xf32> to vector<8x1xf32>
    %464 = arith.subf %456, %463 : vector<8x1xf32>
    %465 = arith.addf %413, %464 : vector<8x1xf32>
    %466 = vector.broadcast %449 : vector<8x1xi32> to vector<8x16xi32>
    %467 = arith.cmpi eq, %202, %466 : vector<8x16xi32>
    %468 = arith.extui %467 : vector<8x16xi1> to vector<8x16xi32>
    %469 = arith.sitofp %468 : vector<8x16xi32> to vector<8x16xf32>
    %470 = arith.truncf %469 : vector<8x16xf32> to vector<8x16xbf16>
    %cst_99 = arith.constant dense<0.000000e+00> : vector<8x96xf32>
    %471 = tpu.matmul %470, %8, %cst_99 {dimension_numbers = #tpu.dot_dimension_numbers<[1], [0], [0], [1], [0, 0, 1, 1], [], []>} : vector<8x16xbf16>, vector<16x96xbf16>, vector<8x96xf32> -> vector<8x96xf32>
    %472 = vector.extract_strided_slice %471 {offsets = [0, 0], sizes = [8, 64], strides = [1, 1]} : vector<8x96xf32> to vector<8x64xf32>
    %473 = arith.addf %472, %199 : vector<8x64xf32>
    %474 = arith.negf %473 : vector<8x64xf32>
    %475 = math.exp %474 : vector<8x64xf32>
    %cst_100 = arith.constant 1.000000e+00 : f32
    %476 = vector.broadcast %cst_100 : f32 to vector<8x64xf32>
    %477 = arith.addf %476, %475 : vector<8x64xf32>
    %478 = arith.divf %476, %477 : vector<8x64xf32>
    %479 = vector.extract_strided_slice %478 {offsets = [0, 0], sizes = [8, 32], strides = [1, 1]} : vector<8x64xf32> to vector<8x32xf32>
    %480 = vector.extract_strided_slice %478 {offsets = [0, 32], sizes = [8, 32], strides = [1, 1]} : vector<8x64xf32> to vector<8x32xf32>
    %481 = vector.extract_strided_slice %471 {offsets = [0, 64], sizes = [8, 32], strides = [1, 1]} : vector<8x96xf32> to vector<8x32xf32>
    %482 = arith.addf %481, %201 : vector<8x32xf32>
    %483 = arith.mulf %479, %200 : vector<8x32xf32>
    %484 = arith.addf %482, %483 : vector<8x32xf32>
    %485 = math.tanh %484 : vector<8x32xf32>
    %cst_101 = arith.constant 1.000000e+00 : f32
    %486 = vector.broadcast %cst_101 : f32 to vector<8x32xf32>
    %487 = arith.subf %486, %480 : vector<8x32xf32>
    %488 = arith.mulf %487, %485 : vector<8x32xf32>
    %489 = arith.mulf %480, %187 : vector<8x32xf32>
    %490 = arith.addf %488, %489 : vector<8x32xf32>
    %491 = arith.truncf %490 : vector<8x32xf32> to vector<8x32xbf16>
    %cst_102 = arith.constant dense<0.000000e+00> : vector<8x16xf32>
    %492 = tpu.matmul %491, %4, %cst_102 {dimension_numbers = #tpu.dot_dimension_numbers<[1], [0], [0], [1], [0, 0, 1, 1], [], []>} : vector<8x32xbf16>, vector<32x16xbf16>, vector<8x16xf32> -> vector<8x16xf32>
    %493 = arith.addf %492, %11 : vector<8x16xf32>
    %cst_103 = arith.constant dense<0xFF800000> : vector<8xf32>
    %494 = vector.multi_reduction <maximumf>, %493, %cst_103 [1] : vector<8x16xf32> to vector<8xf32>
    %495 = vector.shape_cast %494 : vector<8xf32> to vector<8x1xf32>
    %496 = vector.broadcast %495 : vector<8x1xf32> to vector<8x16xf32>
    %497 = arith.cmpf oeq, %493, %496 : vector<8x16xf32>
    %c16_i32_104 = arith.constant 16 : i32
    %498 = vector.broadcast %c16_i32_104 : i32 to vector<8x16xi32>
    %499 = arith.select %497, %202, %498 : vector<8x16xi1>, vector<8x16xi32>
    %cst_105 = arith.constant dense<2147483647> : vector<8xi32>
    %500 = vector.multi_reduction <minsi>, %499, %cst_105 [1] : vector<8x16xi32> to vector<8xi32>
    %501 = vector.shape_cast %500 : vector<8xi32> to vector<8x1xi32>
    %502 = vector.broadcast %495 : vector<8x1xf32> to vector<8x16xf32>
    %503 = arith.subf %493, %502 : vector<8x16xf32>
    %504 = math.exp %503 : vector<8x16xf32>
    %cst_106 = arith.constant dense<0.000000e+00> : vector<8xf32>
    %505 = vector.multi_reduction <add>, %504, %cst_106 [1] : vector<8x16xf32> to vector<8xf32>
    %506 = vector.shape_cast %505 : vector<8xf32> to vector<8x1xf32>
    %507 = math.log %506 : vector<8x1xf32>
    %508 = arith.addf %495, %507 : vector<8x1xf32>
    %509 = vector.extract_strided_slice %203 {offsets = [0, 5], sizes = [8, 1], strides = [1, 1]} : vector<8x8xi32> to vector<8x1xi32>
    %510 = vector.broadcast %509 : vector<8x1xi32> to vector<8x16xi32>
    %511 = arith.cmpi eq, %202, %510 : vector<8x16xi32>
    %cst_107 = arith.constant 0.000000e+00 : f32
    %512 = vector.broadcast %cst_107 : f32 to vector<8x16xf32>
    %513 = arith.select %511, %493, %512 : vector<8x16xi1>, vector<8x16xf32>
    %cst_108 = arith.constant dense<0.000000e+00> : vector<8xf32>
    %514 = vector.multi_reduction <add>, %513, %cst_108 [1] : vector<8x16xf32> to vector<8xf32>
    %515 = vector.shape_cast %514 : vector<8xf32> to vector<8x1xf32>
    %516 = arith.subf %508, %515 : vector<8x1xf32>
    %517 = arith.addf %465, %516 : vector<8x1xf32>
    %518 = vector.broadcast %501 : vector<8x1xi32> to vector<8x16xi32>
    %519 = arith.cmpi eq, %202, %518 : vector<8x16xi32>
    %520 = arith.extui %519 : vector<8x16xi1> to vector<8x16xi32>
    %521 = arith.sitofp %520 : vector<8x16xi32> to vector<8x16xf32>
    %522 = arith.truncf %521 : vector<8x16xf32> to vector<8x16xbf16>
    %cst_109 = arith.constant dense<0.000000e+00> : vector<8x96xf32>
    %523 = tpu.matmul %522, %8, %cst_109 {dimension_numbers = #tpu.dot_dimension_numbers<[1], [0], [0], [1], [0, 0, 1, 1], [], []>} : vector<8x16xbf16>, vector<16x96xbf16>, vector<8x96xf32> -> vector<8x96xf32>
    %524 = vector.extract_strided_slice %523 {offsets = [0, 0], sizes = [8, 64], strides = [1, 1]} : vector<8x96xf32> to vector<8x64xf32>
    %525 = arith.addf %524, %199 : vector<8x64xf32>
    %526 = arith.negf %525 : vector<8x64xf32>
    %527 = math.exp %526 : vector<8x64xf32>
    %cst_110 = arith.constant 1.000000e+00 : f32
    %528 = vector.broadcast %cst_110 : f32 to vector<8x64xf32>
    %529 = arith.addf %528, %527 : vector<8x64xf32>
    %530 = arith.divf %528, %529 : vector<8x64xf32>
    %531 = vector.extract_strided_slice %530 {offsets = [0, 0], sizes = [8, 32], strides = [1, 1]} : vector<8x64xf32> to vector<8x32xf32>
    %532 = vector.extract_strided_slice %530 {offsets = [0, 32], sizes = [8, 32], strides = [1, 1]} : vector<8x64xf32> to vector<8x32xf32>
    %533 = vector.extract_strided_slice %523 {offsets = [0, 64], sizes = [8, 32], strides = [1, 1]} : vector<8x96xf32> to vector<8x32xf32>
    %534 = arith.addf %533, %201 : vector<8x32xf32>
    %535 = arith.mulf %531, %200 : vector<8x32xf32>
    %536 = arith.addf %534, %535 : vector<8x32xf32>
    %537 = math.tanh %536 : vector<8x32xf32>
    %cst_111 = arith.constant 1.000000e+00 : f32
    %538 = vector.broadcast %cst_111 : f32 to vector<8x32xf32>
    %539 = arith.subf %538, %532 : vector<8x32xf32>
    %540 = arith.mulf %539, %537 : vector<8x32xf32>
    %541 = arith.mulf %532, %187 : vector<8x32xf32>
    %542 = arith.addf %540, %541 : vector<8x32xf32>
    %543 = arith.truncf %542 : vector<8x32xf32> to vector<8x32xbf16>
    %cst_112 = arith.constant dense<0.000000e+00> : vector<8x16xf32>
    %544 = tpu.matmul %543, %4, %cst_112 {dimension_numbers = #tpu.dot_dimension_numbers<[1], [0], [0], [1], [0, 0, 1, 1], [], []>} : vector<8x32xbf16>, vector<32x16xbf16>, vector<8x16xf32> -> vector<8x16xf32>
    %545 = arith.addf %544, %11 : vector<8x16xf32>
    %cst_113 = arith.constant dense<0xFF800000> : vector<8xf32>
    %546 = vector.multi_reduction <maximumf>, %545, %cst_113 [1] : vector<8x16xf32> to vector<8xf32>
    %547 = vector.shape_cast %546 : vector<8xf32> to vector<8x1xf32>
    %548 = vector.broadcast %547 : vector<8x1xf32> to vector<8x16xf32>
    %549 = arith.cmpf oeq, %545, %548 : vector<8x16xf32>
    %c16_i32_114 = arith.constant 16 : i32
    %550 = vector.broadcast %c16_i32_114 : i32 to vector<8x16xi32>
    %551 = arith.select %549, %202, %550 : vector<8x16xi1>, vector<8x16xi32>
    %cst_115 = arith.constant dense<2147483647> : vector<8xi32>
    %552 = vector.multi_reduction <minsi>, %551, %cst_115 [1] : vector<8x16xi32> to vector<8xi32>
    %553 = vector.shape_cast %552 : vector<8xi32> to vector<8x1xi32>
    %554 = vector.broadcast %547 : vector<8x1xf32> to vector<8x16xf32>
    %555 = arith.subf %545, %554 : vector<8x16xf32>
    %556 = math.exp %555 : vector<8x16xf32>
    %cst_116 = arith.constant dense<0.000000e+00> : vector<8xf32>
    %557 = vector.multi_reduction <add>, %556, %cst_116 [1] : vector<8x16xf32> to vector<8xf32>
    %558 = vector.shape_cast %557 : vector<8xf32> to vector<8x1xf32>
    %559 = math.log %558 : vector<8x1xf32>
    %560 = arith.addf %547, %559 : vector<8x1xf32>
    %561 = vector.extract_strided_slice %203 {offsets = [0, 6], sizes = [8, 1], strides = [1, 1]} : vector<8x8xi32> to vector<8x1xi32>
    %562 = vector.broadcast %561 : vector<8x1xi32> to vector<8x16xi32>
    %563 = arith.cmpi eq, %202, %562 : vector<8x16xi32>
    %cst_117 = arith.constant 0.000000e+00 : f32
    %564 = vector.broadcast %cst_117 : f32 to vector<8x16xf32>
    %565 = arith.select %563, %545, %564 : vector<8x16xi1>, vector<8x16xf32>
    %cst_118 = arith.constant dense<0.000000e+00> : vector<8xf32>
    %566 = vector.multi_reduction <add>, %565, %cst_118 [1] : vector<8x16xf32> to vector<8xf32>
    %567 = vector.shape_cast %566 : vector<8xf32> to vector<8x1xf32>
    %568 = arith.subf %560, %567 : vector<8x1xf32>
    %569 = arith.addf %517, %568 : vector<8x1xf32>
    %570 = vector.broadcast %553 : vector<8x1xi32> to vector<8x16xi32>
    %571 = arith.cmpi eq, %202, %570 : vector<8x16xi32>
    %572 = arith.extui %571 : vector<8x16xi1> to vector<8x16xi32>
    %573 = arith.sitofp %572 : vector<8x16xi32> to vector<8x16xf32>
    %574 = arith.truncf %573 : vector<8x16xf32> to vector<8x16xbf16>
    %cst_119 = arith.constant dense<0.000000e+00> : vector<8x96xf32>
    %575 = tpu.matmul %574, %8, %cst_119 {dimension_numbers = #tpu.dot_dimension_numbers<[1], [0], [0], [1], [0, 0, 1, 1], [], []>} : vector<8x16xbf16>, vector<16x96xbf16>, vector<8x96xf32> -> vector<8x96xf32>
    %576 = vector.extract_strided_slice %575 {offsets = [0, 0], sizes = [8, 64], strides = [1, 1]} : vector<8x96xf32> to vector<8x64xf32>
    %577 = arith.addf %576, %199 : vector<8x64xf32>
    %578 = arith.negf %577 : vector<8x64xf32>
    %579 = math.exp %578 : vector<8x64xf32>
    %cst_120 = arith.constant 1.000000e+00 : f32
    %580 = vector.broadcast %cst_120 : f32 to vector<8x64xf32>
    %581 = arith.addf %580, %579 : vector<8x64xf32>
    %582 = arith.divf %580, %581 : vector<8x64xf32>
    %583 = vector.extract_strided_slice %582 {offsets = [0, 0], sizes = [8, 32], strides = [1, 1]} : vector<8x64xf32> to vector<8x32xf32>
    %584 = vector.extract_strided_slice %582 {offsets = [0, 32], sizes = [8, 32], strides = [1, 1]} : vector<8x64xf32> to vector<8x32xf32>
    %585 = vector.extract_strided_slice %575 {offsets = [0, 64], sizes = [8, 32], strides = [1, 1]} : vector<8x96xf32> to vector<8x32xf32>
    %586 = arith.addf %585, %201 : vector<8x32xf32>
    %587 = arith.mulf %583, %200 : vector<8x32xf32>
    %588 = arith.addf %586, %587 : vector<8x32xf32>
    %589 = math.tanh %588 : vector<8x32xf32>
    %cst_121 = arith.constant 1.000000e+00 : f32
    %590 = vector.broadcast %cst_121 : f32 to vector<8x32xf32>
    %591 = arith.subf %590, %584 : vector<8x32xf32>
    %592 = arith.mulf %591, %589 : vector<8x32xf32>
    %593 = arith.mulf %584, %187 : vector<8x32xf32>
    %594 = arith.addf %592, %593 : vector<8x32xf32>
    %595 = arith.truncf %594 : vector<8x32xf32> to vector<8x32xbf16>
    %cst_122 = arith.constant dense<0.000000e+00> : vector<8x16xf32>
    %596 = tpu.matmul %595, %4, %cst_122 {dimension_numbers = #tpu.dot_dimension_numbers<[1], [0], [0], [1], [0, 0, 1, 1], [], []>} : vector<8x32xbf16>, vector<32x16xbf16>, vector<8x16xf32> -> vector<8x16xf32>
    %597 = arith.addf %596, %11 : vector<8x16xf32>
    %cst_123 = arith.constant dense<0xFF800000> : vector<8xf32>
    %598 = vector.multi_reduction <maximumf>, %597, %cst_123 [1] : vector<8x16xf32> to vector<8xf32>
    %599 = vector.shape_cast %598 : vector<8xf32> to vector<8x1xf32>
    %600 = vector.broadcast %599 : vector<8x1xf32> to vector<8x16xf32>
    %601 = arith.subf %597, %600 : vector<8x16xf32>
    %602 = math.exp %601 : vector<8x16xf32>
    %cst_124 = arith.constant dense<0.000000e+00> : vector<8xf32>
    %603 = vector.multi_reduction <add>, %602, %cst_124 [1] : vector<8x16xf32> to vector<8xf32>
    %604 = vector.shape_cast %603 : vector<8xf32> to vector<8x1xf32>
    %605 = math.log %604 : vector<8x1xf32>
    %606 = arith.addf %599, %605 : vector<8x1xf32>
    %607 = vector.extract_strided_slice %203 {offsets = [0, 7], sizes = [8, 1], strides = [1, 1]} : vector<8x8xi32> to vector<8x1xi32>
    %608 = vector.broadcast %607 : vector<8x1xi32> to vector<8x16xi32>
    %609 = arith.cmpi eq, %202, %608 : vector<8x16xi32>
    %cst_125 = arith.constant 0.000000e+00 : f32
    %610 = vector.broadcast %cst_125 : f32 to vector<8x16xf32>
    %611 = arith.select %609, %597, %610 : vector<8x16xi1>, vector<8x16xf32>
    %cst_126 = arith.constant dense<0.000000e+00> : vector<8xf32>
    %612 = vector.multi_reduction <add>, %611, %cst_126 [1] : vector<8x16xf32> to vector<8xf32>
    %613 = vector.shape_cast %612 : vector<8xf32> to vector<8x1xf32>
    %614 = arith.subf %606, %613 : vector<8x1xf32>
    %615 = arith.addf %569, %614 : vector<8x1xf32>
    %616 = tpu.concatenate %233, %285, %337, %389, %441, %493, %545, %597 in 1 : vector<8x16xf32>, vector<8x16xf32>, vector<8x16xf32>, vector<8x16xf32>, vector<8x16xf32>, vector<8x16xf32>, vector<8x16xf32>, vector<8x16xf32> -> vector<8x128xf32>
    %c0_127 = arith.constant 0 : index
    %c0_128 = arith.constant 0 : index
    %617 = vector.load %arg15[%c0_127, %c0_128] : memref<8x128xf32, #tpu.memory_space<vmem>>, vector<8x128xf32>
    tpu.vector_store %arg15[%c0_127, %c0_128], %616 {strides = array<i32>} : memref<8x128xf32, #tpu.memory_space<vmem>>, vector<8x128xf32>,
    %618 = vector.shape_cast %615 : vector<8x1xf32> to vector<1x8x1xf32>
    %cst_129 = arith.constant dense<0.000000e+00> : vector<1xf32>
    %619 = vector.multi_reduction <add>, %618, %cst_129 [1, 2] : vector<1x8x1xf32> to vector<1xf32>
    %620 = vector.shape_cast %619 : vector<1xf32> to vector<1x1x1xf32>
    %621 = vector.extract %620[0, 0, 0] : f32 from vector<1x1x1xf32>
    %622 = vector.broadcast %621 : f32 to vector<1x1xf32>
    %c0_130 = arith.constant 0 : index
    %c0_131 = arith.constant 0 : index
    %623 = vector.load %arg16[%c0_130, %c0_131] : memref<1x1xf32, #tpu.memory_space<vmem>>, vector<1x1xf32>
    tpu.vector_store %arg16[%c0_130, %c0_131], %622 {strides = array<i32>} : memref<1x1xf32, #tpu.memory_space<vmem>>, vector<1x1xf32>,
    return
  }
  func.func @transform_0(%arg0: i32) -> (i32, i32, i32) {
    %c0_i32 = arith.constant 0 : i32
    %c0_i32_0 = arith.constant 0 : i32
    %c0_i32_1 = arith.constant 0 : i32
    return %arg0, %c0_i32, %c0_i32_0 : i32, i32, i32
  }
  func.func @transform_1(%arg0: i32) -> (i32, i32) {
    %c0_i32 = arith.constant 0 : i32
    %c0_i32_0 = arith.constant 0 : i32
    return %arg0, %c0_i32 : i32, i32
  }
  func.func @transform_2(%arg0: i32) -> (i32, i32) {
    %c0_i32 = arith.constant 0 : i32
    %c0_i32_0 = arith.constant 0 : i32
    return %arg0, %c0_i32 : i32, i32
  }
  func.func @transform_3(%arg0: i32) -> (i32, i32) {
    %c0_i32 = arith.constant 0 : i32
    %c0_i32_0 = arith.constant 0 : i32
    %c0_i32_1 = arith.constant 0 : i32
    return %c0_i32, %c0_i32_0 : i32, i32
  }
  func.func @transform_4(%arg0: i32) -> (i32, i32) {
    %c0_i32 = arith.constant 0 : i32
    %c0_i32_0 = arith.constant 0 : i32
    %c0_i32_1 = arith.constant 0 : i32
    return %c0_i32, %c0_i32_0 : i32, i32
  }
  func.func @transform_5(%arg0: i32) -> (i32, i32) {
    %c0_i32 = arith.constant 0 : i32
    %c0_i32_0 = arith.constant 0 : i32
    %c0_i32_1 = arith.constant 0 : i32
    return %c0_i32, %c0_i32_0 : i32, i32
  }
  func.func @transform_6(%arg0: i32) -> (i32, i32) {
    %c0_i32 = arith.constant 0 : i32
    %c0_i32_0 = arith.constant 0 : i32
    %c0_i32_1 = arith.constant 0 : i32
    return %c0_i32, %c0_i32_0 : i32, i32
  }
  func.func @transform_7(%arg0: i32) -> (i32, i32) {
    %c0_i32 = arith.constant 0 : i32
    %c0_i32_0 = arith.constant 0 : i32
    %c0_i32_1 = arith.constant 0 : i32
    return %c0_i32, %c0_i32_0 : i32, i32
  }
  func.func @transform_8(%arg0: i32) -> (i32, i32) {
    %c0_i32 = arith.constant 0 : i32
    %c0_i32_0 = arith.constant 0 : i32
    %c0_i32_1 = arith.constant 0 : i32
    return %c0_i32, %c0_i32_0 : i32, i32
  }
  func.func @transform_9(%arg0: i32) -> (i32, i32) {
    %c0_i32 = arith.constant 0 : i32
    %c0_i32_0 = arith.constant 0 : i32
    %c0_i32_1 = arith.constant 0 : i32
    return %c0_i32, %c0_i32_0 : i32, i32
  }
  func.func @transform_10(%arg0: i32) -> (i32, i32) {
    %c0_i32 = arith.constant 0 : i32
    %c0_i32_0 = arith.constant 0 : i32
    %c0_i32_1 = arith.constant 0 : i32
    return %c0_i32, %c0_i32_0 : i32, i32
  }
  func.func @transform_11(%arg0: i32) -> (i32, i32) {
    %c0_i32 = arith.constant 0 : i32
    %c0_i32_0 = arith.constant 0 : i32
    %c0_i32_1 = arith.constant 0 : i32
    return %c0_i32, %c0_i32_0 : i32, i32
  }
  func.func @transform_12(%arg0: i32) -> (i32, i32) {
    %c0_i32 = arith.constant 0 : i32
    %c0_i32_0 = arith.constant 0 : i32
    %c0_i32_1 = arith.constant 0 : i32
    return %c0_i32, %c0_i32_0 : i32, i32
  }
  func.func @transform_13(%arg0: i32) -> (i32, i32) {
    %c0_i32 = arith.constant 0 : i32
    %c0_i32_0 = arith.constant 0 : i32
    %c0_i32_1 = arith.constant 0 : i32
    return %c0_i32, %c0_i32_0 : i32, i32
  }
  func.func @transform_14(%arg0: i32) -> (i32, i32) {
    %c0_i32 = arith.constant 0 : i32
    %c0_i32_0 = arith.constant 0 : i32
    return %arg0, %c0_i32 : i32, i32
  }
  func.func @transform_15(%arg0: i32) -> (i32, i32) {
    %c0_i32 = arith.constant 0 : i32
    %c0_i32_0 = arith.constant 0 : i32
    return %arg0, %c0_i32 : i32, i32
  }
}

</mosaic_0001>

<bundles_post_ra>
// kernel: lstm_seq2seq_forward.1
= control target key start
LH: loop header
LB: loop body
LE: loop exit
PB: predicated region body
PF: predicated region fallthrough
CT: control target
= control target key end

     0   :  { %21 = vsyncpa [#allocation3], 0  ;;  %s7823_s0 = inlined_call_operand.hbm [shape: f32[8,8,16], index: 0, kind: input, shape index: {}]   ;;  %s7824_s1 = inlined_call_operand.hbm [shape: f32[8,16], index: 1, kind: input, shape index: {}]   ;;  %s7825_s2 = inlined_call_operand.hbm [shape: s32[8,8], index: 2, kind: input, shape index: {}]   ;;  %s7826_s3 = inlined_call_operand.hbm [shape: bf16[16,128], index: 3, kind: input, shape index: {}]   ;;  %s7827_s4 = inlined_call_operand.hbm [shape: bf16[32,128], index: 4, kind: input, shape index: {}]   ;;  %s7828_s5 = inlined_call_operand.vmem [shape: f32[1,128], index: 5, kind: input, shape index: {}]   ;;  %s7829_s6 = inlined_call_operand.hbm [shape: bf16[16,32], index: 6, kind: input, shape index: {}]   ;;  %s7830_s7 = inlined_call_operand.hbm [shape: bf16[16,16], index: 7, kind: input, shape index: {}]   ;;  %s7831_s8 = inlined_call_operand.vmem [shape: bf16[16,96], index: 8, kind: input, shape index: {}]   ;;  %s7832_s9 = inlined_call_operand.hbm [shape: bf16[32,96], index: 9, kind: input, shape index: {}]   ;;  %s7833_s10 = inlined_call_operand.vmem [shape: f32[1,96], index: 10, kind: input, shape index: {}, may-alias: {10,11}]   ;;  %s7834_s11 = inlined_call_operand.vmem [shape: f32[1,96], index: 11, kind: input, shape index: {}, may-alias: {10,11}]   ;;  %s7835_s12 = inlined_call_operand.hbm [shape: bf16[32,16], index: 12, kind: input, shape index: {}]   ;;  %s7836_s13 = inlined_call_operand.vmem [shape: f32[1,16], index: 13, kind: input, shape index: {}]   ;;  %s7837_s14 = inlined_call_operand.vmem [shape: f32[8,128], index: 14, kind: output, shape index: {0}]   ;;  %s7838_s15 = inlined_call_operand.hbm [shape: f32[1,1], index: 15, kind: output, shape index: {1}]  }
   0x1   :  { %22 = vsyncpa [#allocation6], 0 }
   0x2   :  { %23 = vsyncpa [#allocation9], 0 }
   0x3   :  { %24 = vsyncpa [#allocation12], 0 }
   0x4   :  { %25 = vsyncpa [#allocation15], 0  ;;  %s45_s20 = sshll.u32 %s7824_s1, 4  ;;  %s46_s20 = int_to_ptr.hbm [resolvable:$true] %s45_s20 }
   0x5   :  { %26 = vsyncpa [#allocation4], 0  ;;  %s5712_s21 = smov [#allocation5]   ;;  %s66_s25 = sshll.u32 %s7826_s3, 4  ;;  %s67_s25 = int_to_ptr.hbm [resolvable:$true] %s66_s25 }
   0x6   :  { %s47_s22 = sshll.u32 %s5712_s21, 4  ;;  %s5713_s26 = smov [#allocation8]   ;;  %s48_s22 = int_to_ptr.vmem [resolvable:$true] %s47_s22 }
   0x7   :  { %50 = dma.hbm_to_vmem [thread:$0]  %s46_s20, 128, %s48_s22, [#allocation6]  }
   0x8   :  { %s68_s27 = sshll.u32 %s5713_s26, 4  ;;  %s5714_s28 = smov 64   ;;  %s69_s27 = int_to_ptr.vmem [resolvable:$true] %s68_s27 }
   0x9   :  { %s5715_s29 = smov 4   ;;  %s94_s16 = sshll.u32 %s7829_s6, 4  ;;  %s95_s16 = int_to_ptr.hbm [resolvable:$true] %s94_s16 }
   0xa   :  { %74 = dma.hbm_to_vmem [thread:$0]  %s67_s25, 128, %s69_s27, [#allocation9], %s5714_s28, %s5714_s28, %s5715_s29  }
   0xb   :  { %s5716_s17 = smov [#allocation11]   ;;  %s122_s20 = sshll.u32 %s7832_s9, 4  ;;  %s123_s20 = int_to_ptr.hbm [resolvable:$true] %s122_s20 }
   0xc   :  { %s96_s18 = sshll.u32 %s5716_s17, 4  ;;  %s5717_s21 = smov [#allocation14]   ;;  %s97_s18 = int_to_ptr.vmem [resolvable:$true] %s96_s18 }
   0xd   :  { %102 = dma.hbm_to_vmem [thread:$0]  %s95_s16, 128, %s97_s18, [#allocation12], %s5714_s28, %s5714_s28, %s5715_s29  }
   0xe   :  { %s124_s22 = sshll.u32 %s5717_s21, 4  ;;  %s31_s25 = sshll.u32 %s7823_s0, 4  ;;  %s125_s22 = int_to_ptr.vmem [resolvable:$true] %s124_s22  ;;  %s32_s25 = int_to_ptr.hbm [resolvable:$true] %s31_s25 }
   0xf   :  { %130 = dma.hbm_to_vmem [thread:$0]  %s123_s20, 256, %s125_s22, [#allocation15], %s5714_s28, %s5714_s28, %s5715_s29  }
  0x10   :  { %s5718_s6 = smov [#allocation2]   ;;  %s56_s1 = sshll.u32 %s7825_s2, 4  ;;  %s57_s1 = int_to_ptr.hbm [resolvable:$true] %s56_s1 }
  0x11   :  { %s33_s26 = sshll.u32 %s5718_s6, 4  ;;  %s5719_s30 = smov 128   ;;  %s34_s26 = int_to_ptr.vmem [resolvable:$true] %s33_s26 }
  0x12   :  { %s5720_s16 = smov 8   ;;  %s5721_s17 = smov [#allocation7]  }
  0x13   :  { %39 = dma.hbm_to_vmem [thread:$0]  %s32_s25, 1024, %s34_s26, [#allocation3], %s5719_s30, %s5719_s30, %s5720_s16  }
  0x14   :  { %s58_s18 = sshll.u32 %s5721_s17, 4  ;;  %s79_s19 = sshll.u32 %s7827_s4, 4  ;;  %s59_s18 = int_to_ptr.vmem [resolvable:$true] %s58_s18  ;;  %s80_s19 = int_to_ptr.hbm [resolvable:$true] %s79_s19 }
  0x15   :  { %61 = dma.hbm_to_vmem [thread:$0]  %s57_s1, 128, %s59_s18, [#allocation6]  }
  0x16   :  { %s107_s22 = sshll.u32 %s7830_s7, 4  ;;  %s5722_s23 = smov [#allocation10]   ;;  %s108_s22 = int_to_ptr.hbm [resolvable:$true] %s107_s22 }
  0x17   :  { %s81_s24 = sshll.u32 %s5722_s23, 4  ;;  %s5723_s2 = smov [#allocation13]   ;;  %s82_s24 = int_to_ptr.vmem [resolvable:$true] %s81_s24 }
  0x18   :  { %87 = dma.hbm_to_vmem [thread:$0]  %s80_s19, 256, %s82_s24, [#allocation9], %s5714_s28, %s5714_s28, %s5715_s29  }
  0x19   :  { %s109_s25 = sshll.u32 %s5723_s2, 4  ;;  %s139_s4 = sshll.u32 %s7835_s12, 4  ;;  %s110_s25 = int_to_ptr.vmem [resolvable:$true] %s109_s25  ;;  %s140_s4 = int_to_ptr.hbm [resolvable:$true] %s139_s4 }
  0x1a   :  { %115 = dma.hbm_to_vmem [thread:$0]  %s108_s22, 128, %s110_s25, [#allocation12], %s5714_s28, %s5714_s28, %s5715_s29  }
  0x1b   :  { %s5724_s7 = smov [#allocation16]  }
  0x1c   :  { %s141_s9 = sshll.u32 %s5724_s7, 4  ;;  %s142_s9 = int_to_ptr.vmem [resolvable:$true] %s141_s9 }
  0x1d   :  { %147 = dma.hbm_to_vmem [thread:$0]  %s140_s4, 256, %s142_s9, [#allocation15], %s5714_s28, %s5714_s28, %s5715_s29  }
  0x1e   :  { %5700 = dma.done.wait [#allocation3], 1024  }
  0x1f   :  { %5701 = vsyncadd [#allocation3], 4294966272 }
  0x20   :  { %5702 = dma.done.wait [#allocation6], 256  }
  0x21   :  { %5703 = vsyncadd [#allocation6], 4294967040 }
  0x22   :  { %5704 = dma.done.wait [#allocation9], 384  }
  0x23   :  { %5705 = vsyncadd [#allocation9], 4294966912 }
  0x24   :  { %5706 = dma.done.wait [#allocation12], 256  }
  0x25   :  { %5707 = vsyncadd [#allocation12], 4294967040 }
  0x26   :  { %5708 = dma.done.wait [#allocation15], 512  }
  0x27   :  { %5709 = vsyncadd [#allocation15], 4294966784  ;;  %v5725_v0 = vmov 0   ;;  %v4793_v1 = vld [vmem:[#allocation8] sm:$0xff]  ;;  %v5866_v2 = vld [vmem:[#allocation10 + $0x8] sm:$0xff]  ;;  %vm7839_vm0 = vcmask 130048  }
  0x28   :  { %4834 = vset.pattern.permute.xlu1 %v5725_v0  ;;  %v241_v3 = vld [vmem:[#allocation2] sm:$0xff]  ;;  %v242_v4 = vld [vmem:[#allocation2 + $0x8] sm:$0xff]  ;;  %282 = vmatpush.bf16.msra.mxu1 %v4793_v1  ;;  %v5869_v6 = vld [vmem:[#allocation10] sm:$0xff]  ;;  %s5737_s21 = smov 48   ;;  %s5738_s22 = smov 80  }
  0x29   :  { %326 = vmatpush.bf16.msra.mxu2 %v5866_v2  ;;  %v249_v5 = vpack.c.bf16 %v242_v4, %v241_v3  ;;  %710 = vmatpush.bf16.msra.mxu3 %v5866_v2  ;;  %v243_v7 = vld [vmem:[#allocation2 + $0x10] sm:$0xff]  ;;  %v244_v8 = vld [vmem:[#allocation2 + $0x18] sm:$0xff]  ;;  %v245_v10 = vld [vmem:[#allocation2 + $0x20] sm:$0xff]  ;;  %s5739_s23 = smov 112   ;;  %s4627_s6 = sshll.u32 %s7838_s15, 4  ;;  %s4628_s6 = int_to_ptr.hbm [resolvable:$true] %s4627_s6 }
  0x2a   :  { %v250_v9 = vpack.c.bf16 %v244_v8, %v243_v7  ;;  %v246_v11 = vld [vmem:[#allocation2 + $0x28] sm:$0xff]  ;;  %v247_v13 = vld [vmem:[#allocation2 + $0x30] sm:$0xff]  ;;  %v248_v14 = vld [vmem:[#allocation2 + $0x38] sm:$0xff]  ;;  %s5740_s26 = smov [#allocation17]  }
  0x2b   :  { %4656 = vmatmul.msk.bf16.vlgmr.msra.gmra.mxu1 %vm7839_vm0, %v249_v5  ;;  %v251_v12 = vpack.c.bf16 %v246_v11, %v245_v10  ;;  %v252_v15 = vpack.c.bf16 %v248_v14, %v247_v13  ;;  %v4843_v17 = vld [vmem:[%s7828_s5] ss:$0 sm:$0xff]  ;;  %s5726_s5 = smov 32   ;;  %s4625_s4 = sshll.u32 %s5740_s26, 4  ;;  %s4626_s4 = int_to_ptr.vmem [resolvable:$true] %s4625_s4 }
  0x2d   :  { %327 = vmatpush.bf16.msra.mxu2 %v5869_v6  ;;  %711 = vmatpush.bf16.msra.mxu3 %v5869_v6 }
  0x30   :  { %328 = vmatmul.bf16.vlgmr.msra.gmra.mxu2 %v5725_v0 }
  0x31   :  { %1512 = vmatpush.bf16.msrb.mxu2 %v5866_v2  ;;  %1913 = vmatpush.bf16.msrb.mxu3 %v5866_v2 }
  0x35   :  { %1513 = vmatpush.bf16.msrb.mxu2 %v5869_v6  ;;  %1914 = vmatpush.bf16.msrb.mxu3 %v5869_v6 }
  0x39   :  { %2715 = vmatpush.bf16.msra.mxu2 %v5866_v2 }
  0x3b   :  { %4657 = vmatmul.msk.bf16.gmra.mxu1 %vm7839_vm0, %v250_v9 }
  0x3d   :  { %2716 = vmatpush.bf16.msra.mxu2 %v5869_v6 }
  0x4b   :  { %4658 = vmatmul.msk.bf16.gmra.mxu1 %vm7839_vm0, %v251_v12 }
  0x5b   :  { %4659 = vmatmul.msk.bf16.gmra.mxu1 %vm7839_vm0, %v252_v15 }
  0xa8   :  { %v284_v16 = vpop.f32.mrf.mxu1 }
  0xa9   :  { %v5887_v19 = vadd.f32 %v4843_v17, %v284_v16 }
  0xb0   :  { %v286_v18 = vpop.f32.mrf.mxu1 }
  0xb1   :  { %v5889_v21 = vadd.f32 %v4843_v17, %v286_v18 }
  0xb3   :  { %v329_v20 = vpop.f32.mrf.mxu2 }
  0xb4   :  { %v349_v22 = vadd.f32 %v329_v20, %v5887_v19  ;;  %v334_v23 = vrot.slane %v329_v20, 1  ;;  %v335_v26 = vrot.slane %v329_v20, 2  ;;  %v336_v32 = vrot.slane %v329_v20, 3 }
  0xb5   :  { %v337_v39 = vrot.slane %v329_v20, 4  ;;  %v338_v44 = vrot.slane %v329_v20, 5  ;;  %v339_v49 = vrot.slane %v329_v20, 6  ;;  %v340_v54 = vrot.slane %v329_v20, 7 }
  0xb6   :  { %4847 = vtanh.f32 %v349_v22  ;;  %v350_v24 = vadd.f32 %v334_v23, %v5889_v21  ;;  %v4668_v58 = vmul.f32 -1.442695, %v349_v22 }
  0xb8   :  { %v289_v25 = vpop.f32.mrf.mxu1  ;;  %4849 = vtanh.f32 %v350_v24  ;;  %v4669_v59 = vmul.f32 -1.442695, %v350_v24 }
  0xb9   :  { %v5893_v27 = vadd.f32 %v4843_v17, %v289_v25 }
  0xbb   :  { %v331_v28 = vpop.f32.mrf.mxu2  ;;  %v351_v30 = vadd.f32 %v335_v26, %v5893_v27 }
  0xbc   :  { %v4848_v29 = vpop.eup %4847 }
  0xbd   :  { %533 = vrot.lane.b32.xlu1 %v4848_v29, %s5714_s28  ;;  %4851 = vtanh.f32 %v351_v30  ;;  %v4670_v62 = vmul.f32 -1.442695, %v351_v30 }
  0xbe   :  { %v4850_v31 = vpop.eup %4849 }
  0xbf   :  { %535 = vrot.lane.b32.xlu0 %v4850_v31, %s5714_s28 }
  0xc0   :  { %v291_v33 = vpop.f32.mrf.mxu1 }
  0xc1   :  { %v5898_v34 = vadd.f32 %v4843_v17, %v291_v33 }
  0xc3   :  { %v352_v35 = vadd.f32 %v336_v32, %v5898_v34  ;;  %v4852_v36 = vpop.eup %4851 }
  0xc5   :  { %4853 = vtanh.f32 %v352_v35  ;;  %v4671_v3 = vmul.f32 -1.442695, %v352_v35 }
  0xc7   :  { %537 = vrot.lane.b32.xlu0 %v4852_v36, %s5714_s28 }
  0xc8   :  { %v294_v37 = vpop.f32.mrf.mxu1 }
  0xc9   :  { %v5902_v38 = vadd.f32 %v4843_v17, %v294_v37 }
  0xcb   :  { %v4854_v40 = vpop.eup %4853  ;;  %v353_v41 = vadd.f32 %v337_v39, %v5902_v38 }
  0xcc   :  { %539 = vrot.lane.b32.xlu1 %v4854_v40, %s5714_s28 }
  0xcd   :  { %4855 = vtanh.f32 %v353_v41  ;;  %v4672_v5 = vmul.f32 -1.442695, %v353_v41 }
  0xd0   :  { %v296_v42 = vpop.f32.mrf.mxu1 }
  0xd1   :  { %v5906_v43 = vadd.f32 %v4843_v17, %v296_v42 }
  0xd3   :  { %v4856_v45 = vpop.eup %4855  ;;  %v354_v46 = vadd.f32 %v338_v44, %v5906_v43 }
  0xd4   :  { %541 = vrot.lane.b32.xlu2 %v4856_v45, %s5714_s28 }
  0xd5   :  { %4857 = vtanh.f32 %v354_v46  ;;  %v4673_v60 = vmul.f32 -1.442695, %v354_v46 }
  0xd8   :  { %v299_v47 = vpop.f32.mrf.mxu1 }
  0xd9   :  { %v5910_v48 = vadd.f32 %v4843_v17, %v299_v47 }
  0xdb   :  { %v4858_v50 = vpop.eup %4857  ;;  %v355_v51 = vadd.f32 %v339_v49, %v5910_v48 }
  0xdc   :  { %543 = vrot.lane.b32.xlu2 %v4858_v50, %s5714_s28 }
  0xdd   :  { %4859 = vtanh.f32 %v355_v51  ;;  %v4674_v33 = vmul.f32 -1.442695, %v355_v51 }
  0xe0   :  { %v301_v52 = vpop.f32.mrf.mxu1 }
  0xe1   :  { %v5914_v53 = vadd.f32 %v4843_v17, %v301_v52 }
  0xe3   :  { %v4860_v55 = vpop.eup %4859  ;;  %v5917_v56 = vadd.f32 %v340_v54, %v5914_v53 }
  0xe4   :  { %545 = vrot.lane.b32.xlu0 %v4860_v55, %s5714_s28 }
  0xe5   :  { %4861 = vtanh.f32 %v5917_v56 }
  0xe6   :  { %4863 = vpow2.f32 %v4668_v58 }
  0xe7   :  { %4865 = vpow2.f32 %v4669_v59 }
  0xe8   :  { %4867 = vpow2.f32 %v4673_v60 }
  0xe9   :  { %4869 = vpow2.f32 %v4670_v62 }
  0xeb   :  { %v4862_v57 = vpop.eup %4861 }
  0xec   :  { %547 = vrot.lane.b32.xlu1 %v4862_v57, %s5714_s28  ;;  %v4864_v61 = vpop.eup %4863 }
  0xed   :  { %v4866_v63 = vpop.eup %4865  ;;  %v381_v0 = vadd.f32 1.0, %v4864_v61 }
  0xee   :  { %v5922_v1 = vadd.f32 1.0, %v4866_v63  ;;  %v4868_v4 = vpop.eup %4867  ;;  %v4675_v63 = vmul.f32 -1.442695, %v5917_v56 }
  0xef   :  { %4871 = vrcp.f32 %v381_v0  ;;  %v4870_v7 = vpop.eup %4869  ;;  %v5925_v8 = vadd.f32 1.0, %v4868_v4  ;;  %v400_v32 = vand.u32 2147483648, %v381_v0  ;;  %vm394_vm2 = vweird.f32 %v381_v0 }
  0xf0   :  { %4873 = vrcp.f32 %v5922_v1  ;;  %v5927_v10 = vadd.f32 1.0, %v4870_v7  ;;  %v398_v35 = vand.u32 2147483647, %v381_v0  ;;  %v415_v36 = vand.u32 2147483648, %v5922_v1 }
  0xf1   :  { %4875 = vpow2.f32 %v4671_v3  ;;  %v401_v46 = vor.u32 1.1754944e-38, %v400_v32  ;;  %vm409_vm5 = vweird.f32 %v5922_v1  ;;  %v413_v47 = vand.u32 2147483647, %v5922_v1 }
  0xf2   :  { %4877 = vpow2.f32 %v4672_v5  ;;  %vm399_vm6 = vcmp.eq.f32.partialorder %v398_v35, 8.507059e+37  ;;  %v416_v50 = vor.u32 1.1754944e-38, %v415_v36  ;;  %v475_v62 = vand.u32 2147483648, %v5925_v8 }
  0xf3   :  { %4879 = vrcp.f32 %v5925_v8  ;;  %vm414_vm9 = vcmp.eq.f32.partialorder %v413_v47, 8.507059e+37  ;;  %vm469_vm10 = vweird.f32 %v5925_v8  ;;  %v473_v3 = vand.u32 2147483647, %v5925_v8 }
  0xf4   :  { %4881 = vrcp.f32 %v5927_v10  ;;  %vm424_vm13 = vweird.f32 %v5927_v10 }
  0xf5   :  { %v4872_v9 = vpop.eup %4871  ;;  %vm474_vm14 = vcmp.eq.f32.partialorder %v473_v3, 8.507059e+37 }
  0xf6   :  { %v4874_v11 = vpop.eup %4873  ;;  %v390_v13 = vmul.f32 %v4872_v9, %v381_v0  ;;  %vm395_vm1 = vweird.f32 %v4872_v9 }
  0xf7   :  { %v4876_v12 = vpop.eup %4875  ;;  %v405_v16 = vmul.f32 %v4874_v11, %v5922_v1  ;;  %vm5949_vm3 = vmor %vm394_vm2, %vm395_vm1  ;;  %vm410_vm4 = vweird.f32 %v4874_v11 }
  0xf8   :  { %v4878_v14 = vpop.eup %4877  ;;  %v5931_v15 = vadd.f32 1.0, %v4876_v12  ;;  %v391_v17 = vsub.f32 1.0, %v390_v13  ;;  %vm5962_vm7 = vmor %vm409_vm5, %vm410_vm4  ;;  %v430_v12 = vand.u32 2147483648, %v5927_v10  ;;  %v476_v13 = vor.u32 1.1754944e-38, %v475_v62 }
  0xf9   :  { %v5934_v18 = vpop.eup %4879  ;;  %v5936_v20 = vadd.f32 1.0, %v4878_v14  ;;  %v406_v22 = vsub.f32 1.0, %v405_v16  ;;  %v428_v14 = vand.u32 2147483647, %v5927_v10 }
  0xfa   :  { %4883 = vrcp.f32 %v5931_v15  ;;  %v5939_v23 = vpop.eup %4881  ;;  %v392_v24 = vmul.f32 %v4872_v9, %v391_v17  ;;  %v465_v25 = vmul.f32 %v5934_v18, %v5925_v8  ;;  %vm470_vm8 = vweird.f32 %v5934_v18 }
  0xfb   :  { %4885 = vrcp.f32 %v5936_v20  ;;  %v407_v26 = vmul.f32 %v4874_v11, %v406_v22  ;;  %v420_v28 = vmul.f32 %v5939_v23, %v5927_v10  ;;  %vm5986_vm11 = vmor %vm469_vm10, %vm470_vm8  ;;  %vm425_vm12 = vweird.f32 %v5939_v23 }
  0xfc   :  { %v393_v29 = vadd.f32 %v4872_v9, %v392_v24  ;;  %v466_v30 = vsub.f32 1.0, %v465_v25  ;;  %4887 = vpow2.f32 %v4674_v33  ;;  %vm426_vm15 = vmor %vm424_vm13, %vm425_vm12  ;;  %vm429_vm2 = vcmp.eq.f32.partialorder %v428_v14, 8.507059e+37 }
  0xfd   :  { %v408_v39 = vadd.f32 %v4874_v11, %v407_v26  ;;  %v421_v40 = vsub.f32 1.0, %v420_v28  ;;  %4889 = vpow2.f32 %v4675_v63  ;;  %v431_v26 = vor.u32 1.1754944e-38, %v430_v12 }
  0xfe   :  { %v397_v42 = vsel %vm5949_vm3, %v4872_v9, %v393_v29  ;;  %v467_v44 = vmul.f32 %v5934_v18, %v466_v30  ;;  %v445_v10 = vand.u32 2147483648, %v5931_v15  ;;  %vm439_vm3 = vweird.f32 %v5931_v15 }
  0xff   :  { %v5970_v55 = vsel %vm399_vm6, %v401_v46, %v397_v42  ;;  %v412_v57 = vsel %vm5962_vm7, %v4874_v11, %v408_v39  ;;  %v422_v58 = vmul.f32 %v5939_v23, %v421_v40  ;;  %v443_v32 = vand.u32 2147483647, %v5931_v15 }
 0x100   :  { %v5946_v31 = vpop.eup %4883  ;;  %v468_v60 = vadd.f32 %v5934_v18, %v467_v44  ;;  %v5980_v1 = vsel %vm414_vm9, %v416_v50, %v412_v57  ;;  %v460_v36 = vand.u32 2147483648, %v5936_v20  ;;  %vm454_vm6 = vweird.f32 %v5936_v20 }
 0x101   :  { %v5953_v41 = vpop.eup %4885  ;;  %v435_v45 = vmul.f32 %v5946_v31, %v5931_v15  ;;  %v423_v9 = vadd.f32 %v5939_v23, %v422_v58  ;;  %vm440_vm1 = vweird.f32 %v5946_v31  ;;  %v458_v39 = vand.u32 2147483647, %v5936_v20 }
 0x102   :  { %v450_v52 = vmul.f32 %v5953_v41, %v5936_v20  ;;  %v4888_v56 = vpop.eup %4887  ;;  %v472_v11 = vsel %vm5986_vm11, %v5934_v18, %v468_v60  ;;  %vm455_vm4 = vweird.f32 %v5953_v41  ;;  %vm441_vm5 = vmor %vm439_vm3, %vm440_vm1  ;;  %v446_v15 = vor.u32 1.1754944e-38, %v445_v10 }
 0x103   :  { %v436_v61 = vsub.f32 1.0, %v435_v45  ;;  %v387_v16 = vadd.f32 1.0, %v4888_v56  ;;  %v6001_v22 = vsel %vm474_vm14, %v476_v13, %v472_v11  ;;  %v427_v24 = vsel %vm426_vm15, %v5939_v23, %v423_v9  ;;  %v4890_v35 = vpop.eup %4889  ;;  %vm456_vm7 = vmor %vm454_vm6, %vm455_vm4 }
 0x104   :  { %v451_v4 = vsub.f32 1.0, %v450_v52  ;;  %v6008_v29 = vsel %vm429_vm2, %v431_v26, %v427_v24  ;;  %vm444_vm8 = vcmp.eq.f32.partialorder %v443_v32, 8.507059e+37  ;;  %v388_v40 = vadd.f32 1.0, %v4890_v35 }
 0x105   :  { %v437_v8 = vmul.f32 %v5946_v31, %v436_v61  ;;  %4891 = vrcp.f32 %v387_v16  ;;  %v461_v46 = vor.u32 1.1754944e-38, %v460_v36  ;;  %vm459_vm9 = vcmp.eq.f32.partialorder %v458_v39, 8.507059e+37 }
 0x106   :  { %v452_v17 = vmul.f32 %v5953_v41, %v451_v4  ;;  %4893 = vrcp.f32 %v388_v40  ;;  %v490_v60 = vand.u32 2147483648, %v387_v16  ;;  %vm484_vm11 = vweird.f32 %v387_v16 }
 0x107   :  { %v438_v28 = vadd.f32 %v5946_v31, %v437_v8  ;;  %v488_v61 = vand.u32 2147483647, %v387_v16  ;;  %v505_v7 = vand.u32 2147483648, %v388_v40  ;;  %vm499_vm15 = vweird.f32 %v388_v40 }
 0x108   :  { %v453_v23 = vadd.f32 %v5953_v41, %v452_v17  ;;  %v503_v9 = vand.u32 2147483647, %v388_v40  ;;  %v518_v14 = vmul.f32 0.0, %v5980_v1  ;;  %vm678_vm3 = vcmask 1041409  }
 0x109   :  { %v442_v37 = vsel %vm441_vm5, %v5946_v31, %v438_v28  ;;  %vm489_vm13 = vcmp.eq.f32.partialorder %v488_v61, 8.507059e+37  ;;  %v506_v11 = vor.u32 1.1754944e-38, %v505_v7  ;;  %v517_v28 = vmul.f32 0.0, %v5970_v55 }
 0x10a   :  { %v457_v42 = vsel %vm456_vm7, %v5953_v41, %v453_v23  ;;  %v6022_v44 = vsel %vm444_vm8, %v446_v15, %v442_v37  ;;  %vm504_vm2 = vcmp.eq.f32.partialorder %v503_v9, 8.507059e+37  ;;  %v522_v23 = vmul.f32 0.0, %v6001_v22 }
 0x10b   :  { %v4892_v49 = vpop.eup %4891  ;;  %v6025_v31 = vsel %vm459_vm9, %v461_v46, %v457_v42  ;;  %v520_v24 = vmul.f32 0.0, %v6022_v44  ;;  %v519_v37 = vmul.f32 0.0, %v6008_v29  ;;  %vm681_vm4 = vcmask 1042434  }
 0x10c   :  { %v480_v50 = vmul.f32 %v4892_v49, %v387_v16  ;;  %v4894_v52 = vpop.eup %4893  ;;  %vm485_vm10 = vweird.f32 %v4892_v49  ;;  %vm684_vm5 = vcmask 1043459   ;;  %vm687_vm6 = vcmask 1044484  }
 0x10d   :  { %v495_v57 = vmul.f32 %v4894_v52, %v388_v40  ;;  %vm486_vm12 = vmor %vm484_vm11, %vm485_vm10  ;;  %vm500_vm14 = vweird.f32 %v4894_v52  ;;  %vm690_vm7 = vcmask 1045509   ;;  %vm693_vm8 = vcmask 1046534  }
 0x10e   :  { %v481_v41 = vsub.f32 1.0, %v480_v50  ;;  %vm501_vm1 = vmor %vm499_vm15, %vm500_vm14  ;;  %vm696_vm9 = vcmask 1047559   ;;  %vm316_vm10 = vcmask 261120  }
 0x12e   :  { %v5966_v51 = vpop.permute.xlu2 %541 }
 0x12f   :  { %v534_v54 = vpop.permute.xlu1 %533  ;;  %v561_v20 = vmul.f32 %v5966_v51, %v6025_v31 }
 0x130   :  { %v557_v59 = vmul.f32 %v534_v54, %v5970_v55  ;;  %v482_v54 = vmul.f32 %v4892_v49, %v481_v41 }
 0x131   :  { %v536_v0 = vpop.permute.xlu0 %535 }
 0x132   :  { %573 = vrot.lane.b32.xlu1 %v557_v59, %s5726_s5  ;;  %v558_v5 = vmul.f32 %v536_v0, %v5980_v1  ;;  %v483_v58 = vadd.f32 %v4892_v49, %v482_v54  ;;  %v496_v59 = vsub.f32 1.0, %v495_v57  ;;  %v491_v0 = vor.u32 1.1754944e-38, %v490_v60 }
 0x134   :  { %575 = vrot.lane.b32.xlu2 %v558_v5, %s5726_s5  ;;  %v487_v62 = vsel %vm486_vm12, %v4892_v49, %v483_v58  ;;  %v497_v63 = vmul.f32 %v4894_v52, %v496_v59 }
 0x135   :  { %v6031_v3 = vsel %vm489_vm13, %v491_v0, %v487_v62 }
 0x136   :  { %v544_v18 = vpop.permute.xlu2 %543  ;;  %v498_v5 = vadd.f32 %v4894_v52, %v497_v63  ;;  %v523_v40 = vmul.f32 0.0, %v6031_v3 }
 0x137   :  { %v562_v25 = vmul.f32 %v544_v18, %v6001_v22 }
 0x138   :  { %v502_v56 = vsel %vm501_vm1, %v4894_v52, %v498_v5 }
 0x139   :  { %v538_v30 = vpop.permute.xlu0 %537  ;;  %v6035_v12 = vsel %vm504_vm2, %v506_v11, %v502_v56 }
 0x13a   :  { %583 = vrot.lane.b32.xlu1 %v562_v25, %s5726_s5  ;;  %v559_v33 = vmul.f32 %v538_v30, %v6008_v29  ;;  %v524_v54 = vmul.f32 0.0, %v6035_v12 }
 0x13c   :  { %577 = vrot.lane.b32.xlu0 %v559_v33, %s5726_s5 }
 0x13e   :  { %v540_v45 = vpop.permute.xlu1 %539 }
 0x13f   :  { %v560_v47 = vmul.f32 %v540_v45, %v6022_v44 }
 0x141   :  { %579 = vrot.lane.b32.xlu2 %v560_v47, %s5726_s5  ;;  %v521_v47 = vmul.f32 0.0, %v6025_v31 }
 0x144   :  { %581 = vrot.lane.b32.xlu0 %v561_v20, %s5726_s5 }
 0x156   :  { %v546_v51 = vpop.permute.xlu0 %545 }
 0x157   :  { %v563_v4 = vmul.f32 %v546_v51, %v6031_v3 }
 0x159   :  { %585 = vrot.lane.b32.xlu2 %v563_v4, %s5726_s5 }
 0x15e   :  { %v548_v8 = vpop.permute.xlu1 %547 }
 0x15f   :  { %v564_v13 = vmul.f32 %v548_v8, %v6035_v12 }
 0x161   :  { %587 = vrot.lane.b32.xlu0 %v564_v13, %s5726_s5 }
 0x18e   :  { %v576_v16 = vpop.permute.xlu2 %575 }
 0x18f   :  { %v6040_v17 = vadd.f32 %v576_v16, %v518_v14 }
 0x191   :  { %4895 = vtanh.f32 %v6040_v17 }
 0x197   :  { %v4896_v18 = vpop.eup %4895 }
 0x198   :  { %623 = vrot.lane.b32.xlu1 %v4896_v18, %s5714_s28 }
 0x19b   :  { %v580_v25 = vpop.permute.xlu2 %579 }
 0x19c   :  { %v6045_v26 = vadd.f32 %v580_v25, %v520_v24 }
 0x19e   :  { %4897 = vtanh.f32 %v6045_v26 }
 0x1a4   :  { %v574_v10 = vpop.permute.xlu1 %573  ;;  %v4898_v30 = vpop.eup %4897 }
 0x1a5   :  { %v6049_v32 = vadd.f32 %v574_v10, %v517_v28  ;;  %627 = vrot.lane.b32.xlu1 %v4898_v30, %s5714_s28 }
 0x1a7   :  { %4899 = vtanh.f32 %v6049_v32 }
 0x1ac   :  { %v584_v33 = vpop.permute.xlu1 %583 }
 0x1ad   :  { %v4900_v35 = vpop.eup %4899  ;;  %v6054_v36 = vadd.f32 %v584_v33, %v522_v23 }
 0x1ae   :  { %621 = vrot.lane.b32.xlu0 %v4900_v35, %s5714_s28  ;;  %v578_v39 = vpop.permute.xlu0 %577 }
 0x1af   :  { %4901 = vtanh.f32 %v6054_v36  ;;  %v6059_v15 = vadd.f32 %v578_v39, %v519_v37 }
 0x1b1   :  { %4903 = vtanh.f32 %v6059_v15 }
 0x1b3   :  { %v586_v42 = vpop.permute.xlu2 %585 }
 0x1b4   :  { %v6063_v46 = vadd.f32 %v586_v42, %v523_v40 }
 0x1b5   :  { %v4902_v45 = vpop.eup %4901 }
 0x1b6   :  { %631 = vrot.lane.b32.xlu0 %v4902_v45, %s5714_s28  ;;  %4905 = vtanh.f32 %v6063_v46  ;;  %v582_v49 = vpop.permute.xlu0 %581 }
 0x1b7   :  { %v4904_v20 = vpop.eup %4903  ;;  %v6068_v50 = vadd.f32 %v582_v49, %v521_v47 }
 0x1b8   :  { %625 = vrot.lane.b32.xlu2 %v4904_v20, %s5714_s28 }
 0x1b9   :  { %4907 = vtanh.f32 %v6068_v50 }
 0x1bc   :  { %v4906_v41 = vpop.eup %4905 }
 0x1bd   :  { %633 = vrot.lane.b32.xlu1 %v4906_v41, %s5714_s28 }
 0x1bf   :  { %v4908_v52 = vpop.eup %4907 }
 0x1c0   :  { %629 = vrot.lane.b32.xlu2 %v4908_v52, %s5714_s28 }
 0x1d3   :  { %v588_v57 = vpop.permute.xlu0 %587 }
 0x1d4   :  { %v6075_v58 = vadd.f32 %v588_v57, %v524_v54 }
 0x1d6   :  { %4909 = vtanh.f32 %v6075_v58 }
 0x1dc   :  { %v4910_v59 = vpop.eup %4909 }
 0x1dd   :  { %635 = vrot.lane.b32.xlu2 %v4910_v59, %s5714_s28 }
 0x20a   :  { %v624_v60 = vpop.permute.xlu1 %623 }
 0x20b   :  { %v646_v63 = vmul.f32 %v624_v60, %v5980_v1 }
 0x20d   :  { %v654_v5 = vpack.c.bf16 %v646_v63, %v646_v63 }
 0x20f   :  { %v670_v13 = vunpack.c.l.b16 %v654_v5 }
 0x212   :  { %v626_v62 = vpop.permute.xlu2 %625 }
 0x213   :  { %v647_v4 = vmul.f32 %v626_v62, %v6008_v29  ;;  %v677_v29 = vrot.slane %v670_v13, 7 }
 0x215   :  { %v655_v8 = vpack.c.bf16 %v647_v4, %v647_v4 }
 0x217   :  { %v628_v0 = vpop.permute.xlu1 %627 }
 0x218   :  { %v648_v9 = vmul.f32 %v628_v0, %v6022_v44 }
 0x21a   :  { %v630_v56 = vpop.permute.xlu2 %629  ;;  %v656_v24 = vpack.c.bf16 %v648_v9, %v648_v9 }
 0x21b   :  { %v649_v16 = vmul.f32 %v630_v56, %v6025_v31 }
 0x21c   :  { %v672_v44 = vunpack.c.l.b16 %v656_v24 }
 0x21d   :  { %v657_v10 = vpack.c.bf16 %v649_v16, %v649_v16 }
 0x21e   :  { %v683_v40 = vrot.slane %v672_v44, 5 }
 0x220   :  { %v622_v61 = vpop.permute.xlu0 %621 }
 0x221   :  { %v645_v51 = vmul.f32 %v622_v61, %v5970_v55  ;;  %v671_v55 = vunpack.c.l.b16 %v655_v8 }
 0x223   :  { %v653_v11 = vpack.c.bf16 %v645_v51, %v645_v51  ;;  %v680_v33 = vrot.slane %v671_v55, 6 }
 0x225   :  { %v669_v1 = vunpack.c.l.b16 %v653_v11 }
 0x227   :  { %v679_v23 = vsel %vm678_vm3, %v677_v29, %v669_v1 }
 0x228   :  { %v632_v7 = vpop.permute.xlu0 %631  ;;  %v682_v31 = vsel %vm681_vm4, %v680_v33, %v679_v23 }
 0x229   :  { %v650_v14 = vmul.f32 %v632_v7, %v6001_v22  ;;  %v673_v22 = vunpack.c.l.b16 %v657_v10  ;;  %v685_v42 = vsel %vm684_vm5, %v683_v40, %v682_v31 }
 0x22b   :  { %v658_v28 = vpack.c.bf16 %v650_v14, %v650_v14  ;;  %v686_v49 = vrot.slane %v673_v22, 4 }
 0x22d   :  { %v674_v35 = vunpack.c.l.b16 %v658_v28  ;;  %v688_v52 = vsel %vm687_vm6, %v686_v49, %v685_v42 }
 0x22f   :  { %v634_v18 = vpop.permute.xlu1 %633  ;;  %v689_v45 = vrot.slane %v674_v35, 3 }
 0x230   :  { %v651_v25 = vmul.f32 %v634_v18, %v6031_v3 }
 0x231   :  { %v691_v54 = vsel %vm690_vm7, %v689_v45, %v688_v52 }
 0x232   :  { %v659_v30 = vpack.c.bf16 %v651_v25, %v651_v25 }
 0x234   :  { %v675_v37 = vunpack.c.l.b16 %v659_v30 }
 0x236   :  { %v692_v20 = vrot.slane %v675_v37, 2 }
 0x237   :  { %v636_v39 = vpop.permute.xlu2 %635 }
 0x238   :  { %v652_v3 = vmul.f32 %v636_v39, %v6035_v12  ;;  %v694_v59 = vsel %vm693_vm8, %v692_v20, %v691_v54 }
 0x23a   :  { %v660_v47 = vpack.c.bf16 %v652_v3, %v652_v3 }
 0x23c   :  { %v676_v41 = vunpack.c.l.b16 %v660_v47 }
 0x23e   :  { %v695_v57 = vrot.slane %v676_v41, 1 }
 0x240   :  { %v697_v12 = vsel %vm696_vm9, %v695_v57, %v694_v59 }
 0x241   :  { %v698_v60 = vpack.c.b16 %v697_v12, %v697_v12 }
 0x243   :  { %699 = vrot.lane.b32.xlu0 %v698_v60, %s5726_s5 }
 0x2b5   :  { %v700_v61 = vpop.permute.xlu0 %699 }
 0x2b6   :  { %4676 = vmatmul.msk.bf16.vlgmr.msra.gmra.mxu3 %vm316_vm10, %v700_v61 }
 0x2b7   :  { %3116 = vmatpush.bf16.msra.mxu3 %v5866_v2 }
 0x2bb   :  { %3117 = vmatpush.bf16.msra.mxu3 %v5869_v6 }
 0x339   :  { %v713_v62 = vpop.f32.mrf.mxu3 }
 0x33a   :  { %v734_v63 = vadd.f32 %v713_v62, %v5889_v21  ;;  %v719_v0 = vrot.slane %v713_v62, 1  ;;  %v718_v51 = vrot.slane %v713_v62, 7  ;;  %v722_v5 = vrot.slane %v713_v62, 4 }
 0x33b   :  { %v721_v9 = vrot.slane %v713_v62, 3  ;;  %v720_v8 = vrot.slane %v713_v62, 2  ;;  %v724_v18 = vrot.slane %v713_v62, 6  ;;  %v723_v1 = vrot.slane %v713_v62, 5 }
 0x33c   :  { %4911 = vtanh.f32 %v734_v63  ;;  %v735_v4 = vadd.f32 %v719_v0, %v5893_v27  ;;  %v733_v7 = vadd.f32 %v718_v51, %v5887_v19  ;;  %v738_v56 = vadd.f32 %v722_v5, %v5906_v43 }
 0x33d   :  { %v737_v6 = vadd.f32 %v721_v9, %v5902_v38  ;;  %v736_v14 = vadd.f32 %v720_v8, %v5898_v34  ;;  %v740_v25 = vadd.f32 %v724_v18, %v5914_v53  ;;  %v739_v29 = vadd.f32 %v723_v1, %v5910_v48 }
 0x33e   :  { %4913 = vtanh.f32 %v735_v4  ;;  %v4679_v44 = vmul.f32 -1.442695, %v735_v4  ;;  %v4678_v37 = vmul.f32 -1.442695, %v734_v63  ;;  %v4677_v42 = vmul.f32 -1.442695, %v733_v7 }
 0x33f   :  { %4915 = vtanh.f32 %v733_v7  ;;  %v4681_v23 = vmul.f32 -1.442695, %v737_v6  ;;  %v4684_v22 = vmul.f32 -1.442695, %v740_v25  ;;  %v4682_v47 = vmul.f32 -1.442695, %v738_v56 }
 0x340   :  { %4917 = vtanh.f32 %v738_v56  ;;  %v4680_v12 = vmul.f32 -1.442695, %v736_v14 }
 0x341   :  { %v715_v11 = vpop.f32.mrf.mxu3  ;;  %4919 = vtanh.f32 %v737_v6 }
 0x342   :  { %v4912_v2 = vpop.eup %4911  ;;  %4921 = vtanh.f32 %v736_v14 }
 0x343   :  { %943 = vrot.lane.b32.xlu0 %v4912_v2, %s5714_s28  ;;  %4923 = vtanh.f32 %v740_v25  ;;  %v4683_v2 = vmul.f32 -1.442695, %v739_v29 }
 0x344   :  { %v4914_v13 = vpop.eup %4913  ;;  %4925 = vtanh.f32 %v739_v29 }
 0x345   :  { %945 = vrot.lane.b32.xlu2 %v4914_v13, %s5714_s28  ;;  %v4916_v16 = vpop.eup %4915  ;;  %4927 = vpow2.f32 %v4679_v44 }
 0x346   :  { %941 = vrot.lane.b32.xlu1 %v4916_v16, %s5714_s28  ;;  %v4918_v24 = vpop.eup %4917  ;;  %4929 = vpow2.f32 %v4681_v23 }
 0x347   :  { %v4920_v55 = vpop.eup %4919 }
 0x348   :  { %v4922_v28 = vpop.eup %4921 }
 0x349   :  { %v4924_v10 = vpop.eup %4923 }
 0x34a   :  { %v4926_v30 = vpop.eup %4925 }
 0x34b   :  { %951 = vrot.lane.b32.xlu0 %v4918_v24, %s5714_s28  ;;  %v4928_v33 = vpop.eup %4927 }
 0x34c   :  { %v767_v35 = vadd.f32 1.0, %v4928_v33  ;;  %v4930_v31 = vpop.eup %4929 }
 0x34d   :  { %949 = vrot.lane.b32.xlu2 %v4920_v55, %s5714_s28  ;;  %v6114_v39 = vadd.f32 1.0, %v4930_v31 }
 0x34e   :  { %947 = vrot.lane.b32.xlu1 %v4922_v28, %s5714_s28  ;;  %4931 = vrcp.f32 %v767_v35  ;;  %v814_v4 = vand.u32 2147483648, %v767_v35  ;;  %vm808_vm12 = vweird.f32 %v767_v35  ;;  %v812_v5 = vand.u32 2147483647, %v767_v35 }
 0x34f   :  { %4933 = vpow2.f32 %v4684_v22  ;;  %v844_v25 = vand.u32 2147483648, %v6114_v39  ;;  %vm838_vm1 = vweird.f32 %v6114_v39  ;;  %v842_v28 = vand.u32 2147483647, %v6114_v39 }
 0x350   :  { %4935 = vpow2.f32 %v4678_v37  ;;  %v815_v8 = vor.u32 1.1754944e-38, %v814_v4  ;;  %vm813_vm14 = vcmp.eq.f32.partialorder %v812_v5, 8.507059e+37 }
 0x351   :  { %4937 = vrcp.f32 %v6114_v39  ;;  %v845_v33 = vor.u32 1.1754944e-38, %v844_v25 }
 0x352   :  { %4939 = vpow2.f32 %v4677_v42 }
 0x353   :  { %4941 = vpow2.f32 %v4682_v47 }
 0x354   :  { %v4932_v40 = vpop.eup %4931 }
 0x355   :  { %955 = vrot.lane.b32.xlu2 %v4924_v10, %s5714_s28  ;;  %v4934_v3 = vpop.eup %4933  ;;  %v804_v45 = vmul.f32 %v4932_v40, %v767_v35  ;;  %vm809_vm11 = vweird.f32 %v4932_v40 }
 0x356   :  { %953 = vrot.lane.b32.xlu1 %v4926_v30, %s5714_s28  ;;  %v6117_v49 = vadd.f32 1.0, %v4934_v3  ;;  %v4936_v20 = vpop.eup %4935  ;;  %vm810_vm13 = vmor %vm808_vm12, %vm809_vm11  ;;  %vm843_vm11 = vcmp.eq.f32.partialorder %v842_v28, 8.507059e+37 }
 0x357   :  { %v805_v41 = vsub.f32 1.0, %v804_v45  ;;  %v4938_v52 = vpop.eup %4937  ;;  %v6120_v54 = vadd.f32 1.0, %v4936_v20 }
 0x358   :  { %4943 = vrcp.f32 %v6117_v49  ;;  %v834_v59 = vmul.f32 %v4938_v52, %v6114_v39  ;;  %v4940_v60 = vpop.eup %4939  ;;  %vm839_vm15 = vweird.f32 %v4938_v52  ;;  %v889_v42 = vand.u32 2147483648, %v6117_v49 }
 0x359   :  { %v806_v57 = vmul.f32 %v4932_v40, %v805_v41  ;;  %v4942_v61 = vpop.eup %4941  ;;  %4945 = vrcp.f32 %v6120_v54  ;;  %v6126_v51 = vadd.f32 1.0, %v4940_v60  ;;  %vm840_vm2 = vmor %vm838_vm1, %vm839_vm15  ;;  %v887_v41 = vand.u32 2147483647, %v6117_v49 }
 0x35a   :  { %v835_v63 = vsub.f32 1.0, %v834_v59  ;;  %4947 = vpow2.f32 %v4680_v12  ;;  %v6128_v7 = vadd.f32 1.0, %v4942_v61  ;;  %v890_v12 = vor.u32 1.1754944e-38, %v889_v42 }
 0x35b   :  { %v807_v62 = vadd.f32 %v4932_v40, %v806_v57  ;;  %4949 = vrcp.f32 %v6126_v51  ;;  %vm888_vm1 = vcmp.eq.f32.partialorder %v887_v41, 8.507059e+37 }
 0x35c   :  { %v836_v56 = vmul.f32 %v4938_v52, %v835_v63  ;;  %4951 = vrcp.f32 %v6128_v7  ;;  %v859_v28 = vand.u32 2147483648, %v6128_v7 }
 0x35d   :  { %v811_v9 = vsel %vm810_vm13, %v4932_v40, %v807_v62  ;;  %4953 = vpow2.f32 %v4683_v2  ;;  %vm883_vm13 = vweird.f32 %v6117_v49  ;;  %v799_v62 = vand.u32 2147483648, %v6120_v54 }
 0x35e   :  { %v6124_v0 = vpop.eup %4943  ;;  %v6136_v16 = vsel %vm813_vm14, %v815_v8, %v811_v9  ;;  %v837_v24 = vadd.f32 %v4938_v52, %v836_v56 }
 0x35f   :  { %v879_v11 = vmul.f32 %v6124_v0, %v6117_v49  ;;  %v6133_v6 = vpop.eup %4945  ;;  %vm884_vm12 = vweird.f32 %v6124_v0  ;;  %v800_v2 = vor.u32 1.1754944e-38, %v799_v62 }
 0x360   :  { %v4948_v13 = vpop.eup %4947  ;;  %v789_v55 = vmul.f32 %v6133_v6, %v6120_v54  ;;  %v841_v30 = vsel %vm840_vm2, %v4938_v52, %v837_v24  ;;  %vm885_vm14 = vmor %vm883_vm13, %vm884_vm12  ;;  %vm794_vm15 = vweird.f32 %v6133_v6  ;;  %vm793_vm2 = vweird.f32 %v6120_v54 }
 0x361   :  { %v880_v1 = vsub.f32 1.0, %v879_v11  ;;  %v6142_v29 = vadd.f32 1.0, %v4948_v13  ;;  %v6147_v10 = vpop.eup %4949  ;;  %v6155_v37 = vsel %vm843_vm11, %v845_v33, %v841_v30  ;;  %vm795_vm11 = vmor %vm793_vm2, %vm794_vm15  ;;  %vm853_vm2 = vweird.f32 %v6128_v7 }
 0x362   :  { %v6150_v23 = vpop.eup %4951  ;;  %v790_v35 = vsub.f32 1.0, %v789_v55  ;;  %v774_v22 = vmul.f32 %v6147_v10, %v6126_v51  ;;  %vm779_vm12 = vweird.f32 %v6147_v10 }
 0x363   :  { %v881_v44 = vmul.f32 %v6124_v0, %v880_v1  ;;  %4955 = vrcp.f32 %v6142_v29  ;;  %v4954_v31 = vpop.eup %4953  ;;  %v849_v47 = vmul.f32 %v6150_v23, %v6128_v7 }
 0x364   :  { %v791_v45 = vmul.f32 %v6133_v6, %v790_v35  ;;  %v6164_v20 = vadd.f32 1.0, %v4954_v31  ;;  %v775_v52 = vsub.f32 1.0, %v774_v22 }
 0x365   :  { %v882_v3 = vadd.f32 %v6124_v0, %v881_v44  ;;  %v850_v61 = vsub.f32 1.0, %v849_v47  ;;  %v857_v44 = vand.u32 2147483647, %v6128_v7 }
 0x366   :  { %v792_v60 = vadd.f32 %v6133_v6, %v791_v45  ;;  %4957 = vrcp.f32 %v6164_v20  ;;  %v776_v63 = vmul.f32 %v6147_v10, %v775_v52  ;;  %v829_v45 = vand.u32 2147483648, %v6142_v29 }
 0x367   :  { %v886_v59 = vsel %vm885_vm14, %v6124_v0, %v882_v3  ;;  %v797_v0 = vand.u32 2147483647, %v6120_v54  ;;  %v851_v11 = vmul.f32 %v6150_v23, %v850_v61  ;;  %v784_v54 = vand.u32 2147483648, %v6126_v51 }
 0x368   :  { %v6177_v49 = vsel %vm888_vm1, %v890_v12, %v886_v59  ;;  %v796_v56 = vsel %vm795_vm11, %v6133_v6, %v792_v60  ;;  %v777_v8 = vadd.f32 %v6147_v10, %v776_v63  ;;  %vm778_vm14 = vweird.f32 %v6126_v51 }
 0x369   :  { %v6169_v57 = vpop.eup %4955  ;;  %vm798_vm13 = vcmp.eq.f32.partialorder %v797_v0, 8.507059e+37  ;;  %v782_v6 = vand.u32 2147483647, %v6126_v51  ;;  %vm780_vm15 = vmor %vm778_vm14, %vm779_vm12  ;;  %v852_v25 = vadd.f32 %v6150_v23, %v851_v11  ;;  %vm854_vm1 = vweird.f32 %v6150_v23 }
 0x36a   :  { %v819_v5 = vmul.f32 %v6169_v57, %v6142_v29  ;;  %v6190_v24 = vsel %vm798_vm13, %v800_v2, %v796_v56  ;;  %v781_v55 = vsel %vm780_vm15, %v6147_v10, %v777_v8  ;;  %v785_v30 = vor.u32 1.1754944e-38, %v784_v54  ;;  %vm855_vm12 = vmor %vm853_vm2, %vm854_vm1 }
 0x36b   :  { %vm783_vm11 = vcmp.eq.f32.partialorder %v782_v6, 8.507059e+37  ;;  %v856_v10 = vsel %vm855_vm12, %v6150_v23, %v852_v25  ;;  %vm858_vm13 = vcmp.eq.f32.partialorder %v857_v44, 8.507059e+37  ;;  %vm824_vm14 = vweird.f32 %v6169_v57 }
 0x36c   :  { %v820_v13 = vsub.f32 1.0, %v819_v5  ;;  %v6204_v22 = vsel %vm783_vm11, %v785_v30, %v781_v55  ;;  %vm823_vm15 = vweird.f32 %v6142_v29  ;;  %v827_v23 = vand.u32 2147483647, %v6142_v29 }
 0x36d   :  { %vm825_vm1 = vmor %vm823_vm15, %vm824_vm14  ;;  %v830_v59 = vor.u32 1.1754944e-38, %v829_v45  ;;  %v874_v63 = vand.u32 2147483648, %v6164_v20  ;;  %vm868_vm12 = vweird.f32 %v6164_v20  ;;  %v872_v29 = vand.u32 2147483647, %v6164_v20 }
 0x36e   :  { %v821_v51 = vmul.f32 %v6169_v57, %v820_v13  ;;  %vm828_vm2 = vcmp.eq.f32.partialorder %v827_v23, 8.507059e+37  ;;  %v910_v56 = vrot.slane %v6040_v17, 7  ;;  %v911_v2 = vrot.slane %v6059_v15, 7 }
 0x36f   :  { %vm873_vm14 = vcmp.eq.f32.partialorder %v872_v29, 8.507059e+37  ;;  %v913_v6 = vrot.slane %v6068_v50, 7  ;;  %v4802_v29 = vld [vmem:[%s7831_s8] sm:$0xff]  ;;  %s5727_s8 = smov 96  }
 0x370   :  { %v926_v11 = vmul.f32 %v910_v56, %v6190_v24  ;;  %229 = vmatpush.bf16.msra.mxu0 %v4802_v29 }
 0x371   :  { %v929_v55 = vmul.f32 %v913_v6, %v6155_v37 }
 0x39f   :  { %v946_v14 = vpop.permute.xlu2 %945 }
 0x3a0   :  { %v967_v18 = vmul.f32 %v946_v14, %v6136_v16  ;;  %v4958_v14 = vpop.eup %4957 }
 0x3a1   :  { %v864_v33 = vmul.f32 %v4958_v14, %v6164_v20  ;;  %vm869_vm11 = vweird.f32 %v4958_v14  ;;  %v927_v20 = vmul.f32 %v911_v2, %v6136_v16  ;;  %v5456_v2 = vld [vmem:[#allocation10] sm:$0xff] }
 0x3a2   :  { %985 = vrot.lane.b32.xlu1 %v967_v18, %s5726_s5 }
 0x3a3   :  { %v865_v7 = vsub.f32 1.0, %v864_v33 }
 0x3a5   :  { %v866_v52 = vmul.f32 %v4958_v14, %v865_v7 }
 0x3a7   :  { %v950_v39 = vpop.permute.xlu2 %949  ;;  %v867_v62 = vadd.f32 %v4958_v14, %v866_v52 }
 0x3a8   :  { %v969_v40 = vmul.f32 %v950_v39, %v6155_v37  ;;  %v860_v39 = vor.u32 1.1754944e-38, %v859_v28 }
 0x3aa   :  { %989 = vrot.lane.b32.xlu1 %v969_v40, %s5726_s5  ;;  %v822_v40 = vadd.f32 %v6169_v57, %v821_v51  ;;  %v6211_v42 = vsel %vm858_vm13, %v860_v39, %v856_v10  ;;  %vm870_vm13 = vmor %vm868_vm12, %vm869_vm11 }
 0x3ac   :  { %v826_v41 = vsel %vm825_vm1, %v6169_v57, %v822_v40  ;;  %v871_v57 = vsel %vm870_vm13, %v4958_v14, %v867_v62 }
 0x3ad   :  { %v6219_v12 = vsel %vm828_vm2, %v830_v59, %v826_v41 }
 0x3af   :  { %v956_v4 = vpop.permute.xlu2 %955 }
 0x3b0   :  { %v972_v9 = vmul.f32 %v956_v4, %v6177_v49  ;;  %v875_v4 = vor.u32 1.1754944e-38, %v874_v63 }
 0x3b2   :  { %995 = vrot.lane.b32.xlu1 %v972_v9, %s5726_s5  ;;  %v6226_v0 = vsel %vm873_vm14, %v875_v4, %v871_v57 }
 0x3b5   :  { %v944_v18 = vpop.permute.xlu0 %943 }
 0x3b6   :  { %v966_v1 = vmul.f32 %v944_v18, %v6190_v24  ;;  %v914_v18 = vrot.slane %v6054_v36, 7  ;;  %v916_v36 = vrot.slane %v6075_v58, 7 }
 0x3b8   :  { %983 = vrot.lane.b32.xlu2 %v966_v1, %s5726_s5  ;;  %v942_v35 = vpop.permute.xlu1 %941  ;;  %v930_v17 = vmul.f32 %v914_v18, %v6211_v42  ;;  %v932_v51 = vmul.f32 %v916_v36, %v6177_v49 }
 0x3b9   :  { %v965_v31 = vmul.f32 %v942_v35, %v6204_v22 }
 0x3bb   :  { %981 = vrot.lane.b32.xlu0 %v965_v31, %s5726_s5  ;;  %v909_v31 = vrot.slane %v6049_v32, 7  ;;  %v915_v32 = vrot.slane %v6063_v46, 7  ;;  %v4801_v46 = vld [vmem:[#allocation13] sm:$0xff] }
 0x3bc   :  { %4651 = vmatmul.msk.bf16.vlgmr.msra.gmra.mxu0 %vm7839_vm0, %v4801_v46 }
 0x3bd   :  { %v952_v3 = vpop.permute.xlu0 %951  ;;  %v925_v40 = vmul.f32 %v909_v31, %v6204_v22  ;;  %v931_v52 = vmul.f32 %v915_v32, %v6226_v0 }
 0x3be   :  { %v970_v47 = vmul.f32 %v952_v3, %v6211_v42  ;;  %v912_v3 = vrot.slane %v6045_v26, 7 }
 0x3c0   :  { %991 = vrot.lane.b32.xlu2 %v970_v47, %s5726_s5  ;;  %v948_v60 = vpop.permute.xlu1 %947  ;;  %v928_v45 = vmul.f32 %v912_v3, %v6219_v12 }
 0x3c1   :  { %v968_v61 = vmul.f32 %v948_v60, %v6219_v12 }
 0x3c3   :  { %987 = vrot.lane.b32.xlu0 %v968_v61, %s5726_s5 }
 0x3c8   :  { %v954_v5 = vpop.permute.xlu1 %953 }
 0x3c9   :  { %v971_v9 = vmul.f32 %v954_v5, %v6226_v0  ;;  %v5455_v5 = vld [vmem:[#allocation10 + $0x8] sm:$0xff] }
 0x3ca   :  { %1111 = vmatpush.bf16.msrb.mxu0 %v5455_v5 }
 0x3cb   :  { %993 = vrot.lane.b32.xlu0 %v971_v9, %s5726_s5 }
 0x3ce   :  { %1112 = vmatpush.bf16.msrb.mxu0 %v5456_v2 }
 0x3d2   :  { %2314 = vmatpush.bf16.msra.mxu0 %v5455_v5 }
 0x3d6   :  { %2315 = vmatpush.bf16.msra.mxu0 %v5456_v2 }
 0x412   :  { %v984_v8 = vpop.permute.xlu2 %983 }
 0x413   :  { %v6233_v54 = vadd.f32 %v984_v8, %v926_v11 }
 0x414   :  { %v986_v13 = vpop.permute.xlu1 %985 }
 0x415   :  { %4959 = vtanh.f32 %v6233_v54  ;;  %v6237_v14 = vadd.f32 %v986_v13, %v927_v20 }
 0x417   :  { %4961 = vtanh.f32 %v6237_v14 }
 0x41a   :  { %v992_v1 = vpop.permute.xlu2 %991 }
 0x41b   :  { %v4960_v15 = vpop.eup %4959  ;;  %v6243_v25 = vadd.f32 %v992_v1, %v930_v17 }
 0x41c   :  { %1031 = vrot.lane.b32.xlu1 %v4960_v15, %s5714_s28  ;;  %v990_v28 = vpop.permute.xlu1 %989 }
 0x41d   :  { %4963 = vtanh.f32 %v6243_v25  ;;  %v4962_v30 = vpop.eup %4961  ;;  %v6248_v44 = vadd.f32 %v990_v28, %v929_v55 }
 0x41e   :  { %1033 = vrot.lane.b32.xlu0 %v4962_v30, %s5714_s28 }
 0x41f   :  { %4965 = vtanh.f32 %v6248_v44 }
 0x423   :  { %v4964_v50 = vpop.eup %4963 }
 0x424   :  { %1039 = vrot.lane.b32.xlu1 %v4964_v50, %s5714_s28  ;;  %v996_v33 = vpop.permute.xlu1 %995 }
 0x425   :  { %v4966_v35 = vpop.eup %4965  ;;  %v6255_v10 = vadd.f32 %v996_v33, %v932_v51 }
 0x426   :  { %1037 = vrot.lane.b32.xlu0 %v4966_v35, %s5714_s28 }
 0x427   :  { %4967 = vtanh.f32 %v6255_v10 }
 0x42d   :  { %v4968_v39 = vpop.eup %4967  ;;  %v982_v7 = vpop.permute.xlu0 %981 }
 0x42e   :  { %1043 = vrot.lane.b32.xlu0 %v4968_v39, %s5714_s28  ;;  %v6262_v58 = vadd.f32 %v982_v7, %v925_v40 }
 0x430   :  { %4969 = vtanh.f32 %v6262_v58 }
 0x435   :  { %v988_v23 = vpop.permute.xlu0 %987 }
 0x436   :  { %v4970_v47 = vpop.eup %4969  ;;  %v6267_v41 = vadd.f32 %v988_v23, %v928_v45 }
 0x437   :  { %1029 = vrot.lane.b32.xlu2 %v4970_v47, %s5714_s28 }
 0x438   :  { %4971 = vtanh.f32 %v6267_v41 }
 0x43d   :  { %v994_v59 = vpop.permute.xlu0 %993 }
 0x43e   :  { %v4972_v60 = vpop.eup %4971  ;;  %v6273_v61 = vadd.f32 %v994_v59, %v931_v52 }
 0x43f   :  { %1035 = vrot.lane.b32.xlu2 %v4972_v60, %s5714_s28 }
 0x440   :  { %4973 = vtanh.f32 %v6273_v61 }
 0x446   :  { %v4974_v26 = vpop.eup %4973 }
 0x447   :  { %1041 = vrot.lane.b32.xlu2 %v4974_v26, %s5714_s28 }
 0x48e   :  { %v1032_v62 = vpop.permute.xlu1 %1031 }
 0x48f   :  { %v1054_v11 = vmul.f32 %v1032_v62, %v6190_v24 }
 0x490   :  { %v1034_v63 = vpop.permute.xlu0 %1033 }
 0x491   :  { %v1030_v57 = vpop.permute.xlu2 %1029  ;;  %v1055_v9 = vmul.f32 %v1034_v63, %v6136_v16  ;;  %v1062_v6 = vpack.c.bf16 %v1054_v11, %v1054_v11 }
 0x492   :  { %v1053_v4 = vmul.f32 %v1030_v57, %v6204_v22 }
 0x493   :  { %v1063_v8 = vpack.c.bf16 %v1055_v9, %v1055_v9  ;;  %v1078_v30 = vunpack.c.l.b16 %v1062_v6 }
 0x494   :  { %v1061_v56 = vpack.c.bf16 %v1053_v4, %v1053_v4 }
 0x495   :  { %v1079_v1 = vunpack.c.l.b16 %v1063_v8 }
 0x496   :  { %v1077_v13 = vunpack.c.l.b16 %v1061_v56  ;;  %v1040_v17 = vpop.permute.xlu1 %1039 }
 0x497   :  { %v1058_v28 = vmul.f32 %v1040_v17, %v6211_v42  ;;  %v1087_v36 = vrot.slane %v1079_v1, 7 }
 0x498   :  { %v1038_v20 = vpop.permute.xlu0 %1037  ;;  %v1085_v55 = vrot.slane %v1077_v13, 1 }
 0x499   :  { %v1057_v18 = vmul.f32 %v1038_v20, %v6155_v37  ;;  %v1036_v22 = vpop.permute.xlu2 %1035  ;;  %v1066_v37 = vpack.c.bf16 %v1058_v28, %v1058_v28 }
 0x49a   :  { %v1056_v16 = vmul.f32 %v1036_v22, %v6219_v12  ;;  %v1086_v35 = vsel %vm678_vm3, %v1078_v30, %v1085_v55 }
 0x49b   :  { %v1065_v15 = vpack.c.bf16 %v1057_v18, %v1057_v18  ;;  %v1088_v12 = vsel %vm681_vm4, %v1087_v36, %v1086_v35  ;;  %v1082_v42 = vunpack.c.l.b16 %v1066_v37 }
 0x49c   :  { %v1064_v24 = vpack.c.bf16 %v1056_v16, %v1056_v16 }
 0x49d   :  { %v1081_v50 = vunpack.c.l.b16 %v1065_v15  ;;  %v1093_v60 = vrot.slane %v1082_v42, 4 }
 0x49e   :  { %v1080_v51 = vunpack.c.l.b16 %v1064_v24 }
 0x49f   :  { %v1091_v3 = vrot.slane %v1081_v50, 5 }
 0x4a0   :  { %v1044_v33 = vpop.permute.xlu0 %1043  ;;  %v1089_v39 = vrot.slane %v1080_v51, 6 }
 0x4a1   :  { %v1060_v31 = vmul.f32 %v1044_v33, %v6177_v49  ;;  %v1042_v7 = vpop.permute.xlu2 %1041 }
 0x4a2   :  { %v1059_v45 = vmul.f32 %v1042_v7, %v6226_v0  ;;  %v1090_v47 = vsel %vm684_vm5, %v1089_v39, %v1088_v12  ;;  %v231_v0 = vpop.f32.mrf.mxu0 }
 0x4a3   :  { %v1068_v40 = vpack.c.bf16 %v1060_v31, %v1060_v31  ;;  %v1092_v52 = vsel %vm687_vm6, %v1091_v3, %v1090_v47 }
 0x4a4   :  { %v1067_v32 = vpack.c.bf16 %v1059_v45, %v1059_v45  ;;  %v1094_v49 = vsel %vm690_vm7, %v1093_v60, %v1092_v52 }
 0x4a5   :  { %v1084_v23 = vunpack.c.l.b16 %v1068_v40 }
 0x4a6   :  { %v1083_v59 = vunpack.c.l.b16 %v1067_v32 }
 0x4a7   :  { %v1097_v26 = vrot.slane %v1084_v23, 2 }
 0x4a8   :  { %v1095_v62 = vrot.slane %v1083_v59, 3 }
 0x4aa   :  { %v1096_v63 = vsel %vm693_vm8, %v1095_v62, %v1094_v49  ;;  %v233_v57 = vpop.f32.mrf.mxu0 }
 0x4ab   :  { %v1098_v29 = vsel %vm696_vm9, %v1097_v26, %v1096_v63  ;;  %v6298_v4 = vpack.c.bf16 %v233_v57, %v231_v0 }
 0x4ac   :  { %v1099_v46 = vpack.c.b16 %v1098_v29, %v1098_v29 }
 0x4ad   :  { %3789 = vmatpush.bf16.msrb.mxu1 %v6298_v4 }
 0x4ae   :  { %1100 = vrot.lane.b32.xlu1 %v1099_v46, %s5726_s5 }
 0x4b1   :  { %4019 = vmatpush.bf16.msra.mxu1 %v6298_v4 }
 0x520   :  { %v1101_v5 = vpop.permute.xlu1 %1100 }
 0x521   :  { %4685 = vmatmul.msk.bf16.vlgmr.msrb.gmra.mxu0 %vm316_vm10, %v1101_v5 }
 0x59e   :  { %v1114_v9 = vpop.f32.mrf.mxu0 }
 0x59f   :  { %v1136_v56 = vadd.f32 %v1114_v9, %v5893_v27  ;;  %v1121_v11 = vrot.slane %v1114_v9, 1  ;;  %v1120_v2 = vrot.slane %v1114_v9, 7  ;;  %v1119_v20 = vrot.slane %v1114_v9, 6 }
 0x5a0   :  { %v1123_v18 = vrot.slane %v1114_v9, 3  ;;  %v1122_v1 = vrot.slane %v1114_v9, 2  ;;  %v1124_v24 = vrot.slane %v1114_v9, 4  ;;  %v1125_v36 = vrot.slane %v1114_v9, 5 }
 0x5a1   :  { %4975 = vtanh.f32 %v1136_v56  ;;  %v1137_v8 = vadd.f32 %v1121_v11, %v5898_v34  ;;  %v1135_v13 = vadd.f32 %v1120_v2, %v5889_v21  ;;  %v1134_v17 = vadd.f32 %v1119_v20, %v5887_v19 }
 0x5a2   :  { %v1139_v15 = vadd.f32 %v1123_v18, %v5906_v43  ;;  %v1138_v55 = vadd.f32 %v1122_v1, %v5902_v38  ;;  %v1140_v50 = vadd.f32 %v1124_v24, %v5910_v48  ;;  %v1141_v33 = vadd.f32 %v1125_v36, %v5914_v53 }
 0x5a3   :  { %4977 = vtanh.f32 %v1137_v8  ;;  %v4688_v39 = vmul.f32 -1.442695, %v1136_v56  ;;  %v4686_v40 = vmul.f32 -1.442695, %v1134_v17  ;;  %v4689_v32 = vmul.f32 -1.442695, %v1137_v8 }
 0x5a4   :  { %4979 = vtanh.f32 %v1135_v13  ;;  %v4692_v45 = vmul.f32 -1.442695, %v1140_v50  ;;  %v4687_v59 = vmul.f32 -1.442695, %v1135_v13  ;;  %v4691_v29 = vmul.f32 -1.442695, %v1139_v15 }
 0x5a5   :  { %4981 = vtanh.f32 %v1134_v17  ;;  %v4690_v0 = vmul.f32 -1.442695, %v1138_v55 }
 0x5a6   :  { %v1116_v6 = vpop.f32.mrf.mxu0  ;;  %4983 = vtanh.f32 %v1139_v15 }
 0x5a7   :  { %v4976_v22 = vpop.eup %4975  ;;  %4985 = vtanh.f32 %v1138_v55 }
 0x5a8   :  { %1346 = vrot.lane.b32.xlu2 %v4976_v22, %s5714_s28  ;;  %4987 = vtanh.f32 %v1140_v50  ;;  %v4693_v22 = vmul.f32 -1.442695, %v1141_v33 }
 0x5a9   :  { %v4978_v16 = vpop.eup %4977  ;;  %4989 = vtanh.f32 %v1141_v33 }
 0x5aa   :  { %1348 = vrot.lane.b32.xlu1 %v4978_v16, %s5714_s28  ;;  %v4980_v28 = vpop.eup %4979  ;;  %4991 = vpow2.f32 %v4688_v39 }
 0x5ab   :  { %1344 = vrot.lane.b32.xlu0 %v4980_v28, %s5714_s28  ;;  %v4982_v30 = vpop.eup %4981  ;;  %4993 = vpow2.f32 %v4686_v40 }
 0x5ac   :  { %v4984_v51 = vpop.eup %4983 }
 0x5ad   :  { %v4986_v35 = vpop.eup %4985 }
 0x5ae   :  { %v4988_v37 = vpop.eup %4987 }
 0x5af   :  { %v4990_v31 = vpop.eup %4989 }
 0x5b0   :  { %1342 = vrot.lane.b32.xlu2 %v4982_v30, %s5714_s28  ;;  %v4992_v7 = vpop.eup %4991 }
 0x5b1   :  { %v1168_v3 = vadd.f32 1.0, %v4992_v7  ;;  %v4994_v12 = vpop.eup %4993 }
 0x5b2   :  { %1352 = vrot.lane.b32.xlu1 %v4984_v51, %s5714_s28  ;;  %v1166_v42 = vadd.f32 1.0, %v4994_v12 }
 0x5b3   :  { %1350 = vrot.lane.b32.xlu0 %v4986_v35, %s5714_s28  ;;  %4995 = vrcp.f32 %v1168_v3  ;;  %v1215_v56 = vand.u32 2147483648, %v1168_v3  ;;  %vm1209_vm1 = vweird.f32 %v1168_v3  ;;  %v1213_v2 = vand.u32 2147483647, %v1168_v3 }
 0x5b4   :  { %4997 = vpow2.f32 %v4692_v45  ;;  %v1185_v24 = vand.u32 2147483648, %v1166_v42  ;;  %vm1179_vm13 = vweird.f32 %v1166_v42  ;;  %v1183_v50 = vand.u32 2147483647, %v1166_v42 }
 0x5b5   :  { %4999 = vrcp.f32 %v1166_v42  ;;  %v1216_v17 = vor.u32 1.1754944e-38, %v1215_v56  ;;  %vm1214_vm11 = vcmp.eq.f32.partialorder %v1213_v2, 8.507059e+37 }
 0x5b6   :  { %5001 = vpow2.f32 %v4689_v32 }
 0x5b7   :  { %5003 = vpow2.f32 %v4687_v59 }
 0x5b8   :  { %1354 = vrot.lane.b32.xlu2 %v4988_v37, %s5714_s28 }
 0x5b9   :  { %v4996_v47 = vpop.eup %4995 }
 0x5ba   :  { %v1205_v23 = vmul.f32 %v4996_v47, %v1168_v3  ;;  %v4998_v52 = vpop.eup %4997  ;;  %vm1210_vm15 = vweird.f32 %v4996_v47 }
 0x5bb   :  { %1356 = vrot.lane.b32.xlu0 %v4990_v31, %s5714_s28  ;;  %v5000_v26 = vpop.eup %4999  ;;  %v6319_v62 = vadd.f32 1.0, %v4998_v52  ;;  %vm1211_vm2 = vmor %vm1209_vm1, %vm1210_vm15  ;;  %v1186_v31 = vor.u32 1.1754944e-38, %v1185_v24  ;;  %vm1184_vm15 = vcmp.eq.f32.partialorder %v1183_v50, 8.507059e+37 }
 0x5bc   :  { %v1206_v60 = vsub.f32 1.0, %v1205_v23  ;;  %v1175_v63 = vmul.f32 %v5000_v26, %v1166_v42  ;;  %v5002_v46 = vpop.eup %5001  ;;  %vm1180_vm12 = vweird.f32 %v5000_v26 }
 0x5bd   :  { %5005 = vrcp.f32 %v6319_v62  ;;  %v5004_v9 = vpop.eup %5003  ;;  %v6322_v11 = vadd.f32 1.0, %v5002_v46  ;;  %vm1181_vm14 = vmor %vm1179_vm13, %vm1180_vm12  ;;  %v1275_v59 = vand.u32 2147483648, %v6319_v62 }
 0x5be   :  { %v1207_v49 = vmul.f32 %v4996_v47, %v1206_v60  ;;  %v1176_v5 = vsub.f32 1.0, %v1175_v63  ;;  %5007 = vpow2.f32 %v4691_v29  ;;  %v6324_v20 = vadd.f32 1.0, %v5004_v9 }
 0x5bf   :  { %5009 = vpow2.f32 %v4690_v0 }
 0x5c0   :  { %v1208_v57 = vadd.f32 %v4996_v47, %v1207_v49  ;;  %v1177_v18 = vmul.f32 %v5000_v26, %v1176_v5  ;;  %5011 = vrcp.f32 %v6322_v11 }
 0x5c1   :  { %5013 = vrcp.f32 %v6324_v20 }
 0x5c2   :  { %v1212_v13 = vsel %vm1211_vm2, %v4996_v47, %v1208_v57  ;;  %v1178_v28 = vadd.f32 %v5000_v26, %v1177_v18  ;;  %5015 = vpow2.f32 %v4693_v22  ;;  %vm1269_vm2 = vweird.f32 %v6319_v62 }
 0x5c3   :  { %v5006_v8 = vpop.eup %5005  ;;  %v6327_v15 = vsel %vm1214_vm11, %v1216_v17, %v1212_v13  ;;  %v1276_v57 = vor.u32 1.1754944e-38, %v1275_v59  ;;  %v1230_v18 = vand.u32 2147483648, %v6322_v11  ;;  %v1228_v17 = vand.u32 2147483647, %v6322_v11 }
 0x5c4   :  { %v5008_v6 = vpop.eup %5007  ;;  %v1265_v16 = vmul.f32 %v5006_v8, %v6319_v62  ;;  %v1182_v35 = vsel %vm1181_vm14, %v5000_v26, %v1178_v28  ;;  %vm1270_vm1 = vweird.f32 %v5006_v8  ;;  %v1273_v26 = vand.u32 2147483647, %v6319_v62 }
 0x5c5   :  { %v5010_v30 = vpop.eup %5009  ;;  %v6332_v36 = vadd.f32 1.0, %v5008_v6  ;;  %v6342_v7 = vsel %vm1184_vm15, %v1186_v31, %v1182_v35  ;;  %vm1271_vm11 = vmor %vm1269_vm2, %vm1270_vm1  ;;  %vm1224_vm14 = vweird.f32 %v6322_v11  ;;  %v1200_v22 = vand.u32 2147483648, %v6324_v20 }
 0x5c6   :  { %v1266_v51 = vsub.f32 1.0, %v1265_v16  ;;  %v6335_v33 = vpop.eup %5011  ;;  %v6337_v37 = vadd.f32 1.0, %v5010_v30  ;;  %vm1274_vm12 = vcmp.eq.f32.partialorder %v1273_v26, 8.507059e+37  ;;  %vm1194_vm2 = vweird.f32 %v6324_v20 }
 0x5c7   :  { %v6339_v39 = vpop.eup %5013  ;;  %5017 = vrcp.f32 %v6332_v36  ;;  %v1220_v12 = vmul.f32 %v6335_v33, %v6322_v11  ;;  %vm1225_vm13 = vweird.f32 %v6335_v33  ;;  %v1198_v28 = vand.u32 2147483647, %v6324_v20 }
 0x5c8   :  { %v1267_v3 = vmul.f32 %v5006_v8, %v1266_v51  ;;  %5019 = vrcp.f32 %v6337_v37  ;;  %v1190_v42 = vmul.f32 %v6339_v39, %v6324_v20  ;;  %v5016_v47 = vpop.eup %5015  ;;  %vm1195_vm15 = vweird.f32 %v6339_v39  ;;  %vm1226_vm1 = vmor %vm1224_vm14, %vm1225_vm13 }
 0x5c9   :  { %v1221_v32 = vsub.f32 1.0, %v1220_v12  ;;  %v6354_v60 = vadd.f32 1.0, %v5016_v47  ;;  %v1231_v30 = vor.u32 1.1754944e-38, %v1230_v18  ;;  %v1201_v35 = vor.u32 1.1754944e-38, %v1200_v22 }
 0x5ca   :  { %v1268_v23 = vadd.f32 %v5006_v8, %v1267_v3  ;;  %v1191_v49 = vsub.f32 1.0, %v1190_v42  ;;  %vm1199_vm13 = vcmp.eq.f32.partialorder %v1198_v28, 8.507059e+37  ;;  %v1258_v42 = vand.u32 2147483647, %v6332_v36 }
 0x5cb   :  { %v1222_v46 = vmul.f32 %v6335_v33, %v1221_v32  ;;  %5021 = vrcp.f32 %v6354_v60  ;;  %v1245_v59 = vand.u32 2147483648, %v6337_v37  ;;  %v1312_v22 = vrot.slane %v6237_v14, 7 }
 0x5cc   :  { %v1272_v29 = vsel %vm1271_vm11, %v5006_v8, %v1268_v23  ;;  %v1192_v5 = vmul.f32 %v6339_v39, %v1191_v49  ;;  %vm1196_vm11 = vmor %vm1194_vm2, %vm1195_vm15  ;;  %vm1254_vm15 = vweird.f32 %v6332_v36  ;;  %v1243_v49 = vand.u32 2147483647, %v6337_v37 }
 0x5cd   :  { %v6351_v52 = vpop.eup %5017  ;;  %v6365_v9 = vsel %vm1274_vm12, %v1276_v57, %v1272_v29  ;;  %v1223_v8 = vadd.f32 %v6335_v33, %v1222_v46  ;;  %vm1229_vm12 = vcmp.eq.f32.partialorder %v1228_v17, 8.507059e+37 }
 0x5ce   :  { %v6358_v63 = vpop.eup %5019  ;;  %v1250_v0 = vmul.f32 %v6351_v52, %v6332_v36  ;;  %v1193_v6 = vadd.f32 %v6339_v39, %v1192_v5  ;;  %vm1255_vm14 = vweird.f32 %v6351_v52  ;;  %v1246_v5 = vor.u32 1.1754944e-38, %v1245_v59 }
 0x5cf   :  { %v1235_v62 = vmul.f32 %v6358_v63, %v6337_v37  ;;  %vm1240_vm2 = vweird.f32 %v6358_v63 }
 0x5d0   :  { %v1251_v13 = vsub.f32 1.0, %v1250_v0  ;;  %v1197_v11 = vsel %vm1196_vm11, %v6339_v39, %v1193_v6  ;;  %v1260_v39 = vand.u32 2147483648, %v6332_v36  ;;  %vm1239_vm11 = vweird.f32 %v6337_v37 }
 0x5d1   :  { %v5022_v16 = vpop.eup %5021  ;;  %v6391_v12 = vsel %vm1199_vm13, %v1201_v35, %v1197_v11  ;;  %vm1241_vm13 = vmor %vm1239_vm11, %vm1240_vm2 }
 0x5d2   :  { %v1252_v24 = vmul.f32 %v6351_v52, %v1251_v13  ;;  %v1261_v26 = vor.u32 1.1754944e-38, %v1260_v39 }
 0x5d4   :  { %v1253_v20 = vadd.f32 %v6351_v52, %v1252_v24  ;;  %v1310_v24 = vrot.slane %v6262_v58, 7 }
 0x602   :  { %v1347_v1 = vpop.permute.xlu2 %1346 }
 0x603   :  { %v1368_v55 = vmul.f32 %v1347_v1, %v6327_v15  ;;  %v1236_v1 = vsub.f32 1.0, %v1235_v62 }
 0x605   :  { %1386 = vrot.lane.b32.xlu1 %v1368_v55, %s5726_s5  ;;  %v1227_v55 = vsel %vm1226_vm1, %v6335_v33, %v1223_v8  ;;  %v1237_v31 = vmul.f32 %v6358_v63, %v1236_v1  ;;  %vm1256_vm1 = vmor %vm1254_vm15, %vm1255_vm14  ;;  %vm1244_vm14 = vcmp.eq.f32.partialorder %v1243_v49, 8.507059e+37  ;;  %vm1285_vm15 = vweird.f32 %v5022_v16 }
 0x606   :  { %v6384_v51 = vsel %vm1229_vm12, %v1231_v30, %v1227_v55  ;;  %v1257_v32 = vsel %vm1256_vm1, %v6351_v52, %v1253_v20  ;;  %vm1259_vm12 = vcmp.eq.f32.partialorder %v1258_v42, 8.507059e+37  ;;  %vm1284_vm1 = vweird.f32 %v6354_v60 }
 0x607   :  { %v1238_v47 = vadd.f32 %v6358_v63, %v1237_v31  ;;  %v6405_v36 = vsel %vm1259_vm12, %v1261_v26, %v1257_v32  ;;  %vm1286_vm2 = vmor %vm1284_vm1, %vm1285_vm15  ;;  %v1328_v1 = vmul.f32 %v1312_v22, %v6327_v15 }
 0x609   :  { %v1242_v46 = vsel %vm1241_vm13, %v6358_v63, %v1238_v47  ;;  %v1288_v63 = vand.u32 2147483647, %v6354_v60 }
 0x60a   :  { %v1343_v40 = vpop.permute.xlu2 %1342  ;;  %v6409_v52 = vsel %vm1244_vm14, %v1246_v5, %v1242_v46 }
 0x60b   :  { %v1366_v45 = vmul.f32 %v1343_v40, %v6342_v7  ;;  %v1280_v40 = vmul.f32 %v5022_v16, %v6354_v60  ;;  %vm1289_vm11 = vcmp.eq.f32.partialorder %v1288_v63, 8.507059e+37 }
 0x60d   :  { %1382 = vrot.lane.b32.xlu1 %v1366_v45, %s5726_s5  ;;  %v1281_v23 = vsub.f32 1.0, %v1280_v40 }
 0x60f   :  { %v1282_v0 = vmul.f32 %v5022_v16, %v1281_v23 }
 0x611   :  { %v1283_v37 = vadd.f32 %v5022_v16, %v1282_v0 }
 0x612   :  { %v1355_v56 = vpop.permute.xlu2 %1354 }
 0x613   :  { %v1372_v2 = vmul.f32 %v1355_v56, %v6365_v9  ;;  %v1287_v8 = vsel %vm1286_vm2, %v5022_v16, %v1283_v37 }
 0x615   :  { %1394 = vrot.lane.b32.xlu1 %v1372_v2, %s5726_s5  ;;  %v1290_v2 = vand.u32 2147483648, %v6354_v60  ;;  %v1311_v60 = vrot.slane %v6233_v54, 7  ;;  %v1314_v54 = vrot.slane %v6248_v44, 7  ;;  %v1317_v44 = vrot.slane %v6255_v10, 7 }
 0x617   :  { %v1291_v13 = vor.u32 1.1754944e-38, %v1290_v2  ;;  %v1327_v16 = vmul.f32 %v1311_v60, %v6391_v12  ;;  %v1330_v40 = vmul.f32 %v1314_v54, %v6409_v52 }
 0x619   :  { %v6417_v18 = vsel %vm1289_vm11, %v1291_v13, %v1287_v8 }
 0x61a   :  { %v1333_v23 = vmul.f32 %v1317_v44, %v6417_v18 }
 0x61c   :  { %v1349_v50 = vpop.permute.xlu1 %1348 }
 0x61d   :  { %v1369_v33 = vmul.f32 %v1349_v50, %v6384_v51  ;;  %v1345_v3 = vpop.permute.xlu0 %1344  ;;  %v1326_v50 = vmul.f32 %v1310_v24, %v6342_v7 }
 0x61e   :  { %v1367_v45 = vmul.f32 %v1345_v3, %v6391_v12  ;;  %v1316_v3 = vrot.slane %v6273_v61, 7  ;;  %v1313_v61 = vrot.slane %v6267_v41, 7 }
 0x61f   :  { %1388 = vrot.lane.b32.xlu0 %v1369_v33, %s5726_s5 }
 0x620   :  { %1384 = vrot.lane.b32.xlu2 %v1367_v45, %s5726_s5  ;;  %v1332_v45 = vmul.f32 %v1316_v3, %v6365_v9  ;;  %v1329_v49 = vmul.f32 %v1313_v61, %v6384_v51 }
 0x624   :  { %v1353_v29 = vpop.permute.xlu1 %1352 }
 0x625   :  { %v1371_v57 = vmul.f32 %v1353_v29, %v6405_v36  ;;  %v1351_v56 = vpop.permute.xlu0 %1350 }
 0x626   :  { %v1370_v62 = vmul.f32 %v1351_v56, %v6409_v52 }
 0x627   :  { %1392 = vrot.lane.b32.xlu0 %v1371_v57, %s5726_s5  ;;  %v1315_v57 = vrot.slane %v6243_v25, 7 }
 0x628   :  { %1390 = vrot.lane.b32.xlu2 %v1370_v62, %s5726_s5 }
 0x629   :  { %v1331_v41 = vmul.f32 %v1315_v57, %v6405_v36 }
 0x62d   :  { %v1357_v17 = vpop.permute.xlu0 %1356 }
 0x62e   :  { %v1373_v6 = vmul.f32 %v1357_v17, %v6417_v18 }
 0x630   :  { %1396 = vrot.lane.b32.xlu2 %v1373_v6, %s5726_s5 }
 0x677   :  { %v1387_v55 = vpop.permute.xlu1 %1386 }
 0x678   :  { %v6423_v28 = vadd.f32 %v1387_v55, %v1328_v1 }
 0x67a   :  { %5023 = vtanh.f32 %v6423_v28  ;;  %v1385_v30 = vpop.permute.xlu2 %1384 }
 0x67b   :  { %v6429_v11 = vadd.f32 %v1385_v30, %v1327_v16 }
 0x67d   :  { %5025 = vtanh.f32 %v6429_v11 }
 0x67f   :  { %v1383_v14 = vpop.permute.xlu1 %1382 }
 0x680   :  { %v5024_v35 = vpop.eup %5023  ;;  %v6433_v31 = vadd.f32 %v1383_v14, %v1326_v50 }
 0x681   :  { %1434 = vrot.lane.b32.xlu0 %v5024_v35, %s5714_s28 }
 0x682   :  { %5027 = vtanh.f32 %v6433_v31  ;;  %v1391_v33 = vpop.permute.xlu2 %1390 }
 0x683   :  { %v5026_v58 = vpop.eup %5025  ;;  %v6439_v20 = vadd.f32 %v1391_v33, %v1330_v40 }
 0x684   :  { %1432 = vrot.lane.b32.xlu1 %v5026_v58, %s5714_s28 }
 0x685   :  { %5029 = vtanh.f32 %v6439_v20 }
 0x687   :  { %v1395_v42 = vpop.permute.xlu1 %1394 }
 0x688   :  { %v5028_v39 = vpop.eup %5027  ;;  %v6447_v47 = vadd.f32 %v1395_v42, %v1332_v45 }
 0x689   :  { %1430 = vrot.lane.b32.xlu0 %v5028_v39, %s5714_s28 }
 0x68a   :  { %5031 = vtanh.f32 %v6447_v47  ;;  %v1397_v32 = vpop.permute.xlu2 %1396 }
 0x68b   :  { %v5030_v59 = vpop.eup %5029  ;;  %v6451_v26 = vadd.f32 %v1397_v32, %v1333_v23 }
 0x68c   :  { %1438 = vrot.lane.b32.xlu1 %v5030_v59, %s5714_s28 }
 0x68d   :  { %5033 = vtanh.f32 %v6451_v26 }
 0x690   :  { %v5032_v29 = vpop.eup %5031 }
 0x691   :  { %v1389_v10 = vpop.permute.xlu0 %1388  ;;  %1442 = vrot.lane.b32.xlu0 %v5032_v29, %s5714_s28 }
 0x692   :  { %v6457_v46 = vadd.f32 %v1389_v10, %v1329_v49 }
 0x693   :  { %v5034_v0 = vpop.eup %5033 }
 0x694   :  { %5035 = vtanh.f32 %v6457_v46  ;;  %1444 = vrot.lane.b32.xlu1 %v5034_v0, %s5714_s28 }
 0x699   :  { %v1393_v5 = vpop.permute.xlu0 %1392 }
 0x69a   :  { %v5036_v56 = vpop.eup %5035  ;;  %v6464_v62 = vadd.f32 %v1393_v5, %v1331_v41 }
 0x69b   :  { %1436 = vrot.lane.b32.xlu2 %v5036_v56, %s5714_s28 }
 0x69c   :  { %5037 = vtanh.f32 %v6464_v62 }
 0x6a2   :  { %v5038_v37 = vpop.eup %5037 }
 0x6a3   :  { %1440 = vrot.lane.b32.xlu2 %v5038_v37, %s5714_s28 }
 0x6f3   :  { %v1435_v2 = vpop.permute.xlu0 %1434 }
 0x6f4   :  { %v1456_v17 = vmul.f32 %v1435_v2, %v6327_v15 }
 0x6f5   :  { %v1437_v63 = vpop.permute.xlu2 %1436 }
 0x6f6   :  { %v1433_v8 = vpop.permute.xlu1 %1432  ;;  %v1457_v13 = vmul.f32 %v1437_v63, %v6384_v51  ;;  %v1464_v30 = vpack.c.bf16 %v1456_v17, %v1456_v17 }
 0x6f7   :  { %v1455_v25 = vmul.f32 %v1433_v8, %v6391_v12 }
 0x6f8   :  { %v1465_v55 = vpack.c.bf16 %v1457_v13, %v1457_v13  ;;  %v1480_v58 = vunpack.c.l.b16 %v1464_v30 }
 0x6f9   :  { %v1463_v6 = vpack.c.bf16 %v1455_v25, %v1455_v25 }
 0x6fa   :  { %v1481_v54 = vunpack.c.l.b16 %v1465_v55 }
 0x6fb   :  { %v1431_v22 = vpop.permute.xlu0 %1430  ;;  %v1479_v60 = vunpack.c.l.b16 %v1463_v6 }
 0x6fc   :  { %v1454_v1 = vmul.f32 %v1431_v22, %v6342_v7  ;;  %v1490_v39 = vrot.slane %v1481_v54, 7 }
 0x6fd   :  { %v1441_v24 = vpop.permute.xlu2 %1440  ;;  %v1487_v40 = vrot.slane %v1479_v60, 1 }
 0x6fe   :  { %v1462_v16 = vpack.c.bf16 %v1454_v1, %v1454_v1  ;;  %v1459_v14 = vmul.f32 %v1441_v24, %v6405_v36  ;;  %v1439_v35 = vpop.permute.xlu1 %1438 }
 0x6ff   :  { %v1458_v51 = vmul.f32 %v1439_v35, %v6409_v52 }
 0x700   :  { %v1478_v50 = vunpack.c.l.b16 %v1462_v16  ;;  %v1467_v33 = vpack.c.bf16 %v1459_v14, %v1459_v14 }
 0x701   :  { %v1466_v3 = vpack.c.bf16 %v1458_v51, %v1458_v51 }
 0x702   :  { %v1486_v12 = vrot.slane %v1478_v50, 2  ;;  %v1483_v23 = vunpack.c.l.b16 %v1467_v33 }
 0x703   :  { %v1482_v45 = vunpack.c.l.b16 %v1466_v3  ;;  %v1443_v44 = vpop.permute.xlu0 %1442 }
 0x704   :  { %v1488_v15 = vsel %vm678_vm3, %v1487_v40, %v1486_v12  ;;  %v1460_v42 = vmul.f32 %v1443_v44, %v6365_v9  ;;  %v1494_v29 = vrot.slane %v1483_v23, 5 }
 0x705   :  { %v1489_v7 = vsel %vm681_vm4, %v1480_v58, %v1488_v15  ;;  %v1492_v32 = vrot.slane %v1482_v45, 6 }
 0x706   :  { %v1491_v36 = vsel %vm684_vm5, %v1490_v39, %v1489_v7  ;;  %v1468_v59 = vpack.c.bf16 %v1460_v42, %v1460_v42  ;;  %v1445_v61 = vpop.permute.xlu1 %1444 }
 0x707   :  { %v1461_v52 = vmul.f32 %v1445_v61, %v6417_v18  ;;  %v1493_v49 = vsel %vm687_vm6, %v1492_v32, %v1491_v36 }
 0x708   :  { %v1484_v10 = vunpack.c.l.b16 %v1468_v59  ;;  %v1495_v5 = vsel %vm690_vm7, %v1494_v29, %v1493_v49 }
 0x709   :  { %v1469_v0 = vpack.c.bf16 %v1461_v52, %v1461_v52 }
 0x70a   :  { %v1496_v57 = vrot.slane %v1484_v10, 4 }
 0x70b   :  { %v1485_v41 = vunpack.c.l.b16 %v1469_v0 }
 0x70c   :  { %v1497_v56 = vsel %vm693_vm8, %v1496_v57, %v1495_v5 }
 0x70d   :  { %v1498_v9 = vrot.slane %v1485_v41, 3 }
 0x70f   :  { %v1499_v37 = vsel %vm696_vm9, %v1498_v9, %v1497_v56 }
 0x710   :  { %v1500_v2 = vpack.c.b16 %v1499_v37, %v1499_v37 }
 0x712   :  { %1501 = vrot.lane.b32.xlu2 %v1500_v2, %s5726_s5 }
 0x76c   :  { %v1502_v63 = vpop.permute.xlu2 %1501 }
 0x76d   :  { %4694 = vmatmul.msk.bf16.vlgmr.msrb.gmra.mxu2 %vm316_vm10, %v1502_v63 }
 0x7f0   :  { %v1515_v18 = vpop.f32.mrf.mxu2 }
 0x7f1   :  { %v1538_v8 = vadd.f32 %v1515_v18, %v5898_v34  ;;  %v1522_v25 = vrot.slane %v1515_v18, 7  ;;  %v1520_v13 = vrot.slane %v1515_v18, 5  ;;  %v1521_v6 = vrot.slane %v1515_v18, 6 }
 0x7f2   :  { %v1524_v1 = vrot.slane %v1515_v18, 2  ;;  %v1523_v24 = vrot.slane %v1515_v18, 1  ;;  %v1526_v54 = vrot.slane %v1515_v18, 4  ;;  %v1525_v12 = vrot.slane %v1515_v18, 3 }
 0x7f3   :  { %5039 = vtanh.f32 %v1538_v8  ;;  %v1537_v17 = vadd.f32 %v1522_v25, %v5893_v27  ;;  %v1535_v22 = vadd.f32 %v1520_v13, %v5887_v19  ;;  %v1536_v55 = vadd.f32 %v1521_v6, %v5889_v21 }
 0x7f4   :  { %v1540_v30 = vadd.f32 %v1524_v1, %v5906_v43  ;;  %v1539_v14 = vadd.f32 %v1523_v24, %v5902_v38  ;;  %v1542_v51 = vadd.f32 %v1526_v54, %v5914_v53  ;;  %v1541_v15 = vadd.f32 %v1525_v12, %v5910_v48 }
 0x7f5   :  { %5041 = vtanh.f32 %v1537_v17  ;;  %v4697_v39 = vmul.f32 -1.442695, %v1537_v17  ;;  %v4698_v36 = vmul.f32 -1.442695, %v1538_v8  ;;  %v4695_v61 = vmul.f32 -1.442695, %v1535_v22 }
 0x7f6   :  { %5043 = vtanh.f32 %v1535_v22  ;;  %v4700_v45 = vmul.f32 -1.442695, %v1540_v30  ;;  %v4696_v49 = vmul.f32 -1.442695, %v1536_v55  ;;  %v4699_v56 = vmul.f32 -1.442695, %v1539_v14 }
 0x7f7   :  { %5045 = vtanh.f32 %v1536_v55  ;;  %v4702_v25 = vmul.f32 -1.442695, %v1542_v51  ;;  %v4701_v1 = vmul.f32 -1.442695, %v1541_v15 }
 0x7f8   :  { %v1517_v60 = vpop.f32.mrf.mxu2  ;;  %5047 = vtanh.f32 %v1540_v30 }
 0x7f9   :  { %v5040_v16 = vpop.eup %5039  ;;  %5049 = vtanh.f32 %v1539_v14 }
 0x7fa   :  { %1749 = vrot.lane.b32.xlu1 %v5040_v16, %s5714_s28  ;;  %5051 = vtanh.f32 %v1542_v51 }
 0x7fb   :  { %v5042_v50 = vpop.eup %5041  ;;  %5053 = vtanh.f32 %v1541_v15 }
 0x7fc   :  { %1747 = vrot.lane.b32.xlu2 %v5042_v50, %s5714_s28  ;;  %v5044_v35 = vpop.eup %5043  ;;  %5055 = vpow2.f32 %v4697_v39 }
 0x7fd   :  { %1743 = vrot.lane.b32.xlu0 %v5044_v35, %s5714_s28  ;;  %v5046_v40 = vpop.eup %5045  ;;  %5057 = vpow2.f32 %v4700_v45 }
 0x7fe   :  { %v5048_v58 = vpop.eup %5047 }
 0x7ff   :  { %v5050_v33 = vpop.eup %5049 }
 0x800   :  { %v5052_v3 = vpop.eup %5051 }
 0x801   :  { %v5054_v7 = vpop.eup %5053 }
 0x802   :  { %1745 = vrot.lane.b32.xlu1 %v5046_v40, %s5714_s28  ;;  %v5056_v44 = vpop.eup %5055 }
 0x803   :  { %v1569_v42 = vadd.f32 1.0, %v5056_v44  ;;  %v5058_v23 = vpop.eup %5057 }
 0x804   :  { %1753 = vrot.lane.b32.xlu2 %v5048_v58, %s5714_s28  ;;  %v1572_v32 = vadd.f32 1.0, %v5058_v23 }
 0x805   :  { %1751 = vrot.lane.b32.xlu0 %v5050_v33, %s5714_s28  ;;  %5059 = vrcp.f32 %v1569_v42  ;;  %v1616_v8 = vand.u32 2147483648, %v1569_v42  ;;  %vm1610_vm13 = vweird.f32 %v1569_v42  ;;  %v1614_v13 = vand.u32 2147483647, %v1569_v42 }
 0x806   :  { %5061 = vpow2.f32 %v4698_v36  ;;  %v1661_v35 = vand.u32 2147483648, %v1572_v32  ;;  %vm1655_vm2 = vweird.f32 %v1572_v32  ;;  %v1659_v12 = vand.u32 2147483647, %v1572_v32 }
 0x807   :  { %5063 = vrcp.f32 %v1572_v32  ;;  %v1617_v55 = vor.u32 1.1754944e-38, %v1616_v8  ;;  %vm1615_vm15 = vcmp.eq.f32.partialorder %v1614_v13, 8.507059e+37 }
 0x808   :  { %5065 = vpow2.f32 %v4695_v61  ;;  %v1662_v33 = vor.u32 1.1754944e-38, %v1661_v35 }
 0x809   :  { %5067 = vpow2.f32 %v4696_v49 }
 0x80a   :  { %1757 = vrot.lane.b32.xlu1 %v5052_v3, %s5714_s28 }
 0x80b   :  { %v5060_v59 = vpop.eup %5059 }
 0x80c   :  { %v1606_v52 = vmul.f32 %v5060_v59, %v1569_v42  ;;  %v5062_v10 = vpop.eup %5061  ;;  %vm1611_vm12 = vweird.f32 %v5060_v59 }
 0x80d   :  { %1755 = vrot.lane.b32.xlu0 %v5054_v7, %s5714_s28  ;;  %v5064_v0 = vpop.eup %5063  ;;  %v6502_v57 = vadd.f32 1.0, %v5062_v10  ;;  %vm1612_vm14 = vmor %vm1610_vm13, %vm1611_vm12  ;;  %vm1660_vm12 = vcmp.eq.f32.partialorder %v1659_v12, 8.507059e+37 }
 0x80e   :  { %v1607_v29 = vsub.f32 1.0, %v1606_v52  ;;  %v1651_v5 = vmul.f32 %v5064_v0, %v1572_v32  ;;  %v5066_v9 = vpop.eup %5065  ;;  %vm1656_vm1 = vweird.f32 %v5064_v0 }
 0x80f   :  { %5069 = vrcp.f32 %v6502_v57  ;;  %v5068_v63 = vpop.eup %5067  ;;  %v6505_v18 = vadd.f32 1.0, %v5066_v9  ;;  %vm1657_vm11 = vmor %vm1655_vm2, %vm1656_vm1 }
 0x810   :  { %v1608_v41 = vmul.f32 %v5060_v59, %v1607_v29  ;;  %v1652_v2 = vsub.f32 1.0, %v1651_v5  ;;  %5071 = vpow2.f32 %v4699_v56  ;;  %v6507_v17 = vadd.f32 1.0, %v5068_v63 }
 0x811   :  { %5073 = vrcp.f32 %v6505_v18  ;;  %v1629_v5 = vand.u32 2147483647, %v6502_v57 }
 0x812   :  { %v1609_v37 = vadd.f32 %v5060_v59, %v1608_v41  ;;  %v1653_v22 = vmul.f32 %v5064_v0, %v1652_v2  ;;  %5075 = vpow2.f32 %v4702_v25  ;;  %v1586_v25 = vand.u32 2147483648, %v6505_v18 }
 0x813   :  { %5077 = vrcp.f32 %v6507_v17  ;;  %vm1630_vm2 = vcmp.eq.f32.partialorder %v1629_v5, 8.507059e+37  ;;  %v1599_v35 = vand.u32 2147483647, %v6507_v17 }
 0x814   :  { %v1613_v6 = vsel %vm1612_vm14, %v5060_v59, %v1609_v37  ;;  %v1654_v14 = vadd.f32 %v5064_v0, %v1653_v22  ;;  %5079 = vpow2.f32 %v4701_v1  ;;  %vm1625_vm14 = vweird.f32 %v6502_v57 }
 0x815   :  { %v5070_v60 = vpop.eup %5069  ;;  %v6510_v30 = vsel %vm1615_vm15, %v1617_v55, %v1613_v6  ;;  %v1584_v1 = vand.u32 2147483647, %v6505_v18 }
 0x816   :  { %v5072_v16 = vpop.eup %5071  ;;  %v1621_v54 = vmul.f32 %v5070_v60, %v6502_v57  ;;  %v1658_v15 = vsel %vm1657_vm11, %v5064_v0, %v1654_v14  ;;  %vm1626_vm13 = vweird.f32 %v5070_v60  ;;  %v1631_v0 = vand.u32 2147483648, %v6502_v57 }
 0x817   :  { %v6515_v40 = vadd.f32 1.0, %v5072_v16  ;;  %v6518_v51 = vpop.eup %5073  ;;  %v6527_v42 = vsel %vm1660_vm12, %v1662_v33, %v1658_v15  ;;  %vm1627_vm15 = vmor %vm1625_vm14, %vm1626_vm13  ;;  %vm1580_vm11 = vweird.f32 %v6505_v18  ;;  %vm1595_vm14 = vweird.f32 %v6507_v17 }
 0x818   :  { %v5076_v58 = vpop.eup %5075  ;;  %v1622_v3 = vsub.f32 1.0, %v1621_v54  ;;  %v1576_v39 = vmul.f32 %v6518_v51, %v6505_v18  ;;  %v1632_v63 = vor.u32 1.1754944e-38, %v1631_v0  ;;  %vm1581_vm1 = vweird.f32 %v6518_v51 }
 0x819   :  { %v6520_v7 = vpop.eup %5077  ;;  %5081 = vrcp.f32 %v6515_v40  ;;  %v6525_v44 = vadd.f32 1.0, %v5076_v58  ;;  %vm6560_vm12 = vmor %vm1580_vm11, %vm1581_vm1  ;;  %v1601_v18 = vand.u32 2147483648, %v6507_v17  ;;  %v1587_v14 = vor.u32 1.1754944e-38, %v1586_v25 }
 0x81a   :  { %v5080_v45 = vpop.eup %5079  ;;  %v1623_v32 = vmul.f32 %v5070_v60, %v1622_v3  ;;  %v1591_v59 = vmul.f32 %v6520_v7, %v6507_v17  ;;  %v1577_v52 = vsub.f32 1.0, %v1576_v39  ;;  %vm1596_vm13 = vweird.f32 %v6520_v7 }
 0x81b   :  { %v6532_v61 = vadd.f32 1.0, %v5080_v45  ;;  %5083 = vrcp.f32 %v6525_v44  ;;  %vm1597_vm1 = vmor %vm1595_vm14, %vm1596_vm13  ;;  %v1602_v39 = vor.u32 1.1754944e-38, %v1601_v18  ;;  %v1691_v5 = vand.u32 2147483648, %v6525_v44 }
 0x81c   :  { %v1624_v10 = vadd.f32 %v5070_v60, %v1623_v32  ;;  %v1592_v29 = vsub.f32 1.0, %v1591_v59  ;;  %v1578_v41 = vmul.f32 %v6518_v51, %v1577_v52  ;;  %v1646_v32 = vand.u32 2147483648, %v6515_v40 }
 0x81d   :  { %5085 = vrcp.f32 %v6532_v61  ;;  %v1644_v52 = vand.u32 2147483647, %v6515_v40  ;;  %v1692_v25 = vor.u32 1.1754944e-38, %v1691_v5 }
 0x81e   :  { %v1628_v37 = vsel %vm1627_vm15, %v5070_v60, %v1624_v10  ;;  %v1593_v2 = vmul.f32 %v6520_v7, %v1592_v29  ;;  %v1579_v8 = vadd.f32 %v6518_v51, %v1578_v41  ;;  %vm1585_vm15 = vcmp.eq.f32.partialorder %v1584_v1, 8.507059e+37 }
 0x81f   :  { %v6536_v49 = vpop.eup %5081  ;;  %v6553_v22 = vsel %vm1630_vm2, %v1632_v63, %v1628_v37  ;;  %vm1600_vm2 = vcmp.eq.f32.partialorder %v1599_v35, 8.507059e+37  ;;  %v1647_v0 = vor.u32 1.1754944e-38, %v1646_v32  ;;  %v1714_v32 = vrot.slane %v6457_v46, 7 }
 0x820   :  { %v1636_v56 = vmul.f32 %v6536_v49, %v6515_v40  ;;  %vm1641_vm11 = vweird.f32 %v6536_v49 }
 0x821   :  { %v6545_v9 = vpop.eup %5083 }
 0x822   :  { %v1637_v13 = vsub.f32 1.0, %v1636_v56  ;;  %v1681_v55 = vmul.f32 %v6545_v9, %v6525_v44  ;;  %vm1686_vm14 = vweird.f32 %v6545_v9 }
 0x823   :  { %v6551_v6 = vpop.eup %5085 }
 0x824   :  { %v1638_v54 = vmul.f32 %v6536_v49, %v1637_v13  ;;  %v1666_v12 = vmul.f32 %v6551_v6, %v6532_v61  ;;  %v1682_v58 = vsub.f32 1.0, %v1681_v55  ;;  %v1674_v13 = vand.u32 2147483647, %v6532_v61 }
 0x826   :  { %v1639_v45 = vadd.f32 %v6536_v49, %v1638_v54  ;;  %v1667_v17 = vsub.f32 1.0, %v1666_v12  ;;  %v1683_v59 = vmul.f32 %v6545_v9, %v1682_v58  ;;  %v1716_v58 = vrot.slane %v6464_v62, 7 }
 0x828   :  { %v1668_v29 = vmul.f32 %v6551_v6, %v1667_v17  ;;  %v1684_v41 = vadd.f32 %v6545_v9, %v1683_v59 }
 0x856   :  { %v1748_v24 = vpop.permute.xlu2 %1747 }
 0x857   :  { %v1769_v50 = vmul.f32 %v1748_v24, %v6510_v30  ;;  %v1594_v24 = vadd.f32 %v6520_v7, %v1593_v2  ;;  %v1669_v2 = vadd.f32 %v6551_v6, %v1668_v29  ;;  %v1730_v29 = vmul.f32 %v1714_v32, %v6553_v22 }
 0x859   :  { %1787 = vrot.lane.b32.xlu1 %v1769_v50, %s5726_s5  ;;  %v1583_v50 = vsel %vm6560_vm12, %v6518_v51, %v1579_v8  ;;  %v1598_v51 = vsel %vm1597_vm1, %v6520_v7, %v1594_v24  ;;  %vm1640_vm12 = vweird.f32 %v6515_v40  ;;  %vm1685_vm1 = vweird.f32 %v6525_v44 }
 0x85a   :  { %v6576_v33 = vsel %vm1585_vm15, %v1587_v14, %v1583_v50  ;;  %vm1642_vm13 = vmor %vm1640_vm12, %vm1641_vm11  ;;  %vm1645_vm15 = vcmp.eq.f32.partialorder %v1644_v52, 8.507059e+37  ;;  %v1689_v40 = vand.u32 2147483647, %v6525_v44  ;;  %vm1671_vm11 = vweird.f32 %v6551_v6 }
 0x85b   :  { %v1643_v10 = vsel %vm1642_vm13, %v6536_v49, %v1639_v45  ;;  %v1676_v8 = vand.u32 2147483648, %v6532_v61  ;;  %vm1670_vm12 = vweird.f32 %v6532_v61  ;;  %v1713_v61 = vrot.slane %v6423_v28, 7 }
 0x85c   :  { %v6596_v56 = vsel %vm1645_vm15, %v1647_v0, %v1643_v10  ;;  %vm1690_vm13 = vcmp.eq.f32.partialorder %v1689_v40, 8.507059e+37  ;;  %vm1672_vm15 = vmor %vm1670_vm12, %vm1671_vm11  ;;  %v1711_v50 = vrot.slane %v6433_v31, 7  ;;  %v1732_v28 = vmul.f32 %v1716_v58, %v6527_v42 }
 0x85d   :  { %v1673_v1 = vsel %vm1672_vm15, %v6551_v6, %v1669_v2  ;;  %v1729_v18 = vmul.f32 %v1713_v61, %v6510_v30  ;;  %v1715_v31 = vrot.slane %v6439_v20, 7  ;;  %v1717_v20 = vrot.slane %v6447_v47, 7 }
 0x85e   :  { %v1754_v23 = vpop.permute.xlu2 %1753  ;;  %v1727_v35 = vmul.f32 %v1711_v50, %v6576_v33  ;;  %v1712_v47 = vrot.slane %v6429_v11, 7  ;;  %v1718_v2 = vrot.slane %v6451_v26, 7 }
 0x85f   :  { %v1772_v36 = vmul.f32 %v1754_v23, %v6527_v42 }
 0x861   :  { %1793 = vrot.lane.b32.xlu1 %v1772_v36, %s5726_s5  ;;  %v6583_v36 = vsel %vm1600_vm2, %v1602_v39, %v1598_v51  ;;  %vm1687_vm2 = vmor %vm1685_vm1, %vm1686_vm14  ;;  %vm1675_vm14 = vcmp.eq.f32.partialorder %v1674_v13, 8.507059e+37  ;;  %v1731_v39 = vmul.f32 %v1715_v31, %v6596_v56 }
 0x862   :  { %v1688_v63 = vsel %vm1687_vm2, %v6545_v9, %v1684_v41  ;;  %v1728_v5 = vmul.f32 %v1712_v47, %v6583_v36 }
 0x863   :  { %v6608_v44 = vsel %vm1690_vm13, %v1692_v25, %v1688_v63 }
 0x86c   :  { %v1750_v57 = vpop.permute.xlu1 %1749 }
 0x86d   :  { %v1770_v60 = vmul.f32 %v1750_v57, %v6553_v22 }
 0x86f   :  { %1789 = vrot.lane.b32.xlu0 %v1770_v60, %s5726_s5  ;;  %v1744_v15 = vpop.permute.xlu0 %1743  ;;  %v1677_v60 = vor.u32 1.1754944e-38, %v1676_v8  ;;  %v1734_v8 = vmul.f32 %v1718_v2, %v6608_v44 }
 0x870   :  { %v1767_v3 = vmul.f32 %v1744_v15, %v6576_v33 }
 0x871   :  { %v6612_v9 = vsel %vm1675_vm14, %v1677_v60, %v1673_v1 }
 0x872   :  { %1783 = vrot.lane.b32.xlu2 %v1767_v3, %s5726_s5  ;;  %v1733_v59 = vmul.f32 %v1717_v20, %v6612_v9 }
 0x874   :  { %v1746_v23 = vpop.permute.xlu1 %1745 }
 0x875   :  { %v1768_v7 = vmul.f32 %v1746_v23, %v6583_v36 }
 0x877   :  { %1785 = vrot.lane.b32.xlu0 %v1768_v7, %s5726_s5  ;;  %v1752_v37 = vpop.permute.xlu0 %1751 }
 0x878   :  { %v1771_v49 = vmul.f32 %v1752_v37, %v6596_v56 }
 0x87a   :  { %1791 = vrot.lane.b32.xlu2 %v1771_v49, %s5726_s5 }
 0x87c   :  { %v1758_v57 = vpop.permute.xlu1 %1757 }
 0x87d   :  { %v1774_v55 = vmul.f32 %v1758_v57, %v6608_v44 }
 0x87f   :  { %v1756_v16 = vpop.permute.xlu0 %1755  ;;  %1797 = vrot.lane.b32.xlu0 %v1774_v55, %s5726_s5 }
 0x880   :  { %v1773_v24 = vmul.f32 %v1756_v16, %v6612_v9 }
 0x882   :  { %1795 = vrot.lane.b32.xlu2 %v1773_v24, %s5726_s5 }
 0x8cb   :  { %v1788_v6 = vpop.permute.xlu1 %1787 }
 0x8cc   :  { %v6620_v14 = vadd.f32 %v1788_v6, %v1729_v18  ;;  %v1784_v54 = vpop.permute.xlu2 %1783 }
 0x8cd   :  { %v6624_v12 = vadd.f32 %v1784_v54, %v1727_v35 }
 0x8ce   :  { %5087 = vtanh.f32 %v6620_v14 }
 0x8cf   :  { %5089 = vtanh.f32 %v6624_v12 }
 0x8d3   :  { %v1794_v15 = vpop.permute.xlu1 %1793 }
 0x8d4   :  { %v5088_v51 = vpop.eup %5087  ;;  %v6630_v3 = vadd.f32 %v1794_v15, %v1732_v28  ;;  %v1792_v17 = vpop.permute.xlu2 %1791 }
 0x8d5   :  { %1835 = vrot.lane.b32.xlu0 %v5088_v51, %s5714_s28  ;;  %v5090_v45 = vpop.eup %5089  ;;  %v6635_v23 = vadd.f32 %v1792_v17, %v1731_v39 }
 0x8d6   :  { %5091 = vtanh.f32 %v6630_v3  ;;  %1831 = vrot.lane.b32.xlu1 %v5090_v45, %s5714_s28 }
 0x8d7   :  { %5093 = vtanh.f32 %v6635_v23 }
 0x8dc   :  { %v5092_v62 = vpop.eup %5091  ;;  %v1796_v7 = vpop.permute.xlu2 %1795 }
 0x8dd   :  { %1841 = vrot.lane.b32.xlu0 %v5092_v62, %s5714_s28  ;;  %v5094_v52 = vpop.eup %5093  ;;  %v6643_v10 = vadd.f32 %v1796_v7, %v1733_v59 }
 0x8de   :  { %1839 = vrot.lane.b32.xlu1 %v5094_v52, %s5714_s28 }
 0x8df   :  { %5095 = vtanh.f32 %v6643_v10 }
 0x8e1   :  { %v1790_v0 = vpop.permute.xlu0 %1789 }
 0x8e2   :  { %v6648_v41 = vadd.f32 %v1790_v0, %v1730_v29 }
 0x8e4   :  { %5097 = vtanh.f32 %v6648_v41 }
 0x8e5   :  { %v5096_v46 = vpop.eup %5095 }
 0x8e6   :  { %1843 = vrot.lane.b32.xlu1 %v5096_v46, %s5714_s28 }
 0x8e9   :  { %v1786_v37 = vpop.permute.xlu0 %1785 }
 0x8ea   :  { %v5098_v40 = vpop.eup %5097  ;;  %v6654_v49 = vadd.f32 %v1786_v37, %v1728_v5 }
 0x8eb   :  { %1837 = vrot.lane.b32.xlu2 %v5098_v40, %s5714_s28 }
 0x8ec   :  { %5099 = vtanh.f32 %v6654_v49 }
 0x8f1   :  { %v1798_v11 = vpop.permute.xlu0 %1797 }
 0x8f2   :  { %v5100_v63 = vpop.eup %5099  ;;  %v6661_v25 = vadd.f32 %v1798_v11, %v1734_v8 }
 0x8f3   :  { %1833 = vrot.lane.b32.xlu2 %v5100_v63, %s5714_s28 }
 0x8f4   :  { %5101 = vtanh.f32 %v6661_v25 }
 0x8fa   :  { %v5102_v13 = vpop.eup %5101 }
 0x8fb   :  { %1845 = vrot.lane.b32.xlu2 %v5102_v13, %s5714_s28 }
 0x945   :  { %v1838_v57 = vpop.permute.xlu2 %1837 }
 0x946   :  { %v1858_v58 = vmul.f32 %v1838_v57, %v6553_v22 }
 0x947   :  { %v1836_v1 = vpop.permute.xlu0 %1835 }
 0x948   :  { %v1832_v55 = vpop.permute.xlu1 %1831  ;;  %v1857_v26 = vmul.f32 %v1836_v1, %v6510_v30  ;;  %v1866_v45 = vpack.c.bf16 %v1858_v58, %v1858_v58 }
 0x949   :  { %v1855_v60 = vmul.f32 %v1832_v55, %v6576_v33 }
 0x94a   :  { %v1865_v50 = vpack.c.bf16 %v1857_v26, %v1857_v26  ;;  %v1882_v7 = vunpack.c.l.b16 %v1866_v45 }
 0x94b   :  { %v1863_v16 = vpack.c.bf16 %v1855_v60, %v1855_v60 }
 0x94c   :  { %v1881_v31 = vunpack.c.l.b16 %v1865_v50 }
 0x94d   :  { %v1834_v24 = vpop.permute.xlu2 %1833  ;;  %v1879_v6 = vunpack.c.l.b16 %v1863_v16 }
 0x94e   :  { %v1856_v61 = vmul.f32 %v1834_v24, %v6583_v36  ;;  %v1890_v36 = vrot.slane %v1881_v31, 1 }
 0x94f   :  { %v1842_v54 = vpop.permute.xlu0 %1841  ;;  %v1887_v39 = vrot.slane %v1879_v6, 3 }
 0x950   :  { %v1864_v18 = vpack.c.bf16 %v1856_v61, %v1856_v61  ;;  %v1840_v28 = vpop.permute.xlu1 %1839  ;;  %v1860_v33 = vmul.f32 %v1842_v54, %v6527_v42 }
 0x951   :  { %v1859_v51 = vmul.f32 %v1840_v28, %v6596_v56 }
 0x952   :  { %v1880_v35 = vunpack.c.l.b16 %v1864_v18  ;;  %v1868_v32 = vpack.c.bf16 %v1860_v33, %v1860_v33 }
 0x953   :  { %v1867_v30 = vpack.c.bf16 %v1859_v51, %v1859_v51 }
 0x954   :  { %v1888_v15 = vrot.slane %v1880_v35, 2  ;;  %v1884_v47 = vunpack.c.l.b16 %v1868_v32 }
 0x955   :  { %v1883_v20 = vunpack.c.l.b16 %v1867_v30  ;;  %v1846_v62 = vpop.permute.xlu2 %1845 }
 0x956   :  { %v1889_v17 = vsel %vm678_vm3, %v1888_v15, %v1887_v39  ;;  %v1862_v59 = vmul.f32 %v1846_v62, %v6608_v44  ;;  %v1895_v2 = vrot.slane %v1884_v47, 6 }
 0x957   :  { %v1891_v22 = vsel %vm681_vm4, %v1890_v36, %v1889_v17  ;;  %v1893_v0 = vrot.slane %v1883_v20, 7 }
 0x958   :  { %v1870_v52 = vpack.c.bf16 %v1862_v59, %v1862_v59  ;;  %v1844_v29 = vpop.permute.xlu1 %1843  ;;  %v1892_v42 = vsel %vm684_vm5, %v1882_v7, %v1891_v22 }
 0x959   :  { %v1861_v56 = vmul.f32 %v1844_v29, %v6612_v9  ;;  %v1894_v37 = vsel %vm687_vm6, %v1893_v0, %v1892_v42 }
 0x95a   :  { %v1886_v5 = vunpack.c.l.b16 %v1870_v52  ;;  %v1896_v44 = vsel %vm690_vm7, %v1895_v2, %v1894_v37 }
 0x95b   :  { %v1869_v46 = vpack.c.bf16 %v1861_v56, %v1861_v56 }
 0x95c   :  { %v1899_v8 = vrot.slane %v1886_v5, 4 }
 0x95d   :  { %v1885_v40 = vunpack.c.l.b16 %v1869_v46 }
 0x95f   :  { %v1897_v63 = vrot.slane %v1885_v40, 5 }
 0x961   :  { %v1898_v11 = vsel %vm693_vm8, %v1897_v63, %v1896_v44 }
 0x962   :  { %v1900_v13 = vsel %vm696_vm9, %v1899_v8, %v1898_v11 }
 0x963   :  { %v1901_v57 = vpack.c.b16 %v1900_v13, %v1900_v13 }
 0x965   :  { %1902 = vrot.lane.b32.xlu0 %v1901_v57, %s5726_s5 }
 0x9d7   :  { %v1903_v9 = vpop.permute.xlu0 %1902 }
 0x9d8   :  { %4703 = vmatmul.msk.bf16.vlgmr.msrb.gmra.mxu3 %vm316_vm10, %v1903_v9 }
 0x9d9   :  { %3637 = vmatpush.bf16.msrb.mxu3 %v6298_v4 }
 0xa5b   :  { %v1916_v1 = vpop.f32.mrf.mxu3 }
 0xa5c   :  { %v1923_v55 = vrot.slane %v1916_v1, 6  ;;  %v1922_v60 = vrot.slane %v1916_v1, 5  ;;  %v1921_v26 = vrot.slane %v1916_v1, 4  ;;  %v1925_v50 = vrot.slane %v1916_v1, 1 }
 0xa5d   :  { %v1940_v6 = vadd.f32 %v1916_v1, %v5902_v38  ;;  %v1924_v35 = vrot.slane %v1916_v1, 7  ;;  %v1927_v15 = vrot.slane %v1916_v1, 3  ;;  %v1926_v39 = vrot.slane %v1916_v1, 2 }
 0xa5e   :  { %v1938_v16 = vadd.f32 %v1923_v55, %v5893_v27  ;;  %v1937_v24 = vadd.f32 %v1922_v60, %v5889_v21  ;;  %v1936_v61 = vadd.f32 %v1921_v26, %v5887_v19  ;;  %v1941_v54 = vadd.f32 %v1925_v50, %v5906_v43 }
 0xa5f   :  { %v1939_v31 = vadd.f32 %v1924_v35, %v5898_v34  ;;  %v1943_v33 = vadd.f32 %v1927_v15, %v5914_v53  ;;  %v1942_v17 = vadd.f32 %v1926_v39, %v5910_v48  ;;  %v4708_v63 = vmul.f32 -1.442695, %v1940_v6 }
 0xa60   :  { %5103 = vtanh.f32 %v1938_v16  ;;  %v4705_v32 = vmul.f32 -1.442695, %v1937_v24  ;;  %v4709_v59 = vmul.f32 -1.442695, %v1941_v54  ;;  %v4706_v47 = vmul.f32 -1.442695, %v1938_v16 }
 0xa61   :  { %5105 = vtanh.f32 %v1937_v24  ;;  %v4711_v52 = vmul.f32 -1.442695, %v1943_v33  ;;  %v4704_v46 = vmul.f32 -1.442695, %v1936_v61  ;;  %v4707_v13 = vmul.f32 -1.442695, %v1939_v31 }
 0xa62   :  { %5107 = vtanh.f32 %v1936_v61  ;;  %v4710_v35 = vmul.f32 -1.442695, %v1942_v17 }
 0xa63   :  { %v1918_v18 = vpop.f32.mrf.mxu3  ;;  %5109 = vtanh.f32 %v1940_v6 }
 0xa64   :  { %5111 = vtanh.f32 %v1941_v54 }
 0xa65   :  { %5113 = vtanh.f32 %v1939_v31 }
 0xa66   :  { %v5104_v58 = vpop.eup %5103  ;;  %5115 = vtanh.f32 %v1943_v33 }
 0xa67   :  { %v5106_v28 = vpop.eup %5105  ;;  %2148 = vrot.lane.b32.xlu0 %v5104_v58, %s5714_s28  ;;  %5117 = vtanh.f32 %v1942_v17 }
 0xa68   :  { %2146 = vrot.lane.b32.xlu2 %v5106_v28, %s5714_s28  ;;  %v5108_v51 = vpop.eup %5107  ;;  %5119 = vpow2.f32 %v4705_v32 }
 0xa69   :  { %2144 = vrot.lane.b32.xlu1 %v5108_v51, %s5714_s28  ;;  %v5110_v30 = vpop.eup %5109  ;;  %5121 = vpow2.f32 %v4709_v59 }
 0xa6a   :  { %v5112_v45 = vpop.eup %5111 }
 0xa6b   :  { %v5114_v36 = vpop.eup %5113 }
 0xa6c   :  { %v5116_v20 = vpop.eup %5115 }
 0xa6d   :  { %v5118_v62 = vpop.eup %5117 }
 0xa6e   :  { %v5120_v22 = vpop.eup %5119 }
 0xa6f   :  { %2152 = vrot.lane.b32.xlu0 %v5110_v30, %s5714_s28  ;;  %v1969_v7 = vadd.f32 1.0, %v5120_v22  ;;  %v5122_v29 = vpop.eup %5121 }
 0xa70   :  { %2154 = vrot.lane.b32.xlu2 %v5112_v45, %s5714_s28  ;;  %v6699_v0 = vadd.f32 1.0, %v5122_v29 }
 0xa71   :  { %2150 = vrot.lane.b32.xlu1 %v5114_v36, %s5714_s28  ;;  %5123 = vrcp.f32 %v1969_v7  ;;  %v2002_v16 = vand.u32 2147483648, %v1969_v7  ;;  %vm1996_vm2 = vweird.f32 %v1969_v7  ;;  %v2000_v24 = vand.u32 2147483647, %v1969_v7 }
 0xa72   :  { %5125 = vpow2.f32 %v4711_v52  ;;  %v2062_v45 = vand.u32 2147483648, %v6699_v0  ;;  %vm2056_vm15 = vweird.f32 %v6699_v0  ;;  %v2060_v36 = vand.u32 2147483647, %v6699_v0 }
 0xa73   :  { %5127 = vrcp.f32 %v6699_v0  ;;  %v2003_v54 = vor.u32 1.1754944e-38, %v2002_v16  ;;  %vm2001_vm12 = vcmp.eq.f32.partialorder %v2000_v24, 8.507059e+37 }
 0xa74   :  { %5129 = vpow2.f32 %v4706_v47  ;;  %v2063_v22 = vor.u32 1.1754944e-38, %v2062_v45 }
 0xa75   :  { %5131 = vpow2.f32 %v4704_v46 }
 0xa77   :  { %v5124_v56 = vpop.eup %5123 }
 0xa78   :  { %2158 = vrot.lane.b32.xlu2 %v5116_v20, %s5714_s28  ;;  %v5126_v42 = vpop.eup %5125  ;;  %v1992_v5 = vmul.f32 %v5124_v56, %v1969_v7  ;;  %vm1997_vm1 = vweird.f32 %v5124_v56 }
 0xa79   :  { %2156 = vrot.lane.b32.xlu1 %v5118_v62, %s5714_s28  ;;  %v6702_v37 = vadd.f32 1.0, %v5126_v42  ;;  %v5128_v2 = vpop.eup %5127  ;;  %vm1998_vm11 = vmor %vm1996_vm2, %vm1997_vm1  ;;  %vm2061_vm1 = vcmp.eq.f32.partialorder %v2060_v36, 8.507059e+37 }
 0xa7a   :  { %v1993_v40 = vsub.f32 1.0, %v1992_v5  ;;  %v5130_v8 = vpop.eup %5129  ;;  %v2052_v11 = vmul.f32 %v5128_v2, %v6699_v0  ;;  %vm2057_vm13 = vweird.f32 %v5128_v2 }
 0xa7b   :  { %5133 = vrcp.f32 %v6702_v37  ;;  %v5132_v57 = vpop.eup %5131  ;;  %v6706_v9 = vadd.f32 1.0, %v5130_v8  ;;  %vm2058_vm14 = vmor %vm2056_vm15, %vm2057_vm13  ;;  %v2092_v5 = vand.u32 2147483648, %v6702_v37 }
 0xa7c   :  { %v1994_v44 = vmul.f32 %v5124_v56, %v1993_v40  ;;  %5135 = vpow2.f32 %v4708_v63  ;;  %v2053_v55 = vsub.f32 1.0, %v2052_v11  ;;  %v6710_v26 = vadd.f32 1.0, %v5132_v57 }
 0xa7d   :  { %5137 = vpow2.f32 %v4707_v13  ;;  %v2093_v57 = vor.u32 1.1754944e-38, %v2092_v5 }
 0xa7e   :  { %v1995_v1 = vadd.f32 %v5124_v56, %v1994_v44  ;;  %5139 = vrcp.f32 %v6706_v9  ;;  %v2054_v18 = vmul.f32 %v5128_v2, %v2053_v55 }
 0xa7f   :  { %5141 = vrcp.f32 %v6710_v26 }
 0xa80   :  { %v1999_v50 = vsel %vm1998_vm11, %v5124_v56, %v1995_v1  ;;  %v2055_v33 = vadd.f32 %v5128_v2, %v2054_v18  ;;  %5143 = vpow2.f32 %v4710_v35  ;;  %vm2086_vm11 = vweird.f32 %v6702_v37 }
 0xa81   :  { %v6708_v60 = vpop.eup %5133  ;;  %v6718_v15 = vsel %vm2001_vm12, %v2003_v54, %v1999_v50  ;;  %v2015_v18 = vand.u32 2147483647, %v6706_v9 }
 0xa82   :  { %v5136_v61 = vpop.eup %5135  ;;  %v2082_v6 = vmul.f32 %v6708_v60, %v6702_v37  ;;  %v2059_v32 = vsel %vm2058_vm14, %v5128_v2, %v2055_v33  ;;  %vm2087_vm2 = vweird.f32 %v6708_v60  ;;  %v2090_v2 = vand.u32 2147483647, %v6702_v37 }
 0xa83   :  { %v6716_v58 = vadd.f32 1.0, %v5136_v61  ;;  %v5138_v28 = vpop.eup %5137  ;;  %v6738_v29 = vsel %vm2061_vm1, %v2063_v22, %v2059_v32  ;;  %vm2088_vm12 = vmor %vm2086_vm11, %vm2087_vm2  ;;  %vm2011_vm14 = vweird.f32 %v6706_v9  ;;  %vm1981_vm11 = vweird.f32 %v6710_v26 }
 0xa84   :  { %v6720_v51 = vpop.eup %5139  ;;  %v2083_v30 = vsub.f32 1.0, %v2082_v6  ;;  %v6725_v17 = vadd.f32 1.0, %v5138_v28  ;;  %vm2091_vm13 = vcmp.eq.f32.partialorder %v2090_v2, 8.507059e+37  ;;  %v1987_v33 = vand.u32 2147483648, %v6710_v26 }
 0xa85   :  { %5145 = vrcp.f32 %v6716_v58  ;;  %v6730_v20 = vpop.eup %5141  ;;  %v2007_v62 = vmul.f32 %v6720_v51, %v6706_v9  ;;  %vm2012_vm15 = vweird.f32 %v6720_v51 }
 0xa86   :  { %v2084_v59 = vmul.f32 %v6708_v60, %v2083_v30  ;;  %5147 = vrcp.f32 %v6725_v17  ;;  %v1977_v7 = vmul.f32 %v6730_v20, %v6710_v26  ;;  %v5144_v52 = vpop.eup %5143  ;;  %vm2013_vm1 = vmor %vm2011_vm14, %vm2012_vm15  ;;  %vm1982_vm2 = vweird.f32 %v6730_v20 }
 0xa87   :  { %v2008_v56 = vsub.f32 1.0, %v2007_v62  ;;  %v6746_v40 = vadd.f32 1.0, %v5144_v52  ;;  %v1985_v30 = vand.u32 2147483647, %v6710_v26  ;;  %v2047_v26 = vand.u32 2147483648, %v6716_v58 }
 0xa88   :  { %v2085_v46 = vadd.f32 %v6708_v60, %v2084_v59  ;;  %v1978_v63 = vsub.f32 1.0, %v1977_v7  ;;  %v1988_v7 = vor.u32 1.1754944e-38, %v1987_v33 }
 0xa89   :  { %v2009_v8 = vmul.f32 %v6720_v51, %v2008_v56  ;;  %5149 = vrcp.f32 %v6746_v40  ;;  %vm1986_vm14 = vcmp.eq.f32.partialorder %v1985_v30, 8.507059e+37  ;;  %v2048_v2 = vor.u32 1.1754944e-38, %v2047_v26 }
 0xa8a   :  { %v2089_v13 = vsel %vm2088_vm12, %v6708_v60, %v2085_v46  ;;  %v1979_v1 = vmul.f32 %v6730_v20, %v1978_v63  ;;  %v2017_v60 = vand.u32 2147483648, %v6706_v9  ;;  %vm2016_vm12 = vcmp.eq.f32.partialorder %v2015_v18, 8.507059e+37 }
 0xa8b   :  { %v6740_v47 = vpop.eup %5145  ;;  %v6760_v37 = vsel %vm2091_vm13, %v2093_v57, %v2089_v13  ;;  %v2010_v16 = vadd.f32 %v6720_v51, %v2009_v8  ;;  %vm6776_vm13 = vmor %vm1981_vm11, %vm1982_vm2  ;;  %v2032_v63 = vand.u32 2147483648, %v6725_v17 }
 0xa8c   :  { %v2037_v44 = vmul.f32 %v6740_v47, %v6716_v58  ;;  %v6754_v11 = vpop.eup %5147  ;;  %v1980_v6 = vadd.f32 %v6730_v20, %v1979_v1  ;;  %vm2042_vm15 = vweird.f32 %v6740_v47 }
 0xa8d   :  { %v2022_v61 = vmul.f32 %v6754_v11, %v6725_v17  ;;  %v2014_v35 = vsel %vm2013_vm1, %v6720_v51, %v2010_v16  ;;  %vm2041_vm1 = vweird.f32 %v6716_v58  ;;  %vm2027_vm11 = vweird.f32 %v6754_v11 }
 0xa8e   :  { %v2038_v24 = vsub.f32 1.0, %v2037_v44  ;;  %v1984_v51 = vsel %vm6776_vm13, %v6730_v20, %v1980_v6  ;;  %v2045_v20 = vand.u32 2147483647, %v6716_v58  ;;  %vm2043_vm2 = vmor %vm2041_vm1, %vm2042_vm15  ;;  %vm2026_vm13 = vweird.f32 %v6725_v17 }
 0xa8f   :  { %v2023_v28 = vsub.f32 1.0, %v2022_v61  ;;  %v2030_v58 = vand.u32 2147483647, %v6725_v17  ;;  %vm2028_vm15 = vmor %vm2026_vm13, %vm2027_vm11  ;;  %v2033_v1 = vor.u32 1.1754944e-38, %v2032_v63  ;;  %v2077_v17 = vand.u32 2147483648, %v6746_v40 }
 0xa90   :  { %v2039_v54 = vmul.f32 %v6740_v47, %v2038_v24 }
 0xa91   :  { %v2024_v59 = vmul.f32 %v6754_v11, %v2023_v28  ;;  %v2113_v28 = vrot.slane %v6654_v49, 7 }
 0xa92   :  { %v2040_v32 = vadd.f32 %v6740_v47, %v2039_v54  ;;  %v2114_v54 = vrot.slane %v6620_v14, 7  ;;  %v2117_v14 = vrot.slane %v6630_v3, 7  ;;  %v2119_v3 = vrot.slane %v6661_v25, 7 }
 0xa93   :  { %v2025_v46 = vadd.f32 %v6754_v11, %v2024_v59 }
 0xac2   :  { %v2147_v31 = vpop.permute.xlu2 %2146 }
 0xac3   :  { %v2169_v39 = vmul.f32 %v2147_v31, %v6718_v15  ;;  %v5150_v31 = vpop.eup %5149 }
 0xac4   :  { %v2067_v22 = vmul.f32 %v5150_v31, %v6746_v40  ;;  %vm2072_vm1 = vweird.f32 %v5150_v31 }
 0xac5   :  { %2186 = vrot.lane.b32.xlu1 %v2169_v39, %s5726_s5  ;;  %v2018_v39 = vor.u32 1.1754944e-38, %v2017_v60  ;;  %v2078_v60 = vor.u32 1.1754944e-38, %v2077_v17 }
 0xac6   :  { %v2068_v5 = vsub.f32 1.0, %v2067_v22 }
 0xac7   :  { %v6781_v36 = vsel %vm2016_vm12, %v2018_v39, %v2014_v35  ;;  %vm2046_vm12 = vcmp.eq.f32.partialorder %v2045_v20, 8.507059e+37 }
 0xac8   :  { %v2069_v57 = vmul.f32 %v5150_v31, %v2068_v5  ;;  %v2130_v39 = vmul.f32 %v2114_v54, %v6781_v36 }
 0xaca   :  { %v2155_v0 = vpop.permute.xlu2 %2154  ;;  %v2070_v61 = vadd.f32 %v5150_v31, %v2069_v57 }
 0xacb   :  { %v2173_v42 = vmul.f32 %v2155_v0, %v6738_v29  ;;  %v6795_v0 = vsel %vm1986_vm14, %v1988_v7, %v1984_v51  ;;  %vm2031_vm14 = vcmp.eq.f32.partialorder %v2030_v58, 8.507059e+37  ;;  %v2115_v58 = vrot.slane %v6648_v41, 7 }
 0xacd   :  { %2194 = vrot.lane.b32.xlu1 %v2173_v42, %s5726_s5  ;;  %v2044_v42 = vsel %vm2043_vm2, %v6740_v47, %v2040_v32  ;;  %v2029_v47 = vsel %vm2028_vm15, %v6754_v11, %v2025_v46  ;;  %vm2071_vm2 = vweird.f32 %v6746_v40  ;;  %v2075_v11 = vand.u32 2147483647, %v6746_v40 }
 0xace   :  { %v6805_v8 = vsel %vm2046_vm12, %v2048_v2, %v2044_v42  ;;  %vm2073_vm11 = vmor %vm2071_vm2, %vm2072_vm1  ;;  %v2129_v40 = vmul.f32 %v2113_v28, %v6718_v15  ;;  %v2112_v46 = vrot.slane %v6624_v12, 7  ;;  %v2118_v12 = vrot.slane %v6643_v10, 7 }
 0xacf   :  { %vm2076_vm12 = vcmp.eq.f32.partialorder %v2075_v11, 8.507059e+37 }
 0xad0   :  { %v2128_v2 = vmul.f32 %v2112_v46, %v6795_v0 }
 0xad2   :  { %v2159_v55 = vpop.permute.xlu2 %2158 }
 0xad3   :  { %v2175_v50 = vmul.f32 %v2159_v55, %v6760_v37  ;;  %v6810_v55 = vsel %vm2031_vm14, %v2033_v1, %v2029_v47 }
 0xad5   :  { %2198 = vrot.lane.b32.xlu1 %v2175_v50, %s5726_s5  ;;  %v2074_v50 = vsel %vm2073_vm11, %v5150_v31, %v2070_v61 }
 0xad6   :  { %v6817_v18 = vsel %vm2076_vm12, %v2078_v60, %v2074_v50 }
 0xad7   :  { %v2134_v1 = vmul.f32 %v2118_v12, %v6817_v18 }
 0xad9   :  { %v2149_v45 = vpop.permute.xlu0 %2148 }
 0xada   :  { %v2170_v62 = vmul.f32 %v2149_v45, %v6781_v36  ;;  %v2116_v45 = vrot.slane %v6635_v23, 7  ;;  %v2135_v23 = vmul.f32 %v2119_v3, %v6760_v37 }
 0xadb   :  { %v2145_v52 = vpop.permute.xlu1 %2144 }
 0xadc   :  { %2188 = vrot.lane.b32.xlu2 %v2170_v62, %s5726_s5  ;;  %v2168_v56 = vmul.f32 %v2145_v52, %v6795_v0  ;;  %v2132_v49 = vmul.f32 %v2116_v45, %v6805_v8  ;;  %v2133_v62 = vmul.f32 %v2117_v14, %v6738_v29 }
 0xade   :  { %2184 = vrot.lane.b32.xlu0 %v2168_v56, %s5726_s5 }
 0xae1   :  { %v2153_v44 = vpop.permute.xlu0 %2152 }
 0xae2   :  { %v2172_v13 = vmul.f32 %v2153_v44, %v6805_v8  ;;  %v2131_v44 = vmul.f32 %v2115_v58, %v6810_v55 }
 0xae3   :  { %v2151_v16 = vpop.permute.xlu1 %2150 }
 0xae4   :  { %2192 = vrot.lane.b32.xlu2 %v2172_v13, %s5726_s5  ;;  %v2171_v24 = vmul.f32 %v2151_v16, %v6810_v55 }
 0xae6   :  { %2190 = vrot.lane.b32.xlu0 %v2171_v24, %s5726_s5 }
 0xaeb   :  { %v2157_v6 = vpop.permute.xlu1 %2156 }
 0xaec   :  { %v2174_v35 = vmul.f32 %v2157_v6, %v6817_v18 }
 0xaee   :  { %2196 = vrot.lane.b32.xlu0 %v2174_v35, %s5726_s5 }
 0xb36   :  { %v2189_v33 = vpop.permute.xlu2 %2188 }
 0xb37   :  { %v6825_v9 = vadd.f32 %v2189_v33, %v2130_v39  ;;  %v2187_v31 = vpop.permute.xlu1 %2186 }
 0xb38   :  { %v6827_v30 = vadd.f32 %v2187_v31, %v2129_v40 }
 0xb39   :  { %5151 = vtanh.f32 %v6825_v9 }
 0xb3a   :  { %5153 = vtanh.f32 %v6827_v30 }
 0xb3e   :  { %v2193_v51 = vpop.permute.xlu2 %2192 }
 0xb3f   :  { %v5152_v32 = vpop.eup %5151  ;;  %v6835_v59 = vadd.f32 %v2193_v51, %v2132_v49  ;;  %v2195_v22 = vpop.permute.xlu1 %2194 }
 0xb40   :  { %v5154_v7 = vpop.eup %5153  ;;  %v6837_v26 = vadd.f32 %v2195_v22, %v2133_v62  ;;  %2236 = vrot.lane.b32.xlu1 %v5152_v32, %s5714_s28 }
 0xb41   :  { %5155 = vtanh.f32 %v6835_v59  ;;  %2234 = vrot.lane.b32.xlu0 %v5154_v7, %s5714_s28 }
 0xb42   :  { %5157 = vtanh.f32 %v6837_v26 }
 0xb47   :  { %v5156_v20 = vpop.eup %5155  ;;  %v2199_v52 = vpop.permute.xlu1 %2198 }
 0xb48   :  { %v5158_v56 = vpop.eup %5157  ;;  %v6845_v42 = vadd.f32 %v2199_v52, %v2135_v23  ;;  %2240 = vrot.lane.b32.xlu1 %v5156_v20, %s5714_s28 }
 0xb49   :  { %2242 = vrot.lane.b32.xlu0 %v5158_v56, %s5714_s28 }
 0xb4a   :  { %5159 = vtanh.f32 %v6845_v42 }
 0xb50   :  { %v5160_v5 = vpop.eup %5159  ;;  %v2185_v25 = vpop.permute.xlu0 %2184 }
 0xb51   :  { %2246 = vrot.lane.b32.xlu0 %v5160_v5, %s5714_s28  ;;  %v6853_v63 = vadd.f32 %v2185_v25, %v2128_v2 }
 0xb53   :  { %5161 = vtanh.f32 %v6853_v63 }
 0xb58   :  { %v2191_v13 = vpop.permute.xlu0 %2190 }
 0xb59   :  { %v5162_v47 = vpop.eup %5161  ;;  %v6858_v57 = vadd.f32 %v2191_v13, %v2131_v44 }
 0xb5a   :  { %2232 = vrot.lane.b32.xlu2 %v5162_v47, %s5714_s28 }
 0xb5b   :  { %5163 = vtanh.f32 %v6858_v57 }
 0xb60   :  { %v2197_v16 = vpop.permute.xlu0 %2196 }
 0xb61   :  { %v5164_v24 = vpop.eup %5163  ;;  %v6864_v61 = vadd.f32 %v2197_v16, %v2134_v1 }
 0xb62   :  { %2238 = vrot.lane.b32.xlu2 %v5164_v24, %s5714_s28 }
 0xb63   :  { %5165 = vtanh.f32 %v6864_v61 }
 0xb69   :  { %v5166_v41 = vpop.eup %5165 }
 0xb6a   :  { %2244 = vrot.lane.b32.xlu2 %v5166_v41, %s5714_s28 }
 0xbb2   :  { %v2237_v11 = vpop.permute.xlu1 %2236 }
 0xbb3   :  { %v2235_v17 = vpop.permute.xlu0 %2234  ;;  %v2258_v10 = vmul.f32 %v2237_v11, %v6781_v36 }
 0xbb4   :  { %v2257_v50 = vmul.f32 %v2235_v17, %v6718_v15  ;;  %v2233_v60 = vpop.permute.xlu2 %2232 }
 0xbb5   :  { %v2256_v6 = vmul.f32 %v2233_v60, %v6795_v0  ;;  %v2266_v28 = vpack.c.bf16 %v2258_v10, %v2258_v10 }
 0xbb6   :  { %v2265_v35 = vpack.c.bf16 %v2257_v50, %v2257_v50 }
 0xbb7   :  { %v2264_v54 = vpack.c.bf16 %v2256_v6, %v2256_v6  ;;  %v2282_v14 = vunpack.c.l.b16 %v2266_v28 }
 0xbb8   :  { %v2281_v33 = vunpack.c.l.b16 %v2265_v35 }
 0xbb9   :  { %v2280_v40 = vunpack.c.l.b16 %v2264_v54  ;;  %v2291_v22 = vrot.slane %v2282_v14, 2 }
 0xbba   :  { %v2241_v31 = vpop.permute.xlu1 %2240  ;;  %v2289_v51 = vrot.slane %v2281_v33, 3 }
 0xbbb   :  { %v2243_v39 = vpop.permute.xlu0 %2242  ;;  %v2288_v62 = vrot.slane %v2280_v40, 4  ;;  %v2260_v32 = vmul.f32 %v2241_v31, %v6805_v8 }
 0xbbc   :  { %v2239_v45 = vpop.permute.xlu2 %2238  ;;  %v2261_v15 = vmul.f32 %v2243_v39, %v6738_v29 }
 0xbbd   :  { %v2259_v49 = vmul.f32 %v2239_v45, %v6810_v55  ;;  %v2290_v3 = vsel %vm678_vm3, %v2289_v51, %v2288_v62  ;;  %v2268_v52 = vpack.c.bf16 %v2260_v32, %v2260_v32 }
 0xbbe   :  { %v2269_v23 = vpack.c.bf16 %v2261_v15, %v2261_v15  ;;  %v2292_v55 = vsel %vm681_vm4, %v2291_v22, %v2290_v3 }
 0xbbf   :  { %v2267_v36 = vpack.c.bf16 %v2259_v49, %v2259_v49  ;;  %v2284_v58 = vunpack.c.l.b16 %v2268_v52 }
 0xbc0   :  { %v2285_v29 = vunpack.c.l.b16 %v2269_v23 }
 0xbc1   :  { %v2283_v0 = vunpack.c.l.b16 %v2267_v36 }
 0xbc2   :  { %v2296_v12 = vrot.slane %v2285_v29, 7 }
 0xbc3   :  { %v2247_v7 = vpop.permute.xlu0 %2246  ;;  %v2293_v56 = vrot.slane %v2283_v0, 1 }
 0xbc4   :  { %v2263_v20 = vmul.f32 %v2247_v7, %v6760_v37  ;;  %v2245_v5 = vpop.permute.xlu2 %2244 }
 0xbc5   :  { %v2262_v2 = vmul.f32 %v2245_v5, %v6817_v18  ;;  %v2294_v8 = vsel %vm684_vm5, %v2293_v56, %v2292_v55 }
 0xbc6   :  { %v2271_v46 = vpack.c.bf16 %v2263_v20, %v2263_v20  ;;  %v2295_v13 = vsel %vm687_vm6, %v2284_v58, %v2294_v8 }
 0xbc7   :  { %v2270_v44 = vpack.c.bf16 %v2262_v2, %v2262_v2  ;;  %v2297_v16 = vsel %vm690_vm7, %v2296_v12, %v2295_v13 }
 0xbc8   :  { %v2287_v25 = vunpack.c.l.b16 %v2271_v46 }
 0xbc9   :  { %v2286_v47 = vunpack.c.l.b16 %v2270_v44 }
 0xbca   :  { %v2300_v1 = vrot.slane %v2287_v25, 5 }
 0xbcb   :  { %v2298_v37 = vrot.slane %v2286_v47, 6 }
 0xbcd   :  { %v2299_v24 = vsel %vm693_vm8, %v2298_v37, %v2297_v16 }
 0xbce   :  { %v2301_v41 = vsel %vm696_vm9, %v2300_v1, %v2299_v24 }
 0xbcf   :  { %v2302_v17 = vpack.c.b16 %v2301_v41, %v2301_v41 }
 0xbd1   :  { %2303 = vrot.lane.b32.xlu1 %v2302_v17, %s5726_s5 }
 0xc43   :  { %v2304_v18 = vpop.permute.xlu1 %2303 }
 0xc44   :  { %4712 = vmatmul.msk.bf16.vlgmr.msra.gmra.mxu0 %vm316_vm10, %v2304_v18 }
 0xcc1   :  { %v2317_v11 = vpop.f32.mrf.mxu0 }
 0xcc2   :  { %v2324_v50 = vrot.slane %v2317_v11, 5  ;;  %v2323_v60 = vrot.slane %v2317_v11, 4  ;;  %v2322_v10 = vrot.slane %v2317_v11, 3  ;;  %v2327_v28 = vrot.slane %v2317_v11, 1 }
 0xcc3   :  { %v2326_v39 = vrot.slane %v2317_v11, 7  ;;  %v2325_v45 = vrot.slane %v2317_v11, 6  ;;  %v2328_v15 = vrot.slane %v2317_v11, 2  ;;  %v2342_v0 = vadd.f32 %v2317_v11, %v5906_v43 }
 0xcc4   :  { %v2339_v6 = vadd.f32 %v2324_v50, %v5893_v27  ;;  %v2338_v35 = vadd.f32 %v2323_v60, %v5889_v21  ;;  %v2337_v54 = vadd.f32 %v2322_v10, %v5887_v19  ;;  %v2343_v40 = vadd.f32 %v2327_v28, %v5910_v48 }
 0xcc5   :  { %v2341_v31 = vadd.f32 %v2326_v39, %v5902_v38  ;;  %v2340_v51 = vadd.f32 %v2325_v45, %v5898_v34  ;;  %v2344_v36 = vadd.f32 %v2328_v15, %v5914_v53  ;;  %v4718_v5 = vmul.f32 -1.442695, %v2342_v0 }
 0xcc6   :  { %5167 = vtanh.f32 %v2339_v6  ;;  %v4713_v20 = vmul.f32 -1.442695, %v2337_v54  ;;  %v4715_v2 = vmul.f32 -1.442695, %v2339_v6  ;;  %v4714_v29 = vmul.f32 -1.442695, %v2338_v35 }
 0xcc7   :  { %5169 = vtanh.f32 %v2338_v35  ;;  %v4716_v52 = vmul.f32 -1.442695, %v2340_v51  ;;  %v4719_v13 = vmul.f32 -1.442695, %v2343_v40  ;;  %v4717_v12 = vmul.f32 -1.442695, %v2341_v31 }
 0xcc8   :  { %5171 = vtanh.f32 %v2337_v54  ;;  %v4720_v50 = vmul.f32 -1.442695, %v2344_v36 }
 0xcc9   :  { %v2319_v33 = vpop.f32.mrf.mxu0  ;;  %5173 = vtanh.f32 %v2343_v40 }
 0xcca   :  { %5175 = vtanh.f32 %v2341_v31 }
 0xccb   :  { %5177 = vtanh.f32 %v2340_v51 }
 0xccc   :  { %v5168_v14 = vpop.eup %5167  ;;  %5179 = vtanh.f32 %v2344_v36 }
 0xccd   :  { %v5170_v49 = vpop.eup %5169  ;;  %2549 = vrot.lane.b32.xlu1 %v5168_v14, %s5714_s28  ;;  %5181 = vtanh.f32 %v2342_v0 }
 0xcce   :  { %2547 = vrot.lane.b32.xlu0 %v5170_v49, %s5714_s28  ;;  %v5172_v62 = vpop.eup %5171  ;;  %5183 = vpow2.f32 %v4713_v20 }
 0xccf   :  { %2545 = vrot.lane.b32.xlu2 %v5172_v62, %s5714_s28  ;;  %v5174_v32 = vpop.eup %5173  ;;  %5185 = vpow2.f32 %v4716_v52 }
 0xcd0   :  { %v5176_v22 = vpop.eup %5175 }
 0xcd1   :  { %v5178_v7 = vpop.eup %5177 }
 0xcd2   :  { %v5180_v3 = vpop.eup %5179 }
 0xcd3   :  { %v5182_v23 = vpop.eup %5181 }
 0xcd4   :  { %v5184_v56 = vpop.eup %5183 }
 0xcd5   :  { %2557 = vrot.lane.b32.xlu1 %v5174_v32, %s5714_s28  ;;  %v2369_v46 = vadd.f32 1.0, %v5184_v56  ;;  %v5186_v55 = vpop.eup %5185 }
 0xcd6   :  { %2553 = vrot.lane.b32.xlu0 %v5176_v22, %s5714_s28  ;;  %v6902_v8 = vadd.f32 1.0, %v5186_v55 }
 0xcd7   :  { %2551 = vrot.lane.b32.xlu2 %v5178_v7, %s5714_s28  ;;  %5187 = vrcp.f32 %v2369_v46  ;;  %v2388_v35 = vand.u32 2147483648, %v2369_v46  ;;  %vm2382_vm15 = vweird.f32 %v2369_v46  ;;  %v2386_v39 = vand.u32 2147483647, %v2369_v46 }
 0xcd8   :  { %5189 = vpow2.f32 %v4718_v5  ;;  %v2433_v20 = vand.u32 2147483648, %v6902_v8  ;;  %vm2427_vm11 = vweird.f32 %v6902_v8  ;;  %v2431_v52 = vand.u32 2147483647, %v6902_v8 }
 0xcd9   :  { %5191 = vpow2.f32 %v4715_v2  ;;  %v2389_v49 = vor.u32 1.1754944e-38, %v2388_v35  ;;  %vm2387_vm1 = vcmp.eq.f32.partialorder %v2386_v39, 8.507059e+37 }
 0xcda   :  { %5193 = vpow2.f32 %v4714_v29 }
 0xcdb   :  { %5195 = vrcp.f32 %v6902_v8 }
 0xcdc   :  { %5197 = vpow2.f32 %v4719_v13 }
 0xcdd   :  { %v5188_v25 = vpop.eup %5187  ;;  %5199 = vpow2.f32 %v4717_v12 }
 0xcde   :  { %2559 = vrot.lane.b32.xlu0 %v5180_v3, %s5714_s28  ;;  %v2378_v58 = vmul.f32 %v5188_v25, %v2369_v46  ;;  %v5190_v44 = vpop.eup %5189  ;;  %vm2383_vm13 = vweird.f32 %v5188_v25 }
 0xcdf   :  { %2555 = vrot.lane.b32.xlu2 %v5182_v23, %s5714_s28  ;;  %v5192_v47 = vpop.eup %5191  ;;  %v6905_v37 = vadd.f32 1.0, %v5190_v44  ;;  %vm2384_vm14 = vmor %vm2382_vm15, %vm2383_vm13  ;;  %vm2432_vm13 = vcmp.eq.f32.partialorder %v2431_v52, 8.507059e+37 }
 0xce0   :  { %v5194_v1 = vpop.eup %5193  ;;  %v2379_v16 = vsub.f32 1.0, %v2378_v58  ;;  %v6907_v41 = vadd.f32 1.0, %v5192_v47  ;;  %v2434_v58 = vor.u32 1.1754944e-38, %v2433_v20 }
 0xce1   :  { %v5196_v24 = vpop.eup %5195  ;;  %v6909_v17 = vadd.f32 1.0, %v5194_v1  ;;  %5201 = vrcp.f32 %v6905_v37 }
 0xce2   :  { %v2380_v18 = vmul.f32 %v5188_v25, %v2379_v16  ;;  %v2423_v11 = vmul.f32 %v5196_v24, %v6902_v8  ;;  %5203 = vrcp.f32 %v6907_v41  ;;  %v5198_v60 = vpop.eup %5197  ;;  %vm2428_vm2 = vweird.f32 %v5196_v24 }
 0xce3   :  { %5205 = vrcp.f32 %v6909_v17  ;;  %v5200_v6 = vpop.eup %5199  ;;  %v6917_v33 = vadd.f32 1.0, %v5198_v60  ;;  %vm2429_vm12 = vmor %vm2427_vm11, %vm2428_vm2 }
 0xce4   :  { %v2381_v10 = vadd.f32 %v5188_v25, %v2380_v18  ;;  %v2424_v54 = vsub.f32 1.0, %v2423_v11  ;;  %5207 = vpow2.f32 %v4720_v50  ;;  %v6921_v31 = vadd.f32 1.0, %v5200_v6 }
 0xce5   :  { %5209 = vrcp.f32 %v6917_v33  ;;  %v2463_v18 = vand.u32 2147483648, %v6905_v37  ;;  %v2461_v11 = vand.u32 2147483647, %v6905_v37 }
 0xce6   :  { %v2385_v45 = vsel %vm2384_vm14, %v5188_v25, %v2381_v10  ;;  %v2425_v51 = vmul.f32 %v5196_v24, %v2424_v54  ;;  %5211 = vrcp.f32 %v6921_v31  ;;  %vm2457_vm14 = vweird.f32 %v6905_v37 }
 0xce7   :  { %v6915_v28 = vpop.eup %5201  ;;  %v6928_v32 = vsel %vm2387_vm1, %v2389_v49, %v2385_v45  ;;  %v2418_v10 = vand.u32 2147483648, %v6907_v41  ;;  %v2464_v45 = vor.u32 1.1754944e-38, %v2463_v18  ;;  %v2416_v49 = vand.u32 2147483647, %v6907_v41 }
 0xce8   :  { %v6919_v40 = vpop.eup %5203  ;;  %v2453_v62 = vmul.f32 %v6915_v28, %v6905_v37  ;;  %v2426_v3 = vadd.f32 %v5196_v24, %v2425_v51  ;;  %vm2458_vm15 = vweird.f32 %v6915_v28  ;;  %v2403_v51 = vand.u32 2147483648, %v6909_v17 }
 0xce9   :  { %v6923_v14 = vpop.eup %5205  ;;  %v2408_v36 = vmul.f32 %v6919_v40, %v6907_v41  ;;  %vm6963_vm1 = vmor %vm2457_vm14, %vm2458_vm15  ;;  %vm2413_vm2 = vweird.f32 %v6919_v40  ;;  %vm2397_vm14 = vweird.f32 %v6909_v17 }
 0xcea   :  { %v2393_v0 = vmul.f32 %v6923_v14, %v6909_v17  ;;  %v5208_v7 = vpop.eup %5207  ;;  %v2454_v23 = vsub.f32 1.0, %v2453_v62  ;;  %v2430_v2 = vsel %vm2429_vm12, %v5196_v24, %v2426_v3  ;;  %vm2398_vm11 = vweird.f32 %v6923_v14 }
 0xceb   :  { %v2409_v56 = vsub.f32 1.0, %v2408_v36  ;;  %v6940_v46 = vadd.f32 1.0, %v5208_v7  ;;  %v6942_v55 = vpop.eup %5209  ;;  %v6949_v13 = vsel %vm2432_vm13, %v2434_v58, %v2430_v2  ;;  %vm2412_vm12 = vweird.f32 %v6907_v41 }
 0xcec   :  { %v2394_v5 = vsub.f32 1.0, %v2393_v0  ;;  %v2455_v29 = vmul.f32 %v6915_v28, %v2454_v23  ;;  %v6945_v25 = vpop.eup %5211  ;;  %v2468_v12 = vmul.f32 %v6942_v55, %v6917_v33  ;;  %vm2462_vm13 = vcmp.eq.f32.partialorder %v2461_v11, 8.507059e+37  ;;  %vm6980_vm15 = vmor %vm2412_vm12, %vm2413_vm2 }
 0xced   :  { %v2410_v44 = vmul.f32 %v6919_v40, %v2409_v56  ;;  %5213 = vrcp.f32 %v6940_v46  ;;  %v2438_v24 = vmul.f32 %v6945_v25, %v6921_v31  ;;  %v2419_v3 = vor.u32 1.1754944e-38, %v2418_v10 }
 0xcee   :  { %v2395_v47 = vmul.f32 %v6923_v14, %v2394_v5  ;;  %v2456_v16 = vadd.f32 %v6915_v28, %v2455_v29  ;;  %v2469_v6 = vsub.f32 1.0, %v2468_v12  ;;  %vm2417_vm2 = vcmp.eq.f32.partialorder %v2416_v49, 8.507059e+37 }
 0xcef   :  { %v2411_v60 = vadd.f32 %v6919_v40, %v2410_v44  ;;  %v2439_v37 = vsub.f32 1.0, %v2438_v24  ;;  %v2404_v20 = vor.u32 1.1754944e-38, %v2403_v51  ;;  %vm2473_vm12 = vweird.f32 %v6942_v55 }
 0xcf0   :  { %v2460_v35 = vsel %vm6963_vm1, %v6915_v28, %v2456_v16  ;;  %v2396_v54 = vadd.f32 %v6923_v14, %v2395_v47  ;;  %v2401_v28 = vand.u32 2147483647, %v6909_v17  ;;  %vm6991_vm1 = vmor %vm2397_vm14, %vm2398_vm11  ;;  %v2470_v0 = vmul.f32 %v6942_v55, %v2469_v6 }
 0xcf1   :  { %v2440_v23 = vmul.f32 %v6945_v25, %v2439_v37  ;;  %v2478_v44 = vand.u32 2147483648, %v6917_v33  ;;  %v2476_v47 = vand.u32 2147483647, %v6917_v33  ;;  %v2448_v12 = vand.u32 2147483648, %v6921_v31 }
 0xcf2   :  { %v2400_v17 = vsel %vm6991_vm1, %v6923_v14, %v2396_v54  ;;  %vm2402_vm11 = vcmp.eq.f32.partialorder %v2401_v28, 8.507059e+37  ;;  %v2471_v14 = vadd.f32 %v6942_v55, %v2470_v0  ;;  %vm2442_vm1 = vweird.f32 %v6921_v31 }
 0xcf3   :  { %v6975_v39 = vpop.eup %5213  ;;  %v7007_v29 = vsel %vm2402_vm11, %v2404_v20, %v2400_v17  ;;  %v2446_v16 = vand.u32 2147483647, %v6921_v31  ;;  %v2479_v18 = vor.u32 1.1754944e-38, %v2478_v44  ;;  %vm2477_vm11 = vcmp.eq.f32.partialorder %v2476_v47, 8.507059e+37 }
 0xcf4   :  { %v2449_v50 = vor.u32 1.1754944e-38, %v2448_v12  ;;  %v2491_v37 = vand.u32 2147483647, %v6940_v46  ;;  %v2513_v41 = vrot.slane %v6853_v63, 7  ;;  %v2517_v17 = vrot.slane %v6835_v59, 7 }
 0xcf5   :  { %vm2447_vm0 = vcmp.eq.f32.partialorder %v2446_v16, 8.507059e+37  ;;  %v2516_v63 = vrot.slane %v6858_v57, 7  ;;  %v2520_v59 = vrot.slane %v6845_v42, 7  ;;  %v2518_v44 = vrot.slane %v6837_v26, 7 }
 0xd29   :  { %v2546_v15 = vpop.permute.xlu2 %2545 }
 0xd2a   :  { %v2569_v22 = vmul.f32 %v2546_v15, %v6928_v32  ;;  %v6986_v15 = vsel %vm2462_vm13, %v2464_v45, %v2460_v35  ;;  %vm2443_vm13 = vweird.f32 %v6945_v25 }
 0xd2b   :  { %v2534_v12 = vmul.f32 %v2518_v44, %v6986_v15 }
 0xd2c   :  { %2585 = vrot.lane.b32.xlu1 %v2569_v22, %s5726_s5  ;;  %v2415_v22 = vsel %vm6980_vm15, %v6919_v40, %v2411_v60  ;;  %v2483_v40 = vmul.f32 %v6975_v39, %v6940_v46  ;;  %vm2472_vm15 = vweird.f32 %v6917_v33 }
 0xd2d   :  { %v7004_v56 = vsel %vm2417_vm2, %v2419_v3, %v2415_v22  ;;  %vm2474_vm14 = vmor %vm2472_vm15, %vm2473_vm12  ;;  %vm2488_vm12 = vweird.f32 %v6975_v39 }
 0xd2e   :  { %v2475_v24 = vsel %vm2474_vm14, %v6942_v55, %v2471_v14  ;;  %vm2444_vm2 = vmor %vm2442_vm1, %vm2443_vm13  ;;  %vm2487_vm13 = vweird.f32 %v6940_v46 }
 0xd2f   :  { %v7025_v60 = vsel %vm2477_vm11, %v2479_v18, %v2475_v24  ;;  %vm2489_vm15 = vmor %vm2487_vm13, %vm2488_vm12 }
 0xd31   :  { %v2552_v8 = vpop.permute.xlu2 %2551 }
 0xd32   :  { %v2572_v1 = vmul.f32 %v2552_v8, %v6949_v13  ;;  %v2441_v8 = vadd.f32 %v6945_v25, %v2440_v23 }
 0xd34   :  { %2591 = vrot.lane.b32.xlu1 %v2572_v1, %s5726_s5  ;;  %v2484_v1 = vsub.f32 1.0, %v2483_v40  ;;  %v2445_v11 = vsel %vm2444_vm2, %v6945_v25, %v2441_v8  ;;  %v2493_v25 = vand.u32 2147483648, %v6940_v46 }
 0xd35   :  { %v7028_v35 = vsel %vm2447_vm0, %v2449_v50, %v2445_v11  ;;  %vm2492_vm0 = vcmp.eq.f32.partialorder %v2491_v37, 8.507059e+37 }
 0xd36   :  { %v2485_v33 = vmul.f32 %v6975_v39, %v2484_v1  ;;  %v2494_v49 = vor.u32 1.1754944e-38, %v2493_v25  ;;  %v2515_v1 = vrot.slane %v6825_v9, 7  ;;  %v2519_v9 = vrot.slane %v6864_v61, 7 }
 0xd38   :  { %v2486_v55 = vadd.f32 %v6975_v39, %v2485_v33  ;;  %v2531_v18 = vmul.f32 %v2515_v1, %v7004_v56 }
 0xd39   :  { %v2556_v36 = vpop.permute.xlu2 %2555 }
 0xd3a   :  { %v2574_v7 = vmul.f32 %v2556_v36, %v6986_v15  ;;  %v2490_v45 = vsel %vm2489_vm15, %v6975_v39, %v2486_v55  ;;  %v2514_v36 = vrot.slane %v6827_v30, 7  ;;  %v2529_v39 = vmul.f32 %v2513_v41, %v6928_v32 }
 0xd3b   :  { %v7039_v51 = vsel %vm2492_vm0, %v2494_v49, %v2490_v45  ;;  %v2533_v30 = vmul.f32 %v2517_v17, %v7028_v35 }
 0xd3c   :  { %2595 = vrot.lane.b32.xlu1 %v2574_v7, %s5726_s5  ;;  %v2530_v22 = vmul.f32 %v2514_v36, %v7007_v29  ;;  %v2536_v57 = vmul.f32 %v2520_v59, %v7039_v51 }
 0xd3f   :  { %v2550_v52 = vpop.permute.xlu1 %2549 }
 0xd40   :  { %v2571_v5 = vmul.f32 %v2550_v52, %v7004_v56  ;;  %v2548_v2 = vpop.permute.xlu0 %2547  ;;  %v2532_v52 = vmul.f32 %v2516_v63, %v6949_v13 }
 0xd41   :  { %v2570_v58 = vmul.f32 %v2548_v2, %v7007_v29 }
 0xd42   :  { %2589 = vrot.lane.b32.xlu0 %v2571_v5, %s5726_s5 }
 0xd43   :  { %2587 = vrot.lane.b32.xlu2 %v2570_v58, %s5726_s5 }
 0xd47   :  { %v2558_v10 = vpop.permute.xlu1 %2557 }
 0xd48   :  { %v2575_v6 = vmul.f32 %v2558_v10, %v7025_v60  ;;  %v2554_v54 = vpop.permute.xlu0 %2553  ;;  %v2535_v10 = vmul.f32 %v2519_v9, %v7025_v60 }
 0xd49   :  { %v2573_v31 = vmul.f32 %v2554_v54, %v7028_v35 }
 0xd4a   :  { %2597 = vrot.lane.b32.xlu0 %v2575_v6, %s5726_s5 }
 0xd4b   :  { %2593 = vrot.lane.b32.xlu2 %v2573_v31, %s5726_s5 }
 0xd50   :  { %v2560_v62 = vpop.permute.xlu0 %2559 }
 0xd51   :  { %v2576_v28 = vmul.f32 %v2560_v62, %v7039_v51 }
 0xd53   :  { %2599 = vrot.lane.b32.xlu2 %v2576_v28, %s5726_s5 }
 0xd9d   :  { %v2588_v0 = vpop.permute.xlu2 %2587 }
 0xd9e   :  { %v7046_v46 = vadd.f32 %v2588_v0, %v2530_v22  ;;  %v2586_v7 = vpop.permute.xlu1 %2585 }
 0xd9f   :  { %v7050_v3 = vadd.f32 %v2586_v7, %v2529_v39 }
 0xda0   :  { %5215 = vtanh.f32 %v7046_v46 }
 0xda1   :  { %5217 = vtanh.f32 %v7050_v3 }
 0xda5   :  { %v2594_v23 = vpop.permute.xlu2 %2593 }
 0xda6   :  { %v5216_v20 = vpop.eup %5215  ;;  %v7056_v40 = vadd.f32 %v2594_v23, %v2533_v30  ;;  %v2592_v2 = vpop.permute.xlu1 %2591 }
 0xda7   :  { %2635 = vrot.lane.b32.xlu1 %v5216_v20, %s5714_s28  ;;  %v5218_v5 = vpop.eup %5217  ;;  %v7061_v14 = vadd.f32 %v2592_v2, %v2532_v52 }
 0xda8   :  { %5219 = vtanh.f32 %v7056_v40  ;;  %2633 = vrot.lane.b32.xlu0 %v5218_v5, %s5714_s28 }
 0xda9   :  { %5221 = vtanh.f32 %v7061_v14 }
 0xdad   :  { %v2600_v8 = vpop.permute.xlu2 %2599 }
 0xdae   :  { %v5220_v58 = vpop.eup %5219  ;;  %v7068_v47 = vadd.f32 %v2600_v8, %v2536_v57  ;;  %v2596_v16 = vpop.permute.xlu1 %2595 }
 0xdaf   :  { %2641 = vrot.lane.b32.xlu1 %v5220_v58, %s5714_s28  ;;  %v5222_v42 = vpop.eup %5221  ;;  %v7074_v24 = vadd.f32 %v2596_v16, %v2534_v12 }
 0xdb0   :  { %5223 = vtanh.f32 %v7068_v47  ;;  %2639 = vrot.lane.b32.xlu0 %v5222_v42, %s5714_s28 }
 0xdb1   :  { %5225 = vtanh.f32 %v7074_v24 }
 0xdb4   :  { %v2590_v26 = vpop.permute.xlu0 %2589 }
 0xdb5   :  { %v7079_v11 = vadd.f32 %v2590_v26, %v2531_v18 }
 0xdb6   :  { %v5224_v50 = vpop.eup %5223 }
 0xdb7   :  { %5227 = vtanh.f32 %v7079_v11  ;;  %2647 = vrot.lane.b32.xlu1 %v5224_v50, %s5714_s28  ;;  %v5226_v33 = vpop.eup %5225 }
 0xdb8   :  { %2643 = vrot.lane.b32.xlu0 %v5226_v33, %s5714_s28 }
 0xdbc   :  { %v2598_v6 = vpop.permute.xlu0 %2597 }
 0xdbd   :  { %v5228_v54 = vpop.eup %5227  ;;  %v7086_v31 = vadd.f32 %v2598_v6, %v2535_v10 }
 0xdbe   :  { %2637 = vrot.lane.b32.xlu2 %v5228_v54, %s5714_s28 }
 0xdbf   :  { %5229 = vtanh.f32 %v7086_v31 }
 0xdc5   :  { %v5230_v55 = vpop.eup %5229 }
 0xdc6   :  { %2645 = vrot.lane.b32.xlu2 %v5230_v55, %s5714_s28 }
 0xe18   :  { %v2638_v37 = vpop.permute.xlu2 %2637 }
 0xe19   :  { %v2636_v25 = vpop.permute.xlu1 %2635  ;;  %v2659_v62 = vmul.f32 %v2638_v37, %v7004_v56 }
 0xe1a   :  { %v2658_v61 = vmul.f32 %v2636_v25, %v7007_v29  ;;  %v2634_v45 = vpop.permute.xlu0 %2633 }
 0xe1b   :  { %v2657_v49 = vmul.f32 %v2634_v45, %v6928_v32  ;;  %v2667_v41 = vpack.c.bf16 %v2659_v62, %v2659_v62 }
 0xe1c   :  { %v2666_v28 = vpack.c.bf16 %v2658_v61, %v2658_v61 }
 0xe1d   :  { %v2665_v36 = vpack.c.bf16 %v2657_v49, %v2657_v49  ;;  %v2683_v20 = vunpack.c.l.b16 %v2667_v41 }
 0xe1e   :  { %v2682_v39 = vunpack.c.l.b16 %v2666_v28 }
 0xe1f   :  { %v2681_v7 = vunpack.c.l.b16 %v2665_v36  ;;  %v2692_v59 = vrot.slane %v2683_v20, 3 }
 0xe20   :  { %v2646_v17 = vpop.permute.xlu2 %2645  ;;  %v2690_v52 = vrot.slane %v2682_v39, 4 }
 0xe21   :  { %v2642_v22 = vpop.permute.xlu1 %2641  ;;  %v2663_v29 = vmul.f32 %v2646_v17, %v7025_v60  ;;  %v2689_v32 = vrot.slane %v2681_v7, 5 }
 0xe22   :  { %v2661_v0 = vmul.f32 %v2642_v22, %v7028_v35  ;;  %v2640_v30 = vpop.permute.xlu0 %2639 }
 0xe23   :  { %v2660_v23 = vmul.f32 %v2640_v30, %v6949_v13  ;;  %v2671_v57 = vpack.c.bf16 %v2663_v29, %v2663_v29  ;;  %v2691_v44 = vsel %vm678_vm3, %v2690_v52, %v2689_v32 }
 0xe24   :  { %v2669_v63 = vpack.c.bf16 %v2661_v0, %v2661_v0  ;;  %v2693_v42 = vsel %vm681_vm4, %v2692_v59, %v2691_v44 }
 0xe25   :  { %v2668_v5 = vpack.c.bf16 %v2660_v23, %v2660_v23  ;;  %v2687_v16 = vunpack.c.l.b16 %v2671_v57 }
 0xe26   :  { %v2685_v58 = vunpack.c.l.b16 %v2669_v63 }
 0xe27   :  { %v2684_v56 = vunpack.c.l.b16 %v2668_v5  ;;  %v2699_v10 = vrot.slane %v2687_v16, 7 }
 0xe28   :  { %v2696_v60 = vrot.slane %v2685_v58, 1 }
 0xe29   :  { %v2648_v2 = vpop.permute.xlu1 %2647  ;;  %v2694_v8 = vrot.slane %v2684_v56, 2 }
 0xe2a   :  { %v2664_v35 = vmul.f32 %v2648_v2, %v7039_v51  ;;  %v2644_v1 = vpop.permute.xlu0 %2643 }
 0xe2b   :  { %v2662_v13 = vmul.f32 %v2644_v1, %v6986_v15  ;;  %v2695_v26 = vsel %vm684_vm5, %v2694_v8, %v2693_v42 }
 0xe2c   :  { %v2672_v12 = vpack.c.bf16 %v2664_v35, %v2664_v35  ;;  %v2697_v51 = vsel %vm687_vm6, %v2696_v60, %v2695_v26 }
 0xe2d   :  { %v2670_v50 = vpack.c.bf16 %v2662_v13, %v2662_v13 }
 0xe2e   :  { %v2688_v18 = vunpack.c.l.b16 %v2672_v12 }
 0xe2f   :  { %v2686_v33 = vunpack.c.l.b16 %v2670_v50 }
 0xe30   :  { %v2701_v9 = vrot.slane %v2688_v18, 6 }
 0xe31   :  { %v2698_v6 = vsel %vm690_vm7, %v2686_v33, %v2697_v51 }
 0xe32   :  { %v2700_v54 = vsel %vm693_vm8, %v2699_v10, %v2698_v6 }
 0xe33   :  { %v2702_v55 = vsel %vm696_vm9, %v2701_v9, %v2700_v54 }
 0xe34   :  { %v2703_v15 = vpack.c.b16 %v2702_v55, %v2702_v55 }
 0xe36   :  { %2704 = vrot.lane.b32.xlu2 %v2703_v15, %s5726_s5 }
 0xe90   :  { %v2705_v25 = vpop.permute.xlu2 %2704 }
 0xe91   :  { %4721 = vmatmul.msk.bf16.vlgmr.msra.gmra.mxu2 %vm316_vm10, %v2705_v25 }
 0xf14   :  { %v2718_v37 = vpop.f32.mrf.mxu2 }
 0xf15   :  { %v2725_v61 = vrot.slane %v2718_v37, 4  ;;  %v2724_v45 = vrot.slane %v2718_v37, 3  ;;  %v2723_v49 = vrot.slane %v2718_v37, 2  ;;  %v2728_v22 = vrot.slane %v2718_v37, 7 }
 0xf16   :  { %v2727_v41 = vrot.slane %v2718_v37, 6  ;;  %v2726_v0 = vrot.slane %v2718_v37, 5  ;;  %v2729_v63 = vrot.slane %v2718_v37, 1  ;;  %v2744_v52 = vadd.f32 %v2718_v37, %v5910_v48 }
 0xf17   :  { %v2740_v62 = vadd.f32 %v2725_v61, %v5893_v27  ;;  %v2739_v28 = vadd.f32 %v2724_v45, %v5889_v21  ;;  %v2738_v36 = vadd.f32 %v2723_v49, %v5887_v19  ;;  %v2743_v7 = vadd.f32 %v2728_v22, %v5906_v43 }
 0xf18   :  { %v2742_v17 = vadd.f32 %v2727_v41, %v5902_v38  ;;  %v2741_v23 = vadd.f32 %v2726_v0, %v5898_v34  ;;  %v2745_v5 = vadd.f32 %v2729_v63, %v5914_v53  ;;  %v4728_v61 = vmul.f32 -1.442695, %v2744_v52 }
 0xf19   :  { %5231 = vtanh.f32 %v2740_v62  ;;  %v4724_v58 = vmul.f32 -1.442695, %v2740_v62  ;;  %v4727_v35 = vmul.f32 -1.442695, %v2743_v7  ;;  %v4723_v16 = vmul.f32 -1.442695, %v2739_v28 }
 0xf1a   :  { %5233 = vtanh.f32 %v2739_v28  ;;  %v4722_v60 = vmul.f32 -1.442695, %v2738_v36  ;;  %v4726_v50 = vmul.f32 -1.442695, %v2742_v17  ;;  %v4725_v9 = vmul.f32 -1.442695, %v2741_v23 }
 0xf1b   :  { %5235 = vtanh.f32 %v2738_v36  ;;  %v4729_v49 = vmul.f32 -1.442695, %v2745_v5 }
 0xf1c   :  { %v2720_v39 = vpop.f32.mrf.mxu2  ;;  %5237 = vtanh.f32 %v2743_v7 }
 0xf1d   :  { %5239 = vtanh.f32 %v2742_v17 }
 0xf1e   :  { %5241 = vtanh.f32 %v2741_v23 }
 0xf1f   :  { %v5232_v30 = vpop.eup %5231  ;;  %5243 = vtanh.f32 %v2744_v52 }
 0xf20   :  { %v5234_v20 = vpop.eup %5233  ;;  %2950 = vrot.lane.b32.xlu2 %v5232_v30, %s5714_s28  ;;  %5245 = vtanh.f32 %v2745_v5 }
 0xf21   :  { %v5236_v29 = vpop.eup %5235  ;;  %2948 = vrot.lane.b32.xlu1 %v5234_v20, %s5714_s28  ;;  %5247 = vpow2.f32 %v4724_v58 }
 0xf22   :  { %2946 = vrot.lane.b32.xlu0 %v5236_v29, %s5714_s28  ;;  %v5238_v32 = vpop.eup %5237  ;;  %5249 = vpow2.f32 %v4727_v35 }
 0xf23   :  { %v5240_v56 = vpop.eup %5239 }
 0xf24   :  { %v5242_v2 = vpop.eup %5241 }
 0xf25   :  { %v5244_v59 = vpop.eup %5243 }
 0xf26   :  { %v5246_v57 = vpop.eup %5245 }
 0xf27   :  { %v5248_v44 = vpop.eup %5247 }
 0xf28   :  { %2956 = vrot.lane.b32.xlu2 %v5238_v32, %s5714_s28  ;;  %v2772_v8 = vadd.f32 1.0, %v5248_v44  ;;  %v5250_v12 = vpop.eup %5249 }
 0xf29   :  { %2954 = vrot.lane.b32.xlu1 %v5240_v56, %s5714_s28  ;;  %v2775_v1 = vadd.f32 1.0, %v5250_v12 }
 0xf2a   :  { %2952 = vrot.lane.b32.xlu0 %v5242_v2, %s5714_s28  ;;  %5251 = vrcp.f32 %v2772_v8  ;;  %v2819_v25 = vand.u32 2147483648, %v2772_v8  ;;  %vm2813_vm1 = vweird.f32 %v2772_v8  ;;  %v2817_v45 = vand.u32 2147483647, %v2772_v8 }
 0xf2b   :  { %5253 = vrcp.f32 %v2775_v1  ;;  %v2864_v23 = vand.u32 2147483648, %v2775_v1  ;;  %vm2858_vm13 = vweird.f32 %v2775_v1  ;;  %v2862_v63 = vand.u32 2147483647, %v2775_v1 }
 0xf2c   :  { %5255 = vpow2.f32 %v4723_v16  ;;  %v2820_v41 = vor.u32 1.1754944e-38, %v2819_v25  ;;  %vm2818_vm11 = vcmp.eq.f32.partialorder %v2817_v45, 8.507059e+37 }
 0xf2d   :  { %5257 = vpow2.f32 %v4722_v60  ;;  %v2865_v2 = vor.u32 1.1754944e-38, %v2864_v23  ;;  %vm2863_vm0 = vcmp.eq.f32.partialorder %v2862_v63, 8.507059e+37 }
 0xf2e   :  { %5259 = vpow2.f32 %v4726_v50 }
 0xf2f   :  { %5261 = vpow2.f32 %v4725_v9 }
 0xf30   :  { %v5252_v13 = vpop.eup %5251 }
 0xf31   :  { %2958 = vrot.lane.b32.xlu1 %v5244_v59, %s5714_s28  ;;  %v2809_v42 = vmul.f32 %v5252_v13, %v2772_v8  ;;  %v5254_v26 = vpop.eup %5253  ;;  %vm2814_vm14 = vweird.f32 %v5252_v13 }
 0xf32   :  { %2960 = vrot.lane.b32.xlu0 %v5246_v57, %s5714_s28  ;;  %v2854_v10 = vmul.f32 %v5254_v26, %v2775_v1  ;;  %v5256_v51 = vpop.eup %5255  ;;  %vm2815_vm2 = vmor %vm2813_vm1, %vm2814_vm14  ;;  %vm2859_vm12 = vweird.f32 %v5254_v26 }
 0xf33   :  { %v2810_v18 = vsub.f32 1.0, %v2809_v42  ;;  %v5258_v6 = vpop.eup %5257  ;;  %v7124_v15 = vadd.f32 1.0, %v5256_v51  ;;  %vm2860_vm15 = vmor %vm2858_vm13, %vm2859_vm12 }
 0xf34   :  { %v2855_v55 = vsub.f32 1.0, %v2854_v10  ;;  %v7126_v37 = vadd.f32 1.0, %v5258_v6  ;;  %v5260_v62 = vpop.eup %5259 }
 0xf35   :  { %v2811_v33 = vmul.f32 %v5252_v13, %v2810_v18  ;;  %5263 = vrcp.f32 %v7124_v15  ;;  %v5262_v22 = vpop.eup %5261  ;;  %v7133_v30 = vadd.f32 1.0, %v5260_v62  ;;  %v2804_v51 = vand.u32 2147483648, %v7124_v15 }
 0xf36   :  { %v2856_v36 = vmul.f32 %v5254_v26, %v2855_v55  ;;  %5265 = vrcp.f32 %v7126_v37  ;;  %v7135_v20 = vadd.f32 1.0, %v5262_v22  ;;  %v2802_v25 = vand.u32 2147483647, %v7124_v15 }
 0xf37   :  { %v2812_v54 = vadd.f32 %v5252_v13, %v2811_v33  ;;  %5267 = vpow2.f32 %v4728_v61  ;;  %v2789_v61 = vand.u32 2147483648, %v7126_v37  ;;  %vm2783_vm12 = vweird.f32 %v7126_v37 }
 0xf38   :  { %5269 = vpow2.f32 %v4729_v49  ;;  %v2857_v17 = vadd.f32 %v5254_v26, %v2856_v36  ;;  %v2787_v45 = vand.u32 2147483647, %v7126_v37  ;;  %v2805_v22 = vor.u32 1.1754944e-38, %v2804_v51 }
 0xf39   :  { %v2816_v28 = vsel %vm2815_vm2, %v5252_v13, %v2812_v54  ;;  %5271 = vrcp.f32 %v7133_v30  ;;  %vm2798_vm2 = vweird.f32 %v7124_v15  ;;  %v2849_v23 = vand.u32 2147483648, %v7133_v30 }
 0xf3a   :  { %v7130_v39 = vsel %vm2818_vm11, %v2820_v41, %v2816_v28  ;;  %v2861_v5 = vsel %vm2860_vm15, %v5254_v26, %v2857_v17  ;;  %5273 = vrcp.f32 %v7135_v20  ;;  %vm2803_vm15 = vcmp.eq.f32.partialorder %v2802_v25, 8.507059e+37 }
 0xf3b   :  { %v5264_v29 = vpop.eup %5263  ;;  %v7142_v58 = vsel %vm2863_vm0, %v2865_v2, %v2861_v5  ;;  %vm2788_vm0 = vcmp.eq.f32.partialorder %v2787_v45, 8.507059e+37 }
 0xf3c   :  { %v5266_v52 = vpop.eup %5265  ;;  %v2794_v59 = vmul.f32 %v5264_v29, %v7124_v15  ;;  %vm2799_vm14 = vweird.f32 %v5264_v29 }
 0xf3d   :  { %v5268_v32 = vpop.eup %5267  ;;  %v2779_v57 = vmul.f32 %v5266_v52, %v7126_v37  ;;  %vm2784_vm1 = vweird.f32 %v5266_v52  ;;  %vm2800_vm11 = vmor %vm2798_vm2, %vm2799_vm14  ;;  %v2790_v37 = vor.u32 1.1754944e-38, %v2789_v61  ;;  %vm2843_vm2 = vweird.f32 %v7133_v30 }
 0xf3e   :  { %v5270_v56 = vpop.eup %5269  ;;  %v7145_v8 = vadd.f32 1.0, %v5268_v32  ;;  %v2795_v12 = vsub.f32 1.0, %v2794_v59  ;;  %vm7170_vm13 = vmor %vm2783_vm12, %vm2784_vm1  ;;  %vm2828_vm12 = vweird.f32 %v7135_v20 }
 0xf3f   :  { %v7147_v1 = vadd.f32 1.0, %v5270_v56  ;;  %v7149_v13 = vpop.eup %5271  ;;  %v2780_v16 = vsub.f32 1.0, %v2779_v57  ;;  %v2847_v57 = vand.u32 2147483647, %v7133_v30 }
 0xf40   :  { %v7152_v60 = vpop.eup %5273  ;;  %5275 = vrcp.f32 %v7145_v8  ;;  %v2796_v42 = vmul.f32 %v5264_v29, %v2795_v12  ;;  %v2839_v18 = vmul.f32 %v7149_v13, %v7133_v30  ;;  %vm2844_vm14 = vweird.f32 %v7149_v13 }
 0xf41   :  { %5277 = vrcp.f32 %v7147_v1  ;;  %v2781_v26 = vmul.f32 %v5266_v52, %v2780_v16  ;;  %v2824_v50 = vmul.f32 %v7152_v60, %v7135_v20  ;;  %vm2829_vm1 = vweird.f32 %v7152_v60 }
 0xf42   :  { %v2797_v9 = vadd.f32 %v5264_v29, %v2796_v42  ;;  %v2840_v33 = vsub.f32 1.0, %v2839_v18  ;;  %v2850_v42 = vor.u32 1.1754944e-38, %v2849_v23  ;;  %v2877_v25 = vand.u32 2147483647, %v7145_v8 }
 0xf43   :  { %v2782_v6 = vadd.f32 %v5266_v52, %v2781_v26  ;;  %v2825_v54 = vsub.f32 1.0, %v2824_v50  ;;  %v2894_v61 = vand.u32 2147483648, %v7147_v1  ;;  %v2892_v45 = vand.u32 2147483647, %v7147_v1 }
 0xf44   :  { %v2801_v49 = vsel %vm2800_vm11, %v5264_v29, %v2797_v9  ;;  %v2841_v28 = vmul.f32 %v7149_v13, %v2840_v33  ;;  %vm2845_vm11 = vmor %vm2843_vm2, %vm2844_vm14  ;;  %vm2873_vm2 = vweird.f32 %v7145_v8 }
 0xf45   :  { %v2786_v15 = vsel %vm7170_vm13, %v5266_v52, %v2782_v6  ;;  %v2826_v41 = vmul.f32 %v7152_v60, %v2825_v54  ;;  %v7182_v17 = vsel %vm2803_vm15, %v2805_v22, %v2801_v49  ;;  %vm2830_vm13 = vmor %vm2828_vm12, %vm2829_vm1  ;;  %vm2848_vm15 = vcmp.eq.f32.partialorder %v2847_v57, 8.507059e+37 }
 0xf46   :  { %v7160_v10 = vpop.eup %5275  ;;  %v7187_v32 = vsel %vm2788_vm0, %v2790_v37, %v2786_v15  ;;  %v2842_v52 = vadd.f32 %v7149_v13, %v2841_v28  ;;  %vm2888_vm12 = vweird.f32 %v7147_v1 }
 0xf47   :  { %v7163_v55 = vpop.eup %5277  ;;  %v2869_v36 = vmul.f32 %v7160_v10, %v7145_v8  ;;  %v2827_v2 = vadd.f32 %v7152_v60, %v2826_v41  ;;  %vm2874_vm14 = vweird.f32 %v7160_v10 }
 0xf48   :  { %v2846_v12 = vsel %vm2845_vm11, %v7149_v13, %v2842_v52  ;;  %vm2889_vm1 = vweird.f32 %v7163_v55  ;;  %vm2875_vm11 = vmor %vm2873_vm2, %vm2874_vm14  ;;  %vm7858_vm14 = vcmask 130048  }
 0xf49   :  { %v2870_v5 = vsub.f32 1.0, %v2869_v36  ;;  %v2831_v18 = vsel %vm2830_vm13, %v7152_v60, %v2827_v2  ;;  %v7206_v50 = vsel %vm2848_vm15, %v2850_v42, %v2846_v12  ;;  %v2879_v60 = vand.u32 2147483648, %v7145_v8  ;;  %vm2890_vm13 = vmor %vm2888_vm12, %vm2889_vm1 }
 0xf4a   :  { %vm2878_vm15 = vcmp.eq.f32.partialorder %v2877_v25, 8.507059e+37  ;;  %v2895_v36 = vor.u32 1.1754944e-38, %v2894_v61 }
 0xf4b   :  { %v2871_v16 = vmul.f32 %v7160_v10, %v2870_v5  ;;  %v2880_v62 = vor.u32 1.1754944e-38, %v2879_v60  ;;  %v2919_v5 = vrot.slane %v7074_v24, 7 }
 0xf4d   :  { %v2872_v13 = vadd.f32 %v7160_v10, %v2871_v16 }
 0xf4f   :  { %v2876_v49 = vsel %vm2875_vm11, %v7160_v10, %v2872_v13  ;;  %v2914_v10 = vrot.slane %v7050_v3, 7  ;;  %v2935_v3 = vmul.f32 %v2919_v5, %v7142_v58  ;;  %v2918_v13 = vrot.slane %v7056_v40, 7 }
 0xf50   :  { %v7226_v22 = vsel %vm2878_vm15, %v2880_v62, %v2876_v49 }
 0xf7a   :  { %v2951_v0 = vpop.permute.xlu2 %2950 }
 0xf7b   :  { %v2972_v7 = vmul.f32 %v2951_v0, %v7130_v39  ;;  %v2884_v0 = vmul.f32 %v7163_v55, %v7147_v1  ;;  %v2916_v1 = vrot.slane %v7079_v11, 7  ;;  %v2917_v11 = vrot.slane %v7061_v14, 7 }
 0xf7c   :  { %v2921_v14 = vrot.slane %v7068_v47, 7 }
 0xf7d   :  { %2990 = vrot.lane.b32.xlu1 %v2972_v7, %s5726_s5  ;;  %v2885_v59 = vsub.f32 1.0, %v2884_v0 }
 0xf7f   :  { %v2886_v30 = vmul.f32 %v7163_v55, %v2885_v59 }
 0xf81   :  { %v2887_v54 = vadd.f32 %v7163_v55, %v2886_v30 }
 0xf82   :  { %v2957_v35 = vpop.permute.xlu2 %2956 }
 0xf83   :  { %v2975_v44 = vmul.f32 %v2957_v35, %v7142_v58  ;;  %v2834_v35 = vand.u32 2147483648, %v7135_v20  ;;  %v2891_v28 = vsel %vm2890_vm13, %v7163_v55, %v2887_v54  ;;  %v2932_v55 = vmul.f32 %v2916_v1, %v7130_v39 }
 0xf85   :  { %2996 = vrot.lane.b32.xlu1 %v2975_v44, %s5726_s5  ;;  %v2832_v44 = vand.u32 2147483647, %v7135_v20  ;;  %v2835_v26 = vor.u32 1.1754944e-38, %v2834_v35 }
 0xf87   :  { %vm2833_vm0 = vcmp.eq.f32.partialorder %v2832_v44, 8.507059e+37 }
 0xf88   :  { %v7209_v51 = vsel %vm2833_vm0, %v2835_v26, %v2831_v18  ;;  %vm2893_vm0 = vcmp.eq.f32.partialorder %v2892_v45, 8.507059e+37  ;;  %v2915_v26 = vrot.slane %v7046_v46, 7  ;;  %v2920_v46 = vrot.slane %v7086_v31, 7 }
 0xf89   :  { %v7229_v41 = vsel %vm2893_vm0, %v2895_v36, %v2891_v28  ;;  %v2933_v57 = vmul.f32 %v2917_v11, %v7209_v51 }
 0xf8a   :  { %v2937_v16 = vmul.f32 %v2921_v14, %v7229_v41  ;;  %v2936_v61 = vmul.f32 %v2920_v46, %v7226_v22 }
 0xf93   :  { %v2949_v7 = vpop.permute.xlu1 %2948 }
 0xf94   :  { %v2971_v29 = vmul.f32 %v2949_v7, %v7182_v17  ;;  %v2947_v63 = vpop.permute.xlu0 %2946 }
 0xf95   :  { %v2970_v56 = vmul.f32 %v2947_v63, %v7187_v32 }
 0xf96   :  { %2988 = vrot.lane.b32.xlu0 %v2971_v29, %s5726_s5  ;;  %v2930_v29 = vmul.f32 %v2914_v10, %v7187_v32 }
 0xf97   :  { %2986 = vrot.lane.b32.xlu2 %v2970_v56, %s5726_s5 }
 0xf9b   :  { %v2955_v9 = vpop.permute.xlu1 %2954 }
 0xf9c   :  { %v2974_v33 = vmul.f32 %v2955_v9, %v7206_v50  ;;  %v2953_v20 = vpop.permute.xlu0 %2952  ;;  %v2931_v9 = vmul.f32 %v2915_v26, %v7182_v17 }
 0xf9d   :  { %v2973_v6 = vmul.f32 %v2953_v20, %v7209_v51 }
 0xf9e   :  { %2994 = vrot.lane.b32.xlu0 %v2974_v33, %s5726_s5 }
 0xf9f   :  { %2992 = vrot.lane.b32.xlu2 %v2973_v6, %s5726_s5  ;;  %v2934_v6 = vmul.f32 %v2918_v13, %v7206_v50 }
 0xfa3   :  { %v2959_v8 = vpop.permute.xlu1 %2958 }
 0xfa4   :  { %v2976_v15 = vmul.f32 %v2959_v8, %v7226_v22  ;;  %v2961_v0 = vpop.permute.xlu0 %2960 }
 0xfa5   :  { %v2977_v37 = vmul.f32 %v2961_v0, %v7229_v41 }
 0xfa6   :  { %2998 = vrot.lane.b32.xlu0 %v2976_v15, %s5726_s5 }
 0xfa7   :  { %3000 = vrot.lane.b32.xlu2 %v2977_v37, %s5726_s5 }
 0xfef   :  { %v2991_v7 = vpop.permute.xlu1 %2990 }
 0xff0   :  { %v7237_v23 = vadd.f32 %v2991_v7, %v2932_v55 }
 0xff1   :  { %v2987_v63 = vpop.permute.xlu2 %2986 }
 0xff2   :  { %5279 = vtanh.f32 %v7237_v23  ;;  %v7241_v52 = vadd.f32 %v2987_v63, %v2930_v29 }
 0xff4   :  { %5281 = vtanh.f32 %v7241_v52 }
 0xff7   :  { %v2997_v56 = vpop.permute.xlu1 %2996 }
 0xff8   :  { %v5280_v2 = vpop.eup %5279  ;;  %v7247_v59 = vadd.f32 %v2997_v56, %v2935_v3 }
 0xff9   :  { %v2993_v35 = vpop.permute.xlu2 %2992  ;;  %3038 = vrot.lane.b32.xlu0 %v5280_v2, %s5714_s28 }
 0xffa   :  { %v5282_v44 = vpop.eup %5281  ;;  %5283 = vtanh.f32 %v7247_v59  ;;  %v7252_v12 = vadd.f32 %v2993_v35, %v2933_v57 }
 0xffb   :  { %3034 = vrot.lane.b32.xlu1 %v5282_v44, %s5714_s28 }
 0xffc   :  { %5285 = vtanh.f32 %v7252_v12 }
0x1000   :  { %v5284_v24 = vpop.eup %5283 }
0x1001   :  { %v3001_v42 = vpop.permute.xlu2 %3000  ;;  %3044 = vrot.lane.b32.xlu0 %v5284_v24, %s5714_s28 }
0x1002   :  { %v5286_v18 = vpop.eup %5285  ;;  %v7259_v30 = vadd.f32 %v3001_v42, %v2937_v16 }
0x1003   :  { %3040 = vrot.lane.b32.xlu1 %v5286_v18, %s5714_s28 }
0x1004   :  { %5287 = vtanh.f32 %v7259_v30 }
0x1008   :  { %v2989_v33 = vpop.permute.xlu0 %2988 }
0x1009   :  { %v7265_v20 = vadd.f32 %v2989_v33, %v2931_v9 }
0x100a   :  { %v5288_v47 = vpop.eup %5287 }
0x100b   :  { %5289 = vtanh.f32 %v7265_v20  ;;  %3048 = vrot.lane.b32.xlu1 %v5288_v47, %s5714_s28 }
0x1010   :  { %v2995_v60 = vpop.permute.xlu0 %2994 }
0x1011   :  { %v5290_v54 = vpop.eup %5289  ;;  %v7271_v25 = vadd.f32 %v2995_v60, %v2934_v6 }
0x1012   :  { %3036 = vrot.lane.b32.xlu2 %v5290_v54, %s5714_s28 }
0x1013   :  { %5291 = vtanh.f32 %v7271_v25 }
0x1018   :  { %v2999_v45 = vpop.permute.xlu0 %2998 }
0x1019   :  { %v5292_v49 = vpop.eup %5291  ;;  %v7277_v62 = vadd.f32 %v2999_v45, %v2936_v61 }
0x101a   :  { %3042 = vrot.lane.b32.xlu2 %v5292_v49, %s5714_s28 }
0x101b   :  { %5293 = vtanh.f32 %v7277_v62 }
0x1021   :  { %v5294_v40 = vpop.eup %5293 }
0x1022   :  { %3046 = vrot.lane.b32.xlu2 %v5294_v40, %s5714_s28 }
0x106b   :  { %v3039_v28 = vpop.permute.xlu0 %3038 }
0x106c   :  { %v3037_v36 = vpop.permute.xlu2 %3036  ;;  %v3060_v8 = vmul.f32 %v3039_v28, %v7130_v39 }
0x106d   :  { %v3059_v15 = vmul.f32 %v3037_v36, %v7182_v17  ;;  %v3035_v31 = vpop.permute.xlu1 %3034 }
0x106e   :  { %v3058_v0 = vmul.f32 %v3035_v31, %v7187_v32  ;;  %v3068_v10 = vpack.c.bf16 %v3060_v8, %v3060_v8  ;;  %v3467_v8 = vld [vmem:[#allocation5] sm:$0xff] }
0x106f   :  { %v3067_v37 = vpack.c.bf16 %v3059_v15, %v3059_v15  ;;  %v3468_v15 = vpack.c.bf16 %v3467_v8, %v3467_v8 }
0x1070   :  { %v3066_v1 = vpack.c.bf16 %v3058_v0, %v3058_v0  ;;  %v3084_v11 = vunpack.c.l.b16 %v3068_v10 }
0x1071   :  { %v3083_v55 = vunpack.c.l.b16 %v3067_v37 }
0x1072   :  { %v3082_v7 = vunpack.c.l.b16 %v3066_v1  ;;  %v3093_v44 = vrot.slane %v3084_v11, 4 }
0x1073   :  { %v3045_v29 = vpop.permute.xlu0 %3044  ;;  %v3091_v2 = vrot.slane %v3083_v55, 5 }
0x1074   :  { %v3063_v63 = vmul.f32 %v3045_v29, %v7142_v58  ;;  %v3043_v5 = vpop.permute.xlu2 %3042  ;;  %v3090_v39 = vrot.slane %v3082_v7, 6 }
0x1075   :  { %v3062_v3 = vmul.f32 %v3043_v5, %v7206_v50  ;;  %v3041_v56 = vpop.permute.xlu1 %3040 }
0x1076   :  { %v3061_v17 = vmul.f32 %v3041_v56, %v7209_v51  ;;  %v3071_v35 = vpack.c.bf16 %v3063_v63, %v3063_v63  ;;  %v3092_v24 = vsel %vm678_vm3, %v3091_v2, %v3090_v39 }
0x1077   :  { %v3070_v57 = vpack.c.bf16 %v3062_v3, %v3062_v3  ;;  %v3094_v9 = vsel %vm681_vm4, %v3093_v44, %v3092_v24 }
0x1078   :  { %v3069_v32 = vpack.c.bf16 %v3061_v17, %v3061_v17  ;;  %v3087_v18 = vunpack.c.l.b16 %v3071_v35 }
0x1079   :  { %v3086_v14 = vunpack.c.l.b16 %v3070_v57 }
0x107a   :  { %v3085_v16 = vunpack.c.l.b16 %v3069_v32  ;;  %v3099_v60 = vrot.slane %v3087_v18, 1 }
0x107b   :  { %v3097_v42 = vrot.slane %v3086_v14, 2 }
0x107c   :  { %v3095_v58 = vrot.slane %v3085_v16, 3  ;;  %v3047_v26 = vpop.permute.xlu2 %3046 }
0x107d   :  { %v3064_v50 = vmul.f32 %v3047_v26, %v7226_v22  ;;  %v3049_v33 = vpop.permute.xlu1 %3048 }
0x107e   :  { %v3096_v47 = vsel %vm684_vm5, %v3095_v58, %v3094_v9  ;;  %v3065_v51 = vmul.f32 %v3049_v33, %v7229_v41  ;;  %v4796_v41 = vld [vmem:[#allocation11] sm:$0xff] }
0x107f   :  { %v3098_v13 = vsel %vm687_vm6, %v3097_v42, %v3096_v47  ;;  %v3072_v6 = vpack.c.bf16 %v3064_v50, %v3064_v50  ;;  %3485 = vmatpush.bf16.msrb.mxu0 %v4796_v41 }
0x1080   :  { %v3073_v54 = vpack.c.bf16 %v3065_v51, %v3065_v51  ;;  %v3100_v61 = vsel %vm690_vm7, %v3099_v60, %v3098_v13 }
0x1081   :  { %v3088_v46 = vunpack.c.l.b16 %v3072_v6 }
0x1082   :  { %v3089_v45 = vunpack.c.l.b16 %v3073_v54  ;;  %4743 = vmatmul.msk.bf16.vlgmr.msrb.gmra.mxu0 %vm7858_vm14, %v3468_v15 }
0x1083   :  { %v3101_v49 = vsel %vm693_vm8, %v3088_v46, %v3100_v61 }
0x1084   :  { %v3102_v40 = vrot.slane %v3089_v45, 7 }
0x1086   :  { %v3103_v28 = vsel %vm696_vm9, %v3102_v40, %v3101_v49 }
0x1087   :  { %v3104_v22 = vpack.c.b16 %v3103_v28, %v3103_v28 }
0x1089   :  { %3105 = vrot.lane.b32.xlu0 %v3104_v22, %s5726_s5 }
0x10fb   :  { %v3106_v36 = vpop.permute.xlu0 %3105 }
0x10fc   :  { %4730 = vmatmul.msk.bf16.vlgmr.msra.gmra.mxu3 %vm316_vm10, %v3106_v36 }
0x10fd   :  { %3904 = vmatpush.bf16.msra.mxu3 %v6298_v4 }
0x117f   :  { %v3119_v31 = vpop.f32.mrf.mxu3 }
0x1180   :  { %v3126_v0 = vrot.slane %v3119_v31, 3  ;;  %v3125_v37 = vrot.slane %v3119_v31, 2  ;;  %v3124_v1 = vrot.slane %v3119_v31, 1  ;;  %v3129_v29 = vrot.slane %v3119_v31, 6 }
0x1181   :  { %v3128_v63 = vrot.slane %v3119_v31, 5  ;;  %v3127_v5 = vrot.slane %v3119_v31, 4  ;;  %v3146_v17 = vadd.f32 %v3119_v31, %v5914_v53 }
0x1182   :  { %v3141_v10 = vadd.f32 %v3126_v0, %v5893_v27  ;;  %v3140_v55 = vadd.f32 %v3125_v37, %v5889_v21  ;;  %v3139_v7 = vadd.f32 %v3124_v1, %v5887_v19  ;;  %v3144_v3 = vadd.f32 %v3129_v29, %v5906_v43 }
0x1183   :  { %v3143_v56 = vadd.f32 %v3128_v63, %v5902_v38  ;;  %v3142_v27 = vadd.f32 %v3127_v5, %v5898_v34  ;;  %v3130_v21 = vrot.slane %v3119_v31, 7  ;;  %v4738_v24 = vmul.f32 -1.442695, %v3146_v17 }
0x1184   :  { %5295 = vtanh.f32 %v3141_v10  ;;  %v4732_v53 = vmul.f32 -1.442695, %v3140_v55  ;;  %v4733_v58 = vmul.f32 -1.442695, %v3141_v10  ;;  %v4731_v26 = vmul.f32 -1.442695, %v3139_v7 }
0x1185   :  { %5297 = vtanh.f32 %v3140_v55  ;;  %v3145_v38 = vadd.f32 %v3130_v21, %v5910_v48  ;;  %v4735_v44 = vmul.f32 -1.442695, %v3143_v56  ;;  %v4736_v13 = vmul.f32 -1.442695, %v3144_v3 }
0x1186   :  { %5299 = vtanh.f32 %v3139_v7  ;;  %v4734_v60 = vmul.f32 -1.442695, %v3142_v27 }
0x1187   :  { %v3121_v11 = vpop.f32.mrf.mxu3  ;;  %5301 = vtanh.f32 %v3144_v3  ;;  %v4737_v15 = vmul.f32 -1.442695, %v3145_v38 }
0x1188   :  { %5303 = vtanh.f32 %v3143_v56 }
0x1189   :  { %5305 = vtanh.f32 %v3142_v27 }
0x118a   :  { %v5296_v2 = vpop.eup %5295  ;;  %5307 = vtanh.f32 %v3146_v17 }
0x118b   :  { %v5298_v39 = vpop.eup %5297  ;;  %3351 = vrot.lane.b32.xlu0 %v5296_v2, %s5714_s28  ;;  %5309 = vtanh.f32 %v3145_v38 }
0x118c   :  { %v5300_v19 = vpop.eup %5299  ;;  %3349 = vrot.lane.b32.xlu2 %v5298_v39, %s5714_s28  ;;  %5311 = vpow2.f32 %v4732_v53 }
0x118d   :  { %3347 = vrot.lane.b32.xlu1 %v5300_v19, %s5714_s28  ;;  %v5302_v43 = vpop.eup %5301  ;;  %5313 = vpow2.f32 %v4735_v44 }
0x118e   :  { %v5304_v57 = vpop.eup %5303 }
0x118f   :  { %v5306_v34 = vpop.eup %5305 }
0x1190   :  { %v5308_v35 = vpop.eup %5307 }
0x1191   :  { %v5310_v32 = vpop.eup %5309 }
0x1192   :  { %v5312_v48 = vpop.eup %5311 }
0x1193   :  { %3357 = vrot.lane.b32.xlu0 %v5302_v43, %s5714_s28  ;;  %v3172_v14 = vadd.f32 1.0, %v5312_v48  ;;  %v5314_v16 = vpop.eup %5313 }
0x1194   :  { %3355 = vrot.lane.b32.xlu2 %v5304_v57, %s5714_s28  ;;  %v7317_v42 = vadd.f32 1.0, %v5314_v16 }
0x1195   :  { %3353 = vrot.lane.b32.xlu1 %v5306_v34, %s5714_s28  ;;  %5315 = vrcp.f32 %v3172_v14  ;;  %v3205_v36 = vand.u32 2147483648, %v3172_v14  ;;  %vm3199_vm2 = vweird.f32 %v3172_v14  ;;  %v3203_v41 = vand.u32 2147483647, %v3172_v14 }
0x1196   :  { %5317 = vpow2.f32 %v4738_v24  ;;  %v3250_v2 = vand.u32 2147483648, %v7317_v42  ;;  %vm3244_vm15 = vweird.f32 %v7317_v42  ;;  %v3248_v39 = vand.u32 2147483647, %v7317_v42 }
0x1197   :  { %5319 = vrcp.f32 %v7317_v42  ;;  %v3206_v10 = vor.u32 1.1754944e-38, %v3205_v36  ;;  %vm3204_vm12 = vcmp.eq.f32.partialorder %v3203_v41, 8.507059e+37 }
0x1198   :  { %5321 = vpow2.f32 %v4733_v58  ;;  %v3251_v38 = vor.u32 1.1754944e-38, %v3250_v2  ;;  %vm3249_vm14 = vcmp.eq.f32.partialorder %v3248_v39, 8.507059e+37 }
0x1199   :  { %5323 = vpow2.f32 %v4731_v26 }
0x119b   :  { %v5316_v18 = vpop.eup %5315 }
0x119c   :  { %3361 = vrot.lane.b32.xlu2 %v5308_v35, %s5714_s28  ;;  %v5318_v9 = vpop.eup %5317  ;;  %v3195_v50 = vmul.f32 %v5316_v18, %v3172_v14  ;;  %vm3200_vm1 = vweird.f32 %v5316_v18 }
0x119d   :  { %3359 = vrot.lane.b32.xlu1 %v5310_v32, %s5714_s28  ;;  %v7320_v33 = vadd.f32 1.0, %v5318_v9  ;;  %v5320_v51 = vpop.eup %5319  ;;  %vm3201_vm11 = vmor %vm3199_vm2, %vm3200_vm1 }
0x119e   :  { %v3196_v47 = vsub.f32 1.0, %v3195_v50  ;;  %v5322_v6 = vpop.eup %5321  ;;  %v3240_v46 = vmul.f32 %v5320_v51, %v7317_v42  ;;  %vm3245_vm13 = vweird.f32 %v5320_v51 }
0x119f   :  { %5325 = vrcp.f32 %v7320_v33  ;;  %v5324_v61 = vpop.eup %5323  ;;  %v7324_v45 = vadd.f32 1.0, %v5322_v6  ;;  %vm3246_vm0 = vmor %vm3244_vm15, %vm3245_vm13  ;;  %v3295_v24 = vand.u32 2147483648, %v7320_v33  ;;  %vm3289_vm2 = vweird.f32 %v7320_v33 }
0x11a0   :  { %v3197_v54 = vmul.f32 %v5316_v18, %v3196_v47  ;;  %5327 = vpow2.f32 %v4736_v13  ;;  %v3241_v40 = vsub.f32 1.0, %v3240_v46  ;;  %v7326_v28 = vadd.f32 1.0, %v5324_v61 }
0x11a1   :  { %5329 = vpow2.f32 %v4734_v60  ;;  %v3296_v50 = vor.u32 1.1754944e-38, %v3295_v24  ;;  %vm3214_vm15 = vweird.f32 %v7324_v45  ;;  %v3220_v46 = vand.u32 2147483648, %v7324_v45 }
0x11a2   :  { %v3198_v49 = vadd.f32 %v5316_v18, %v3197_v54  ;;  %5331 = vrcp.f32 %v7324_v45  ;;  %v3242_v0 = vmul.f32 %v5320_v51, %v3241_v40  ;;  %v3218_v61 = vand.u32 2147483647, %v7324_v45 }
0x11a3   :  { %5333 = vrcp.f32 %v7326_v28  ;;  %v3190_v36 = vand.u32 2147483648, %v7326_v28 }
0x11a4   :  { %v3202_v31 = vsel %vm3201_vm11, %v5316_v18, %v3198_v49  ;;  %5335 = vpow2.f32 %v4737_v15  ;;  %v3243_v11 = vadd.f32 %v5320_v51, %v3242_v0  ;;  %v3293_v18 = vand.u32 2147483647, %v7320_v33 }
0x11a5   :  { %v7328_v22 = vpop.eup %5325  ;;  %v7336_v29 = vsel %vm3204_vm12, %v3206_v10, %v3202_v31  ;;  %v3221_v15 = vor.u32 1.1754944e-38, %v3220_v46 }
0x11a6   :  { %v5328_v8 = vpop.eup %5327  ;;  %v3285_v37 = vmul.f32 %v7328_v22, %v7320_v33  ;;  %v3247_v21 = vsel %vm3246_vm0, %v5320_v51, %v3243_v11  ;;  %vm3290_vm1 = vweird.f32 %v7328_v22  ;;  %vm3294_vm12 = vcmp.eq.f32.partialorder %v3293_v18, 8.507059e+37 }
0x11a7   :  { %v5330_v1 = vpop.eup %5329  ;;  %v7334_v55 = vadd.f32 1.0, %v5328_v8  ;;  %v7356_v34 = vsel %vm3249_vm14, %v3251_v38, %v3247_v21  ;;  %vm3291_vm11 = vmor %vm3289_vm2, %vm3290_vm1  ;;  %vm3184_vm1 = vweird.f32 %v7326_v28  ;;  %v3188_v8 = vand.u32 2147483647, %v7326_v28 }
0x11a8   :  { %v7338_v63 = vpop.eup %5331  ;;  %v3286_v3 = vsub.f32 1.0, %v3285_v37  ;;  %v7341_v56 = vadd.f32 1.0, %v5330_v1 }
0x11a9   :  { %v7344_v27 = vpop.eup %5333  ;;  %5337 = vrcp.f32 %v7334_v55  ;;  %v3210_v19 = vmul.f32 %v7338_v63, %v7324_v45  ;;  %vm3215_vm13 = vweird.f32 %v7338_v63  ;;  %v3265_v2 = vand.u32 2147483648, %v7334_v55 }
0x11aa   :  { %v3287_v17 = vmul.f32 %v7328_v22, %v3286_v3  ;;  %5339 = vrcp.f32 %v7341_v56  ;;  %v5336_v43 = vpop.eup %5335  ;;  %v3180_v57 = vmul.f32 %v7344_v27, %v7326_v28  ;;  %vm3185_vm0 = vweird.f32 %v7344_v27  ;;  %vm3216_vm14 = vmor %vm3214_vm15, %vm3215_vm13 }
0x11ab   :  { %v3211_v32 = vsub.f32 1.0, %v3210_v19  ;;  %v7363_v14 = vadd.f32 1.0, %v5336_v43  ;;  %vm3186_vm2 = vmor %vm3184_vm1, %vm3185_vm0  ;;  %vm3189_vm13 = vcmp.eq.f32.partialorder %v3188_v8, 8.507059e+37  ;;  %v3263_v3 = vand.u32 2147483647, %v7334_v55 }
0x11ac   :  { %v3288_v48 = vadd.f32 %v7328_v22, %v3287_v17  ;;  %v3181_v16 = vsub.f32 1.0, %v3180_v57  ;;  %v3235_v43 = vand.u32 2147483648, %v7341_v56  ;;  %vm3229_vm1 = vweird.f32 %v7341_v56 }
0x11ad   :  { %v3212_v58 = vmul.f32 %v7338_v63, %v3211_v32  ;;  %5341 = vrcp.f32 %v7363_v14  ;;  %v3233_v57 = vand.u32 2147483647, %v7341_v56 }
0x11ae   :  { %v3292_v9 = vsel %vm3291_vm11, %v7328_v22, %v3288_v48  ;;  %v3182_v47 = vmul.f32 %v7344_v27, %v3181_v16  ;;  %vm3219_vm11 = vcmp.eq.f32.partialorder %v3218_v61, 8.507059e+37  ;;  %v3317_v61 = vrot.slane %v7237_v23, 7 }
0x11af   :  { %v7358_v53 = vpop.eup %5337  ;;  %v7379_v13 = vsel %vm3294_vm12, %v3296_v50, %v3292_v9  ;;  %v3213_v6 = vadd.f32 %v7338_v63, %v3212_v58  ;;  %vm3259_vm12 = vweird.f32 %v7334_v55  ;;  %v3278_v9 = vand.u32 2147483647, %v7363_v14 }
0x11b0   :  { %v7366_v42 = vpop.eup %5339  ;;  %v3255_v26 = vmul.f32 %v7358_v53, %v7334_v55  ;;  %v3183_v49 = vadd.f32 %v7344_v27, %v3182_v47  ;;  %vm3260_vm15 = vweird.f32 %v7358_v53 }
0x11b1   :  { %v3225_v51 = vmul.f32 %v7366_v42, %v7341_v56  ;;  %v3217_v41 = vsel %vm3216_vm14, %v7338_v63, %v3213_v6  ;;  %vm3230_vm0 = vweird.f32 %v7366_v42  ;;  %vm3261_vm14 = vmor %vm3259_vm12, %vm3260_vm15  ;;  %vm3234_vm12 = vcmp.eq.f32.partialorder %v3233_v57, 8.507059e+37 }
0x11b2   :  { %v3256_v60 = vsub.f32 1.0, %v3255_v26  ;;  %v3187_v31 = vsel %vm3186_vm2, %v7344_v27, %v3183_v49  ;;  %v7401_v10 = vsel %vm3219_vm11, %v3221_v15, %v3217_v41  ;;  %v7412_v27 = vpop.f32.mrf.mxu0  ;;  %vm3231_vm2 = vmor %vm3229_vm1, %vm3230_vm0  ;;  %vm3264_vm11 = vcmp.eq.f32.partialorder %v3263_v3, 8.507059e+37 }
0x11b3   :  { %v3226_v40 = vsub.f32 1.0, %v3225_v51  ;;  %v7389_v22 = vpop.eup %5341  ;;  %v3493_v17 = vrot.slane %v7412_v27, 2  ;;  %vm3274_vm15 = vweird.f32 %v7363_v14  ;;  %v3495_v46 = vrot.slane %v7412_v27, 4 }
0x11b4   :  { %v3257_v45 = vmul.f32 %v7358_v53, %v3256_v60  ;;  %v3270_v37 = vmul.f32 %v7389_v22, %v7363_v14  ;;  %v3492_v60 = vrot.slane %v7412_v27, 1  ;;  %v3497_v49 = vrot.slane %v7412_v27, 6 }
0x11b5   :  { %v3227_v0 = vmul.f32 %v7366_v42, %v3226_v40  ;;  %v3316_v40 = vrot.slane %v7265_v20, 7 }
0x11b6   :  { %v3258_v63 = vadd.f32 %v7358_v53, %v3257_v45  ;;  %v3271_v21 = vsub.f32 1.0, %v3270_v37 }
0x11b7   :  { %v3228_v19 = vadd.f32 %v7366_v42, %v3227_v0  ;;  %v3332_v41 = vmul.f32 %v3316_v40, %v7336_v29 }
0x11b8   :  { %v3262_v38 = vsel %vm3261_vm14, %v7358_v53, %v3258_v63  ;;  %v3272_v32 = vmul.f32 %v7389_v22, %v3271_v21  ;;  %v3236_v53 = vor.u32 1.1754944e-38, %v3235_v43  ;;  %vm3279_vm14 = vcmp.eq.f32.partialorder %v3278_v9, 8.507059e+37  ;;  %v3619_v43 = vld [vmem:[#allocation7] sm:$0xff] }
0x11b9   :  { %v3232_v55 = vsel %vm3231_vm2, %v7366_v42, %v3228_v19  ;;  %v3280_v42 = vand.u32 2147483648, %v7363_v14  ;;  %v3494_v14 = vrot.slane %v7412_v27, 3  ;;  %vm7859_vm2 = vcmask 130048  }
0x11ba   :  { %v7433_v56 = vsel %vm3234_vm12, %v3236_v53, %v3232_v55  ;;  %v3489_v18 = vpop.f32.mrf.mxu0  ;;  %v3273_v26 = vadd.f32 %v7389_v22, %v3272_v32  ;;  %v3319_v32 = vrot.slane %v7271_v25, 7  ;;  %v3498_v25 = vrot.slane %v7412_v27, 7 }
0x11bb   :  { %v3281_v47 = vor.u32 1.1754944e-38, %v3280_v42 }
0x11e6   :  { %v3350_v7 = vpop.permute.xlu2 %3349 }
0x11e7   :  { %v3372_v5 = vmul.f32 %v3350_v7, %v7336_v29  ;;  %v3191_v7 = vor.u32 1.1754944e-38, %v3190_v36 }
0x11e9   :  { %3389 = vrot.lane.b32.xlu1 %v3372_v5, %s5726_s5  ;;  %v7407_v11 = vsel %vm3189_vm13, %v3191_v7, %v3187_v31  ;;  %vm3275_vm13 = vweird.f32 %v7389_v22  ;;  %v3320_v31 = vrot.slane %v7247_v59, 7  ;;  %v3315_v59 = vrot.slane %v7241_v52, 7 }
0x11ea   :  { %vm3276_vm0 = vmor %vm3274_vm15, %vm3275_vm13  ;;  %v3335_v52 = vmul.f32 %v3319_v32, %v7356_v34 }
0x11eb   :  { %v3277_v50 = vsel %vm3276_vm0, %v7389_v22, %v3273_v26  ;;  %v3333_v22 = vmul.f32 %v3317_v61, %v7401_v10  ;;  %vm7862_vm13 = vmmov %vm7859_vm2 }
0x11ec   :  { %v7444_v51 = vsel %vm3279_vm14, %v3281_v47, %v3277_v50 }
0x11ee   :  { %v3356_v35 = vpop.permute.xlu2 %3355 }
0x11ef   :  { %v3375_v44 = vmul.f32 %v3356_v35, %v7356_v34  ;;  %v3266_v35 = vor.u32 1.1754944e-38, %v3265_v2 }
0x11f1   :  { %3395 = vrot.lane.b32.xlu1 %v3375_v44, %s5726_s5  ;;  %v7430_v44 = vsel %vm3264_vm11, %v3266_v35, %v3262_v38 }
0x11f2   :  { %v3336_v23 = vmul.f32 %v3320_v31, %v7430_v44 }
0x11f6   :  { %v3362_v33 = vpop.permute.xlu2 %3361 }
0x11f7   :  { %v3378_v54 = vmul.f32 %v3362_v33, %v7379_v13 }
0x11f9   :  { %3401 = vrot.lane.b32.xlu1 %v3378_v54, %s5726_s5  ;;  %v3496_v54 = vrot.slane %v7412_v27, 5 }
0x11fd   :  { %v3352_v1 = vpop.permute.xlu0 %3351 }
0x11fe   :  { %v3373_v28 = vmul.f32 %v3352_v1, %v7401_v10 }
0x11ff   :  { %v3348_v5 = vpop.permute.xlu1 %3347 }
0x1200   :  { %v3371_v39 = vmul.f32 %v3348_v5, %v7407_v11  ;;  %3391 = vrot.lane.b32.xlu2 %v3373_v28, %s5726_s5  ;;  %v3322_v28 = vrot.slane %v7259_v30, 7  ;;  %v3318_v30 = vrot.slane %v7252_v12, 7 }
0x1201   :  { %3501 = vrot.lane.b32.xlu1 %v3493_v17, %s5727_s8 }
0x1202   :  { %3387 = vrot.lane.b32.xlu0 %v3371_v39, %s5726_s5  ;;  %v3338_v63 = vmul.f32 %v3322_v28, %v7379_v13  ;;  %v3331_v39 = vmul.f32 %v3315_v59, %v7407_v11  ;;  %v3334_v38 = vmul.f32 %v3318_v30, %v7433_v56  ;;  %v3617_v28 = vlaneseq }
0x1205   :  { %v3358_v48 = vpop.permute.xlu0 %3357 }
0x1206   :  { %v3376_v24 = vmul.f32 %v3358_v48, %v7430_v44  ;;  %v3321_v48 = vrot.slane %v7277_v62, 7 }
0x1207   :  { %v3354_v16 = vpop.permute.xlu1 %3353 }
0x1208   :  { %v3374_v58 = vmul.f32 %v3354_v16, %v7433_v56  ;;  %3397 = vrot.lane.b32.xlu2 %v3376_v24, %s5726_s5  ;;  %v3337_v24 = vmul.f32 %v3321_v48, %v7444_v51 }
0x1209   :  { %3507 = vrot.lane.b32.xlu1 %v3496_v54, %s5727_s8 }
0x120a   :  { %3393 = vrot.lane.b32.xlu0 %v3374_v58, %s5726_s5 }
0x120f   :  { %v3360_v33 = vpop.permute.xlu1 %3359 }
0x1210   :  { %v3377_v6 = vmul.f32 %v3360_v33, %v7444_v51  ;;  %3505 = vrot.lane.b32.xlu2 %v3495_v46, %s5727_s8 }
0x1212   :  { %3399 = vrot.lane.b32.xlu0 %v3377_v6, %s5726_s5 }
0x1218   :  { %3509 = vrot.lane.b32.xlu2 %v3497_v49, %s5727_s8 }
0x121a   :  { %3499 = vrot.lane.b32.xlu0 %v3492_v60, %s5727_s8 }
0x1222   :  { %3503 = vrot.lane.b32.xlu0 %v3494_v14, %s5727_s8 }
0x125a   :  { %v3392_v36 = vpop.permute.xlu2 %3391 }
0x125b   :  { %v3413_v8 = vadd.f32 %v3392_v36, %v3333_v22  ;;  %v3390_v45 = vpop.permute.xlu1 %3389 }
0x125c   :  { %v3412_v15 = vadd.f32 %v3390_v45, %v3332_v41 }
0x125d   :  { %5343 = vtanh.f32 %v3413_v8 }
0x125e   :  { %5345 = vtanh.f32 %v3412_v15 }
0x1262   :  { %v3398_v0 = vpop.permute.xlu2 %3397 }
0x1263   :  { %v5344_v37 = vpop.eup %5343  ;;  %v3416_v1 = vadd.f32 %v3398_v0, %v3336_v23  ;;  %v3396_v20 = vpop.permute.xlu1 %3395 }
0x1264   :  { %v5346_v7 = vpop.eup %5345  ;;  %3439 = vrot.lane.b32.xlu1 %v5344_v37, %s5714_s28  ;;  %v3415_v53 = vadd.f32 %v3396_v20, %v3335_v52 }
0x1265   :  { %5347 = vtanh.f32 %v3416_v1  ;;  %3437 = vrot.lane.b32.xlu0 %v5346_v7, %s5714_s28 }
0x126a   :  { %v3506_v9 = vpop.permute.xlu2 %3505 }
0x126b   :  { %v5348_v5 = vpop.eup %5347  ;;  %v3402_v3 = vpop.permute.xlu1 %3401 }
0x126c   :  { %v3418_v2 = vadd.f32 %v3402_v3, %v3338_v63  ;;  %3445 = vrot.lane.b32.xlu1 %v5348_v5, %s5714_s28 }
0x126e   :  { %5349 = vtanh.f32 %v3418_v2  ;;  %v7494_v2 = vand.u32 127, %v3617_v28 }
0x1272   :  { %v3510_v33 = vpop.permute.xlu2 %3509 }
0x1273   :  { %v3502_v62 = vpop.permute.xlu1 %3501 }
0x1274   :  { %v5350_v19 = vpop.eup %5349  ;;  %v3388_v21 = vpop.permute.xlu0 %3387 }
0x1275   :  { %v3411_v17 = vadd.f32 %v3388_v21, %v3331_v39  ;;  %3449 = vrot.lane.b32.xlu1 %v5350_v19, %s5714_s28  ;;  %v5728_v39 = vmov 0.0  }
0x1277   :  { %5351 = vtanh.f32 %v3411_v17 }
0x127b   :  { %v3508_v50 = vpop.permute.xlu1 %3507 }
0x127c   :  { %v3394_v57 = vpop.permute.xlu0 %3393 }
0x127d   :  { %v5352_v35 = vpop.eup %5351  ;;  %v3414_v55 = vadd.f32 %v3394_v57, %v3334_v38  ;;  %3621 = vperm.xlu1 %4834, %v3619_v43  }
0x127e   :  { %3435 = vrot.lane.b32.xlu2 %v5352_v35, %s5714_s28  ;;  %v4798_v35 = vld [vmem:[#allocation14 + $0x8] sm:$0xff] }
0x127f   :  { %5353 = vtanh.f32 %v3414_v55  ;;  %3605 = vmatpush.bf16.msrb.mxu2 %v4798_v35  ;;  %v4797_v55 = vld [vmem:[#allocation14] sm:$0xff] }
0x1280   :  { %5355 = vtanh.f32 %v3415_v53 }
0x1283   :  { %3606 = vmatpush.bf16.msrb.mxu2 %v4797_v55 }
0x1284   :  { %v3400_v12 = vpop.permute.xlu0 %3399 }
0x1285   :  { %v5354_v16 = vpop.eup %5353  ;;  %v3417_v18 = vadd.f32 %v3400_v12, %v3337_v24 }
0x1286   :  { %3441 = vrot.lane.b32.xlu2 %v5354_v16, %s5714_s28  ;;  %v5356_v58 = vpop.eup %5355 }
0x1287   :  { %5357 = vtanh.f32 %v3417_v18 }
0x128c   :  { %v3500_v42 = vpop.permute.xlu0 %3499 }
0x128d   :  { %v5358_v26 = vpop.eup %5357 }
0x128e   :  { %3447 = vrot.lane.b32.xlu0 %v5358_v26, %s5714_s28  ;;  %3443 = vrot.lane.b32.xlu2 %v5356_v58, %s5714_s28 }
0x1294   :  { %v3504_v47 = vpop.permute.xlu0 %3503 }
0x1296   :  { %3511 = vrot.lane.b32.xlu0 %v3498_v25, %s5727_s8  ;;  %3513 = vrot.lane.b32.xlu2 %v7412_v27, %s5727_s8 }
0x12d6   :  { %v3440_v6 = vpop.permute.xlu1 %3439 }
0x12d7   :  { %v3461_v60 = vmul.f32 %v3440_v6, %v7401_v10  ;;  %v3438_v54 = vpop.permute.xlu0 %3437 }
0x12d8   :  { %v3460_v14 = vmul.f32 %v3438_v54, %v7336_v29  ;;  %v3436_v46 = vpop.permute.xlu2 %3435 }
0x12d9   :  { %v3525_v61 = vadd.f32 %v3504_v47, %v3461_v60  ;;  %v3459_v49 = vmul.f32 %v3436_v46, %v7407_v11 }
0x12da   :  { %v3524_v40 = vadd.f32 %v3502_v62, %v3460_v14 }
0x12db   :  { %5359 = vtanh.f32 %v3525_v61  ;;  %v3523_v22 = vadd.f32 %v3500_v42, %v3459_v49 }
0x12dc   :  { %5361 = vtanh.f32 %v3524_v40 }
0x12dd   :  { %5363 = vtanh.f32 %v3523_v22 }
0x12de   :  { %v3446_v27 = vpop.permute.xlu1 %3445 }
0x12df   :  { %v3464_v0 = vmul.f32 %v3446_v27, %v7430_v44 }
0x12e0   :  { %v3442_v36 = vpop.permute.xlu2 %3441 }
0x12e1   :  { %v5360_v41 = vpop.eup %5359  ;;  %v3462_v8 = vmul.f32 %v3442_v36, %v7433_v56  ;;  %v3528_v20 = vadd.f32 %v3510_v33, %v3464_v0 }
0x12e2   :  { %v5362_v45 = vpop.eup %5361  ;;  %v3692_v10 = vrot.slane %v5360_v41, 5  ;;  %v3541_v12 = vpack.c.bf16 %v5360_v41, %v5360_v41 }
0x12e3   :  { %v5364_v15 = vpop.eup %5363  ;;  %v3690_v31 = vrot.slane %v5362_v45, 6  ;;  %v3526_v23 = vadd.f32 %v3506_v9, %v3462_v8  ;;  %v3540_v52 = vpack.c.bf16 %v5362_v45, %v5362_v45 }
0x12e4   :  { %v3689_v29 = vrot.slane %v5364_v15, 7  ;;  %v3539_v48 = vpack.c.bf16 %v5364_v15, %v5364_v15 }
0x12e5   :  { %5365 = vtanh.f32 %v3526_v23  ;;  %v3560_v18 = vunpack.c.l.b16 %v3540_v52 }
0x12e6   :  { %v3691_v11 = vsel %vm678_vm3, %v3690_v31, %v3689_v29  ;;  %5367 = vtanh.f32 %v3528_v20  ;;  %v3559_v58 = vunpack.c.l.b16 %v3539_v48 }
0x12e7   :  { %v3450_v37 = vpop.permute.xlu1 %3449  ;;  %v3693_v1 = vsel %vm681_vm4, %v3692_v10, %v3691_v11  ;;  %v3568_v47 = vrot.slane %v3560_v18, 6 }
0x12e8   :  { %v3444_v7 = vpop.permute.xlu2 %3443  ;;  %v3466_v24 = vmul.f32 %v3450_v37, %v7379_v13  ;;  %v3567_v33 = vrot.slane %v3559_v58, 7 }
0x12e9   :  { %v3463_v63 = vmul.f32 %v3444_v7, %v7356_v34 }
0x12ea   :  { %v3569_v13 = vsel %vm678_vm3, %v3568_v47, %v3567_v33 }
0x12eb   :  { %v5366_v56 = vpop.eup %5365  ;;  %v3527_v5 = vadd.f32 %v3508_v50, %v3463_v63  ;;  %v3561_v50 = vunpack.c.l.b16 %v3541_v12 }
0x12ec   :  { %v3694_v3 = vrot.slane %v5366_v56, 4  ;;  %v5368_v19 = vpop.eup %5367  ;;  %v3542_v26 = vpack.c.bf16 %v5366_v56, %v5366_v56  ;;  %v4844_v56 = vld [vmem:[%s7834_s11] ss:$0 sm:$0xff] }
0x12ed   :  { %5369 = vtanh.f32 %v3527_v5  ;;  %v3698_v43 = vrot.slane %v5368_v19, 2  ;;  %v3544_v54 = vpack.c.bf16 %v5368_v19, %v5368_v19  ;;  %v3570_v14 = vrot.slane %v3561_v50, 5 }
0x12ee   :  { %v3695_v44 = vsel %vm684_vm5, %v3694_v3, %v3693_v1  ;;  %v3562_v6 = vunpack.c.l.b16 %v3542_v26 }
0x12ef   :  { %v7497_v59 = vpop.permute.xlu1 %3621  ;;  %v3564_v22 = vunpack.c.l.b16 %v3544_v54 }
0x12f0   :  { %vm3623_vm1 = vcmp.eq.s32.totalorder %v7494_v2, %v7497_v59  ;;  %v3514_v53 = vpop.permute.xlu2 %3513  ;;  %v3572_v46 = vrot.slane %v3562_v6, 4 }
0x12f1   :  { %v4753_v34 = vsel %vm3623_vm1, 1.0, %v5728_v39  ;;  %v3530_v16 = vadd.f32 %v3514_v53, %v3466_v24  ;;  %v3576_v31 = vrot.slane %v3564_v22, 2 }
0x12f2   :  { %v3626_v21 = vpack.c.bf16 %v4753_v34, %v4753_v34  ;;  %v7530_v34 = vld [vmem:[%s7833_s10] ss:$0 sm:$0xff] }
0x12f3   :  { %v5370_v17 = vpop.eup %5369  ;;  %5371 = vtanh.f32 %v3530_v16 }
0x12f4   :  { %v3696_v30 = vrot.slane %v5370_v17, 3  ;;  %4754 = vmatmul.msk.bf16.vlgmr.msrb.gmra.mxu3 %vm7859_vm2, %v3626_v21  ;;  %v3543_v62 = vpack.c.bf16 %v5370_v17, %v5370_v17 }
0x12f5   :  { %4134 = vmatpush.bf16.msrb.mxu3 %v6298_v4 }
0x12f6   :  { %v3697_v38 = vsel %vm687_vm6, %v3696_v30, %v3695_v44  ;;  %v3563_v60 = vunpack.c.l.b16 %v3543_v62 }
0x12f7   :  { %v3699_v57 = vsel %vm690_vm7, %v3698_v43, %v3697_v38 }
0x12f8   :  { %v3574_v49 = vrot.slane %v3563_v60, 3 }
0x12f9   :  { %v5372_v61 = vpop.eup %5371 }
0x12fa   :  { %v3546_v8 = vpack.c.bf16 %v5372_v61, %v5372_v61 }
0x12fc   :  { %v3566_v0 = vunpack.c.l.b16 %v3546_v8 }
0x1300   :  { %v3448_v32 = vpop.permute.xlu0 %3447 }
0x1301   :  { %v3465_v25 = vmul.f32 %v3448_v32, %v7444_v51  ;;  %v3571_v51 = vsel %vm681_vm4, %v3570_v14, %v3569_v13 }
0x1302   :  { %v3573_v41 = vsel %vm684_vm5, %v3572_v46, %v3571_v51  ;;  %v7564_v46 = vld [vmem:[%s7836_s13] ss:$0 sm:$0xff] }
0x1303   :  { %v3575_v15 = vsel %vm687_vm6, %v3574_v49, %v3573_v41 }
0x1304   :  { %v3577_v11 = vsel %vm690_vm7, %v3576_v31, %v3575_v15  ;;  %vm7860_vm7 = vmmov %vm7859_vm2 }
0x1308   :  { %v3512_v42 = vpop.permute.xlu0 %3511 }
0x1309   :  { %v3529_v9 = vadd.f32 %v3512_v42, %v3465_v25  ;;  %v7542_v42 = vld [vmem:[#allocation16 + $0x8] sm:$0xff] }
0x130a   :  { %3733 = vmatpush.bf16.msra.mxu0 %v7542_v42  ;;  %3844 = vmatpush.bf16.msra.mxu2 %v7542_v42 }
0x130b   :  { %5373 = vtanh.f32 %v3529_v9  ;;  %v7545_v9 = vld [vmem:[#allocation16] sm:$0xff] }
0x130e   :  { %3734 = vmatpush.bf16.msra.mxu0 %v7545_v9  ;;  %3845 = vmatpush.bf16.msra.mxu2 %v7545_v9 }
0x1311   :  { %v5374_v40 = vpop.eup %5373 }
0x1312   :  { %v3545_v27 = vpack.c.bf16 %v5374_v40, %v5374_v40  ;;  %v3700_v36 = vrot.slane %v5374_v40, 1  ;;  %3959 = vmatpush.bf16.msrb.mxu0 %v7542_v42 }
0x1314   :  { %v3565_v45 = vunpack.c.l.b16 %v3545_v27  ;;  %v3701_v10 = vsel %vm693_vm8, %v3700_v36, %v3699_v57 }
0x1315   :  { %v3702_v23 = vsel %vm696_vm9, %v5372_v61, %v3701_v10 }
0x1316   :  { %v3578_v29 = vrot.slane %v3565_v45, 1  ;;  %3960 = vmatpush.bf16.msrb.mxu0 %v7545_v9 }
0x1318   :  { %v3579_v37 = vsel %vm693_vm8, %v3578_v29, %v3577_v11 }
0x1319   :  { %v3580_v1 = vsel %vm696_vm9, %v3566_v0, %v3579_v37  ;;  %vm7861_vm9 = vmmov %vm7859_vm2 }
0x131a   :  { %v3581_v20 = vpack.c.b16 %v3580_v1, %v3580_v1 }
0x131c   :  { %3582 = vrot.lane.b32.xlu0 %v3581_v20, %s5726_s5 }
0x1377   :  { %v3639_v28 = vpop.f32.mrf.mxu3 }
0x1378   :  { %v3663_v58 = vadd.f32 %v7530_v34, %v3639_v28 }
0x137f   :  { %v3641_v63 = vpop.f32.mrf.mxu3 }
0x138e   :  { %v3583_v7 = vpop.permute.xlu0 %3582 }
0x138f   :  { %4752 = vmatmul.msk.bf16.vlgmr.msrb.gmra.mxu2 %vm316_vm10, %v3583_v7 }
0x1390   :  { %4074 = vmatpush.bf16.msrb.mxu2 %v7542_v42 }
0x1394   :  { %4075 = vmatpush.bf16.msrb.mxu2 %v7545_v9 }
0x1412   :  { %v3608_v5 = vpop.f32.mrf.mxu2 }
0x1413   :  { %v3609_v3 = vadd.f32 %v4844_v56, %v3608_v5 }
0x1415   :  { %3665 = vrot.lane.b32.xlu2 %v3609_v3, %s5714_s28  ;;  %v7533_v19 = vadd.f32 %v7530_v34, %v3609_v3 }
0x1417   :  { %v3643_v21 = vadd.f32 %v3639_v28, %v7533_v19 }
0x1419   :  { %v4755_v17 = vmul.f32 -1.442695, %v3643_v21 }
0x141a   :  { %v3610_v44 = vpop.f32.mrf.mxu2 }
0x141b   :  { %5375 = vpow2.f32 %v4755_v17 }
0x141d   :  { %3703 = vrot.lane.b32.xlu2 %v3702_v23, %s5714_s28 }
0x1421   :  { %v5376_v30 = vpop.eup %5375 }
0x1422   :  { %v3647_v43 = vadd.f32 1.0, %v5376_v30 }
0x1424   :  { %5377 = vrcp.f32 %v3647_v43  ;;  %v3659_v52 = vand.u32 2147483648, %v3647_v43  ;;  %vm3653_vm4 = vweird.f32 %v3647_v43  ;;  %v3657_v48 = vand.u32 2147483647, %v3647_v43 }
0x1426   :  { %v3660_v24 = vor.u32 1.1754944e-38, %v3659_v52  ;;  %vm3658_vm6 = vcmp.eq.f32.partialorder %v3657_v48, 8.507059e+37 }
0x142a   :  { %v5378_v38 = vpop.eup %5377 }
0x142b   :  { %v3649_v57 = vmul.f32 %v5378_v38, %v3647_v43  ;;  %vm3654_vm3 = vweird.f32 %v5378_v38 }
0x142c   :  { %vm3655_vm5 = vmor %vm3653_vm4, %vm3654_vm3 }
0x142d   :  { %v3650_v35 = vsub.f32 1.0, %v3649_v57  ;;  %vm7863_vm3 = vmmov %vm7860_vm7 }
0x142f   :  { %v3651_v55 = vmul.f32 %v5378_v38, %v3650_v35 }
0x1431   :  { %v3652_v32 = vadd.f32 %v5378_v38, %v3651_v55 }
0x1433   :  { %v3656_v53 = vsel %vm3655_vm5, %v5378_v38, %v3652_v32  ;;  %vm7864_vm5 = vmmov %vm7863_vm3 }
0x1434   :  { %v3661_v16 = vsel %vm3658_vm6, %v3660_v24, %v3656_v53 }
0x1435   :  { %v3675_v47 = vsub.f32 1.0, %v3661_v16 }
0x146f   :  { %v7536_v12 = vpop.permute.xlu2 %3665 }
0x1470   :  { %v3668_v18 = vmul.f32 %v7536_v12, %v3661_v16 }
0x1472   :  { %3670 = vrot.lane.b32.xlu0 %v3668_v18, %s5714_s28 }
0x1477   :  { %v7554_v50 = vpop.permute.xlu2 %3703 }
0x1478   :  { %v3706_v6 = vmul.f32 %v7554_v50, %v3661_v16 }
0x14e4   :  { %v3671_v26 = vpop.permute.xlu0 %3670 }
0x14e5   :  { %v3673_v25 = vadd.f32 %v3671_v26, %v3663_v58 }
0x14e7   :  { %5379 = vtanh.f32 %v3673_v25 }
0x14ed   :  { %v5380_v62 = vpop.eup %5379 }
0x14ee   :  { %3677 = vrot.lane.b32.xlu1 %v5380_v62, %s5727_s8 }
0x1560   :  { %v3678_v33 = vpop.permute.xlu1 %3677 }
0x1561   :  { %v3680_v60 = vmul.f32 %v3678_v33, %v3675_v47 }
0x1563   :  { %v3707_v54 = vadd.f32 %v3706_v6, %v3680_v60 }
0x1565   :  { %v3708_v14 = vpack.c.bf16 %v3707_v54, %v3707_v54 }
0x1567   :  { %3710 = vrot.lane.b32.xlu0 %v3708_v14, %s5727_s8 }
0x15d9   :  { %v3711_v13 = vpop.permute.xlu0 %3710 }
0x15da   :  { %4764 = vmatmul.msk.bf16.vlgmr.msra.gmra.mxu0 %vm316_vm10, %v3711_v13 }
0x15db   :  { %4189 = vmatpush.bf16.msra.mxu0 %v7542_v42 }
0x15df   :  { %4190 = vmatpush.bf16.msra.mxu0 %v7545_v9 }
0x1657   :  { %v3736_v61 = vpop.f32.mrf.mxu0 }
0x1658   :  { %v7567_v49 = vadd.f32 %v7564_v46, %v3736_v61 }
0x165a   :  { %v3740_v40 = vsel %vm7860_vm7, %v7567_v49, -inf }
0x165b   :  { %3741 = vmax.xlane.f32.xlu1 %v3740_v40 }
0x165f   :  { %v3738_v22 = vpop.f32.mrf.mxu0 }
0x16ce   :  { %v7571_v51 = vpop.xlane.xlu1 %3741 }
0x16cf   :  { %vm3743_vm8 = vcmp.eq.f32.partialorder %v7567_v49, %v7571_v51 }
0x16d0   :  { %v3744_v27 = vsel %vm3743_vm8, %v7494_v2, 16  ;;  %vm7865_vm8 = vmmov %vm7863_vm3 }
0x16d1   :  { %v3745_v36 = vsel %vm7861_vm9, %v3744_v27, 2147483647 }
0x16d2   :  { %v3747_v41 = vshra.s32 %v3745_v36, 16  ;;  %v3746_v45 = vand.u32 65535, %v3745_v36 }
0x16d4   :  { %v3749_v8 = vcvt.s32.f32 %v3747_v41  ;;  %v3748_v10 = vcvt.s32.f32 %v3746_v45 }
0x16d6   :  { %3750 = vmin.xlane.f32.xlu2 %v3749_v8 }
0x1749   :  { %v3751_v15 = vpop.xlane.xlu2 %3750 }
0x174a   :  { %vm3752_vm11 = vcmp.eq.f32.partialorder %v3749_v8, %v3751_v15  ;;  %v3757_v23 = vcvt.f32.s32 %v3751_v15 }
0x174b   :  { %v3753_v31 = vsel %vm3752_vm11, %v3748_v10, inf }
0x174c   :  { %3754 = vmin.xlane.f32.xlu0 %v3753_v31  ;;  %v3758_v0 = vshll.u32 %v3757_v23, 16 }
0x17bf   :  { %v3755_v29 = vpop.xlane.xlu0 %3754 }
0x17c0   :  { %v3756_v11 = vcvt.f32.s32 %v3755_v29 }
0x17c2   :  { %v3759_v37 = vadd.s32 %v3758_v0, %v3756_v11 }
0x17c4   :  { %vm3775_vm12 = vcmp.eq.s32.totalorder %v7494_v2, %v3759_v37 }
0x17c5   :  { %v4765_v1 = vsel %vm3775_vm12, 1.0, %v5728_v39 }
0x17c6   :  { %v3778_v20 = vpack.c.bf16 %v4765_v1, %v4765_v1 }
0x17c8   :  { %4766 = vmatmul.msk.bf16.vlgmr.msrb.gmra.mxu1 %vm7862_vm13, %v3778_v20 }
0x17c9   :  { %4249 = vmatpush.bf16.msrb.mxu1 %v6298_v4 }
0x1845   :  { %v3791_v7 = vpop.f32.mrf.mxu1 }
0x1846   :  { %v3795_v28 = vadd.f32 %v3791_v7, %v7533_v19  ;;  %v3815_v48 = vadd.f32 %v7530_v34, %v3791_v7 }
0x1848   :  { %v4767_v63 = vmul.f32 -1.442695, %v3795_v28 }
0x184a   :  { %5381 = vpow2.f32 %v4767_v63 }
0x184d   :  { %v3793_v56 = vpop.f32.mrf.mxu1 }
0x1850   :  { %v5382_v5 = vpop.eup %5381 }
0x1851   :  { %v3799_v3 = vadd.f32 1.0, %v5382_v5 }
0x1853   :  { %5383 = vrcp.f32 %v3799_v3  ;;  %v3811_v30 = vand.u32 2147483648, %v3799_v3  ;;  %v3809_v38 = vand.u32 2147483647, %v3799_v3  ;;  %vm3805_vm0 = vweird.f32 %v3799_v3 }
0x1855   :  { %v3812_v35 = vor.u32 1.1754944e-38, %v3811_v30  ;;  %vm3810_vm2 = vcmp.eq.f32.partialorder %v3809_v38, 8.507059e+37 }
0x1859   :  { %v5384_v44 = vpop.eup %5383 }
0x185a   :  { %v3801_v21 = vmul.f32 %v5384_v44, %v3799_v3  ;;  %vm3806_vm15 = vweird.f32 %v5384_v44 }
0x185b   :  { %vm3807_vm14 = vmor %vm3805_vm0, %vm3806_vm15 }
0x185c   :  { %v3802_v17 = vsub.f32 1.0, %v3801_v21  ;;  %vm7866_vm15 = vmmov %vm7863_vm3 }
0x185e   :  { %v3803_v43 = vmul.f32 %v5384_v44, %v3802_v17 }
0x1860   :  { %v3804_v57 = vadd.f32 %v5384_v44, %v3803_v43 }
0x1862   :  { %v3808_v55 = vsel %vm3807_vm14, %v5384_v44, %v3804_v57  ;;  %vm7867_vm14 = vmmov %vm7863_vm3 }
0x1863   :  { %v3813_v32 = vsel %vm3810_vm2, %v3812_v35, %v3808_v55 }
0x1864   :  { %v3816_v52 = vmul.f32 %v3813_v32, %v7536_v12  ;;  %v3823_v18 = vsub.f32 1.0, %v3813_v32  ;;  %v3829_v26 = vmul.f32 %v3813_v32, %v7554_v50 }
0x1866   :  { %3818 = vrot.lane.b32.xlu2 %v3816_v52, %s5714_s28 }
0x18c0   :  { %v3819_v53 = vpop.permute.xlu2 %3818 }
0x18c1   :  { %v3821_v24 = vadd.f32 %v3819_v53, %v3815_v48 }
0x18c3   :  { %5385 = vtanh.f32 %v3821_v24 }
0x18c9   :  { %v5386_v16 = vpop.eup %5385 }
0x18ca   :  { %3825 = vrot.lane.b32.xlu1 %v5386_v16, %s5727_s8 }
0x193c   :  { %v3826_v58 = vpop.permute.xlu1 %3825 }
0x193d   :  { %v3828_v25 = vmul.f32 %v3826_v58, %v3823_v18 }
0x193f   :  { %v3830_v62 = vadd.f32 %v3829_v26, %v3828_v25 }
0x1941   :  { %v3831_v47 = vpack.c.bf16 %v3830_v62, %v3830_v62 }
0x1943   :  { %3833 = vrot.lane.b32.xlu0 %v3831_v47, %s5727_s8 }
0x19b5   :  { %v3834_v33 = vpop.permute.xlu0 %3833 }
0x19b6   :  { %4768 = vmatmul.msk.bf16.vlgmr.msra.gmra.mxu2 %vm316_vm10, %v3834_v33 }
0x19b7   :  { %4304 = vmatpush.bf16.msra.mxu2 %v7542_v42 }
0x19bb   :  { %4305 = vmatpush.bf16.msra.mxu2 %v7545_v9 }
0x1a39   :  { %v3847_v6 = vpop.f32.mrf.mxu2 }
0x1a3a   :  { %v7592_v60 = vadd.f32 %v7564_v46, %v3847_v6 }
0x1a3c   :  { %v3851_v54 = vsel %vm7863_vm3, %v7592_v60, -inf }
0x1a3d   :  { %3852 = vmax.xlane.f32.xlu2 %v3851_v54 }
0x1a41   :  { %v3849_v14 = vpop.f32.mrf.mxu2 }
0x1ab0   :  { %v7596_v13 = vpop.xlane.xlu2 %3852 }
0x1ab1   :  { %vm3854_vm4 = vcmp.eq.f32.partialorder %v7592_v60, %v7596_v13 }
0x1ab2   :  { %v3855_v61 = vsel %vm3854_vm4, %v7494_v2, 16  ;;  %vm7868_vm4 = vmmov %vm7864_vm5 }
0x1ab3   :  { %v3856_v40 = vsel %vm7864_vm5, %v3855_v61, 2147483647 }
0x1ab4   :  { %v3858_v22 = vshra.s32 %v3856_v40, 16  ;;  %v3857_v36 = vand.u32 65535, %v3856_v40 }
0x1ab6   :  { %v3860_v27 = vcvt.s32.f32 %v3858_v22  ;;  %v3859_v8 = vcvt.s32.f32 %v3857_v36 }
0x1ab8   :  { %3861 = vmin.xlane.f32.xlu1 %v3860_v27 }
0x1b2b   :  { %v3862_v41 = vpop.xlane.xlu1 %3861 }
0x1b2c   :  { %vm3863_vm6 = vcmp.eq.f32.partialorder %v3860_v27, %v3862_v41  ;;  %v3868_v15 = vcvt.f32.s32 %v3862_v41 }
0x1b2d   :  { %v3864_v45 = vsel %vm3863_vm6, %v3859_v8, inf }
0x1b2e   :  { %3865 = vmin.xlane.f32.xlu0 %v3864_v45  ;;  %v3869_v31 = vshll.u32 %v3868_v15, 16 }
0x1ba1   :  { %v3866_v10 = vpop.xlane.xlu0 %3865 }
0x1ba2   :  { %v3867_v23 = vcvt.f32.s32 %v3866_v10 }
0x1ba4   :  { %v3870_v29 = vadd.s32 %v3869_v31, %v3867_v23 }
0x1ba6   :  { %vm3890_vm7 = vcmp.eq.s32.totalorder %v7494_v2, %v3870_v29 }
0x1ba7   :  { %v4769_v0 = vsel %vm3890_vm7, 1.0, %v5728_v39 }
0x1ba8   :  { %v3893_v11 = vpack.c.bf16 %v4769_v0, %v4769_v0 }
0x1baa   :  { %4770 = vmatmul.msk.bf16.vlgmr.msra.gmra.mxu3 %vm7865_vm8, %v3893_v11 }
0x1bab   :  { %4364 = vmatpush.bf16.msra.mxu3 %v6298_v4 }
0x1c2d   :  { %v3906_v37 = vpop.f32.mrf.mxu3 }
0x1c2e   :  { %v3910_v1 = vadd.f32 %v3906_v37, %v7533_v19  ;;  %v3930_v55 = vadd.f32 %v7530_v34, %v3906_v37 }
0x1c30   :  { %v4771_v20 = vmul.f32 -1.442695, %v3910_v1 }
0x1c32   :  { %5387 = vpow2.f32 %v4771_v20 }
0x1c35   :  { %v3908_v7 = vpop.f32.mrf.mxu3 }
0x1c38   :  { %v5388_v28 = vpop.eup %5387 }
0x1c39   :  { %v3914_v63 = vadd.f32 1.0, %v5388_v28 }
0x1c3b   :  { %5389 = vrcp.f32 %v3914_v63  ;;  %v3926_v44 = vand.u32 2147483648, %v3914_v63  ;;  %v3924_v17 = vand.u32 2147483647, %v3914_v63  ;;  %vm3920_vm11 = vweird.f32 %v3914_v63 }
0x1c3d   :  { %v3927_v43 = vor.u32 1.1754944e-38, %v3926_v44  ;;  %vm3925_vm13 = vcmp.eq.f32.partialorder %v3924_v17, 8.507059e+37 }
0x1c41   :  { %v5390_v56 = vpop.eup %5389 }
0x1c42   :  { %v3916_v5 = vmul.f32 %v5390_v56, %v3914_v63  ;;  %vm3921_vm9 = vweird.f32 %v5390_v56 }
0x1c43   :  { %vm3922_vm12 = vmor %vm3920_vm11, %vm3921_vm9 }
0x1c44   :  { %v3917_v3 = vsub.f32 1.0, %v3916_v5  ;;  %vm7869_vm9 = vmmov %vm7868_vm4 }
0x1c46   :  { %v3918_v21 = vmul.f32 %v5390_v56, %v3917_v3 }
0x1c48   :  { %v3919_v30 = vadd.f32 %v5390_v56, %v3918_v21 }
0x1c4a   :  { %v3923_v38 = vsel %vm3922_vm12, %v5390_v56, %v3919_v30  ;;  %vm7870_vm12 = vmmov %vm7868_vm4 }
0x1c4b   :  { %v3928_v57 = vsel %vm3925_vm13, %v3927_v43, %v3923_v38 }
0x1c4c   :  { %v3931_v35 = vmul.f32 %v3928_v57, %v7536_v12  ;;  %v3938_v53 = vsub.f32 1.0, %v3928_v57  ;;  %v3944_v16 = vmul.f32 %v3928_v57, %v7554_v50 }
0x1c4e   :  { %3933 = vrot.lane.b32.xlu2 %v3931_v35, %s5714_s28 }
0x1ca8   :  { %v3934_v32 = vpop.permute.xlu2 %3933 }
0x1ca9   :  { %v3936_v52 = vadd.f32 %v3934_v32, %v3930_v55 }
0x1cab   :  { %5391 = vtanh.f32 %v3936_v52 }
0x1cb1   :  { %v5392_v48 = vpop.eup %5391 }
0x1cb2   :  { %3940 = vrot.lane.b32.xlu1 %v5392_v48, %s5727_s8 }
0x1d24   :  { %v3941_v24 = vpop.permute.xlu1 %3940 }
0x1d25   :  { %v3943_v18 = vmul.f32 %v3941_v24, %v3938_v53 }
0x1d27   :  { %v3945_v58 = vadd.f32 %v3944_v16, %v3943_v18 }
0x1d29   :  { %v3946_v26 = vpack.c.bf16 %v3945_v58, %v3945_v58 }
0x1d2b   :  { %3948 = vrot.lane.b32.xlu0 %v3946_v26, %s5727_s8 }
0x1d9d   :  { %v3949_v25 = vpop.permute.xlu0 %3948 }
0x1d9e   :  { %4772 = vmatmul.msk.bf16.vlgmr.msrb.gmra.mxu0 %vm316_vm10, %v3949_v25 }
0x1d9f   :  { %4419 = vmatpush.bf16.msrb.mxu0 %v7542_v42 }
0x1da3   :  { %4420 = vmatpush.bf16.msrb.mxu0 %v7545_v9 }
0x1e1b   :  { %v3962_v62 = vpop.f32.mrf.mxu0 }
0x1e1c   :  { %v7617_v47 = vadd.f32 %v7564_v46, %v3962_v62 }
0x1e1e   :  { %v3966_v33 = vsel %vm7866_vm15, %v7617_v47, -inf }
0x1e1f   :  { %3967 = vmax.xlane.f32.xlu2 %v3966_v33 }
0x1e23   :  { %v3964_v6 = vpop.f32.mrf.mxu0 }
0x1e92   :  { %v7621_v54 = vpop.xlane.xlu2 %3967 }
0x1e93   :  { %vm3969_vm0 = vcmp.eq.f32.partialorder %v7617_v47, %v7621_v54 }
0x1e94   :  { %v3970_v14 = vsel %vm3969_vm0, %v7494_v2, 16  ;;  %vm7871_vm0 = vmmov %vm7868_vm4 }
0x1e95   :  { %v3971_v61 = vsel %vm7867_vm14, %v3970_v14, 2147483647 }
0x1e96   :  { %v3973_v40 = vshra.s32 %v3971_v61, 16  ;;  %v3972_v27 = vand.u32 65535, %v3971_v61 }
0x1e98   :  { %v3975_v22 = vcvt.s32.f32 %v3973_v40  ;;  %v3974_v41 = vcvt.s32.f32 %v3972_v27 }
0x1e9a   :  { %3976 = vmin.xlane.f32.xlu0 %v3975_v22 }
0x1f0d   :  { %v3977_v36 = vpop.xlane.xlu0 %3976 }
0x1f0e   :  { %vm3978_vm2 = vcmp.eq.f32.partialorder %v3975_v22, %v3977_v36  ;;  %v3983_v45 = vcvt.f32.s32 %v3977_v36 }
0x1f0f   :  { %v3979_v8 = vsel %vm3978_vm2, %v3974_v41, inf }
0x1f10   :  { %3980 = vmin.xlane.f32.xlu1 %v3979_v8  ;;  %v3984_v10 = vshll.u32 %v3983_v45, 16 }
0x1f83   :  { %v3981_v15 = vpop.xlane.xlu1 %3980 }
0x1f84   :  { %v3982_v31 = vcvt.f32.s32 %v3981_v15 }
0x1f86   :  { %v3985_v23 = vadd.s32 %v3984_v10, %v3982_v31 }
0x1f88   :  { %vm4005_vm3 = vcmp.eq.s32.totalorder %v7494_v2, %v3985_v23 }
0x1f89   :  { %v4773_v29 = vsel %vm4005_vm3, 1.0, %v5728_v39 }
0x1f8a   :  { %v4008_v0 = vpack.c.bf16 %v4773_v29, %v4773_v29 }
0x1f8c   :  { %4774 = vmatmul.msk.bf16.vlgmr.msra.gmra.mxu1 %vm7868_vm4, %v4008_v0 }
0x1f8d   :  { %4479 = vmatpush.bf16.msra.mxu1 %v6298_v4 }
0x2009   :  { %v4021_v11 = vpop.f32.mrf.mxu1 }
0x200a   :  { %v4025_v37 = vadd.f32 %v4021_v11, %v7533_v19  ;;  %v4045_v57 = vadd.f32 %v7530_v34, %v4021_v11 }
0x200c   :  { %v4775_v1 = vmul.f32 -1.442695, %v4025_v37 }
0x200e   :  { %5393 = vpow2.f32 %v4775_v1 }
0x2011   :  { %v4023_v20 = vpop.f32.mrf.mxu1 }
0x2014   :  { %v5394_v7 = vpop.eup %5393 }
0x2015   :  { %v4029_v28 = vadd.f32 1.0, %v5394_v7 }
0x2017   :  { %5395 = vrcp.f32 %v4029_v28  ;;  %v4041_v3 = vand.u32 2147483648, %v4029_v28  ;;  %v4039_v21 = vand.u32 2147483647, %v4029_v28  ;;  %vm4035_vm6 = vweird.f32 %v4029_v28 }
0x2019   :  { %v4042_v4 = vor.u32 1.1754944e-38, %v4041_v3  ;;  %vm4040_vm8 = vcmp.eq.f32.partialorder %v4039_v21, 8.507059e+37 }
0x201d   :  { %v5396_v63 = vpop.eup %5395 }
0x201e   :  { %v4031_v56 = vmul.f32 %v5396_v63, %v4029_v28  ;;  %vm4036_vm5 = vweird.f32 %v5396_v63 }
0x201f   :  { %vm4037_vm7 = vmor %vm4035_vm6, %vm4036_vm5 }
0x2020   :  { %v4032_v5 = vsub.f32 1.0, %v4031_v56  ;;  %vm7872_vm5 = vmmov %vm7871_vm0 }
0x2022   :  { %v4033_v44 = vmul.f32 %v5396_v63, %v4032_v5 }
0x2024   :  { %v4034_v17 = vadd.f32 %v5396_v63, %v4033_v44 }
0x2026   :  { %v4038_v30 = vsel %vm4037_vm7, %v5396_v63, %v4034_v17  ;;  %vm7873_vm7 = vmmov %vm7871_vm0 }
0x2027   :  { %v4043_v43 = vsel %vm4040_vm8, %v4042_v4, %v4038_v30 }
0x2028   :  { %v4046_v38 = vmul.f32 %v4043_v43, %v7536_v12  ;;  %v4053_v52 = vsub.f32 1.0, %v4043_v43  ;;  %v4059_v53 = vmul.f32 %v4043_v43, %v7554_v50 }
0x202a   :  { %4048 = vrot.lane.b32.xlu2 %v4046_v38, %s5714_s28 }
0x2084   :  { %v4049_v35 = vpop.permute.xlu2 %4048 }
0x2085   :  { %v4051_v55 = vadd.f32 %v4049_v35, %v4045_v57 }
0x2087   :  { %5397 = vtanh.f32 %v4051_v55 }
0x208d   :  { %v5398_v32 = vpop.eup %5397 }
0x208e   :  { %4055 = vrot.lane.b32.xlu0 %v5398_v32, %s5727_s8 }
0x2100   :  { %v4056_v48 = vpop.permute.xlu0 %4055 }
0x2101   :  { %v4058_v24 = vmul.f32 %v4056_v48, %v4053_v52 }
0x2103   :  { %v4060_v16 = vadd.f32 %v4059_v53, %v4058_v24 }
0x2105   :  { %v4061_v18 = vpack.c.bf16 %v4060_v16, %v4060_v16 }
0x2107   :  { %4063 = vrot.lane.b32.xlu1 %v4061_v18, %s5727_s8 }
0x2179   :  { %v4064_v58 = vpop.permute.xlu1 %4063 }
0x217a   :  { %4776 = vmatmul.msk.bf16.vlgmr.msrb.gmra.mxu2 %vm316_vm10, %v4064_v58 }
0x217b   :  { %4534 = vmatpush.bf16.msrb.mxu2 %v7542_v42 }
0x217f   :  { %4535 = vmatpush.bf16.msrb.mxu2 %v7545_v9 }
0x21fd   :  { %v4077_v26 = vpop.f32.mrf.mxu2 }
0x21fe   :  { %v7642_v25 = vadd.f32 %v7564_v46, %v4077_v26 }
0x2200   :  { %v4081_v62 = vsel %vm7869_vm9, %v7642_v25, -inf }
0x2201   :  { %4082 = vmax.xlane.f32.xlu0 %v4081_v62 }
0x2205   :  { %v4079_v33 = vpop.f32.mrf.mxu2 }
0x2274   :  { %v7646_v6 = vpop.xlane.xlu0 %4082 }
0x2275   :  { %vm4084_vm11 = vcmp.eq.f32.partialorder %v7642_v25, %v7646_v6 }
0x2276   :  { %v4085_v14 = vsel %vm4084_vm11, %v7494_v2, 16  ;;  %vm7874_vm11 = vmmov %vm7871_vm0 }
0x2277   :  { %v4086_v42 = vsel %vm7870_vm12, %v4085_v14, 2147483647 }
0x2278   :  { %v4088_v61 = vshra.s32 %v4086_v42, 16  ;;  %v4087_v40 = vand.u32 65535, %v4086_v42 }
0x227a   :  { %v4090_v9 = vcvt.s32.f32 %v4088_v61  ;;  %v4089_v27 = vcvt.s32.f32 %v4087_v40 }
0x227c   :  { %4091 = vmin.xlane.f32.xlu2 %v4090_v9 }
0x22ef   :  { %v4092_v22 = vpop.xlane.xlu2 %4091 }
0x22f0   :  { %vm4093_vm13 = vcmp.eq.f32.partialorder %v4090_v9, %v4092_v22  ;;  %v4098_v41 = vcvt.f32.s32 %v4092_v22 }
0x22f1   :  { %v4094_v36 = vsel %vm4093_vm13, %v4089_v27, inf }
0x22f2   :  { %4095 = vmin.xlane.f32.xlu1 %v4094_v36  ;;  %v4099_v45 = vshll.u32 %v4098_v41, 16 }
0x2365   :  { %v4096_v8 = vpop.xlane.xlu1 %4095 }
0x2366   :  { %v4097_v15 = vcvt.f32.s32 %v4096_v8 }
0x2368   :  { %v4100_v10 = vadd.s32 %v4099_v45, %v4097_v15 }
0x236a   :  { %vm4120_vm15 = vcmp.eq.s32.totalorder %v7494_v2, %v4100_v10 }
0x236b   :  { %v4777_v31 = vsel %vm4120_vm15, 1.0, %v5728_v39 }
0x236c   :  { %v4123_v23 = vpack.c.bf16 %v4777_v31, %v4777_v31 }
0x236e   :  { %4778 = vmatmul.msk.bf16.vlgmr.msrb.gmra.mxu3 %vm7871_vm0, %v4123_v23 }
0x23f1   :  { %v4136_v29 = vpop.f32.mrf.mxu3 }
0x23f2   :  { %v4140_v0 = vadd.f32 %v4136_v29, %v7533_v19  ;;  %v4160_v43 = vadd.f32 %v7530_v34, %v4136_v29 }
0x23f4   :  { %v4779_v11 = vmul.f32 -1.442695, %v4140_v0 }
0x23f6   :  { %5399 = vpow2.f32 %v4779_v11 }
0x23f9   :  { %v4138_v37 = vpop.f32.mrf.mxu3 }
0x23fc   :  { %v5400_v1 = vpop.eup %5399 }
0x23fd   :  { %v4144_v20 = vadd.f32 1.0, %v5400_v1 }
0x23ff   :  { %5401 = vrcp.f32 %v4144_v20  ;;  %v4156_v56 = vand.u32 2147483648, %v4144_v20  ;;  %v4154_v3 = vand.u32 2147483647, %v4144_v20  ;;  %vm4150_vm2 = vweird.f32 %v4144_v20 }
0x2401   :  { %v4157_v21 = vor.u32 1.1754944e-38, %v4156_v56  ;;  %vm4155_vm4 = vcmp.eq.f32.partialorder %v4154_v3, 8.507059e+37 }
0x2405   :  { %v5402_v7 = vpop.eup %5401 }
0x2406   :  { %v4146_v28 = vmul.f32 %v5402_v7, %v4144_v20  ;;  %vm4151_vm14 = vweird.f32 %v5402_v7 }
0x2407   :  { %vm4152_vm3 = vmor %vm4150_vm2, %vm4151_vm14 }
0x2408   :  { %v4147_v63 = vsub.f32 1.0, %v4146_v28  ;;  %vm7875_vm14 = vmmov %vm7872_vm5 }
0x240a   :  { %v4148_v5 = vmul.f32 %v5402_v7, %v4147_v63 }
0x240c   :  { %v4149_v44 = vadd.f32 %v5402_v7, %v4148_v5 }
0x240e   :  { %v4153_v17 = vsel %vm4152_vm3, %v5402_v7, %v4149_v44  ;;  %vm7876_vm3 = vmmov %vm7872_vm5 }
0x240f   :  { %v4158_v4 = vsel %vm4155_vm4, %v4157_v21, %v4153_v17 }
0x2410   :  { %v4161_v30 = vmul.f32 %v4158_v4, %v7536_v12  ;;  %v4168_v55 = vsub.f32 1.0, %v4158_v4  ;;  %v4174_v52 = vmul.f32 %v4158_v4, %v7554_v50 }
0x2412   :  { %4163 = vrot.lane.b32.xlu0 %v4161_v30, %s5714_s28 }
0x2484   :  { %v4164_v38 = vpop.permute.xlu0 %4163 }
0x2485   :  { %v4166_v57 = vadd.f32 %v4164_v38, %v4160_v43 }
0x2487   :  { %5403 = vtanh.f32 %v4166_v57 }
0x248d   :  { %v5404_v35 = vpop.eup %5403 }
0x248e   :  { %4170 = vrot.lane.b32.xlu2 %v5404_v35, %s5727_s8 }
0x24e8   :  { %v4171_v32 = vpop.permute.xlu2 %4170 }
0x24e9   :  { %v4173_v48 = vmul.f32 %v4171_v32, %v4168_v55 }
0x24eb   :  { %v4175_v53 = vadd.f32 %v4174_v52, %v4173_v48 }
0x24ed   :  { %v4176_v24 = vpack.c.bf16 %v4175_v53, %v4175_v53 }
0x24ef   :  { %4178 = vrot.lane.b32.xlu1 %v4176_v24, %s5727_s8 }
0x2561   :  { %v4179_v16 = vpop.permute.xlu1 %4178 }
0x2562   :  { %4780 = vmatmul.msk.bf16.vlgmr.msra.gmra.mxu0 %vm316_vm10, %v4179_v16 }
0x25df   :  { %v4192_v18 = vpop.f32.mrf.mxu0 }
0x25e0   :  { %v7664_v58 = vadd.f32 %v7564_v46, %v4192_v18 }
0x25e2   :  { %v4196_v26 = vsel %vm7872_vm5, %v7664_v58, -inf }
0x25e3   :  { %4197 = vmax.xlane.f32.xlu0 %v4196_v26 }
0x25e7   :  { %v4194_v62 = vpop.f32.mrf.mxu0 }
0x2656   :  { %v7668_v33 = vpop.xlane.xlu0 %4197 }
0x2657   :  { %vm4199_vm6 = vcmp.eq.f32.partialorder %v7664_v58, %v7668_v33 }
0x2658   :  { %v4200_v14 = vsel %vm4199_vm6, %v7494_v2, 16  ;;  %vm7877_vm6 = vmmov %vm7876_vm3 }
0x2659   :  { %v4201_v42 = vsel %vm7873_vm7, %v4200_v14, 2147483647 }
0x265a   :  { %v4203_v61 = vshra.s32 %v4201_v42, 16  ;;  %v4202_v40 = vand.u32 65535, %v4201_v42 }
0x265c   :  { %v4205_v9 = vcvt.s32.f32 %v4203_v61  ;;  %v4204_v27 = vcvt.s32.f32 %v4202_v40 }
0x265e   :  { %4206 = vmin.xlane.f32.xlu2 %v4205_v9 }
0x26d1   :  { %v4207_v22 = vpop.xlane.xlu2 %4206 }
0x26d2   :  { %vm4208_vm8 = vcmp.eq.f32.partialorder %v4205_v9, %v4207_v22  ;;  %v4213_v41 = vcvt.f32.s32 %v4207_v22 }
0x26d3   :  { %v4209_v36 = vsel %vm4208_vm8, %v4204_v27, inf }
0x26d4   :  { %4210 = vmin.xlane.f32.xlu1 %v4209_v36  ;;  %v4214_v45 = vshll.u32 %v4213_v41, 16 }
0x2747   :  { %v4211_v8 = vpop.xlane.xlu1 %4210 }
0x2748   :  { %v4212_v15 = vcvt.f32.s32 %v4211_v8 }
0x274a   :  { %v4215_v10 = vadd.s32 %v4214_v45, %v4212_v15 }
0x274c   :  { %vm4235_vm9 = vcmp.eq.s32.totalorder %v7494_v2, %v4215_v10 }
0x274d   :  { %v4781_v31 = vsel %vm4235_vm9, 1.0, %v5728_v39 }
0x274e   :  { %v4238_v23 = vpack.c.bf16 %v4781_v31, %v4781_v31 }
0x2750   :  { %4782 = vmatmul.msk.bf16.vlgmr.msrb.gmra.mxu1 %vm7874_vm11, %v4238_v23 }
0x27cd   :  { %v4251_v29 = vpop.f32.mrf.mxu1 }
0x27ce   :  { %v4255_v0 = vadd.f32 %v4251_v29, %v7533_v19  ;;  %v4275_v43 = vadd.f32 %v7530_v34, %v4251_v29 }
0x27d0   :  { %v4783_v11 = vmul.f32 -1.442695, %v4255_v0 }
0x27d2   :  { %5405 = vpow2.f32 %v4783_v11 }
0x27d5   :  { %v4253_v37 = vpop.f32.mrf.mxu1 }
0x27d8   :  { %v5406_v1 = vpop.eup %5405 }
0x27d9   :  { %v4259_v20 = vadd.f32 1.0, %v5406_v1 }
0x27db   :  { %5407 = vrcp.f32 %v4259_v20  ;;  %v4271_v56 = vand.u32 2147483648, %v4259_v20  ;;  %v4269_v3 = vand.u32 2147483647, %v4259_v20  ;;  %vm4265_vm13 = vweird.f32 %v4259_v20 }
0x27dd   :  { %v4272_v21 = vor.u32 1.1754944e-38, %v4271_v56  ;;  %vm4270_vm0 = vcmp.eq.f32.partialorder %v4269_v3, 8.507059e+37 }
0x27e1   :  { %v5408_v7 = vpop.eup %5407 }
0x27e2   :  { %v4261_v28 = vmul.f32 %v5408_v7, %v4259_v20  ;;  %vm4266_vm12 = vweird.f32 %v5408_v7 }
0x27e3   :  { %vm4267_vm15 = vmor %vm4265_vm13, %vm4266_vm12 }
0x27e4   :  { %v4262_v63 = vsub.f32 1.0, %v4261_v28  ;;  %vm7878_vm12 = vmmov %vm7876_vm3 }
0x27e6   :  { %v4263_v5 = vmul.f32 %v5408_v7, %v4262_v63 }
0x27e8   :  { %v4264_v44 = vadd.f32 %v5408_v7, %v4263_v5 }
0x27ea   :  { %v4268_v17 = vsel %vm4267_vm15, %v5408_v7, %v4264_v44  ;;  %vm7879_vm15 = vmmov %vm7876_vm3 }
0x27eb   :  { %v4273_v4 = vsel %vm4270_vm0, %v4272_v21, %v4268_v17 }
0x27ec   :  { %v4276_v30 = vmul.f32 %v4273_v4, %v7536_v12  ;;  %v4283_v55 = vsub.f32 1.0, %v4273_v4  ;;  %v4289_v52 = vmul.f32 %v4273_v4, %v7554_v50 }
0x27ee   :  { %4278 = vrot.lane.b32.xlu0 %v4276_v30, %s5714_s28 }
0x2860   :  { %v4279_v38 = vpop.permute.xlu0 %4278 }
0x2861   :  { %v4281_v57 = vadd.f32 %v4279_v38, %v4275_v43 }
0x2863   :  { %5409 = vtanh.f32 %v4281_v57 }
0x2869   :  { %v5410_v35 = vpop.eup %5409 }
0x286a   :  { %4285 = vrot.lane.b32.xlu2 %v5410_v35, %s5727_s8 }
0x28c4   :  { %v4286_v32 = vpop.permute.xlu2 %4285 }
0x28c5   :  { %v4288_v48 = vmul.f32 %v4286_v32, %v4283_v55 }
0x28c7   :  { %v4290_v53 = vadd.f32 %v4289_v52, %v4288_v48 }
0x28c9   :  { %v4291_v24 = vpack.c.bf16 %v4290_v53, %v4290_v53 }
0x28cb   :  { %4293 = vrot.lane.b32.xlu1 %v4291_v24, %s5727_s8 }
0x293d   :  { %v4294_v16 = vpop.permute.xlu1 %4293 }
0x293e   :  { %4784 = vmatmul.msk.bf16.vlgmr.msra.gmra.mxu2 %vm316_vm10, %v4294_v16 }
0x29c1   :  { %v4307_v18 = vpop.f32.mrf.mxu2 }
0x29c2   :  { %v7686_v26 = vadd.f32 %v7564_v46, %v4307_v18 }
0x29c4   :  { %v4311_v62 = vsel %vm7875_vm14, %v7686_v26, -inf  ;;  %vm7880_vm14 = vmmov %vm7876_vm3 }
0x29c5   :  { %4312 = vmax.xlane.f32.xlu0 %v4311_v62 }
0x29c9   :  { %v4309_v14 = vpop.f32.mrf.mxu2 }
0x2a38   :  { %v7690_v42 = vpop.xlane.xlu0 %4312 }
0x2a39   :  { %vm4314_vm2 = vcmp.eq.f32.partialorder %v7686_v26, %v7690_v42 }
0x2a3a   :  { %v4315_v61 = vsel %vm4314_vm2, %v7494_v2, 16  ;;  %vm7881_vm2 = vmmov %vm7876_vm3 }
0x2a3b   :  { %v4316_v9 = vsel %vm7876_vm3, %v4315_v61, 2147483647 }
0x2a3c   :  { %v4318_v40 = vshra.s32 %v4316_v9, 16  ;;  %v4317_v27 = vand.u32 65535, %v4316_v9 }
0x2a3e   :  { %v4320_v22 = vcvt.s32.f32 %v4318_v40  ;;  %v4319_v41 = vcvt.s32.f32 %v4317_v27 }
0x2a40   :  { %4321 = vmin.xlane.f32.xlu2 %v4320_v22 }
0x2ab3   :  { %v4322_v36 = vpop.xlane.xlu2 %4321 }
0x2ab4   :  { %vm4323_vm4 = vcmp.eq.f32.partialorder %v4320_v22, %v4322_v36  ;;  %v4328_v45 = vcvt.f32.s32 %v4322_v36 }
0x2ab5   :  { %v4324_v8 = vsel %vm4323_vm4, %v4319_v41, inf  ;;  %vm7882_vm4 = vmmov %vm7881_vm2 }
0x2ab6   :  { %4325 = vmin.xlane.f32.xlu1 %v4324_v8  ;;  %v4329_v10 = vshll.u32 %v4328_v45, 16 }
0x2b29   :  { %v4326_v15 = vpop.xlane.xlu1 %4325 }
0x2b2a   :  { %v4327_v31 = vcvt.f32.s32 %v4326_v15 }
0x2b2c   :  { %v4330_v23 = vadd.s32 %v4329_v10, %v4327_v31  ;;  %v3871_v31 = vsub.f32 %v7592_v60, %v7596_v13 }
0x2b2e   :  { %vm4350_vm5 = vcmp.eq.s32.totalorder %v7494_v2, %v4330_v23 }
0x2b2f   :  { %v4785_v29 = vsel %vm4350_vm5, 1.0, %v5728_v39 }
0x2b30   :  { %v4353_v0 = vpack.c.bf16 %v4785_v29, %v4785_v29  ;;  %v3872_v29 = vmul.f32 1.442695, %v3871_v31 }
0x2b32   :  { %4786 = vmatmul.msk.bf16.vlgmr.msra.gmra.mxu3 %vm7877_vm6, %v4353_v0 }
0x2bb5   :  { %v4366_v11 = vpop.f32.mrf.mxu3 }
0x2bb6   :  { %v4370_v37 = vadd.f32 %v4366_v11, %v7533_v19  ;;  %v4390_v57 = vadd.f32 %v7530_v34, %v4366_v11 }
0x2bb8   :  { %v4787_v1 = vmul.f32 -1.442695, %v4370_v37 }
0x2bba   :  { %5411 = vpow2.f32 %v4787_v1 }
0x2bbd   :  { %v4368_v20 = vpop.f32.mrf.mxu3 }
0x2bc0   :  { %v5412_v7 = vpop.eup %5411 }
0x2bc1   :  { %v4374_v28 = vadd.f32 1.0, %v5412_v7 }
0x2bc3   :  { %5413 = vrcp.f32 %v4374_v28  ;;  %v4386_v3 = vand.u32 2147483648, %v4374_v28  ;;  %v4384_v21 = vand.u32 2147483647, %v4374_v28  ;;  %vm4380_vm8 = vweird.f32 %v4374_v28 }
0x2bc5   :  { %v4387_v4 = vor.u32 1.1754944e-38, %v4386_v3  ;;  %vm4385_vm11 = vcmp.eq.f32.partialorder %v4384_v21, 8.507059e+37 }
0x2bc9   :  { %v5414_v63 = vpop.eup %5413 }
0x2bca   :  { %v4376_v56 = vmul.f32 %v5414_v63, %v4374_v28  ;;  %vm4381_vm7 = vweird.f32 %v5414_v63 }
0x2bcb   :  { %vm4382_vm9 = vmor %vm4380_vm8, %vm4381_vm7 }
0x2bcc   :  { %v4377_v5 = vsub.f32 1.0, %v4376_v56 }
0x2bce   :  { %v4378_v44 = vmul.f32 %v5414_v63, %v4377_v5 }
0x2bd0   :  { %v4379_v17 = vadd.f32 %v5414_v63, %v4378_v44 }
0x2bd2   :  { %v4383_v30 = vsel %vm4382_vm9, %v5414_v63, %v4379_v17  ;;  %vm7883_vm9 = vmmov %vm7881_vm2 }
0x2bd3   :  { %v4388_v43 = vsel %vm4385_vm11, %v4387_v4, %v4383_v30 }
0x2bd4   :  { %v4391_v38 = vmul.f32 %v4388_v43, %v7536_v12  ;;  %v4398_v52 = vsub.f32 1.0, %v4388_v43  ;;  %v4404_v53 = vmul.f32 %v4388_v43, %v7554_v50 }
0x2bd6   :  { %4393 = vrot.lane.b32.xlu0 %v4391_v38, %s5714_s28 }
0x2c48   :  { %v4394_v35 = vpop.permute.xlu0 %4393 }
0x2c49   :  { %v4396_v55 = vadd.f32 %v4394_v35, %v4390_v57 }
0x2c4b   :  { %5415 = vtanh.f32 %v4396_v55 }
0x2c51   :  { %v5416_v32 = vpop.eup %5415 }
0x2c52   :  { %4400 = vrot.lane.b32.xlu2 %v5416_v32, %s5727_s8 }
0x2cac   :  { %v4401_v48 = vpop.permute.xlu2 %4400 }
0x2cad   :  { %v4403_v24 = vmul.f32 %v4401_v48, %v4398_v52 }
0x2caf   :  { %v4405_v16 = vadd.f32 %v4404_v53, %v4403_v24 }
0x2cb1   :  { %v4406_v18 = vpack.c.bf16 %v4405_v16, %v4405_v16  ;;  %v5729_v16 = vmov 1  }
0x2cb2   :  { %4835 = vset.pattern.permute.xlu2 %v5729_v16 }
0x2cb3   :  { %4408 = vrot.lane.b32.xlu1 %v4406_v18, %s5727_s8  ;;  %v5457_v18 = vld [vmem:[%s7833_s10] ss:$0 sm:$0xff] }
0x2d25   :  { %v4409_v62 = vpop.permute.xlu1 %4408 }
0x2d26   :  { %4788 = vmatmul.msk.bf16.vlgmr.msrb.gmra.mxu0 %vm316_vm10, %v4409_v62 }
0x2da3   :  { %v4422_v14 = vpop.f32.mrf.mxu0 }
0x2da4   :  { %v7708_v34 = vadd.f32 %v7564_v46, %v4422_v14  ;;  %v3760_v46 = vsub.f32 %v7567_v49, %v7571_v51 }
0x2da6   :  { %v4426_v61 = vsel %vm7878_vm12, %v7708_v34, -inf  ;;  %v3761_v45 = vmul.f32 1.442695, %v3760_v46  ;;  %vm7884_vm12 = vmmov %vm7881_vm2 }
0x2da7   :  { %4427 = vmax.xlane.f32.xlu0 %v4426_v61 }
0x2da8   :  { %5417 = vpow2.f32 %v3761_v45 }
0x2da9   :  { %5419 = vpow2.f32 %v3872_v29 }
0x2dab   :  { %v4424_v9 = vpop.f32.mrf.mxu0 }
0x2dae   :  { %v5418_v0 = vpop.eup %5417 }
0x2daf   :  { %v3763_v11 = vsel %vm7880_vm14, %v5418_v0, 0.0  ;;  %v5420_v37 = vpop.eup %5419  ;;  %v4216_v0 = vsub.f32 %v7664_v58, %v7668_v33 }
0x2db0   :  { %v3874_v1 = vsel %vm7881_vm2, %v5420_v37, 0.0 }
0x2db1   :  { %v4217_v37 = vmul.f32 1.442695, %v4216_v0 }
0x2e1a   :  { %v7712_v40 = vpop.xlane.xlu0 %4427 }
0x2e1b   :  { %vm4429_vm13 = vcmp.eq.f32.partialorder %v7708_v34, %v7712_v40  ;;  %v4446_v59 = vsub.f32 %v7708_v34, %v7712_v40 }
0x2e1c   :  { %v4430_v22 = vsel %vm4429_vm13, %v7494_v2, 16  ;;  %vm7885_vm13 = vmmov %vm7881_vm2 }
0x2e1d   :  { %v4431_v27 = vsel %vm7879_vm15, %v4430_v22, 2147483647  ;;  %v7734_v22 = vld [vmem:[#allocation7] sm:$0xff]  ;;  %vm7886_vm15 = vmmov %vm7881_vm2 }
0x2e1e   :  { %v4433_v36 = vshra.s32 %v4431_v27, 16  ;;  %v4432_v8 = vand.u32 65535, %v4431_v27  ;;  %v3986_v27 = vsub.f32 %v7617_v47, %v7621_v54 }
0x2e20   :  { %v4435_v41 = vcvt.s32.f32 %v4433_v36  ;;  %v4434_v10 = vcvt.s32.f32 %v4432_v8  ;;  %v3987_v36 = vmul.f32 1.442695, %v3986_v27  ;;  %v5731_v8 = vmov 2  }
0x2e21   :  { %4836 = vset.pattern.permute.xlu1 %v5731_v8  ;;  %v5735_v27 = vmov 4   ;;  %v5459_v8 = vld [vmem:[%s7836_s13] ss:$0 sm:$0xff]  ;;  %s5736_s13 = smov 16  }
0x2e22   :  { %4436 = vmin.xlane.f32.xlu2 %v4435_v41  ;;  %4838 = vset.pattern.permute.xlu0 %v5735_v27 }
0x2e95   :  { %v4437_v15 = vpop.xlane.xlu2 %4436 }
0x2e96   :  { %vm4438_vm0 = vcmp.eq.f32.partialorder %v4435_v41, %v4437_v15  ;;  %v4443_v20 = vcvt.f32.s32 %v4437_v15 }
0x2e97   :  { %v4439_v23 = vsel %vm4438_vm0, %v4434_v10, inf }
0x2e98   :  { %4440 = vmin.xlane.f32.xlu1 %v4439_v23  ;;  %v4444_v28 = vshll.u32 %v4443_v20, 16 }
0x2ea0   :  { %3764 = vadd.xlane.f32.xlu1 %v3763_v11 }
0x2ea8   :  { %3875 = vadd.xlane.f32.xlu1 %v3874_v1 }
0x2f0b   :  { %v4441_v7 = vpop.xlane.xlu1 %4440 }
0x2f0c   :  { %v4442_v63 = vcvt.f32.s32 %v4441_v7 }
0x2f0e   :  { %v4445_v56 = vadd.s32 %v4444_v28, %v4442_v63  ;;  %v5732_v28 = vmov 3   ;;  %v3769_v63 = vsel %vm3623_vm1, %v7567_v49, 0.0  ;;  %vm7887_vm1 = vmmov %vm7881_vm2 }
0x2f0f   :  { %vm7888_vm0 = vmmov %vm7887_vm1 }
0x2f10   :  { %vm4465_vm3 = vcmp.eq.s32.totalorder %v7494_v2, %v4445_v56  ;;  %v3770_v56 = vsel %vm7886_vm15, %v3769_v63, 0.0  ;;  %vm7889_vm2 = vmmov %vm7888_vm0 }
0x2f11   :  { %v4789_v5 = vsel %vm4465_vm3, 1.0, %v5728_v39  ;;  %vm7890_vm3 = vmmov %vm7888_vm0 }
0x2f12   :  { %v4468_v3 = vpack.c.bf16 %v4789_v5, %v4789_v5  ;;  %v5733_v5 = vmov 5  }
0x2f14   :  { %4790 = vmatmul.msk.bf16.vlgmr.msra.gmra.mxu1 %vm7882_vm4, %v4468_v3  ;;  %v5734_v3 = vmov 7   ;;  %vm7891_vm4 = vmmov %vm7888_vm0 }
0x2f91   :  { %v4481_v44 = vpop.f32.mrf.mxu1 }
0x2f92   :  { %v4485_v21 = vadd.f32 %v4481_v44, %v7533_v19  ;;  %v4505_v62 = vadd.f32 %v5457_v18, %v4481_v44  ;;  %v4101_v44 = vsub.f32 %v7642_v25, %v7646_v6 }
0x2f94   :  { %v4791_v17 = vmul.f32 -1.442695, %v4485_v21  ;;  %v4102_v21 = vmul.f32 1.442695, %v4101_v44 }
0x2f96   :  { %5421 = vpow2.f32 %v4791_v17  ;;  %v4447_v17 = vmul.f32 1.442695, %v4446_v59 }
0x2f99   :  { %v4483_v4 = vpop.f32.mrf.mxu1 }
0x2f9c   :  { %v5422_v30 = vpop.eup %5421 }
0x2f9d   :  { %v4489_v43 = vadd.f32 1.0, %v5422_v30 }
0x2f9f   :  { %5423 = vrcp.f32 %v4489_v43  ;;  %v4501_v55 = vand.u32 2147483648, %v4489_v43  ;;  %v4499_v52 = vand.u32 2147483647, %v4489_v43  ;;  %vm4495_vm6 = vweird.f32 %v4489_v43 }
0x2fa1   :  { %v4502_v48 = vor.u32 1.1754944e-38, %v4501_v55  ;;  %vm4500_vm8 = vcmp.eq.f32.partialorder %v4499_v52, 8.507059e+37 }
0x2fa5   :  { %v5424_v38 = vpop.eup %5423 }
0x2fa6   :  { %v4491_v57 = vmul.f32 %v5424_v38, %v4489_v43  ;;  %vm4496_vm5 = vweird.f32 %v5424_v38 }
0x2fa7   :  { %vm4497_vm7 = vmor %vm4495_vm6, %vm4496_vm5 }
0x2fa8   :  { %v4492_v35 = vsub.f32 1.0, %v4491_v57  ;;  %vm7892_vm6 = vmmov %vm7888_vm0 }
0x2faa   :  { %v4493_v32 = vmul.f32 %v5424_v38, %v4492_v35  ;;  %v3765_v35 = vpop.xlane.xlu1 %3764 }
0x2fac   :  { %v4494_v39 = vadd.f32 %v5424_v38, %v4493_v32 }
0x2fae   :  { %v4498_v53 = vsel %vm4497_vm7, %v5424_v38, %v4494_v39  ;;  %vm7893_vm7 = vmmov %vm7888_vm0 }
0x2faf   :  { %v4503_v19 = vsel %vm4500_vm8, %v4502_v48, %v4498_v53 }
0x2fb0   :  { %v4506_v24 = vmul.f32 %v4503_v19, %v7536_v12  ;;  %v5730_v12 = vmov 6   ;;  %v4513_v45 = vsub.f32 1.0, %v4503_v19  ;;  %v4519_v10 = vmul.f32 %v4503_v19, %v7554_v50 }
0x2fb2   :  { %4508 = vrot.lane.b32.xlu0 %v4506_v24, %s5714_s28  ;;  %v3876_v55 = vpop.xlane.xlu1 %3875 }
0x3024   :  { %v4509_v14 = vpop.permute.xlu0 %4508 }
0x3025   :  { %v4511_v61 = vadd.f32 %v4509_v14, %v4505_v62 }
0x3027   :  { %5425 = vtanh.f32 %v4511_v61 }
0x3028   :  { %5427 = vpow2.f32 %v3987_v36 }
0x3029   :  { %5429 = vpow2.f32 %v4217_v37  ;;  %v4331_v37 = vsub.f32 %v7686_v26, %v7690_v42 }
0x302a   :  { %5431 = vpow2.f32 %v4102_v21 }
0x302b   :  { %5433 = vpow2.f32 %v4447_v17 }
0x302c   :  { %5435 = vlog2.f32 %v3765_v35 }
0x302d   :  { %v5426_v9 = vpop.eup %5425  ;;  %5437 = vlog2.f32 %v3876_v55 }
0x302e   :  { %4515 = vrot.lane.b32.xlu2 %v5426_v9, %s5727_s8  ;;  %v5428_v41 = vpop.eup %5427 }
0x302f   :  { %v3989_v46 = vsel %vm7883_vm9, %v5428_v41, 0.0  ;;  %v5430_v7 = vpop.eup %5429 }
0x3030   :  { %v4219_v50 = vsel %vm7885_vm13, %v5430_v7, 0.0  ;;  %v5432_v4 = vpop.eup %5431  ;;  %vm7895_vm13 = vmmov %vm7888_vm0 }
0x3031   :  { %v4104_v30 = vsel %vm7887_vm1, %v5432_v4, 0.0  ;;  %v5434_v43 = vpop.eup %5433  ;;  %vm7896_vm1 = vmmov %vm7888_vm0 }
0x3032   :  { %v4449_v38 = vsel %vm7888_vm0, %v5434_v43, 0.0  ;;  %v5436_v53 = vpop.eup %5435 }
0x3033   :  { %v5438_v19 = vpop.eup %5437  ;;  %v3767_v24 = vmul.f32 0.6931472, %v5436_v53 }
0x3034   :  { %v3878_v16 = vmul.f32 0.6931472, %v5438_v19 }
0x3035   :  { %v3768_v62 = vadd.f32 %v3767_v24, %v7571_v51 }
0x3036   :  { %3881 = vperm.xlu2 %4835, %v7734_v22   ;;  %v3879_v18 = vadd.f32 %v3878_v16, %v7596_v13 }
0x303e   :  { %4840 = vset.pattern.permute.xlu2 %v5730_v12 }
0x305f   :  { %3990 = vadd.xlane.f32.xlu2 %v3989_v46 }
0x3077   :  { %4456 = vperm.xlu2 %4840, %v7734_v22  }
0x3088   :  { %v4516_v15 = vpop.permute.xlu2 %4515 }
0x3089   :  { %v4518_v31 = vmul.f32 %v4516_v15, %v4513_v45 }
0x308b   :  { %v4520_v23 = vadd.f32 %v4519_v10, %v4518_v31 }
0x308d   :  { %v4521_v29 = vpack.c.bf16 %v4520_v23, %v4520_v23 }
0x308f   :  { %4523 = vrot.lane.b32.xlu0 %v4521_v29, %s5727_s8 }
0x3090   :  { %v3882_v11 = vpop.permute.xlu2 %3881 }
0x3091   :  { %vm3883_vm11 = vcmp.eq.s32.totalorder %v7494_v2, %v3882_v11 }
0x3092   :  { %v3884_v1 = vsel %vm3883_vm11, %v7592_v60, 0.0  ;;  %vm7894_vm11 = vmmov %vm7888_vm0 }
0x3093   :  { %v3885_v20 = vsel %vm7884_vm12, %v3884_v1, 0.0  ;;  %v4332_v1 = vmul.f32 1.442695, %v4331_v37 }
0x3094   :  { %3886 = vadd.xlane.f32.xlu1 %v3885_v20 }
0x30a0   :  { %4220 = vadd.xlane.f32.xlu2 %v4219_v50 }
0x30ad   :  { %3996 = vperm.xlu1 %4836, %v7734_v22  }
0x30b5   :  { %4837 = vset.pattern.permute.xlu1 %v5732_v28 }
0x30b6   :  { %4111 = vperm.xlu1 %4837, %v7734_v22  }
0x30b9   :  { %3771 = vadd.xlane.f32.xlu0 %v3770_v56 }
0x30be   :  { %4839 = vset.pattern.permute.xlu1 %v5733_v5 }
0x30bf   :  { %4341 = vperm.xlu1 %4839, %v7734_v22  }
0x30c7   :  { %4841 = vset.pattern.permute.xlu1 %v5734_v3 }
0x30c8   :  { %4554 = vperm.xlu1 %4841, %v7734_v22  }
0x30d2   :  { %v3991_v36 = vpop.xlane.xlu2 %3990 }
0x30d3   :  { %5439 = vlog2.f32 %v3991_v36 }
0x30d4   :  { %5441 = vpow2.f32 %v4332_v1 }
0x30d9   :  { %v5440_v51 = vpop.eup %5439 }
0x30da   :  { %v4457_v46 = vpop.permute.xlu2 %4456  ;;  %v3993_v31 = vmul.f32 0.6931472, %v5440_v51  ;;  %v5442_v7 = vpop.eup %5441 }
0x30db   :  { %v4334_v28 = vsel %vm7891_vm4, %v5442_v7, 0.0  ;;  %vm4458_vm12 = vcmp.eq.s32.totalorder %v7494_v2, %v4457_v46  ;;  %vm4595_vm4 = vcmask 523264  }
0x30dc   :  { %v3994_v23 = vadd.f32 %v3993_v31, %v7621_v54  ;;  %v4459_v43 = vsel %vm4458_vm12, %v7708_v34, 0.0 }
0x30f2   :  { %4105 = vadd.xlane.f32.xlu1 %v4104_v30 }
0x30fa   :  { %4450 = vadd.xlane.f32.xlu1 %v4449_v38 }
0x3101   :  { %v4524_v57 = vpop.permute.xlu0 %4523 }
0x3102   :  { %4792 = vmatmul.msk.bf16.vlgmr.msrb.gmra.mxu2 %vm316_vm10, %v4524_v57  ;;  %v4460_v57 = vsel %vm7896_vm1, %v4459_v43, 0.0 }
0x3107   :  { %v3887_v32 = vpop.xlane.xlu1 %3886 }
0x3108   :  { %v3888_v61 = vsub.f32 %v3879_v18, %v3887_v32 }
0x3113   :  { %v4221_v10 = vpop.xlane.xlu2 %4220 }
0x311f   :  { %v3997_v52 = vpop.permute.xlu1 %3996 }
0x3120   :  { %vm3998_vm14 = vcmp.eq.s32.totalorder %v7494_v2, %v3997_v52 }
0x3121   :  { %v3999_v39 = vsel %vm3998_vm14, %v7617_v47, 0.0  ;;  %vm4604_vm14 = vcmask 7168  }
0x3122   :  { %v4000_v48 = vsel %vm7889_vm2, %v3999_v39, 0.0  ;;  %vm7897_vm2 = vmmov %vm7888_vm0 }
0x3123   :  { %4001 = vadd.xlane.f32.xlu2 %v4000_v48 }
0x3128   :  { %v4112_v20 = vpop.permute.xlu1 %4111 }
0x3129   :  { %vm4113_vm8 = vcmp.eq.s32.totalorder %v7494_v2, %v4112_v20 }
0x312a   :  { %v4114_v21 = vsel %vm4113_vm8, %v7642_v25, 0.0 }
0x312b   :  { %v4115_v17 = vsel %vm7894_vm11, %v4114_v21, 0.0 }
0x312c   :  { %v3772_v14 = vpop.xlane.xlu0 %3771 }
0x312d   :  { %v3773_v9 = vsub.f32 %v3768_v62, %v3772_v14 }
0x312f   :  { %v3889_v12 = vadd.f32 %v3888_v61, %v3773_v9 }
0x3131   :  { %v4342_v50 = vpop.permute.xlu1 %4341 }
0x3132   :  { %vm4343_vm5 = vcmp.eq.s32.totalorder %v7494_v2, %v4342_v50 }
0x3133   :  { %v4344_v54 = vsel %vm4343_vm5, %v7686_v26, 0.0  ;;  %vm4597_vm5 = vcmask 654336  }
0x3134   :  { %v4345_v63 = vsel %vm7892_vm6, %v4344_v54, 0.0  ;;  %vm4599_vm6 = vcmask 785408  }
0x313a   :  { %v4555_v30 = vpop.permute.xlu1 %4554 }
0x313b   :  { %vm4556_vm15 = vcmp.eq.s32.totalorder %v7494_v2, %v4555_v30 }
0x3185   :  { %v4537_v41 = vpop.f32.mrf.mxu2 }
0x3186   :  { %v4538_v45 = vadd.f32 %v5459_v8, %v4537_v41 }
0x3188   :  { %v4541_v15 = vsel %vm7890_vm3, %v4538_v45, -inf  ;;  %v4557_v38 = vsel %vm4556_vm15, %v4538_v45, 0.0  ;;  %vm4593_vm3 = vcmask 392192  }
0x3189   :  { %4542 = vmax.xlane.f32.xlu0 %v4541_v15  ;;  %v4558_v35 = vsel %vm7888_vm0, %v4557_v38, 0.0 }
0x318d   :  { %v4539_v13 = vpop.f32.mrf.mxu2 }
0x3196   :  { %v4002_v29 = vpop.xlane.xlu2 %4001 }
0x3197   :  { %v4003_v0 = vsub.f32 %v3994_v23, %v4002_v29 }
0x3199   :  { %v7775_v11 = vadd.f32 %v4003_v0, %v3889_v12 }
0x319d   :  { %4226 = vperm.xlu0 %4838, %v7734_v22  }
0x31a5   :  { %4842 = vset.pattern.permute.xlu0 %v5734_v3 }
0x31c7   :  { %4335 = vadd.xlane.f32.xlu0 %v4334_v28 }
0x31cf   :  { %4346 = vadd.xlane.f32.xlu0 %v4345_v63 }
0x31e3   :  { %4564 = vrot.lane.b32.xlu0 %v7592_v60, %s5736_s13 }
0x31fc   :  { %v7785_v22 = vpop.xlane.xlu0 %4542 }
0x31fd   :  { %v4544_v56 = vsub.f32 %v4538_v45, %v7785_v22 }
0x31ff   :  { %v4545_v5 = vmul.f32 1.442695, %v4544_v56 }
0x3201   :  { %5443 = vpow2.f32 %v4545_v5 }
0x3207   :  { %v5444_v3 = vpop.eup %5443 }
0x3208   :  { %v4547_v44 = vsel %vm7893_vm7, %v5444_v3, 0.0  ;;  %vm4601_vm7 = vcmask 916480  }
0x3209   :  { %4548 = vadd.xlane.f32.xlu1 %v4547_v44 }
0x320f   :  { %v4227_v59 = vpop.permute.xlu0 %4226 }
0x3210   :  { %vm4228_vm9 = vcmp.eq.s32.totalorder %v7494_v2, %v4227_v59  ;;  %v4106_v2 = vpop.xlane.xlu1 %4105 }
0x3211   :  { %v4229_v60 = vsel %vm4228_vm9, %v7664_v58, 0.0  ;;  %4116 = vadd.xlane.f32.xlu1 %v4115_v17  ;;  %5445 = vlog2.f32 %v4106_v2 }
0x3212   :  { %v4230_v4 = vsel %vm7895_vm13, %v4229_v60, 0.0  ;;  %5447 = vlog2.f32 %v4221_v10 }
0x3213   :  { %4231 = vadd.xlane.f32.xlu2 %v4230_v4 }
0x3218   :  { %v4451_v55 = vpop.xlane.xlu1 %4450 }
0x3219   :  { %4461 = vadd.xlane.f32.xlu1 %v4460_v57 }
0x321b   :  { %4559 = vadd.xlane.f32.xlu2 %v4558_v35 }
0x3232   :  { %4568 = vrot.lane.b32.xlu1 %v7617_v47, %s5726_s5  ;;  %v5446_v47 = vpop.eup %5445 }
0x3233   :  { %4572 = vrot.lane.b32.xlu2 %v7642_v25, %s5737_s21  ;;  %v5448_v25 = vpop.eup %5447  ;;  %v4108_v39 = vmul.f32 0.6931472, %v5446_v47 }
0x3234   :  { %v4223_v48 = vmul.f32 0.6931472, %v5448_v25 }
0x3235   :  { %v4109_v53 = vadd.f32 %v4108_v39, %v7646_v6 }
0x3236   :  { %v4224_v16 = vadd.f32 %v4223_v48, %v7668_v33 }
0x323a   :  { %4576 = vrot.lane.b32.xlu1 %v7664_v58, %s5714_s28  ;;  %v4336_v32 = vpop.xlane.xlu0 %4335 }
0x323b   :  { %4580 = vrot.lane.b32.xlu2 %v7686_v26, %s5738_s22  ;;  %5449 = vlog2.f32 %v4336_v32 }
0x323c   :  { %5451 = vlog2.f32 %v4451_v55 }
0x3241   :  { %v5450_v58 = vpop.eup %5449 }
0x3242   :  { %4584 = vrot.lane.b32.xlu1 %v7708_v34, %s5727_s8  ;;  %v4338_v26 = vmul.f32 0.6931472, %v5450_v58  ;;  %v5452_v34 = vpop.eup %5451  ;;  %v4347_v41 = vpop.xlane.xlu0 %4346 }
0x3243   :  { %4588 = vrot.lane.b32.xlu2 %v4538_v45, %s5739_s23  ;;  %v4453_v14 = vmul.f32 0.6931472, %v5452_v34 }
0x3244   :  { %v4339_v61 = vadd.f32 %v4338_v26, %v7690_v42 }
0x3245   :  { %v4454_v8 = vadd.f32 %v4453_v14, %v7712_v40 }
0x3246   :  { %v4348_v46 = vsub.f32 %v4339_v61, %v4347_v41 }
0x3255   :  { %v4565_v0 = vpop.permute.xlu0 %4564 }
0x3256   :  { %v4591_v37 = vsel %vm7897_vm2, %v7567_v49, %v4565_v0 }
0x327c   :  { %v4549_v52 = vpop.xlane.xlu1 %4548 }
0x327d   :  { %5453 = vlog2.f32 %v4549_v52 }
0x3283   :  { %v5454_v18 = vpop.eup %5453 }
0x3284   :  { %v4117_v19 = vpop.xlane.xlu1 %4116  ;;  %v4551_v27 = vmul.f32 0.6931472, %v5454_v18 }
0x3285   :  { %v4118_v24 = vsub.f32 %v4109_v53, %v4117_v19 }
0x3286   :  { %v4232_v62 = vpop.xlane.xlu2 %4231  ;;  %v4552_v13 = vadd.f32 %v4551_v27, %v7785_v22 }
0x3287   :  { %v4119_v9 = vadd.f32 %v4118_v24, %v7775_v11  ;;  %v4233_v12 = vsub.f32 %v4224_v16, %v4232_v62 }
0x3289   :  { %v4234_v36 = vadd.f32 %v4233_v12, %v4119_v9 }
0x328b   :  { %v4349_v45 = vadd.f32 %v4348_v46, %v4234_v36 }
0x328c   :  { %v4462_v6 = vpop.xlane.xlu1 %4461 }
0x328d   :  { %v4463_v15 = vsub.f32 %v4454_v8, %v4462_v6 }
0x328e   :  { %v4560_v33 = vpop.xlane.xlu2 %4559 }
0x328f   :  { %v4464_v51 = vadd.f32 %v4463_v15, %v4349_v45  ;;  %v4561_v10 = vsub.f32 %v4552_v13, %v4560_v33 }
0x3291   :  { %v4562_v31 = vadd.f32 %v4561_v10, %v4464_v51 }
0x3293   :  { %v4605_v42 = vsel %vm4604_vm14, %v4562_v31, 0.0 }
0x3294   :  { %4606 = vadd.xlane.f32.xlu0 %v4605_v42 }
0x3296   :  { %v4573_v23 = vpop.permute.xlu2 %4572 }
0x329e   :  { %v4581_v11 = vpop.permute.xlu2 %4580 }
0x32a4   :  { %v4569_v29 = vpop.permute.xlu1 %4568 }
0x32a5   :  { %v4592_v1 = vsel %vm316_vm10, %v4591_v37, %v4569_v29  ;;  %vm4616_vm10 = vcmask 0  }
0x32a6   :  { %v4594_v20 = vsel %vm4593_vm3, %v4592_v1, %v4573_v23  ;;  %v4589_v54 = vpop.permute.xlu2 %4588 }
0x32ac   :  { %v4577_v40 = vpop.permute.xlu1 %4576 }
0x32ad   :  { %v4596_v7 = vsel %vm4595_vm4, %v4594_v20, %v4577_v40 }
0x32ae   :  { %v4598_v50 = vsel %vm4597_vm5, %v4596_v7, %v4581_v11 }
0x32b4   :  { %v4585_v28 = vpop.permute.xlu1 %4584 }
0x32b5   :  { %v4600_v63 = vsel %vm4599_vm6, %v4598_v50, %v4585_v28 }
0x32b6   :  { %v4602_v22 = vsel %vm4601_vm7, %v4600_v63, %v4589_v54 }
0x32b7   :  { %4603 = vst [vmem:[%s7837_s14] sm:$0xff] %v4602_v22 }
0x3307   :  { %v4607_v49 = vpop.xlane.xlu0 %4606 }
0x3308   :  { %v4608_v56 = vrot.slane %v4607_v49, 4 }
0x330a   :  { %v4609_v5 = vadd.f32 %v4608_v56, %v4607_v49 }
0x330c   :  { %v4610_v3 = vrot.slane %v4609_v5, 2 }
0x330e   :  { %v4611_v44 = vadd.f32 %v4610_v3, %v4609_v5 }
0x3310   :  { %v4612_v21 = vrot.slane %v4611_v44, 1 }
0x3312   :  { %v4613_v59 = vadd.f32 %v4612_v21, %v4611_v44 }
0x3314   :  { %4803 = vpush %v4613_v59 }
0x3345   :  { %s4804_s7 = spop %4803 }
0x3346   :  { %v4615_v17 = vstv %s4804_s7 }
0x3347   :  { %4617 = vst.msk [vmem:[#allocation17] sm:$0x1] %vm4616_vm10, %v4615_v17 }
0x3348   :  { %4630 = dma.vmem_to_hbm [thread:$0]  %s4626_s4, 16, %s4628_s6, [#allocation4]  }
0x3349   :  { %5710 = dma.done.wait [#allocation4], 16  }
0x334a   :  { %5711 = vsyncadd [#allocation4], 4294967280 }
0x334b   :  { %4637 = vsyncpa [#allocation3], 1 }
0x334c   :  { %4638 = vsyncpa [#allocation6], 1 }
0x334d   :  { %4639 = vsyncpa [#allocation9], 1 }
0x334e   :  { %4640 = vsyncpa [#allocation12], 1 }
0x334f   :  { %4641 = vsyncpa [#allocation15], 1 }
0x3350   :  { %4642 = vsyncpa [#allocation4], 1 }

</bundles_post_ra>
